<compile_context>
chip_gen: v5e
topology: v5e:2x2
jax: 0.10.0
libtpu: 0.0.40
codegen_flags: <defaults>
</compile_context>

<pallas_src>
import jax
import jax.numpy as jnp
import numpy as np
from jax import lax
from jax.experimental import pallas as pl
from jax.experimental.pallas import tpu as pltpu


def _relu6(v):
    return jnp.clip(v, 0.0, 6.0)


def _sigmoid(v):
    # sigmoid(v) == 0.5*tanh(0.5*v)+0.5 ; tanh runs on the EUP slot, keeping
    # the logistic's divide off the VALU.
    return 0.5 * jnp.tanh(0.5 * v) + 0.5


def _padt(W):
    # Halo rows for the flattened scratch: the ky=+-1 tap windows reach exactly
    # W rows past the interior, and the interior must start sublane-aligned.
    return ((W + 7) // 8) * 8


# ----------------------------------------------------------------------------
# Pallas kernel (built with static H, W)
# ----------------------------------------------------------------------------
def _build_kernel(H, W):
    HW = H * W
    PADT = _padt(W)
    assert PADT >= W and PADT % 8 == 0, "pad scratch needs >= W aligned halo rows"

    def kernel(fuse_ref,                               # SMEM (2,) fuse params
               res_ref, xup_ref,                       # (1,HW,Cin)/(1,HW,C) bf16
               w_pre_ref,                              # (Cin,C) bf16
               w_post_ref, post_b_ref,                 # (3,3C,C) bf16, (1,C)
               w_sc_ref,                               # (C,C) bf16 (BN folded)
               w_pa_ref, b_pa_ref,                     # (9,C), (1,C)
               w_ca1_ref, w_ca2_ref,                   # (C,Cr), (Cr,C)
               w_pjd_ref,                              # (9,C) (BN scale folded)
               w_pjp_ref,                              # (C,C) bf16
               final_b_ref,                            # (1,C) = sc_b + pj_b@w_pjp
               out_ref,                                # (1,HW,C)
               pad3_ref):                              # VMEM (HW+2*PADT,3C) bf16
        C = out_ref.shape[-1]

        # Zero the top/bottom halo strips (tiny: 2*PADT rows).  Unconditional
        # on purpose: with dimension_semantics=("parallel",) the grid may be
        # sharded across TensorCores (each with its own scratch), so a
        # program_id==0 guard would leave one core's halo uninitialised.
        z = jnp.zeros((PADT, 3 * C), jnp.bfloat16)
        pad3_ref[0:PADT, :] = z
        pad3_ref[PADT + HW:PADT + HW + PADT, :] = z

        # Horizontal-edge masks, hoisted once at full width (plain multiplies
        # in the scratch build; no per-tap broadcast/select).
        col = lax.broadcasted_iota(jnp.int32, (HW, 1), 0) % W
        mask_l = jnp.broadcast_to((col >= 1).astype(jnp.bfloat16), (HW, C))
        mask_r = jnp.broadcast_to((col < W - 1).astype(jnp.bfloat16), (HW, C))

        def fill_pad3(a_bf16):
            # Shifted-row scratch: interior row q holds [x[q-1] | x[q] | x[q+1]]
            # with horizontal wrap already zeroed, so every 3x3 tap is a plain
            # row-offset read (vertical halo comes from the zeroed strips).
            pad3_ref[PADT:PADT + HW, C:2 * C] = a_bf16
            lft = pad3_ref[PADT - 1:PADT - 1 + HW, C:2 * C]
            rgt = pad3_ref[PADT + 1:PADT + 1 + HW, C:2 * C]
            pad3_ref[PADT:PADT + HW, 0:C] = lft * mask_l
            pad3_ref[PADT:PADT + HW, 2 * C:3 * C] = rgt * mask_r

        def dw3x3(a_bf16, w9_ref):
            # Depthwise 3x3: 9 per-channel multiply-adds (VPU, f32 acc).
            fill_pad3(a_bf16)
            acc = None
            for ky in range(3):
                off = PADT + (ky - 1) * W
                for kx in range(3):
                    t = pad3_ref[off:off + HW, kx * C:(kx + 1) * C]
                    term = t * w9_ref[ky * 3 + kx:ky * 3 + kx + 1, :]
                    acc = term if acc is None else acc + term
            return acc

        # ---- fuse weights: relu + normalize (scalar math from SMEM) ----
        w0 = jnp.maximum(fuse_ref[0], 0.0)
        w1 = jnp.maximum(fuse_ref[1], 0.0)
        inv = 1.0 / (w0 + w1 + 1e-8)
        f0 = w0 * inv
        f1 = w1 * inv

        # pre_conv (1x1, no bias) + weighted fusion (f32)
        pre = jnp.dot(res_ref[0], w_pre_ref[...],
                      preferred_element_type=jnp.float32)
        x0 = f0 * pre + f1 * xup_ref[0].astype(jnp.float32)

        # post_conv (3x3, folded BN, ReLU6): 3 accumulated (HW,3C)@(3C,C)
        # bf16 matmuls over contiguous row windows of the shifted-row scratch.
        fill_pad3(x0.astype(jnp.bfloat16))
        x1 = None
        for ky in range(3):
            off = PADT + (ky - 1) * W
            part = jnp.dot(pad3_ref[off:off + HW, :], w_post_ref[ky],
                           preferred_element_type=jnp.float32)
            x1 = part if x1 is None else x1 + part
        x1 = _relu6(x1 + post_b_ref[...])
        x1_bf = x1.astype(jnp.bfloat16)

        # shortcut 1x1 (BN scale folded into w_sc; bias lives in final_b):
        # issued right after x1 so the MXU work overlaps the VPU-heavy
        # depthwise / gating section below.
        sc = jnp.dot(x1_bf, w_sc_ref[...], preferred_element_type=jnp.float32)

        # CA: global avg pool -> 1x1 -> ReLU6 -> 1x1 -> sigmoid  (tiny)
        gap = jnp.mean(x1, axis=0, keepdims=True)
        hid = _relu6(jnp.dot(gap, w_ca1_ref[...],
                             preferred_element_type=jnp.float32))
        att = _sigmoid(jnp.dot(hid, w_ca2_ref[...],
                               preferred_element_type=jnp.float32))

        # PA gate + fused combine: y = (sigmoid(dw3x3(x1)+b_pa) + att) * x1
        gate = _sigmoid(dw3x3(x1_bf, w_pa_ref) + b_pa_ref[...])
        y = (gate + att) * x1

        # proj (SeparableConvBN): depthwise 3x3 (BN scale folded) -> pointwise
        dwp = dw3x3(y.astype(jnp.bfloat16), w_pjd_ref)
        proj = jnp.dot(dwp.astype(jnp.bfloat16), w_pjp_ref[...],
                       preferred_element_type=jnp.float32)

        out_ref[...] = _relu6(proj + sc + final_b_ref[...]).reshape(1, HW, C)

    return kernel


# ----------------------------------------------------------------------------
# Wrapper
# ----------------------------------------------------------------------------
def feature_refinement_head(x_nhwc, res_nhwc, params):
    N, h, w, C = x_nhwc.shape
    H, W = 2 * h, 2 * w
    HW = H * W
    Cin = res_nhwc.shape[-1]
    assert params["w_pre"].shape == (Cin, C)
    assert HW % 8 == 0
    PADT = _padt(W)

    # F.interpolate(scale_factor=2, mode='bilinear', align_corners=False)
    # (half-pixel) == jax.image.resize 'bilinear'.  Glue, not kernel.
    # TODO(synk): fuse the 2x bilinear upsample into the kernel; the horizontal
    # interleave needs a sublane<->lane relayout in the flattened (HW,C)
    # layout, so it stays in the wrapper.  The kernel-facing copies are bf16
    # to halve the HBM traffic of this mem-bound stage.
    xup = jax.image.resize(x_nhwc, (N, H, W, C), method="bilinear")
    xup2 = xup.reshape(N, HW, C).astype(jnp.bfloat16)
    res2 = res_nhwc.reshape(N, HW, Cin).astype(jnp.bfloat16)

    # ---- fold BN scales into the weights; bf16 copies for MXU operands ----
    w_pre_bf = params["w_pre"].astype(jnp.bfloat16)
    w_post3 = (params["w_post9"] * params["post_s"].reshape(1, 1, C))
    w_post3 = w_post3.reshape(3, 3 * C, C).astype(jnp.bfloat16)
    w_sc_bf = (params["w_sc"] * params["sc_s"]).astype(jnp.bfloat16)
    w_pjd = params["w_pjd9"] * params["pj_s"]
    w_pjp_bf = params["w_pjp"].astype(jnp.bfloat16)
    # proj-BN bias pushed through the pointwise conv + shortcut-BN bias,
    # merged into a single final bias added before the last ReLU6.
    final_b = params["sc_b"] + params["pj_b"] @ params["w_pjp"]

    ins = [res2, xup2,
           w_pre_bf,
           w_post3, params["post_b"],
           w_sc_bf,
           params["w_pa9"], params["b_pa"],
           params["w_ca1"], params["w_ca2"],
           w_pjd,
           w_pjp_bf,
           final_b]

    def img_spec(c):
        return pl.BlockSpec((1, HW, c), lambda n, *_: (n, 0, 0))

    def full_spec(a):
        nd = a.ndim
        return pl.BlockSpec(a.shape, lambda n, *_: (0,) * nd)

    in_specs = [img_spec(Cin), img_spec(C)] + [full_spec(a) for a in ins[2:]]

    # Rough VMEM budget: double-buffered image blocks + weights + the
    # shifted-row scratch, with headroom (v5e default scoped window is only
    # 16 MiB; v7x physical VMEM is 64 MiB).
    def nbytes(a):
        return a.size * a.dtype.itemsize
    est = (2 * (nbytes(res2) // N + nbytes(xup2) // N + HW * C * 4)
           + 2 * sum(nbytes(a) for a in ins[2:])
           + (HW + 2 * PADT) * 3 * C * 2)
    vmem_limit = int(min(96 * 2 ** 20, max(32 * 2 ** 20, 2 * est)))

    # TODO(synk): at realistic resolutions add a spatial (row-block) grid axis
    # with a 1-row halo so the working set tiles into v7x's 64 MiB VMEM and
    # both TensorCores stay busy when N is small.
    grid_spec = pltpu.PrefetchScalarGridSpec(
        num_scalar_prefetch=1,                  # fuse weights live in SMEM
        grid=(N,),
        in_specs=in_specs,
        out_specs=img_spec(C),
        scratch_shapes=[pltpu.VMEM((HW + 2 * PADT, 3 * C), jnp.bfloat16)],
    )

    out = pl.pallas_call(
        _build_kernel(H, W),
        out_shape=jax.ShapeDtypeStruct((N, HW, C), jnp.float32),
        grid_spec=grid_spec,
        compiler_params=pltpu.CompilerParams(
            dimension_semantics=("parallel",),
            vmem_limit_bytes=vmem_limit),
    )(params["fuse_w"], *ins)
    return out.reshape(N, H, W, C)


# ----------------------------------------------------------------------------
# Deterministic parameter construction (synthetic; BN folded to scale/bias)
# ----------------------------------------------------------------------------
def make_params(key, Cin, C, Cr):
    keys = iter(jax.random.split(key, 32))

    def nrm(shape, s):
        return (s * jax.random.normal(next(keys), shape)).astype(jnp.float32)

    def bn_fold():
        gamma = 1.0 + 0.1 * jax.random.normal(next(keys), (C,))
        beta = 0.1 * jax.random.normal(next(keys), (C,))
        mean = 0.1 * jax.random.normal(next(keys), (C,))
        var = 1.0 + 0.5 * jax.random.uniform(next(keys), (C,))
        scale = gamma * lax.rsqrt(var + 1e-5)
        bias = beta - mean * scale
        return (scale.reshape(1, C).astype(jnp.float32),
                bias.reshape(1, C).astype(jnp.float32))

    p = {}
    p["fuse_w"] = jnp.array([0.7, 1.3], dtype=jnp.float32)   # nn.Parameter (2,)
    # pre_conv: Conv(in,C,1) bias=False: torch (C,Cin,1,1) -> (Cin,C)
    p["w_pre"] = nrm((Cin, C), 0.15)
    # post_conv: ConvBNReLU 3x3 -> weights as (ky*3+kx, Cin, Cout) == HWIO flat
    p["w_post9"] = nrm((9, C, C), 0.05)
    p["post_s"], p["post_b"] = bn_fold()
    # shortcut: ConvBN 1x1
    p["w_sc"] = nrm((C, C), 0.15)
    p["sc_s"], p["sc_b"] = bn_fold()
    # pa: depthwise 3x3 (bias=True) + sigmoid
    p["w_pa9"] = nrm((9, C), 0.25)
    p["b_pa"] = nrm((1, C), 0.1)
    # ca: 1x1 (no bias) -> ReLU6 -> 1x1 (no bias) -> sigmoid
    p["w_ca1"] = nrm((C, Cr), 0.3)
    p["w_ca2"] = nrm((Cr, C), 0.3)
    # proj: SeparableConvBN = dw3x3 (no bias) -> BN -> pw1x1 (no bias)
    p["w_pjd9"] = nrm((9, C), 0.25)
    p["pj_s"], p["pj_b"] = bn_fold()
    p["w_pjp"] = nrm((C, C), 0.15)
    return p


# ----------------------------------------------------------------------------
# Pure-JAX reference (for numerical verification of the kernel)
# ----------------------------------------------------------------------------
def reference(x_nhwc, res_nhwc, p):
    N, h, w, _ = x_nhwc.shape
    H, W = 2 * h, 2 * w
    C = p["w_pre"].shape[1]
    xup = jax.image.resize(x_nhwc, (N, H, W, x_nhwc.shape[-1]),
                           method="bilinear")
    wts = jnp.maximum(p["fuse_w"], 0.0)
    fuse = wts / (jnp.sum(wts) + 1e-8)

    def conv1x1(v, wmat):
        return jnp.einsum("nhwc,cd->nhwd", v, wmat,
                          precision=lax.Precision.HIGHEST)

    dn = ("NHWC", "HWIO", "NHWC")

    def conv3x3(v, w_hwio):
        return lax.conv_general_dilated(v, w_hwio, (1, 1), "SAME",
                                        dimension_numbers=dn,
                                        precision=lax.Precision.HIGHEST)

    def dwconv3x3(v, w_hwio):
        return lax.conv_general_dilated(v, w_hwio, (1, 1), "SAME",
                                        dimension_numbers=dn,
                                        feature_group_count=C,
                                        precision=lax.Precision.HIGHEST)

    pre = conv1x1(res_nhwc, p["w_pre"])
    x0 = fuse[0] * pre + fuse[1] * xup
    x1 = _relu6(conv3x3(x0, p["w_post9"].reshape(3, 3, C, C)) * p["post_s"]
                + p["post_b"])
    sc = conv1x1(x1, p["w_sc"]) * p["sc_s"] + p["sc_b"]
    pa = jax.nn.sigmoid(dwconv3x3(x1, p["w_pa9"].reshape(3, 3, 1, C))
                        + p["b_pa"]) * x1
    gap = jnp.mean(x1, axis=(1, 2), keepdims=True)
    hid = _relu6(conv1x1(gap, p["w_ca1"]))
    att = jax.nn.sigmoid(conv1x1(hid, p["w_ca2"]))
    ca = att * x1
    y = pa + ca
    dw = (dwconv3x3(y, p["w_pjd9"].reshape(3, 3, 1, C)) * p["pj_s"]
          + p["pj_b"])
    proj = conv1x1(dw, p["w_pjp"])
    return _relu6(proj + sc)


if __name__ == "__main__":
    key = jax.random.PRNGKey(0)
    k1, k2, kp = jax.random.split(key, 3)

    # Module defaults: in_channels=64, decode_channels=64; small spatial dims.
    N, Cin, h, w = 2, 64, 8, 8          # x  : (N, C, 8, 8)   NCHW
    C = 64                              # decode_channels
    Cr = C // 16

    x_nchw = jax.random.normal(k1, (N, C, h, w), jnp.float32)
    res_nchw = jax.random.normal(k2, (N, Cin, 2 * h, 2 * w), jnp.float32)

    # NCHW -> NHWC for the kernel
    x = jnp.transpose(x_nchw, (0, 2, 3, 1))
    res = jnp.transpose(res_nchw, (0, 2, 3, 1))

    params = make_params(kp, Cin, C, Cr)

    out = feature_refinement_head(x, res, params)
    out = jax.block_until_ready(out)
    assert out.shape == (N, 2 * h, 2 * w, C)

    # bf16 MXU operands + bf16 shifted-row scratch vs f32 HIGHEST reference.
    ref = reference(x, res, params)
    np.testing.assert_allclose(np.asarray(out), np.asarray(ref),
                               rtol=5e-2, atol=1e-1)
    print("KERNEL_OK")
</pallas_src>

<mosaic_0001>
module attributes {stable_mosaic.version = 11 : i64} {
  func.func @kernel(%arg0: i32, %arg1: memref<2xf32, #tpu.memory_space<smem>>, %arg2: memref<1x256x64xbf16, #tpu.memory_space<vmem>>, %arg3: memref<1x256x64xbf16, #tpu.memory_space<vmem>>, %arg4: memref<64x64xbf16, #tpu.memory_space<vmem>>, %arg5: memref<3x192x64xbf16, #tpu.memory_space<vmem>>, %arg6: memref<1x64xf32, #tpu.memory_space<vmem>>, %arg7: memref<64x64xbf16, #tpu.memory_space<vmem>>, %arg8: memref<9x64xf32, #tpu.memory_space<vmem>>, %arg9: memref<1x64xf32, #tpu.memory_space<vmem>>, %arg10: memref<64x4xf32, #tpu.memory_space<vmem>>, %arg11: memref<4x64xf32, #tpu.memory_space<vmem>>, %arg12: memref<9x64xf32, #tpu.memory_space<vmem>>, %arg13: memref<64x64xbf16, #tpu.memory_space<vmem>>, %arg14: memref<1x64xf32, #tpu.memory_space<vmem>>, %arg15: memref<1x256x64xf32, #tpu.memory_space<vmem>>, %arg16: memref<288x192xbf16, #tpu.memory_space<vmem>>) attributes {dimension_semantics = [#tpu.dimension_semantics<parallel>], iteration_bounds = array<i64: 2>, scalar_prefetch = 1 : i64, scratch_operands = 1 : i64, tpu.core_type = #tpu.core_type<tc>, window_params = [{transform_indices = @transform_0, window_bounds = array<i64: 1, 256, 64>}, {transform_indices = @transform_1, window_bounds = array<i64: 1, 256, 64>}, {pipeline_mode = #tpu.pipeline_mode<synchronous>, transform_indices = @transform_2, window_bounds = array<i64: 64, 64>}, {pipeline_mode = #tpu.pipeline_mode<synchronous>, transform_indices = @transform_3, window_bounds = array<i64: 3, 192, 64>}, {pipeline_mode = #tpu.pipeline_mode<synchronous>, transform_indices = @transform_4, window_bounds = array<i64: 1, 64>}, {pipeline_mode = #tpu.pipeline_mode<synchronous>, transform_indices = @transform_5, window_bounds = array<i64: 64, 64>}, {pipeline_mode = #tpu.pipeline_mode<synchronous>, transform_indices = @transform_6, window_bounds = array<i64: 9, 64>}, {pipeline_mode = #tpu.pipeline_mode<synchronous>, transform_indices = @transform_7, window_bounds = array<i64: 1, 64>}, {pipeline_mode = #tpu.pipeline_mode<synchronous>, transform_indices = @transform_8, window_bounds = array<i64: 64, 4>}, {pipeline_mode = #tpu.pipeline_mode<synchronous>, transform_indices = @transform_9, window_bounds = array<i64: 4, 64>}, {pipeline_mode = #tpu.pipeline_mode<synchronous>, transform_indices = @transform_10, window_bounds = array<i64: 9, 64>}, {pipeline_mode = #tpu.pipeline_mode<synchronous>, transform_indices = @transform_11, window_bounds = array<i64: 64, 64>}, {pipeline_mode = #tpu.pipeline_mode<synchronous>, transform_indices = @transform_12, window_bounds = array<i64: 1, 64>}, {transform_indices = @transform_13, window_bounds = array<i64: 1, 256, 64>}]} {
    %cst = arith.constant 0.000000e+00 : bf16
    %0 = vector.broadcast %cst : bf16 to vector<16x192xbf16>
    %c0 = arith.constant 0 : index
    %c0_0 = arith.constant 0 : index
    %1 = vector.load %arg16[%c0, %c0_0] : memref<288x192xbf16, #tpu.memory_space<vmem>>, vector<16x192xbf16>
    tpu.vector_store %arg16[%c0, %c0_0], %0 {strides = array<i32>} : memref<288x192xbf16, #tpu.memory_space<vmem>>, vector<16x192xbf16>,
    %c272 = arith.constant 272 : index
    %c0_1 = arith.constant 0 : index
    %2 = vector.load %arg16[%c272, %c0_1] : memref<288x192xbf16, #tpu.memory_space<vmem>>, vector<16x192xbf16>
    tpu.vector_store %arg16[%c272, %c0_1], %0 {strides = array<i32>} : memref<288x192xbf16, #tpu.memory_space<vmem>>, vector<16x192xbf16>,
    %3 = tpu.iota {dimensions = array<i32: 0>} : vector<256x1xi32>
    %c16_i32 = arith.constant 16 : i32
    %c0_i32 = arith.constant 0 : i32
    %4 = arith.cmpi eq, %c16_i32, %c0_i32 : i32
    %c1_i32 = arith.constant 1 : i32
    %5 = arith.select %4, %c1_i32, %c16_i32 : i32
    %6 = vector.broadcast %5 : i32 to vector<256x1xi32>
    %7 = arith.remsi %3, %6 : vector<256x1xi32>
    %c0_i32_2 = arith.constant 0 : i32
    %8 = vector.broadcast %c0_i32_2 : i32 to vector<256x1xi32>
    %9 = arith.cmpi ne, %7, %8 : vector<256x1xi32>
    %c0_i32_3 = arith.constant 0 : i32
    %10 = vector.broadcast %c0_i32_3 : i32 to vector<256x1xi32>
    %11 = arith.cmpi slt, %7, %10 : vector<256x1xi32>
    %c0_i32_4 = arith.constant 0 : i32
    %12 = arith.cmpi slt, %5, %c0_i32_4 : i32
    %13 = vector.broadcast %12 : i1 to vector<256x1xi1>
    %14 = vector.broadcast %13 : vector<256x1xi1> to vector<256x1xi1>
    %15 = arith.xori %11, %14 : vector<256x1xi1>
    %16 = arith.andi %15, %9 : vector<256x1xi1>
    %17 = vector.broadcast %5 : i32 to vector<256x1xi32>
    %18 = arith.addi %7, %17 : vector<256x1xi32>
    %19 = arith.select %16, %18, %7 : vector<256x1xi1>, vector<256x1xi32>
    %c1_i32_5 = arith.constant 1 : i32
    %20 = vector.broadcast %c1_i32_5 : i32 to vector<256x1xi32>
    %21 = arith.cmpi sge, %19, %20 : vector<256x1xi32>
    %22 = arith.extui %21 : vector<256x1xi1> to vector<256x1xi32>
    %23 = arith.sitofp %22 : vector<256x1xi32> to vector<256x1xf32>
    %24 = arith.truncf %23 : vector<256x1xf32> to vector<256x1xbf16>
    %25 = vector.shape_cast %24 : vector<256x1xbf16> to vector<256x1xbf16>
    %26 = vector.broadcast %25 : vector<256x1xbf16> to vector<256x64xbf16>
    %c15_i32 = arith.constant 15 : i32
    %27 = vector.broadcast %c15_i32 : i32 to vector<256x1xi32>
    %28 = arith.cmpi slt, %19, %27 : vector<256x1xi32>
    %29 = arith.extui %28 : vector<256x1xi1> to vector<256x1xi32>
    %30 = arith.sitofp %29 : vector<256x1xi32> to vector<256x1xf32>
    %31 = arith.truncf %30 : vector<256x1xf32> to vector<256x1xbf16>
    %32 = vector.shape_cast %31 : vector<256x1xbf16> to vector<256x1xbf16>
    %33 = vector.broadcast %32 : vector<256x1xbf16> to vector<256x64xbf16>
    %c0_6 = arith.constant 0 : index
    %34 = memref.load %arg1[%c0_6] : memref<2xf32, #tpu.memory_space<smem>>
    %cst_7 = arith.constant 0.000000e+00 : f32
    %35 = arith.maximumf %34, %cst_7 : f32
    %c1 = arith.constant 1 : index
    %36 = memref.load %arg1[%c1] : memref<2xf32, #tpu.memory_space<smem>>
    %cst_8 = arith.constant 0.000000e+00 : f32
    %37 = arith.maximumf %36, %cst_8 : f32
    %38 = arith.addf %35, %37 : f32
    %cst_9 = arith.constant 9.99999993E-9 : f32
    %39 = arith.addf %38, %cst_9 : f32
    %cst_10 = arith.constant 1.000000e+00 : f32
    %40 = arith.divf %cst_10, %39 : f32
    %41 = arith.mulf %35, %40 : f32
    %42 = arith.mulf %37, %40 : f32
    %c0_11 = arith.constant 0 : index
    %c0_12 = arith.constant 0 : index
    %c0_13 = arith.constant 0 : index
    %43 = vector.load %arg2[%c0_11, %c0_12, %c0_13] : memref<1x256x64xbf16, #tpu.memory_space<vmem>>, vector<1x256x64xbf16>
    %44 = vector.shape_cast %43 : vector<1x256x64xbf16> to vector<256x64xbf16>
    %c0_14 = arith.constant 0 : index
    %c0_15 = arith.constant 0 : index
    %45 = vector.load %arg4[%c0_14, %c0_15] : memref<64x64xbf16, #tpu.memory_space<vmem>>, vector<64x64xbf16>
    %cst_16 = arith.constant dense<0.000000e+00> : vector<256x64xf32>
    %46 = tpu.matmul %44, %45, %cst_16 {dimension_numbers = #tpu.dot_dimension_numbers<[1], [0], [0], [1], [0, 0, 1, 1], [], []>} : vector<256x64xbf16>, vector<64x64xbf16>, vector<256x64xf32> -> vector<256x64xf32>
    %47 = vector.broadcast %41 : f32 to vector<256x64xf32>
    %48 = arith.mulf %47, %46 : vector<256x64xf32>
    %c0_17 = arith.constant 0 : index
    %c0_18 = arith.constant 0 : index
    %c0_19 = arith.constant 0 : index
    %49 = vector.load %arg3[%c0_17, %c0_18, %c0_19] : memref<1x256x64xbf16, #tpu.memory_space<vmem>>, vector<1x256x64xbf16>
    %50 = vector.shape_cast %49 : vector<1x256x64xbf16> to vector<256x64xbf16>
    %51 = arith.extf %50 : vector<256x64xbf16> to vector<256x64xf32>
    %52 = vector.broadcast %42 : f32 to vector<256x64xf32>
    %53 = arith.mulf %52, %51 : vector<256x64xf32>
    %54 = arith.addf %48, %53 : vector<256x64xf32>
    %55 = arith.truncf %54 : vector<256x64xf32> to vector<256x64xbf16>
    %c16 = arith.constant 16 : index
    %c64 = arith.constant 64 : index
    %56 = vector.load %arg16[%c16, %c64] : memref<288x192xbf16, #tpu.memory_space<vmem>>, vector<256x64xbf16>
    tpu.vector_store %arg16[%c16, %c64], %55 {strides = array<i32>} : memref<288x192xbf16, #tpu.memory_space<vmem>>, vector<256x64xbf16>,
    %c15 = arith.constant 15 : index
    %c64_20 = arith.constant 64 : index
    %57 = vector.load %arg16[%c15, %c64_20] : memref<288x192xbf16, #tpu.memory_space<vmem>>, vector<256x64xbf16>
    %c17 = arith.constant 17 : index
    %c64_21 = arith.constant 64 : index
    %58 = vector.load %arg16[%c17, %c64_21] : memref<288x192xbf16, #tpu.memory_space<vmem>>, vector<256x64xbf16>
    %59 = arith.mulf %57, %26 : vector<256x64xbf16>
    %c16_22 = arith.constant 16 : index
    %c0_23 = arith.constant 0 : index
    %60 = vector.load %arg16[%c16_22, %c0_23] : memref<288x192xbf16, #tpu.memory_space<vmem>>, vector<256x64xbf16>
    tpu.vector_store %arg16[%c16_22, %c0_23], %59 {strides = array<i32>} : memref<288x192xbf16, #tpu.memory_space<vmem>>, vector<256x64xbf16>,
    %61 = arith.mulf %58, %33 : vector<256x64xbf16>
    %c16_24 = arith.constant 16 : index
    %c128 = arith.constant 128 : index
    %62 = vector.load %arg16[%c16_24, %c128] : memref<288x192xbf16, #tpu.memory_space<vmem>>, vector<256x64xbf16>
    tpu.vector_store %arg16[%c16_24, %c128], %61 {strides = array<i32>} : memref<288x192xbf16, #tpu.memory_space<vmem>>, vector<256x64xbf16>,
    %c0_25 = arith.constant 0 : index
    %c0_26 = arith.constant 0 : index
    %63 = vector.load %arg16[%c0_25, %c0_26] : memref<288x192xbf16, #tpu.memory_space<vmem>>, vector<256x192xbf16>
    %c0_27 = arith.constant 0 : index
    %c0_28 = arith.constant 0 : index
    %c0_29 = arith.constant 0 : index
    %64 = vector.load %arg5[%c0_27, %c0_28, %c0_29] : memref<3x192x64xbf16, #tpu.memory_space<vmem>>, vector<1x192x64xbf16>
    %65 = vector.shape_cast %64 : vector<1x192x64xbf16> to vector<192x64xbf16>
    %cst_30 = arith.constant dense<0.000000e+00> : vector<256x64xf32>
    %66 = tpu.matmul %63, %65, %cst_30 {dimension_numbers = #tpu.dot_dimension_numbers<[1], [0], [0], [1], [0, 0, 1, 1], [], []>} : vector<256x192xbf16>, vector<192x64xbf16>, vector<256x64xf32> -> vector<256x64xf32>
    %c16_31 = arith.constant 16 : index
    %c0_32 = arith.constant 0 : index
    %67 = vector.load %arg16[%c16_31, %c0_32] : memref<288x192xbf16, #tpu.memory_space<vmem>>, vector<256x192xbf16>
    %c1_33 = arith.constant 1 : index
    %c0_34 = arith.constant 0 : index
    %c0_35 = arith.constant 0 : index
    %68 = vector.load %arg5[%c1_33, %c0_34, %c0_35] : memref<3x192x64xbf16, #tpu.memory_space<vmem>>, vector<1x192x64xbf16>
    %69 = vector.shape_cast %68 : vector<1x192x64xbf16> to vector<192x64xbf16>
    %cst_36 = arith.constant dense<0.000000e+00> : vector<256x64xf32>
    %70 = tpu.matmul %67, %69, %cst_36 {dimension_numbers = #tpu.dot_dimension_numbers<[1], [0], [0], [1], [0, 0, 1, 1], [], []>} : vector<256x192xbf16>, vector<192x64xbf16>, vector<256x64xf32> -> vector<256x64xf32>
    %71 = arith.addf %66, %70 : vector<256x64xf32>
    %c32 = arith.constant 32 : index
    %c0_37 = arith.constant 0 : index
    %72 = vector.load %arg16[%c32, %c0_37] : memref<288x192xbf16, #tpu.memory_space<vmem>>, vector<256x192xbf16>
    %c2 = arith.constant 2 : index
    %c0_38 = arith.constant 0 : index
    %c0_39 = arith.constant 0 : index
    %73 = vector.load %arg5[%c2, %c0_38, %c0_39] : memref<3x192x64xbf16, #tpu.memory_space<vmem>>, vector<1x192x64xbf16>
    %74 = vector.shape_cast %73 : vector<1x192x64xbf16> to vector<192x64xbf16>
    %cst_40 = arith.constant dense<0.000000e+00> : vector<256x64xf32>
    %75 = tpu.matmul %72, %74, %cst_40 {dimension_numbers = #tpu.dot_dimension_numbers<[1], [0], [0], [1], [0, 0, 1, 1], [], []>} : vector<256x192xbf16>, vector<192x64xbf16>, vector<256x64xf32> -> vector<256x64xf32>
    %76 = arith.addf %71, %75 : vector<256x64xf32>
    %c0_41 = arith.constant 0 : index
    %c0_42 = arith.constant 0 : index
    %77 = vector.load %arg6[%c0_41, %c0_42] : memref<1x64xf32, #tpu.memory_space<vmem>>, vector<1x64xf32>
    %78 = vector.broadcast %77 : vector<1x64xf32> to vector<256x64xf32>
    %79 = arith.addf %76, %78 : vector<256x64xf32>
    %cst_43 = arith.constant 0.000000e+00 : f32
    %cst_44 = arith.constant 6.000000e+00 : f32
    %80 = vector.broadcast %cst_43 : f32 to vector<256x64xf32>
    %81 = arith.maximumf %80, %79 : vector<256x64xf32>
    %82 = vector.broadcast %cst_44 : f32 to vector<256x64xf32>
    %83 = arith.minimumf %82, %81 : vector<256x64xf32>
    %84 = arith.truncf %83 : vector<256x64xf32> to vector<256x64xbf16>
    %c0_45 = arith.constant 0 : index
    %c0_46 = arith.constant 0 : index
    %85 = vector.load %arg7[%c0_45, %c0_46] : memref<64x64xbf16, #tpu.memory_space<vmem>>, vector<64x64xbf16>
    %cst_47 = arith.constant dense<0.000000e+00> : vector<256x64xf32>
    %86 = tpu.matmul %84, %85, %cst_47 {dimension_numbers = #tpu.dot_dimension_numbers<[1], [0], [0], [1], [0, 0, 1, 1], [], []>} : vector<256x64xbf16>, vector<64x64xbf16>, vector<256x64xf32> -> vector<256x64xf32>
    %cst_48 = arith.constant dense<0.000000e+00> : vector<64xf32>
    %87 = vector.multi_reduction <add>, %83, %cst_48 [0] : vector<256x64xf32> to vector<64xf32>
    %88 = vector.shape_cast %87 : vector<64xf32> to vector<1x64xf32>
    %cst_49 = arith.constant 2.560000e+02 : f32
    %89 = vector.broadcast %cst_49 : f32 to vector<1x64xf32>
    %90 = arith.divf %88, %89 : vector<1x64xf32>
    %c0_50 = arith.constant 0 : index
    %c0_51 = arith.constant 0 : index
    %91 = vector.load %arg10[%c0_50, %c0_51] : memref<64x4xf32, #tpu.memory_space<vmem>>, vector<64x4xf32>
    %cst_52 = arith.constant dense<0.000000e+00> : vector<1x4xf32>
    %92 = tpu.matmul %90, %91, %cst_52 {dimension_numbers = #tpu.dot_dimension_numbers<[1], [0], [0], [1], [0, 0, 1, 1], [], []>} : vector<1x64xf32>, vector<64x4xf32>, vector<1x4xf32> -> vector<1x4xf32>
    %cst_53 = arith.constant 0.000000e+00 : f32
    %cst_54 = arith.constant 6.000000e+00 : f32
    %93 = vector.broadcast %cst_53 : f32 to vector<1x4xf32>
    %94 = arith.maximumf %93, %92 : vector<1x4xf32>
    %95 = vector.broadcast %cst_54 : f32 to vector<1x4xf32>
    %96 = arith.minimumf %95, %94 : vector<1x4xf32>
    %c0_55 = arith.constant 0 : index
    %c0_56 = arith.constant 0 : index
    %97 = vector.load %arg11[%c0_55, %c0_56] : memref<4x64xf32, #tpu.memory_space<vmem>>, vector<4x64xf32>
    %cst_57 = arith.constant dense<0.000000e+00> : vector<1x64xf32>
    %98 = tpu.matmul %96, %97, %cst_57 {dimension_numbers = #tpu.dot_dimension_numbers<[1], [0], [0], [1], [0, 0, 1, 1], [], []>} : vector<1x4xf32>, vector<4x64xf32>, vector<1x64xf32> -> vector<1x64xf32>
    %cst_58 = arith.constant 5.000000e-01 : f32
    %99 = vector.broadcast %cst_58 : f32 to vector<1x64xf32>
    %100 = arith.mulf %99, %98 : vector<1x64xf32>
    %101 = math.tanh %100 : vector<1x64xf32>
    %cst_59 = arith.constant 5.000000e-01 : f32
    %102 = vector.broadcast %cst_59 : f32 to vector<1x64xf32>
    %103 = arith.mulf %102, %101 : vector<1x64xf32>
    %cst_60 = arith.constant 5.000000e-01 : f32
    %104 = vector.broadcast %cst_60 : f32 to vector<1x64xf32>
    %105 = arith.addf %103, %104 : vector<1x64xf32>
    %c16_61 = arith.constant 16 : index
    %c64_62 = arith.constant 64 : index
    %106 = vector.load %arg16[%c16_61, %c64_62] : memref<288x192xbf16, #tpu.memory_space<vmem>>, vector<256x64xbf16>
    tpu.vector_store %arg16[%c16_61, %c64_62], %84 {strides = array<i32>} : memref<288x192xbf16, #tpu.memory_space<vmem>>, vector<256x64xbf16>,
    %c15_63 = arith.constant 15 : index
    %c64_64 = arith.constant 64 : index
    %107 = vector.load %arg16[%c15_63, %c64_64] : memref<288x192xbf16, #tpu.memory_space<vmem>>, vector<256x64xbf16>
    %c17_65 = arith.constant 17 : index
    %c64_66 = arith.constant 64 : index
    %108 = vector.load %arg16[%c17_65, %c64_66] : memref<288x192xbf16, #tpu.memory_space<vmem>>, vector<256x64xbf16>
    %109 = arith.mulf %107, %26 : vector<256x64xbf16>
    %c16_67 = arith.constant 16 : index
    %c0_68 = arith.constant 0 : index
    %110 = vector.load %arg16[%c16_67, %c0_68] : memref<288x192xbf16, #tpu.memory_space<vmem>>, vector<256x64xbf16>
    tpu.vector_store %arg16[%c16_67, %c0_68], %109 {strides = array<i32>} : memref<288x192xbf16, #tpu.memory_space<vmem>>, vector<256x64xbf16>,
    %111 = arith.mulf %108, %33 : vector<256x64xbf16>
    %c16_69 = arith.constant 16 : index
    %c128_70 = arith.constant 128 : index
    %112 = vector.load %arg16[%c16_69, %c128_70] : memref<288x192xbf16, #tpu.memory_space<vmem>>, vector<256x64xbf16>
    tpu.vector_store %arg16[%c16_69, %c128_70], %111 {strides = array<i32>} : memref<288x192xbf16, #tpu.memory_space<vmem>>, vector<256x64xbf16>,
    %c0_71 = arith.constant 0 : index
    %c0_72 = arith.constant 0 : index
    %113 = vector.load %arg16[%c0_71, %c0_72] : memref<288x192xbf16, #tpu.memory_space<vmem>>, vector<256x64xbf16>
    %c0_73 = arith.constant 0 : index
    %c0_74 = arith.constant 0 : index
    %114 = vector.load %arg8[%c0_73, %c0_74] : memref<9x64xf32, #tpu.memory_space<vmem>>, vector<1x64xf32>
    %115 = arith.extf %113 : vector<256x64xbf16> to vector<256x64xf32>
    %116 = vector.broadcast %114 : vector<1x64xf32> to vector<256x64xf32>
    %117 = arith.mulf %115, %116 : vector<256x64xf32>
    %c0_75 = arith.constant 0 : index
    %c64_76 = arith.constant 64 : index
    %118 = vector.load %arg16[%c0_75, %c64_76] : memref<288x192xbf16, #tpu.memory_space<vmem>>, vector<256x64xbf16>
    %c1_77 = arith.constant 1 : index
    %c0_78 = arith.constant 0 : index
    %119 = vector.load %arg8[%c1_77, %c0_78] : memref<9x64xf32, #tpu.memory_space<vmem>>, vector<1x64xf32>
    %120 = arith.extf %118 : vector<256x64xbf16> to vector<256x64xf32>
    %121 = vector.broadcast %119 : vector<1x64xf32> to vector<256x64xf32>
    %122 = arith.mulf %120, %121 : vector<256x64xf32>
    %123 = arith.addf %117, %122 : vector<256x64xf32>
    %c0_79 = arith.constant 0 : index
    %c128_80 = arith.constant 128 : index
    %124 = vector.load %arg16[%c0_79, %c128_80] : memref<288x192xbf16, #tpu.memory_space<vmem>>, vector<256x64xbf16>
    %c2_81 = arith.constant 2 : index
    %c0_82 = arith.constant 0 : index
    %125 = vector.load %arg8[%c2_81, %c0_82] : memref<9x64xf32, #tpu.memory_space<vmem>>, vector<1x64xf32>
    %126 = arith.extf %124 : vector<256x64xbf16> to vector<256x64xf32>
    %127 = vector.broadcast %125 : vector<1x64xf32> to vector<256x64xf32>
    %128 = arith.mulf %126, %127 : vector<256x64xf32>
    %129 = arith.addf %123, %128 : vector<256x64xf32>
    %c16_83 = arith.constant 16 : index
    %c0_84 = arith.constant 0 : index
    %130 = vector.load %arg16[%c16_83, %c0_84] : memref<288x192xbf16, #tpu.memory_space<vmem>>, vector<256x64xbf16>
    %c3 = arith.constant 3 : index
    %c0_85 = arith.constant 0 : index
    %131 = vector.load %arg8[%c3, %c0_85] : memref<9x64xf32, #tpu.memory_space<vmem>>, vector<1x64xf32>
    %132 = arith.extf %130 : vector<256x64xbf16> to vector<256x64xf32>
    %133 = vector.broadcast %131 : vector<1x64xf32> to vector<256x64xf32>
    %134 = arith.mulf %132, %133 : vector<256x64xf32>
    %135 = arith.addf %129, %134 : vector<256x64xf32>
    %c16_86 = arith.constant 16 : index
    %c64_87 = arith.constant 64 : index
    %136 = vector.load %arg16[%c16_86, %c64_87] : memref<288x192xbf16, #tpu.memory_space<vmem>>, vector<256x64xbf16>
    %c4 = arith.constant 4 : index
    %c0_88 = arith.constant 0 : index
    %137 = vector.load %arg8[%c4, %c0_88] : memref<9x64xf32, #tpu.memory_space<vmem>>, vector<1x64xf32>
    %138 = arith.extf %136 : vector<256x64xbf16> to vector<256x64xf32>
    %139 = vector.broadcast %137 : vector<1x64xf32> to vector<256x64xf32>
    %140 = arith.mulf %138, %139 : vector<256x64xf32>
    %141 = arith.addf %135, %140 : vector<256x64xf32>
    %c16_89 = arith.constant 16 : index
    %c128_90 = arith.constant 128 : index
    %142 = vector.load %arg16[%c16_89, %c128_90] : memref<288x192xbf16, #tpu.memory_space<vmem>>, vector<256x64xbf16>
    %c5 = arith.constant 5 : index
    %c0_91 = arith.constant 0 : index
    %143 = vector.load %arg8[%c5, %c0_91] : memref<9x64xf32, #tpu.memory_space<vmem>>, vector<1x64xf32>
    %144 = arith.extf %142 : vector<256x64xbf16> to vector<256x64xf32>
    %145 = vector.broadcast %143 : vector<1x64xf32> to vector<256x64xf32>
    %146 = arith.mulf %144, %145 : vector<256x64xf32>
    %147 = arith.addf %141, %146 : vector<256x64xf32>
    %c32_92 = arith.constant 32 : index
    %c0_93 = arith.constant 0 : index
    %148 = vector.load %arg16[%c32_92, %c0_93] : memref<288x192xbf16, #tpu.memory_space<vmem>>, vector<256x64xbf16>
    %c6 = arith.constant 6 : index
    %c0_94 = arith.constant 0 : index
    %149 = vector.load %arg8[%c6, %c0_94] : memref<9x64xf32, #tpu.memory_space<vmem>>, vector<1x64xf32>
    %150 = arith.extf %148 : vector<256x64xbf16> to vector<256x64xf32>
    %151 = vector.broadcast %149 : vector<1x64xf32> to vector<256x64xf32>
    %152 = arith.mulf %150, %151 : vector<256x64xf32>
    %153 = arith.addf %147, %152 : vector<256x64xf32>
    %c32_95 = arith.constant 32 : index
    %c64_96 = arith.constant 64 : index
    %154 = vector.load %arg16[%c32_95, %c64_96] : memref<288x192xbf16, #tpu.memory_space<vmem>>, vector<256x64xbf16>
    %c7 = arith.constant 7 : index
    %c0_97 = arith.constant 0 : index
    %155 = vector.load %arg8[%c7, %c0_97] : memref<9x64xf32, #tpu.memory_space<vmem>>, vector<1x64xf32>
    %156 = arith.extf %154 : vector<256x64xbf16> to vector<256x64xf32>
    %157 = vector.broadcast %155 : vector<1x64xf32> to vector<256x64xf32>
    %158 = arith.mulf %156, %157 : vector<256x64xf32>
    %159 = arith.addf %153, %158 : vector<256x64xf32>
    %c32_98 = arith.constant 32 : index
    %c128_99 = arith.constant 128 : index
    %160 = vector.load %arg16[%c32_98, %c128_99] : memref<288x192xbf16, #tpu.memory_space<vmem>>, vector<256x64xbf16>
    %c8 = arith.constant 8 : index
    %c0_100 = arith.constant 0 : index
    %161 = vector.load %arg8[%c8, %c0_100] : memref<9x64xf32, #tpu.memory_space<vmem>>, vector<1x64xf32>
    %162 = arith.extf %160 : vector<256x64xbf16> to vector<256x64xf32>
    %163 = vector.broadcast %161 : vector<1x64xf32> to vector<256x64xf32>
    %164 = arith.mulf %162, %163 : vector<256x64xf32>
    %165 = arith.addf %159, %164 : vector<256x64xf32>
    %c0_101 = arith.constant 0 : index
    %c0_102 = arith.constant 0 : index
    %166 = vector.load %arg9[%c0_101, %c0_102] : memref<1x64xf32, #tpu.memory_space<vmem>>, vector<1x64xf32>
    %167 = vector.broadcast %166 : vector<1x64xf32> to vector<256x64xf32>
    %168 = arith.addf %165, %167 : vector<256x64xf32>
    %cst_103 = arith.constant 5.000000e-01 : f32
    %169 = vector.broadcast %cst_103 : f32 to vector<256x64xf32>
    %170 = arith.mulf %169, %168 : vector<256x64xf32>
    %171 = math.tanh %170 : vector<256x64xf32>
    %cst_104 = arith.constant 5.000000e-01 : f32
    %172 = vector.broadcast %cst_104 : f32 to vector<256x64xf32>
    %173 = arith.mulf %172, %171 : vector<256x64xf32>
    %cst_105 = arith.constant 5.000000e-01 : f32
    %174 = vector.broadcast %cst_105 : f32 to vector<256x64xf32>
    %175 = arith.addf %173, %174 : vector<256x64xf32>
    %176 = vector.broadcast %105 : vector<1x64xf32> to vector<256x64xf32>
    %177 = arith.addf %175, %176 : vector<256x64xf32>
    %178 = arith.mulf %177, %83 : vector<256x64xf32>
    %179 = arith.truncf %178 : vector<256x64xf32> to vector<256x64xbf16>
    %c16_106 = arith.constant 16 : index
    %c64_107 = arith.constant 64 : index
    %180 = vector.load %arg16[%c16_106, %c64_107] : memref<288x192xbf16, #tpu.memory_space<vmem>>, vector<256x64xbf16>
    tpu.vector_store %arg16[%c16_106, %c64_107], %179 {strides = array<i32>} : memref<288x192xbf16, #tpu.memory_space<vmem>>, vector<256x64xbf16>,
    %c15_108 = arith.constant 15 : index
    %c64_109 = arith.constant 64 : index
    %181 = vector.load %arg16[%c15_108, %c64_109] : memref<288x192xbf16, #tpu.memory_space<vmem>>, vector<256x64xbf16>
    %c17_110 = arith.constant 17 : index
    %c64_111 = arith.constant 64 : index
    %182 = vector.load %arg16[%c17_110, %c64_111] : memref<288x192xbf16, #tpu.memory_space<vmem>>, vector<256x64xbf16>
    %183 = arith.mulf %181, %26 : vector<256x64xbf16>
    %c16_112 = arith.constant 16 : index
    %c0_113 = arith.constant 0 : index
    %184 = vector.load %arg16[%c16_112, %c0_113] : memref<288x192xbf16, #tpu.memory_space<vmem>>, vector<256x64xbf16>
    tpu.vector_store %arg16[%c16_112, %c0_113], %183 {strides = array<i32>} : memref<288x192xbf16, #tpu.memory_space<vmem>>, vector<256x64xbf16>,
    %185 = arith.mulf %182, %33 : vector<256x64xbf16>
    %c16_114 = arith.constant 16 : index
    %c128_115 = arith.constant 128 : index
    %186 = vector.load %arg16[%c16_114, %c128_115] : memref<288x192xbf16, #tpu.memory_space<vmem>>, vector<256x64xbf16>
    tpu.vector_store %arg16[%c16_114, %c128_115], %185 {strides = array<i32>} : memref<288x192xbf16, #tpu.memory_space<vmem>>, vector<256x64xbf16>,
    %c0_116 = arith.constant 0 : index
    %c0_117 = arith.constant 0 : index
    %187 = vector.load %arg16[%c0_116, %c0_117] : memref<288x192xbf16, #tpu.memory_space<vmem>>, vector<256x64xbf16>
    %c0_118 = arith.constant 0 : index
    %c0_119 = arith.constant 0 : index
    %188 = vector.load %arg12[%c0_118, %c0_119] : memref<9x64xf32, #tpu.memory_space<vmem>>, vector<1x64xf32>
    %189 = arith.extf %187 : vector<256x64xbf16> to vector<256x64xf32>
    %190 = vector.broadcast %188 : vector<1x64xf32> to vector<256x64xf32>
    %191 = arith.mulf %189, %190 : vector<256x64xf32>
    %c0_120 = arith.constant 0 : index
    %c64_121 = arith.constant 64 : index
    %192 = vector.load %arg16[%c0_120, %c64_121] : memref<288x192xbf16, #tpu.memory_space<vmem>>, vector<256x64xbf16>
    %c1_122 = arith.constant 1 : index
    %c0_123 = arith.constant 0 : index
    %193 = vector.load %arg12[%c1_122, %c0_123] : memref<9x64xf32, #tpu.memory_space<vmem>>, vector<1x64xf32>
    %194 = arith.extf %192 : vector<256x64xbf16> to vector<256x64xf32>
    %195 = vector.broadcast %193 : vector<1x64xf32> to vector<256x64xf32>
    %196 = arith.mulf %194, %195 : vector<256x64xf32>
    %197 = arith.addf %191, %196 : vector<256x64xf32>
    %c0_124 = arith.constant 0 : index
    %c128_125 = arith.constant 128 : index
    %198 = vector.load %arg16[%c0_124, %c128_125] : memref<288x192xbf16, #tpu.memory_space<vmem>>, vector<256x64xbf16>
    %c2_126 = arith.constant 2 : index
    %c0_127 = arith.constant 0 : index
    %199 = vector.load %arg12[%c2_126, %c0_127] : memref<9x64xf32, #tpu.memory_space<vmem>>, vector<1x64xf32>
    %200 = arith.extf %198 : vector<256x64xbf16> to vector<256x64xf32>
    %201 = vector.broadcast %199 : vector<1x64xf32> to vector<256x64xf32>
    %202 = arith.mulf %200, %201 : vector<256x64xf32>
    %203 = arith.addf %197, %202 : vector<256x64xf32>
    %c16_128 = arith.constant 16 : index
    %c0_129 = arith.constant 0 : index
    %204 = vector.load %arg16[%c16_128, %c0_129] : memref<288x192xbf16, #tpu.memory_space<vmem>>, vector<256x64xbf16>
    %c3_130 = arith.constant 3 : index
    %c0_131 = arith.constant 0 : index
    %205 = vector.load %arg12[%c3_130, %c0_131] : memref<9x64xf32, #tpu.memory_space<vmem>>, vector<1x64xf32>
    %206 = arith.extf %204 : vector<256x64xbf16> to vector<256x64xf32>
    %207 = vector.broadcast %205 : vector<1x64xf32> to vector<256x64xf32>
    %208 = arith.mulf %206, %207 : vector<256x64xf32>
    %209 = arith.addf %203, %208 : vector<256x64xf32>
    %c16_132 = arith.constant 16 : index
    %c64_133 = arith.constant 64 : index
    %210 = vector.load %arg16[%c16_132, %c64_133] : memref<288x192xbf16, #tpu.memory_space<vmem>>, vector<256x64xbf16>
    %c4_134 = arith.constant 4 : index
    %c0_135 = arith.constant 0 : index
    %211 = vector.load %arg12[%c4_134, %c0_135] : memref<9x64xf32, #tpu.memory_space<vmem>>, vector<1x64xf32>
    %212 = arith.extf %210 : vector<256x64xbf16> to vector<256x64xf32>
    %213 = vector.broadcast %211 : vector<1x64xf32> to vector<256x64xf32>
    %214 = arith.mulf %212, %213 : vector<256x64xf32>
    %215 = arith.addf %209, %214 : vector<256x64xf32>
    %c16_136 = arith.constant 16 : index
    %c128_137 = arith.constant 128 : index
    %216 = vector.load %arg16[%c16_136, %c128_137] : memref<288x192xbf16, #tpu.memory_space<vmem>>, vector<256x64xbf16>
    %c5_138 = arith.constant 5 : index
    %c0_139 = arith.constant 0 : index
    %217 = vector.load %arg12[%c5_138, %c0_139] : memref<9x64xf32, #tpu.memory_space<vmem>>, vector<1x64xf32>
    %218 = arith.extf %216 : vector<256x64xbf16> to vector<256x64xf32>
    %219 = vector.broadcast %217 : vector<1x64xf32> to vector<256x64xf32>
    %220 = arith.mulf %218, %219 : vector<256x64xf32>
    %221 = arith.addf %215, %220 : vector<256x64xf32>
    %c32_140 = arith.constant 32 : index
    %c0_141 = arith.constant 0 : index
    %222 = vector.load %arg16[%c32_140, %c0_141] : memref<288x192xbf16, #tpu.memory_space<vmem>>, vector<256x64xbf16>
    %c6_142 = arith.constant 6 : index
    %c0_143 = arith.constant 0 : index
    %223 = vector.load %arg12[%c6_142, %c0_143] : memref<9x64xf32, #tpu.memory_space<vmem>>, vector<1x64xf32>
    %224 = arith.extf %222 : vector<256x64xbf16> to vector<256x64xf32>
    %225 = vector.broadcast %223 : vector<1x64xf32> to vector<256x64xf32>
    %226 = arith.mulf %224, %225 : vector<256x64xf32>
    %227 = arith.addf %221, %226 : vector<256x64xf32>
    %c32_144 = arith.constant 32 : index
    %c64_145 = arith.constant 64 : index
    %228 = vector.load %arg16[%c32_144, %c64_145] : memref<288x192xbf16, #tpu.memory_space<vmem>>, vector<256x64xbf16>
    %c7_146 = arith.constant 7 : index
    %c0_147 = arith.constant 0 : index
    %229 = vector.load %arg12[%c7_146, %c0_147] : memref<9x64xf32, #tpu.memory_space<vmem>>, vector<1x64xf32>
    %230 = arith.extf %228 : vector<256x64xbf16> to vector<256x64xf32>
    %231 = vector.broadcast %229 : vector<1x64xf32> to vector<256x64xf32>
    %232 = arith.mulf %230, %231 : vector<256x64xf32>
    %233 = arith.addf %227, %232 : vector<256x64xf32>
    %c32_148 = arith.constant 32 : index
    %c128_149 = arith.constant 128 : index
    %234 = vector.load %arg16[%c32_148, %c128_149] : memref<288x192xbf16, #tpu.memory_space<vmem>>, vector<256x64xbf16>
    %c8_150 = arith.constant 8 : index
    %c0_151 = arith.constant 0 : index
    %235 = vector.load %arg12[%c8_150, %c0_151] : memref<9x64xf32, #tpu.memory_space<vmem>>, vector<1x64xf32>
    %236 = arith.extf %234 : vector<256x64xbf16> to vector<256x64xf32>
    %237 = vector.broadcast %235 : vector<1x64xf32> to vector<256x64xf32>
    %238 = arith.mulf %236, %237 : vector<256x64xf32>
    %239 = arith.addf %233, %238 : vector<256x64xf32>
    %240 = arith.truncf %239 : vector<256x64xf32> to vector<256x64xbf16>
    %c0_152 = arith.constant 0 : index
    %c0_153 = arith.constant 0 : index
    %241 = vector.load %arg13[%c0_152, %c0_153] : memref<64x64xbf16, #tpu.memory_space<vmem>>, vector<64x64xbf16>
    %cst_154 = arith.constant dense<0.000000e+00> : vector<256x64xf32>
    %242 = tpu.matmul %240, %241, %cst_154 {dimension_numbers = #tpu.dot_dimension_numbers<[1], [0], [0], [1], [0, 0, 1, 1], [], []>} : vector<256x64xbf16>, vector<64x64xbf16>, vector<256x64xf32> -> vector<256x64xf32>
    %243 = arith.addf %242, %86 : vector<256x64xf32>
    %c0_155 = arith.constant 0 : index
    %c0_156 = arith.constant 0 : index
    %244 = vector.load %arg14[%c0_155, %c0_156] : memref<1x64xf32, #tpu.memory_space<vmem>>, vector<1x64xf32>
    %245 = vector.broadcast %244 : vector<1x64xf32> to vector<256x64xf32>
    %246 = arith.addf %243, %245 : vector<256x64xf32>
    %cst_157 = arith.constant 0.000000e+00 : f32
    %cst_158 = arith.constant 6.000000e+00 : f32
    %247 = vector.broadcast %cst_157 : f32 to vector<256x64xf32>
    %248 = arith.maximumf %247, %246 : vector<256x64xf32>
    %249 = vector.broadcast %cst_158 : f32 to vector<256x64xf32>
    %250 = arith.minimumf %249, %248 : vector<256x64xf32>
    %251 = vector.shape_cast %250 : vector<256x64xf32> to vector<1x256x64xf32>
    %c0_159 = arith.constant 0 : index
    %c0_160 = arith.constant 0 : index
    %c0_161 = arith.constant 0 : index
    %252 = vector.load %arg15[%c0_159, %c0_160, %c0_161] : memref<1x256x64xf32, #tpu.memory_space<vmem>>, vector<1x256x64xf32>
    tpu.vector_store %arg15[%c0_159, %c0_160, %c0_161], %251 {strides = array<i32>} : memref<1x256x64xf32, #tpu.memory_space<vmem>>, vector<1x256x64xf32>,
    return
  }
  func.func @transform_0(%arg0: i32, %arg1: memref<2xf32, #tpu.memory_space<smem>>) -> (i32, i32, i32) {
    %c0_i32 = arith.constant 0 : i32
    %c0_i32_0 = arith.constant 0 : i32
    %c0_i32_1 = arith.constant 0 : i32
    return %arg0, %c0_i32, %c0_i32_0 : i32, i32, i32
  }
  func.func @transform_1(%arg0: i32, %arg1: memref<2xf32, #tpu.memory_space<smem>>) -> (i32, i32, i32) {
    %c0_i32 = arith.constant 0 : i32
    %c0_i32_0 = arith.constant 0 : i32
    %c0_i32_1 = arith.constant 0 : i32
    return %arg0, %c0_i32, %c0_i32_0 : i32, i32, i32
  }
  func.func @transform_2(%arg0: i32, %arg1: memref<2xf32, #tpu.memory_space<smem>>) -> (i32, i32) {
    %c0_i32 = arith.constant 0 : i32
    %c0_i32_0 = arith.constant 0 : i32
    %c0_i32_1 = arith.constant 0 : i32
    return %c0_i32, %c0_i32_0 : i32, i32
  }
  func.func @transform_3(%arg0: i32, %arg1: memref<2xf32, #tpu.memory_space<smem>>) -> (i32, i32, i32) {
    %c0_i32 = arith.constant 0 : i32
    %c0_i32_0 = arith.constant 0 : i32
    %c0_i32_1 = arith.constant 0 : i32
    %c0_i32_2 = arith.constant 0 : i32
    return %c0_i32, %c0_i32_0, %c0_i32_1 : i32, i32, i32
  }
  func.func @transform_4(%arg0: i32, %arg1: memref<2xf32, #tpu.memory_space<smem>>) -> (i32, i32) {
    %c0_i32 = arith.constant 0 : i32
    %c0_i32_0 = arith.constant 0 : i32
    %c0_i32_1 = arith.constant 0 : i32
    return %c0_i32, %c0_i32_0 : i32, i32
  }
  func.func @transform_5(%arg0: i32, %arg1: memref<2xf32, #tpu.memory_space<smem>>) -> (i32, i32) {
    %c0_i32 = arith.constant 0 : i32
    %c0_i32_0 = arith.constant 0 : i32
    %c0_i32_1 = arith.constant 0 : i32
    return %c0_i32, %c0_i32_0 : i32, i32
  }
  func.func @transform_6(%arg0: i32, %arg1: memref<2xf32, #tpu.memory_space<smem>>) -> (i32, i32) {
    %c0_i32 = arith.constant 0 : i32
    %c0_i32_0 = arith.constant 0 : i32
    %c0_i32_1 = arith.constant 0 : i32
    return %c0_i32, %c0_i32_0 : i32, i32
  }
  func.func @transform_7(%arg0: i32, %arg1: memref<2xf32, #tpu.memory_space<smem>>) -> (i32, i32) {
    %c0_i32 = arith.constant 0 : i32
    %c0_i32_0 = arith.constant 0 : i32
    %c0_i32_1 = arith.constant 0 : i32
    return %c0_i32, %c0_i32_0 : i32, i32
  }
  func.func @transform_8(%arg0: i32, %arg1: memref<2xf32, #tpu.memory_space<smem>>) -> (i32, i32) {
    %c0_i32 = arith.constant 0 : i32
    %c0_i32_0 = arith.constant 0 : i32
    %c0_i32_1 = arith.constant 0 : i32
    return %c0_i32, %c0_i32_0 : i32, i32
  }
  func.func @transform_9(%arg0: i32, %arg1: memref<2xf32, #tpu.memory_space<smem>>) -> (i32, i32) {
    %c0_i32 = arith.constant 0 : i32
    %c0_i32_0 = arith.constant 0 : i32
    %c0_i32_1 = arith.constant 0 : i32
    return %c0_i32, %c0_i32_0 : i32, i32
  }
  func.func @transform_10(%arg0: i32, %arg1: memref<2xf32, #tpu.memory_space<smem>>) -> (i32, i32) {
    %c0_i32 = arith.constant 0 : i32
    %c0_i32_0 = arith.constant 0 : i32
    %c0_i32_1 = arith.constant 0 : i32
    return %c0_i32, %c0_i32_0 : i32, i32
  }
  func.func @transform_11(%arg0: i32, %arg1: memref<2xf32, #tpu.memory_space<smem>>) -> (i32, i32) {
    %c0_i32 = arith.constant 0 : i32
    %c0_i32_0 = arith.constant 0 : i32
    %c0_i32_1 = arith.constant 0 : i32
    return %c0_i32, %c0_i32_0 : i32, i32
  }
  func.func @transform_12(%arg0: i32, %arg1: memref<2xf32, #tpu.memory_space<smem>>) -> (i32, i32) {
    %c0_i32 = arith.constant 0 : i32
    %c0_i32_0 = arith.constant 0 : i32
    %c0_i32_1 = arith.constant 0 : i32
    return %c0_i32, %c0_i32_0 : i32, i32
  }
  func.func @transform_13(%arg0: i32, %arg1: memref<2xf32, #tpu.memory_space<smem>>) -> (i32, i32, i32) {
    %c0_i32 = arith.constant 0 : i32
    %c0_i32_0 = arith.constant 0 : i32
    %c0_i32_1 = arith.constant 0 : i32
    return %arg0, %c0_i32, %c0_i32_0 : i32, i32, i32
  }
}

</mosaic_0001>

<bundles_post_ra>
// kernel: tpu_custom_call.1
= control target key start
LH: loop header
LB: loop body
LE: loop exit
PB: predicated region body
PF: predicated region fallthrough
CT: control target
= control target key end

     0   :  { %s11431_s16 = smov [#allocation4]   ;;  %s17352_s0 = inlined_call_operand.vmem [shape: f32[2], index: 0, kind: input, shape index: {}]   ;;  %s17353_s1 = inlined_call_operand.vmem [shape: bf16[2,256,64], index: 1, kind: input, shape index: {}]   ;;  %s17354_s2 = inlined_call_operand.vmem [shape: bf16[2,256,64], index: 2, kind: input, shape index: {}]   ;;  %s17355_s3 = inlined_call_operand.vmem [shape: bf16[64,64], index: 3, kind: input, shape index: {}]   ;;  %s17356_s4 = inlined_call_operand.vmem [shape: bf16[3,192,64], index: 4, kind: input, shape index: {}]   ;;  %s17357_s5 = inlined_call_operand.vmem [shape: f32[1,64], index: 5, kind: input, shape index: {}]   ;;  %s17358_s6 = inlined_call_operand.vmem [shape: bf16[64,64], index: 6, kind: input, shape index: {}]   ;;  %s17359_s7 = inlined_call_operand.vmem [shape: f32[9,64], index: 7, kind: input, shape index: {}]   ;;  %s17360_s8 = inlined_call_operand.vmem [shape: f32[1,64], index: 8, kind: input, shape index: {}]   ;;  %s17361_s9 = inlined_call_operand.vmem [shape: f32[64,4], index: 9, kind: input, shape index: {}]   ;;  %s17362_s10 = inlined_call_operand.vmem [shape: f32[4,64], index: 10, kind: input, shape index: {}]   ;;  %s17363_s11 = inlined_call_operand.vmem [shape: f32[9,64], index: 11, kind: input, shape index: {}]   ;;  %s17364_s12 = inlined_call_operand.vmem [shape: bf16[64,64], index: 12, kind: input, shape index: {}]   ;;  %s17365_s13 = inlined_call_operand.vmem [shape: f32[1,64], index: 13, kind: input, shape index: {}]   ;;  %s17366_s14 = inlined_call_operand.vmem [shape: f32[2,256,64], index: 14, kind: output, shape index: {}]  }
   0x1   :  { %s20_s15 = sshll.u32 %s17352_s0, 4  ;;  %s21_s15 = int_to_ptr.vmem [resolvable:$true] %s20_s15 }
   0x2   :  { %23 = dma.vmem_to_smem %s21_s15, 16, %s11431_s16, [#allocation3] }
   0x3   :  { %11425 = dma.done.wait [#allocation3], 16 }
   0x4   :  { %11426 = vsyncadd [#allocation3], 4294967280 }
   0x5   :  { %26 = sfence }
   0x6   :  { %s11516_s17 = smov 0  }
   0x7 LB: > { %s10335_s18 = sadd.s32 4294967295, %s11429_s17   ;;  %p10339_p0 = scmp.ge.s32.totalorder %s11429_s17, 1  ;;  %s11429_s17 = sphi %s11516_s17, %s32_s17  }
   0x8   : > { %p406_p1 = scmp.lt.s32.totalorder %s11429_s17, 3 }
   0xa   : > { %p407_p2 = pnand %p10339_p0, %p406_p1 }
   0xc   : > { %410 = sbr.rel (%p407_p2) target bundleno = 2347 (0x92b), region = 72 }
  0x11   : > { %v11073_v0 = vld [vmem:[%s17355_s3 + $0x18] sm:$0xff]  ;;  %p455_p3 = scmp.lt.s32.totalorder %s10335_s18, 1  ;;  %v11072_v1 = vld [vmem:[%s17355_s3 + $0x10] sm:$0xff]  ;;  %v11071_v2 = vld [vmem:[%s17355_s3 + $0x8] sm:$0xff]  ;;  %vm1319_vm0 = vcmask 523264   ;;  %s1151_s30 = sld [smem:[#allocation4]] }
  0x12   : > { %1372 = vmatpush.bf16.msra.mxu0 %v11073_v0  ;;  %11263 = vmatpush.bf16.msra.mxu1 %v11073_v0  ;;  %v11070_v3 = vld [vmem:[%s17355_s3] sm:$0xff]  ;;  %s10378_s15 = sld [smem:[#allocation4 + $0x1]]  ;;  %s11432_s16 = smov 0.0   ;;  %vm471_vm5 = vcmask 1043456   ;;  %vm472_vm6 = vcmask 523268   ;;  %vm1779_vm9 = vcmask 1043968  }
  0x13   : > { %11264 = vmatpush.bf16.msra.mxu2 %v11073_v0  ;;  %11265 = vmatpush.bf16.msra.mxu3 %v11073_v0  ;;  %s18024_s18 = smov (!%p455_p3, %s10335_s18), 1  ;;  %s11433_s28 = smov 64   ;;  %vm473_vm7 = vmor %vm472_vm6, %vm471_vm5  ;;  %vm1943_vm10 = vcmask 1046528   ;;  %vm2106_vm15 = vsmask.f32 256 }
  0x14   : > { %s11051_s24 = sshll.u32 %s18024_s18, 7 }
  0x15   : > { %s11544_s29 = scalar_lea.vmem %s17353_s1, %s11051_s24  ;;  %s11589_s25 = scalar_lea.vmem %s17354_s2, %s11051_s24 }
  0x16   : > { %1373 = vmatpush.bf16.msra.mxu0 %v11072_v1  ;;  %11266 = vmatpush.bf16.msra.mxu1 %v11072_v1  ;;  %v11054_v4 = vld [vmem:[%s11544_s29] sm:$0xff]  ;;  %v11060_v6 = vld [vmem:[%s11544_s29 + $0x30] sm:$0xff]  ;;  %v11065_v7 = vld [vmem:[%s11544_s29 + $0x58] sm:$0xff] }
  0x17   : > { %11267 = vmatpush.bf16.msra.mxu2 %v11072_v1  ;;  %11268 = vmatpush.bf16.msra.mxu3 %v11072_v1  ;;  %v11058_v5 = vld [vmem:[%s11544_s29 + $0x20] sm:$0xff]  ;;  %v11055_v8 = vld [vmem:[%s11544_s29 + $0x8] sm:$0xff]  ;;  %v11061_v10 = vld [vmem:[%s11544_s29 + $0x38] sm:$0xff]  ;;  %s11558_s0 = smax.f32 %s11432_s16, %s1151_s30 }
  0x18   : > { %v11059_v9 = vld [vmem:[%s11544_s29 + $0x28] sm:$0xff]  ;;  %v11066_v11 = vld [vmem:[%s11544_s29 + $0x60] sm:$0xff]  ;;  %s11560_s19 = smax.f32 %s11432_s16, %s10378_s15  ;;  %v11056_v13 = vld [vmem:[%s11544_s29 + $0x10] sm:$0xff] }
  0x19   : > { %s1155_s20 = sadd.f32 %s11560_s19, %s11558_s0  ;;  %v11062_v14 = vld [vmem:[%s11544_s29 + $0x40] sm:$0xff]  ;;  %v11067_v15 = vld [vmem:[%s11544_s29 + $0x68] sm:$0xff]  ;;  %v11057_v26 = vld [vmem:[%s11544_s29 + $0x18] sm:$0xff] }
  0x1a   : > { %1374 = vmatpush.bf16.msra.mxu0 %v11071_v2  ;;  %11269 = vmatpush.bf16.msra.mxu1 %v11071_v2  ;;  %v11063_v27 = vld [vmem:[%s11544_s29 + $0x48] sm:$0xff]  ;;  %v11068_v28 = vld [vmem:[%s11544_s29 + $0x70] sm:$0xff]  ;;  %v11069_v30 = vld [vmem:[%s11544_s29 + $0x78] sm:$0xff] }
  0x1b   : > { %11270 = vmatpush.bf16.msra.mxu2 %v11071_v2  ;;  %11271 = vmatpush.bf16.msra.mxu3 %v11071_v2  ;;  %s1156_s21 = sadd.f32 1e-08, %s1155_s20  ;;  %v11064_v29 = vld [vmem:[%s11544_s29 + $0x50] sm:$0xff]  ;;  %v11258_v32 = vld [vmem:[%s11589_s25 + $0x58] sm:$0xff]   ;;  %v11252_v35 = vld [vmem:[%s11589_s25 + $0x28] sm:$0xff]  }
  0x1c   : > { %v11253_v31 = vld [vmem:[%s11589_s25 + $0x30] sm:$0xff]   ;;  %v11230_v34 = vunpack.c.l.bf16 %v11258_v32  ;;  %v11254_v36 = vld [vmem:[%s11589_s25 + $0x38] sm:$0xff]   ;;  %v11231_v39 = vunpack.c.h.bf16 %v11258_v32  ;;  %v11206_v40 = vunpack.c.l.bf16 %v11252_v35  ;;  %v11259_v42 = vld [vmem:[%s11589_s25 + $0x60] sm:$0xff]   ;;  %v11207_v52 = vunpack.c.h.bf16 %v11252_v35 }
  0x1d   : > { %v1157_v12 = vstv %s1156_s21  ;;  %v11210_v33 = vunpack.c.l.bf16 %v11253_v31  ;;  %v11211_v37 = vunpack.c.h.bf16 %v11253_v31  ;;  %v11214_v41 = vunpack.c.l.bf16 %v11254_v36  ;;  %v11255_v47 = vld [vmem:[%s11589_s25 + $0x40] sm:$0xff]   ;;  %v11260_v48 = vld [vmem:[%s11589_s25 + $0x68] sm:$0xff]   ;;  %v11261_v62 = vld [vmem:[%s11589_s25 + $0x70] sm:$0xff]  }
  0x1e   : > { %1375 = vmatpush.bf16.msra.mxu0 %v11070_v3  ;;  %11272 = vmatpush.bf16.msra.mxu1 %v11070_v3  ;;  %11317 = vrcp.f32 %v1157_v12  ;;  %v1169_v18 = vand.u32 2147483648, %v1157_v12  ;;  %vm1163_vm1 = vweird.f32 %v1157_v12  ;;  %v1167_v20 = vand.u32 2147483647, %v1157_v12  ;;  %v11256_v58 = vld [vmem:[%s11589_s25 + $0x48] sm:$0xff]  }
  0x1f   : > { %11273 = vmatpush.bf16.msra.mxu2 %v11070_v3  ;;  %11274 = vmatpush.bf16.msra.mxu3 %v11070_v3  ;;  %v11234_v51 = vunpack.c.l.bf16 %v11259_v42  ;;  %v11215_v53 = vunpack.c.h.bf16 %v11254_v36  ;;  %v11235_v54 = vunpack.c.h.bf16 %v11259_v42  ;;  %v11218_v56 = vunpack.c.l.bf16 %v11255_v47  ;;  %v11248_v35 = vld [vmem:[%s11589_s25 + $0x8] sm:$0xff]  }
  0x20   : > { %v1170_v22 = vor.u32 1.1754944e-38, %v1169_v18  ;;  %vm1168_vm4 = vcmp.eq.f32.partialorder %v1167_v20, 8.507059e+37  ;;  %v11238_v57 = vunpack.c.l.bf16 %v11260_v48  ;;  %v11219_v1 = vunpack.c.h.bf16 %v11255_v47 }
  0x21   : > { %10459 = vmatmul.msk.bf16.vlgmr.msra.gmra.mxu0 %vm1319_vm0, %v11054_v4  ;;  %10463 = vmatmul.msk.bf16.vlgmr.msra.gmra.mxu1 %vm1319_vm0, %v11058_v5  ;;  %v11239_v2 = vunpack.c.h.bf16 %v11260_v48  ;;  %v11222_v3 = vunpack.c.l.bf16 %v11256_v58  ;;  %v11242_v4 = vunpack.c.l.bf16 %v11261_v62  ;;  %v11257_v5 = vld [vmem:[%s11589_s25 + $0x50] sm:$0xff]  }
  0x22   : > { %10465 = vmatmul.msk.bf16.vlgmr.msra.gmra.mxu2 %vm1319_vm0, %v11060_v6  ;;  %10470 = vmatmul.msk.bf16.vlgmr.msra.gmra.mxu3 %vm1319_vm0, %v11065_v7  ;;  %v11262_v6 = vld [vmem:[%s11589_s25 + $0x78] sm:$0xff]  }
  0x24   : > { %v11318_v16 = vpop.eup %11317 }
  0x25   : > { %v1159_v17 = vmul.f32 %v11318_v16, %v1157_v12  ;;  %vm1164_vm2 = vweird.f32 %v11318_v16  ;;  %v11243_v12 = vunpack.c.h.bf16 %v11261_v62 }
  0x26   : > { %vm1165_vm3 = vmor %vm1163_vm1, %vm1164_vm2  ;;  %vm2107_vm1 = vsmask.f32 4368  ;;  %vm2595_vm2 = vcmask 1040384  }
  0x27   : > { %v1160_v19 = vsub.f32 1.0, %v1159_v17 }
  0x29   : > { %v1161_v21 = vmul.f32 %v11318_v16, %v1160_v19 }
  0x2b   : > { %v1162_v23 = vadd.f32 %v11318_v16, %v1161_v21 }
  0x2d   : > { %v1166_v24 = vsel %vm1165_vm3, %v11318_v16, %v1162_v23  ;;  %v11247_v16 = vunpack.c.h.bf16 %v11262_v6  ;;  %v11185_v23 = vld [vmem:[%s11589_s25] sm:$0xff]   ;;  %vm11768_vm3 = vmor %vm2106_vm15, %vm2107_vm1  ;;  %vm2497_vm1 = vcmask 519168  }
  0x2e   : > { %v1171_v25 = vsel %vm1168_vm4, %v1170_v22, %v1166_v24  ;;  %v11186_v24 = vunpack.c.l.bf16 %v11185_v23  ;;  %v11187_v31 = vunpack.c.h.bf16 %v11185_v23  ;;  %v11250_v23 = vld [vmem:[%s11589_s25 + $0x18] sm:$0xff]  }
  0x2f   : > { %11279 = vpush %v1171_v25 }
  0x31   : > { %10460 = vmatmul.msk.bf16.gmra.mxu0 %vm1319_vm0, %v11055_v8  ;;  %10464 = vmatmul.msk.bf16.gmra.mxu1 %vm1319_vm0, %v11059_v9 }
  0x32   : > { %10466 = vmatmul.msk.bf16.gmra.mxu2 %vm1319_vm0, %v11061_v10  ;;  %10471 = vmatmul.msk.bf16.gmra.mxu3 %vm1319_vm0, %v11066_v11  ;;  %v11223_v11 = vunpack.c.h.bf16 %v11256_v58 }
  0x41   : > { %10461 = vmatmul.msk.bf16.gmra.mxu0 %vm1319_vm0, %v11056_v13  ;;  %v11226_v13 = vunpack.c.l.bf16 %v11257_v5 }
  0x42   : > { %10467 = vmatmul.msk.bf16.gmra.mxu2 %vm1319_vm0, %v11062_v14  ;;  %10472 = vmatmul.msk.bf16.gmra.mxu3 %vm1319_vm0, %v11067_v15  ;;  %v11246_v14 = vunpack.c.l.bf16 %v11262_v6  ;;  %v11227_v15 = vunpack.c.h.bf16 %v11257_v5 }
  0x51   : > { %10462 = vmatmul.msk.bf16.gmra.mxu0 %vm1319_vm0, %v11057_v26 }
  0x52   : > { %10468 = vmatmul.msk.bf16.gmra.mxu2 %vm1319_vm0, %v11063_v27  ;;  %10473 = vmatmul.msk.bf16.gmra.mxu3 %vm1319_vm0, %v11068_v28 }
  0x60   : > { %s11591_s26 = spop %11279 }
  0x61   : > { %s1174_s27 = smul.f32 %s11591_s26, %s11560_s19 }
  0x62   : > { %10469 = vmatmul.msk.bf16.gmra.mxu2 %vm1319_vm0, %v11064_v29  ;;  %10474 = vmatmul.msk.bf16.gmra.mxu3 %vm1319_vm0, %v11069_v30  ;;  %s1173_s24 = smul.f32 %s11591_s26, %s11558_s0 }
  0x63   : > { %v11599_v38 = vstv %s1174_s27  ;;  %s11053_s27 = sshll.u32 %s18024_s18, 8 }
  0x64   : > { %v11603_v43 = vmul.f32 %v11210_v33, %v11599_v38  ;;  %v11606_v44 = vmul.f32 %v11230_v34, %v11599_v38  ;;  %v11609_v45 = vmul.f32 %v11211_v37, %v11599_v38  ;;  %v11612_v46 = vmul.f32 %v11231_v39, %v11599_v38  ;;  %s17032_s29 = scalar_lea.vmem %s17366_s14, %s11053_s27 }
  0x65   : > { %v11617_v49 = vmul.f32 %v11206_v40, %v11599_v38  ;;  %v11620_v50 = vmul.f32 %v11214_v41, %v11599_v38  ;;  %v11623_v55 = vmul.f32 %v11234_v51, %v11599_v38  ;;  %v11627_v59 = vmul.f32 %v11207_v52, %v11599_v38 }
  0x66   : > { %v11630_v60 = vmul.f32 %v11215_v53, %v11599_v38  ;;  %v11633_v61 = vmul.f32 %v11235_v54, %v11599_v38  ;;  %v11637_v63 = vmul.f32 %v11218_v56, %v11599_v38  ;;  %v11640_v0 = vmul.f32 %v11238_v57, %v11599_v38  ;;  %v11249_v56 = vld [vmem:[%s11589_s25 + $0x10] sm:$0xff]  }
  0x67   : > { %v11645_v7 = vmul.f32 %v11219_v1, %v11599_v38  ;;  %v11648_v8 = vmul.f32 %v11239_v2, %v11599_v38  ;;  %v11651_v9 = vmul.f32 %v11222_v3, %v11599_v38  ;;  %v11654_v10 = vmul.f32 %v11242_v4, %v11599_v38 }
  0x68   : > { %v11657_v17 = vmul.f32 %v11223_v11, %v11599_v38  ;;  %v11660_v18 = vmul.f32 %v11243_v12, %v11599_v38  ;;  %v11663_v19 = vmul.f32 %v11226_v13, %v11599_v38  ;;  %v11666_v20 = vmul.f32 %v11246_v14, %v11599_v38  ;;  %v11251_v11 = vld [vmem:[%s11589_s25 + $0x20] sm:$0xff]  }
  0x69   : > { %v11669_v21 = vmul.f32 %v11227_v15, %v11599_v38  ;;  %v11672_v22 = vmul.f32 %v11247_v16, %v11599_v38  ;;  %v11677_v25 = vstv %s1173_s24  ;;  %v1555_v26 = vmul.f32 %v11186_v24, %v11599_v38 }
  0x6a   : > { %v1556_v34 = vmul.f32 %v11187_v31, %v11599_v38  ;;  %v11190_v39 = vunpack.c.l.bf16 %v11248_v35  ;;  %v11191_v51 = vunpack.c.h.bf16 %v11248_v35  ;;  %v11194_v62 = vunpack.c.l.bf16 %v11249_v56 }
  0x6b   : > { %v11195_v6 = vunpack.c.h.bf16 %v11249_v56  ;;  %v11202_v14 = vunpack.c.l.bf16 %v11251_v11  ;;  %v11203_v35 = vunpack.c.h.bf16 %v11251_v11  ;;  %v11436_v11 = vmov 1.0|1.0  }
  0x6c   : > { %v1557_v42 = vmul.f32 %v11190_v39, %v11599_v38  ;;  %v1558_v54 = vmul.f32 %v11191_v51, %v11599_v38  ;;  %v1559_v3 = vmul.f32 %v11194_v62, %v11599_v38 }
  0x6d   : > { %v1560_v16 = vmul.f32 %v11195_v6, %v11599_v38 }
  0x9e   : > { %v1377_v27 = vpop.f32.mrf.mxu0  ;;  %v1397_v12 = vpop.f32.mrf.mxu1 }
  0x9f   : > { %v1458_v28 = vmul.f32 %v11677_v25, %v1377_v27  ;;  %v1563_v27 = vmul.f32 %v11202_v14, %v11599_v38 }
  0xa1   : > { %v1587_v29 = vadd.f32 %v1555_v26, %v1458_v28  ;;  %v1466_v26 = vmul.f32 %v11677_v25, %v1397_v12  ;;  %v1880_v12 = vunpack.c.l.bf16 %v11436_v11 }
  0xa3   : > { %v1619_v30 = vpack.c.bf16 %v1587_v29, %v1587_v29  ;;  %v11198_v29 = vunpack.c.l.bf16 %v11250_v23  ;;  %v1595_v31 = vadd.f32 %v1563_v27, %v1466_v26 }
  0xa5   : > { %1683 = vrot.lane.b32.xlu0 %v1619_v30, %s11433_s28 }
  0xa6   : > { %v1379_v32 = vpop.f32.mrf.mxu0 }
  0xa7   : > { %v1459_v33 = vmul.f32 %v11677_v25, %v1379_v32 }
  0xa9   : > { %v1588_v36 = vadd.f32 %v1556_v34, %v1459_v33  ;;  %v1561_v33 = vmul.f32 %v11198_v29, %v11599_v38  ;;  %v1399_v34 = vpop.f32.mrf.mxu1 }
  0xaa   : > { %v1467_v39 = vmul.f32 %v11677_v25, %v1399_v34 }
  0xab   : > { %v1620_v37 = vpack.c.bf16 %v1588_v36, %v1588_v36 }
  0xad   : > { %1685 = vrot.lane.b32.xlu0 %v1620_v37, %s11433_s28  ;;  %v1627_v37 = vpack.c.bf16 %v1595_v31, %v1595_v31 }
  0xae   : > { %v1382_v40 = vpop.f32.mrf.mxu0 }
  0xaf   : > { %v1460_v41 = vmul.f32 %v11677_v25, %v1382_v40 }
  0xb1   : > { %v1589_v47 = vadd.f32 %v1557_v42, %v1460_v41  ;;  %v11199_v41 = vunpack.c.h.bf16 %v11250_v23  ;;  %v1564_v42 = vmul.f32 %v11203_v35, %v11599_v38  ;;  %v11723_v23 = vrot.slane %v1880_v12, 1 }
  0xb3   : > { %v1621_v48 = vpack.c.bf16 %v1589_v47, %v1589_v47  ;;  %17585 = vst [vmem:[#allocation7_spill] sm:$0xff] %v11723_v23 }
  0xb5   : > { %1687 = vrot.lane.b32.xlu1 %v1621_v48, %s11433_s28  ;;  %v1596_v48 = vadd.f32 %v1564_v42, %v1467_v39 }
  0xb6   : > { %v1384_v52 = vpop.f32.mrf.mxu0 }
  0xb7   : > { %v1461_v53 = vmul.f32 %v11677_v25, %v1384_v52  ;;  %v1562_v52 = vmul.f32 %v11199_v41, %v11599_v38 }
  0xb9   : > { %v1590_v57 = vadd.f32 %v1558_v54, %v1461_v53  ;;  %v1628_v54 = vpack.c.bf16 %v1596_v48, %v1596_v48 }
  0xbb   : > { %v1622_v58 = vpack.c.bf16 %v1590_v57, %v1590_v57  ;;  %v11434_v57 = vmov 0  }
  0xbc   : > { %475 = vst.msk [vmem:[#allocation2 + $0x8] sm:$0xff] %vm473_vm7, %v11434_v57 }
  0xbd   : > { %1689 = vrot.lane.b32.xlu1 %v1622_v58, %s11433_s28  ;;  %474 = vst.msk [vmem:[#allocation2] sm:$0xff] %vm473_vm7, %v11434_v57  ;;  %v478_v58 = vlaneseq }
  0xbe   : > { %v1387_v1 = vpop.f32.mrf.mxu0  ;;  %476 = vst.msk [vmem:[#allocation2 + $0x110] sm:$0xff] %vm473_vm7, %v11434_v57 }
  0xbf   : > { %v1462_v2 = vmul.f32 %v11677_v25, %v1387_v1  ;;  %477 = vst.msk [vmem:[#allocation2 + $0x118] sm:$0xff] %vm473_vm7, %v11434_v57  ;;  %v11714_v62 = vshrl.u32 %v478_v58, 7  ;;  %v1407_v57 = vpop.f32.mrf.mxu2  ;;  %vm2758_vm7 = vsmask.f32 3328 }
  0xc1   : > { %v1591_v4 = vadd.f32 %v1559_v3, %v1462_v2  ;;  %v515_v38 = vand.u32 15, %v11714_v62  ;;  %v481_v2 = vadd.s32 16, %v11714_v62  ;;  %v17367_v3 = vmov 0.0  }
  0xc2   : > { %v480_v14 = vadd.s32 8, %v11714_v62  ;;  %v483_v27 = vadd.s32 32, %v11714_v62  ;;  %v485_v11 = vadd.s32 48, %v11714_v62 }
  0xc3   : > { %v1623_v5 = vpack.c.bf16 %v1591_v4, %v1591_v4  ;;  %vm895_vm8 = vcmp.ge.s32.totalorder %v515_v38, 1  ;;  %v1812_v1 = vld [vmem:[#allocation2 + $0x8] sm:$0x8] }
  0xc4   : > { %v10346_v4 = vsel %vm895_vm8, 1.0, %v17367_v3  ;;  %v1846_v6 = vunpack.c.l.bf16 %v1812_v1  ;;  %v522_v26 = vand.u32 15, %v480_v14 }
  0xc5   : > { %1691 = vrot.lane.b32.xlu2 %v1623_v5, %s11433_s28 }
  0xc6   : > { %v1389_v13 = vpop.f32.mrf.mxu0  ;;  %vm1024_vm12 = vcmp.lt.s32.totalorder %v522_v26, 15 }
  0xc7   : > { %v1463_v15 = vmul.f32 %v11677_v25, %v1389_v13  ;;  %v1402_v13 = vpop.f32.mrf.mxu1 }
  0xc8   : > { %v1468_v48 = vmul.f32 %v11677_v25, %v1402_v13 }
  0xc9   : > { %v1592_v24 = vadd.f32 %v1560_v16, %v1463_v15  ;;  %v11721_v15 = vrot.slane %v10346_v4, 1  ;;  %v529_v16 = vand.u32 15, %v481_v2 }
  0xca   : > { %v1597_v26 = vadd.f32 %v11617_v49, %v1468_v48 }
  0xcb   : > { %v1624_v28 = vpack.c.bf16 %v1592_v24, %v1592_v24  ;;  %17584 = vst [vmem:[#allocation6_spill] sm:$0xff] %v11721_v15  ;;  %v2040_v24 = vmul.f32 %v11721_v15, %v1846_v6  ;;  %vm897_vm11 = vcmp.ge.s32.totalorder %v529_v16, 1  ;;  %v484_v16 = vadd.s32 40, %v11714_v62 }
  0xcc   : > { %v11735_v35 = vsel %vm897_vm11, 1.0, %v17367_v3  ;;  %vm2759_vm11 = vsmask.f32 7440 }
  0xcd   : > { %1693 = vrot.lane.b32.xlu2 %v1624_v28, %s11433_s28  ;;  %v482_v28 = vadd.s32 24, %v11714_v62  ;;  %v1947_v42 = vrot.slane %v11735_v35, 1  ;;  %v557_v35 = vand.u32 15, %v485_v11  ;;  %v11809_v11 = vpop.f32.mrf.mxu2 }
  0xce   : > { %v1392_v30 = vpop.f32.mrf.mxu0 }
  0xcf   : > { %v1464_v32 = vmul.f32 %v11677_v25, %v1392_v30  ;;  %v1404_v39 = vpop.f32.mrf.mxu1  ;;  %v11755_v6 = vsel %vm1943_vm10, %v11723_v23, %v1947_v42  ;;  %vm11805_vm4 = vcmp.ge.s32.totalorder %v557_v35, 1 }
  0xd0   : > { %17592 = vst [vmem:[#allocation10_spill] sm:$0xff] %v11755_v6  ;;  %v11822_v35 = vsel %vm11805_vm4, 1.0, %v17367_v3 }
  0xd1   : > { %v1593_v36 = vadd.f32 %v1561_v33, %v1464_v32  ;;  %v11731_v32 = vsel %vm1943_vm10, %v11721_v15, %v11723_v23  ;;  %v2073_v33 = vpack.c.bf16 %v2040_v24, %v2040_v24  ;;  %v1470_v24 = vmul.f32 %v11677_v25, %v1407_v57 }
  0xd2   : > { %17586 = vst [vmem:[#allocation8_spill] sm:$0xff] %v11731_v32 }
  0xd3   : > { %v1625_v40 = vpack.c.bf16 %v1593_v36, %v1593_v36  ;;  %v543_v36 = vand.u32 15, %v483_v27  ;;  %v2110_v41 = vshrl.u32 %v2073_v33, 16 }
  0xd5   : > { %1699 = vrot.lane.b32.xlu2 %v1627_v37, %s11433_s28  ;;  %1695 = vrot.lane.b32.xlu0 %v1625_v40, %s11433_s28  ;;  %v536_v37 = vand.u32 15, %v482_v28  ;;  %vm11743_vm13 = vcmp.ge.s32.totalorder %v543_v36, 1  ;;  %v10475_v4 = vrot.slane %v2110_v41, 11  ;;  %v17593_v28 = vmov 0 }
  0xd6   : > { %v1394_v47 = vpop.f32.mrf.mxu0  ;;  %v17594_v28 = vsel %vm11768_vm3, 4294967295, %v17593_v28  ;;  %v10348_v49 = vsel %vm11743_vm13, 1.0, %v17367_v3  ;;  %v488_v36 = vadd.s32 72, %v11714_v62 }
  0xd7   : > { %v1465_v51 = vmul.f32 %v11677_v25, %v1394_v47  ;;  %v10362_v47 = vsel %vm1024_vm12, 1.0, %v17367_v3  ;;  %vm11747_vm14 = vcmp.lt.s32.totalorder %v536_v37, 15  ;;  %17595 = vst [vmem:[#allocation11_spill] sm:$0xff] %v17594_v28  ;;  %v1951_v41 = vrot.slane %v10348_v49, 1  ;;  %vm11883_vm12 = vmor %vm2758_vm7, %vm2759_vm11 }
  0xd8   : > { %v2597_v38 = vrot.slane %v10362_v47, 7  ;;  %v11784_v33 = vsel %vm11747_vm14, 1.0, %v17367_v3 }
  0xd9   : > { %v1594_v53 = vadd.f32 %v1562_v52, %v1465_v51  ;;  %v1469_v52 = vmul.f32 %v11677_v25, %v1404_v39  ;;  %v550_v39 = vand.u32 15, %v484_v16 }
  0xdb   : > { %v1626_v56 = vpack.c.bf16 %v1594_v53, %v1594_v53  ;;  %v11763_v27 = vadd.f32 %v11627_v59, %v1469_v52  ;;  %vm1028_vm6 = vcmp.lt.s32.totalorder %v550_v39, 15 }
  0xdd   : > { %1701 = vrot.lane.b32.xlu2 %v1628_v54, %s11433_s28  ;;  %1697 = vrot.lane.b32.xlu1 %v1626_v56, %s11433_s28  ;;  %v11751_v56 = vrot.slane %v1880_v12, 7  ;;  %v2601_v54 = vrot.slane %v11784_v33, 7 }
  0xdf   : > { %17591 = vst [vmem:[#allocation9_spill] sm:$0xff] %v11751_v56  ;;  %v11779_v59 = vsel %vm2595_vm2, %v11751_v56, %v2597_v38 }
  0xe0   : > { %17596 = vst [vmem:[#allocation12_spill] sm:$0xff] %v11779_v59 }
 0x117   : > { %v1684_v5 = vpop.permute.xlu0 %1683 }
 0x118   : > { %1780 = vst.msk [vmem:[#allocation2 + $0x10] sm:$0xf] %vm1779_vm9, %v1684_v5 }
 0x11f   : > { %v1686_v29 = vpop.permute.xlu0 %1685  ;;  %v1692_v30 = vpop.permute.xlu2 %1691  ;;  %v1813_v31 = vld [vmem:[#allocation2 + $0x10] sm:$0xf] }
 0x120   : > { %1781 = vst.msk [vmem:[#allocation2 + $0x18] sm:$0xf] %vm1779_vm9, %v1686_v29  ;;  %v1847_v34 = vunpack.c.l.bf16 %v1813_v31 }
 0x121   : > { %1784 = vst.msk [vmem:[#allocation2 + $0x30] sm:$0xf] %vm1779_vm9, %v1692_v30 }
 0x122   : > { %v2041_v40 = vmul.f32 %v11731_v32, %v1847_v34  ;;  %v2692_v29 = vmul.f32 %v11751_v56, %v1847_v34 }
 0x124   : > { %v2074_v51 = vpack.c.bf16 %v2041_v40, %v2041_v40  ;;  %v11790_v40 = vadd.f32 %v11603_v43, %v1470_v24  ;;  %v2725_v48 = vpack.c.bf16 %v2692_v29, %v2692_v29  ;;  %v11799_v43 = vsel %vm1943_vm10, %v1947_v42, %v11723_v23 }
 0x125   : > { %17597 = vst [vmem:[#allocation13_spill] sm:$0xff] %v11799_v43  ;;  %v11815_v42 = vsel %vm1943_vm10, %v1951_v41, %v11723_v23 }
 0x126   : > { %v2115_v58 = vshrl.u32 %v2074_v51, 16  ;;  %v2118_v13 = vshll.u32 %v2074_v51, 16  ;;  %v1629_v51 = vpack.c.bf16 %v1597_v26, %v1597_v26  ;;  %17601 = vst [vmem:[#allocation15_spill] sm:$0xff] %v11815_v42  ;;  %v2762_v24 = vshrl.u32 %v2725_v48, 16 }
 0x127   : > { %v1688_v1 = vpop.permute.xlu1 %1687  ;;  %v1694_v2 = vpop.permute.xlu2 %1693  ;;  %v1814_v5 = vld [vmem:[#allocation2 + $0x18] sm:$0xf]  ;;  %v2765_v26 = vshll.u32 %v2725_v48, 16 }
 0x128   : > { %1782 = vst.msk [vmem:[#allocation2 + $0x20] sm:$0xf] %vm1779_vm9, %v1688_v1  ;;  %v2117_v12 = vrot.slane %v2115_v58, 7  ;;  %v1848_v14 = vunpack.c.l.bf16 %v1814_v5  ;;  %v578_v5 = vand.u32 15, %v488_v36  ;;  %v1817_v33 = vld [vmem:[#allocation2 + $0x30] sm:$0xf] }
 0x129   : > { %1785 = vst.msk [vmem:[#allocation2 + $0x38] sm:$0xf] %vm1779_vm9, %v1694_v2  ;;  %v11803_v2 = vsel %vm2595_vm2, %v2597_v38, %v11751_v56  ;;  %v11825_v36 = vsel %vm1028_vm6, 1.0, %v17367_v3  ;;  %v1851_v39 = vunpack.c.l.bf16 %v1817_v33  ;;  %v2764_v48 = vrot.slane %v2762_v24, 4 }
 0x12a   : > { %v2120_v30 = vor.u32 %v2118_v13, %v2117_v12  ;;  %v2042_v31 = vmul.f32 %v11755_v6, %v1848_v14  ;;  %v2693_v47 = vmul.f32 %v11779_v59, %v1848_v14  ;;  %17598 = vst [vmem:[#allocation14_spill] sm:$0xff] %v11803_v2  ;;  %v2122_v29 = vrot.slane %v2117_v12, 4 }
 0x12b   : > { %vm1032_vm8 = vcmp.lt.s32.totalorder %v578_v5, 15  ;;  %v2045_v33 = vmul.f32 %v11815_v42, %v1851_v39 }
 0x12c   : > { %v2121_v34 = vsel %vm11768_vm3, %v10475_v4, %v2120_v30  ;;  %v2075_v37 = vpack.c.bf16 %v2042_v31, %v2042_v31  ;;  %v2726_v38 = vpack.c.bf16 %v2693_v47, %v2693_v47  ;;  %v11837_v4 = vsel %vm1032_vm8, 1.0, %v17367_v3 }
 0x12d   : > { %2401 = vrot.lane.b32.xlu0 %v2121_v34, %s11433_s28 }
 0x12e   : > { %v2124_v52 = vshrl.u32 %v2075_v37, 16  ;;  %v2127_v14 = vshll.u32 %v2075_v37, 16  ;;  %v2771_v47 = vshll.u32 %v2726_v38, 16  ;;  %v2775_v24 = vshrl.u32 %v2726_v38, 16 }
 0x12f   : > { %v1690_v57 = vpop.permute.xlu1 %1689  ;;  %v1700_v58 = vpop.permute.xlu2 %1699  ;;  %v1815_v1 = vld [vmem:[#allocation2 + $0x20] sm:$0xf] }
 0x130   : > { %1783 = vst.msk [vmem:[#allocation2 + $0x28] sm:$0xf] %vm1779_vm9, %v1690_v57  ;;  %v2126_v13 = vrot.slane %v2124_v52, 7  ;;  %v1849_v16 = vunpack.c.l.bf16 %v1815_v1  ;;  %v2767_v52 = vrot.slane %v2765_v26, 5  ;;  %v11850_v3 = vrot.slane %v2771_v47, 5  ;;  %v11852_v1 = vpop.f32.mrf.mxu2 }
 0x131   : > { %1788 = vst.msk [vmem:[#allocation2 + $0x50] sm:$0xf] %vm1779_vm9, %v1700_v58  ;;  %v11833_v58 = vsel %vm1943_vm10, %v11723_v23, %v1951_v41 }
 0x132   : > { %v2129_v30 = vor.u32 %v2127_v14, %v2126_v13  ;;  %v2043_v31 = vmul.f32 %v11799_v43, %v1849_v16  ;;  %v2694_v49 = vmul.f32 %v11803_v2, %v1849_v16  ;;  %17602 = vst [vmem:[#allocation16_spill] sm:$0xff] %v11833_v58  ;;  %v2768_v53 = vor.u32 %v2767_v52, %v2764_v48 }
 0x133   : > { %v2131_v38 = vrot.slane %v2126_v13, 4  ;;  %v2777_v43 = vrot.slane %v2775_v24, 4  ;;  %v17605_v48 = vrot.slane %v11822_v35, 1  ;;  %v17607_v52 = vpack.c.bf16 %v11763_v27, %v11763_v27 }
 0x134   : > { %v2130_v34 = vsel %vm11768_vm3, %v2122_v29, %v2129_v30  ;;  %v2076_v12 = vpack.c.bf16 %v2043_v31, %v2043_v31  ;;  %v2727_v37 = vpack.c.bf16 %v2694_v49, %v2694_v49  ;;  %v11846_v31 = vsel %vm2595_vm2, %v2601_v54, %v11751_v56  ;;  %v1818_v49 = vld [vmem:[#allocation2 + $0x38] sm:$0xf] }
 0x135   : > { %1703 = vrot.lane.b32.xlu0 %v1629_v51, %s11433_s28  ;;  %2403 = vrot.lane.b32.xlu1 %v2130_v34, %s11433_s28  ;;  %v11841_v51 = vsel %vm2595_vm2, %v11751_v56, %v2601_v54  ;;  %17604 = vst [vmem:[#allocation18_spill] sm:$0xff] %v11846_v31  ;;  %v11864_v13 = vsel %vm1943_vm10, %v11723_v23, %v17605_v48  ;;  %v17610_v27 = vmov 0 }
 0x136   : > { %v2133_v57 = vshrl.u32 %v2076_v12, 16  ;;  %17603 = vst [vmem:[#allocation17_spill] sm:$0xff] %v11841_v51  ;;  %v2781_v16 = vshll.u32 %v2727_v37, 16  ;;  %v2785_v29 = vshrl.u32 %v2727_v37, 16  ;;  %v2136_v30 = vshll.u32 %v2076_v12, 16 }
 0x137   : > { %v1702_v5 = vpop.permute.xlu2 %1701  ;;  %v1816_v14 = vld [vmem:[#allocation2 + $0x28] sm:$0xf]  ;;  %17606 = vst [vmem:[#allocation19_spill] sm:$0xff] %v11864_v13  ;;  %v17611_v27 = vsel %vm11883_vm12, 4294967295, %v17610_v27  ;;  %v2778_v48 = vor.u32 %v2777_v43, %v11850_v3 }
 0x138   : > { %1789 = vst.msk [vmem:[#allocation2 + $0x58] sm:$0xf] %vm1779_vm9, %v1702_v5  ;;  %v2135_v26 = vrot.slane %v2133_v57, 7  ;;  %v1850_v41 = vunpack.c.l.bf16 %v1816_v14  ;;  %v11856_v5 = vrot.slane %v2781_v16, 5  ;;  %v2787_v54 = vrot.slane %v2785_v29, 4  ;;  %v1414_v2 = vpop.f32.mrf.mxu2 }
 0x139   : > { %v1852_v14 = vunpack.c.l.bf16 %v1818_v49  ;;  %v2696_v16 = vmul.f32 %v11846_v31, %v1851_v39  ;;  %v11872_v29 = vpack.c.bf16 %v2045_v33, %v2045_v33  ;;  %17612 = vst [vmem:[#allocation21_spill] sm:$0xff] %v17611_v27  ;;  %v11887_v39 = vrot.slane %v2768_v53, 4 }
 0x13a   : > { %v2138_v37 = vor.u32 %v2136_v30, %v2135_v26  ;;  %v2044_v57 = vmul.f32 %v11833_v58, %v1850_v41  ;;  %v2695_v12 = vmul.f32 %v11841_v51, %v1850_v41  ;;  %v17608_v30 = vrot.slane %v11837_v4, 7 }
 0x13b   : > { %v1471_v58 = vmul.f32 %v11677_v25, %v11809_v11  ;;  %v17613_v53 = vrot.slane %v11825_v36, 7  ;;  %v1631_v11 = vpack.c.bf16 %v11790_v40, %v11790_v40 }
 0x13c   : > { %v2139_v42 = vsel %vm11768_vm3, %v2131_v38, %v2138_v37  ;;  %v2077_v34 = vpack.c.bf16 %v2044_v57, %v2044_v57  ;;  %v2728_v47 = vpack.c.bf16 %v2695_v12, %v2695_v12  ;;  %v11879_v41 = vsel %vm2595_vm2, %v11751_v56, %v17608_v30 }
 0x13d   : > { %1705 = vrot.lane.b32.xlu0 %v17607_v52, %s11433_s28  ;;  %2405 = vrot.lane.b32.xlu1 %v2139_v42, %s11433_s28  ;;  %17609 = vst [vmem:[#allocation20_spill] sm:$0xff] %v11879_v41  ;;  %v2788_v37 = vor.u32 %v2787_v54, %v11856_v5  ;;  %v2046_v57 = vmul.f32 %v11864_v13, %v1852_v14  ;;  %v487_v54 = vadd.s32 64, %v11714_v62  ;;  %v2151_v13 = vshrl.u32 %v11872_v29, 16 }
 0x13e   : > { %v2142_v49 = vshrl.u32 %v2077_v34, 16  ;;  %v2791_v42 = vshll.u32 %v2728_v47, 16  ;;  %v2795_v38 = vshrl.u32 %v2728_v47, 16  ;;  %v2145_v33 = vshll.u32 %v2077_v34, 16 }
 0x13f   : > { %v11891_v12 = vld [vmem:[#allocation2 + $0x58] sm:$0xf]  ;;  %v11901_v34 = vsel %vm2595_vm2, %v11751_v56, %v17613_v53  ;;  %v2140_v47 = vrot.slane %v2135_v26, 4  ;;  %v2789_v31 = vrot.slane %v2788_v37, 4  ;;  %v2079_v26 = vpack.c.bf16 %v2046_v57, %v2046_v57 }
 0x140   : > { %v2144_v52 = vrot.slane %v2142_v49, 7  ;;  %v2793_v30 = vrot.slane %v2791_v42, 5  ;;  %v2797_v24 = vrot.slane %v2795_v38, 4  ;;  %17614 = vst [vmem:[#allocation22_spill] sm:$0xff] %v11901_v34  ;;  %v2729_v42 = vpack.c.bf16 %v2696_v16, %v2696_v16 }
 0x141   : > { %v11908_v38 = vrot.slane %v2778_v48, 4  ;;  %v17615_v53 = vunpack.c.l.bf16 %v11891_v12  ;;  %v1600_v48 = vadd.f32 %v11609_v45, %v1471_v58  ;;  %v486_v57 = vadd.s32 56, %v11714_v62 }
 0x142   : > { %v2147_v49 = vor.u32 %v2145_v33, %v2144_v52  ;;  %v2798_v43 = vor.u32 %v2797_v24, %v2793_v30  ;;  %v2794_v40 = vsel %vm11883_vm12, %v2789_v31, %v2793_v30  ;;  %v2697_v33 = vmul.f32 %v11901_v34, %v1852_v14 }
 0x143   : > { %v2701_v51 = vmul.f32 %v11879_v41, %v17615_v53  ;;  %v2801_v24 = vshll.u32 %v2729_v42, 16  ;;  %v2153_v53 = vrot.slane %v2151_v13, 7  ;;  %v2805_v16 = vshrl.u32 %v2729_v42, 16 }
 0x144   : > { %v2148_v6 = vsel %vm11768_vm3, %v2140_v47, %v2147_v49  ;;  %v571_v47 = vand.u32 15, %v487_v54  ;;  %v2799_v31 = vrot.slane %v2798_v43, 4  ;;  %v2160_v45 = vshrl.u32 %v2079_v26, 16 }
 0x145   : > { %2407 = vrot.lane.b32.xlu2 %v2148_v6, %s11433_s28  ;;  %1707 = vrot.lane.b32.xlu0 %v1631_v11, %s11433_s28  ;;  %v2734_v37 = vpack.c.bf16 %v2701_v51, %v2701_v51  ;;  %v1472_v11 = vmul.f32 %v11677_v25, %v11852_v1  ;;  %v2154_v51 = vshll.u32 %v11872_v29, 16  ;;  %v2149_v58 = vrot.slane %v2144_v52, 4 }
 0x146   : > { %3089 = vrot.lane.b32.xlu1 %v2794_v40, %s11433_s28  ;;  %v2730_v14 = vpack.c.bf16 %v2697_v33, %v2697_v33  ;;  %v2803_v54 = vrot.slane %v2801_v24, 5  ;;  %v1632_v13 = vpack.c.bf16 %v1600_v48, %v1600_v48  ;;  %v564_v42 = vand.u32 15, %v486_v57  ;;  %v1417_v24 = vpop.f32.mrf.mxu2 }
 0x147   : > { %v1696_v49 = vpop.permute.xlu0 %1695  ;;  %v2851_v6 = vshll.u32 %v2734_v37, 16  ;;  %v2855_v41 = vshrl.u32 %v2734_v37, 16  ;;  %vm11938_vm13 = vcmp.ge.s32.totalorder %v571_v47, 1  ;;  %v2156_v1 = vor.u32 %v2154_v51, %v2153_v53 }
 0x148   : > { %1786 = vst.msk [vmem:[#allocation2 + $0x40] sm:$0xf] %vm1779_vm9, %v1696_v49  ;;  %v2807_v34 = vrot.slane %v2805_v16, 4  ;;  %v489_v43 = vadd.s32 80, %v11714_v62  ;;  %v2804_v52 = vsel %vm11883_vm12, %v2799_v31, %v2803_v54  ;;  %v11947_v33 = vrot.slane %v2160_v45, 7 }
 0x149   : > { %v11934_v30 = vrot.slane %v2851_v6, 5  ;;  %v11936_v40 = vrot.slane %v2855_v41, 4  ;;  %v1601_v41 = vadd.f32 %v11620_v50, %v1472_v11  ;;  %v2157_v48 = vsel %vm11768_vm3, %v2149_v58, %v2156_v1 }
 0x14a   : > { %v2811_v16 = vshll.u32 %v2730_v14, 16  ;;  %v2163_v57 = vshll.u32 %v2079_v26, 16  ;;  %v2815_v47 = vshrl.u32 %v2730_v14, 16  ;;  %vm1030_vm14 = vcmp.lt.s32.totalorder %v564_v42, 15 }
 0x14b   : > { %v17618_v49 = vmov 0.0   ;;  %v2808_v50 = vor.u32 %v2807_v34, %v2803_v54  ;;  %v17619_v51 = vrot.slane %v11825_v36, 7  ;;  %v17621_v58 = vrot.slane %v11822_v35, 1 }
 0x14c   : > { %v10350_v6 = vsel %vm11938_vm13, 1.0, %v17618_v49  ;;  %v585_v14 = vand.u32 15, %v489_v43  ;;  %v1473_v34 = vmul.f32 %v11677_v25, %v1414_v2  ;;  %v2813_v54 = vrot.slane %v2811_v16, 5 }
 0x14d   : > { %3091 = vrot.lane.b32.xlu2 %v2804_v52, %s11433_s28  ;;  %1709 = vrot.lane.b32.xlu0 %v1632_v13, %s11433_s28  ;;  %v11962_v45 = vsel %vm2595_vm2, %v17619_v51, %v11751_v56  ;;  %v11968_v26 = vsel %vm1943_vm10, %v17621_v58, %v11723_v23  ;;  %v2165_v13 = vor.u32 %v2163_v57, %v11947_v33  ;;  %v10365_v36 = vsel %vm1030_vm14, 1.0, %v17618_v49 }
 0x14e   : > { %2409 = vrot.lane.b32.xlu1 %v2157_v48, %s11433_s28  ;;  %17620 = vst [vmem:[#allocation23_spill] sm:$0xff] %v11962_v45  ;;  %v1959_v37 = vrot.slane %v10350_v6, 1  ;;  %v2158_v1 = vrot.slane %v2153_v53, 4  ;;  %v2817_v48 = vrot.slane %v2815_v47, 4  ;;  %v1633_v51 = vpack.c.bf16 %v1601_v41, %v1601_v41 }
 0x14f   : > { %v1698_v31 = vpop.permute.xlu1 %1697  ;;  %v1819_v11 = vld [vmem:[#allocation2 + $0x40] sm:$0xf]  ;;  %17622 = vst [vmem:[#allocation24_spill] sm:$0xff] %v11968_v26  ;;  %v2809_v58 = vrot.slane %v2808_v50, 4  ;;  %vm905_vm15 = vcmp.ge.s32.totalorder %v585_v14, 1  ;;  %v1602_v2 = vadd.f32 %v11630_v60, %v1473_v34  ;;  %v2609_v16 = vrot.slane %v10365_v36, 7 }
 0x150   : > { %1787 = vst.msk [vmem:[#allocation2 + $0x48] sm:$0xf] %vm1779_vm9, %v1698_v31  ;;  %v1853_v42 = vunpack.c.l.bf16 %v1819_v11  ;;  %v2166_v43 = vsel %vm11768_vm3, %v2158_v1, %v2165_v13  ;;  %v1821_v11 = vld [vmem:[#allocation2 + $0x50] sm:$0xf]  ;;  %v11985_v41 = vsel %vm1943_vm10, %v1959_v37, %v11723_v23  ;;  %v2818_v47 = vor.u32 %v2817_v48, %v2813_v54  ;;  %v1419_v1 = vpop.f32.mrf.mxu2 }
 0x151   : > { %v2814_v53 = vsel %vm11883_vm12, %v2809_v58, %v2813_v54  ;;  %17623 = vst [vmem:[#allocation25_spill] sm:$0xff] %v11985_v41  ;;  %v11989_v14 = vsel %vm905_vm15, 1.0, %v17618_v49  ;;  %v11993_v13 = vsel %vm2595_vm2, %v11751_v56, %v2609_v16  ;;  %v11997_v34 = vsel %vm1943_vm10, %v11723_v23, %v1959_v37 }
 0x152   : > { %v2698_v52 = vmul.f32 %v11962_v45, %v1853_v42  ;;  %v2047_v35 = vmul.f32 %v11968_v26, %v1853_v42  ;;  %17624 = vst [vmem:[#allocation26_spill] sm:$0xff] %v11993_v13  ;;  %v1855_v36 = vunpack.c.l.bf16 %v1821_v11  ;;  %v1634_v58 = vpack.c.bf16 %v1602_v2, %v1602_v2 }
 0x153   : > { %17625 = vst [vmem:[#allocation27_spill] sm:$0xff] %v11997_v34  ;;  %v2167_v29 = vrot.slane %v11947_v33, 4 }
 0x154   : > { %v2731_v57 = vpack.c.bf16 %v2698_v52, %v2698_v52  ;;  %v2080_v31 = vpack.c.bf16 %v2047_v35, %v2047_v35  ;;  %v2049_v11 = vmul.f32 %v11985_v41, %v1855_v36 }
 0x155   : > { %2411 = vrot.lane.b32.xlu2 %v2166_v43, %s11433_s28  ;;  %1711 = vrot.lane.b32.xlu0 %v1633_v51, %s11433_s28  ;;  %v1474_v51 = vmul.f32 %v11677_v25, %v1417_v24  ;;  %v17393_v43 = vrot.slane %v11989_v14, 1 }
 0x156   : > { %3093 = vrot.lane.b32.xlu1 %v2814_v53, %s11433_s28  ;;  %v2821_v6 = vshll.u32 %v2731_v57, 16  ;;  %v2169_v50 = vshrl.u32 %v2080_v31, 16  ;;  %v2825_v42 = vshrl.u32 %v2731_v57, 16  ;;  %v2172_v54 = vshll.u32 %v2080_v31, 16 }
 0x157   : > { %v1820_v60 = vld [vmem:[#allocation2 + $0x48] sm:$0xf]  ;;  %v2819_v53 = vrot.slane %v2818_v47, 4  ;;  %v12007_v31 = vsel %vm2595_vm2, %v2609_v16, %v11751_v56  ;;  %v11113_v16 = vld [vmem:[%s17356_s4 + $0x38] sm:$0xff] }
 0x158   : > { %v2823_v52 = vrot.slane %v2821_v6, 5  ;;  %v2171_v35 = vrot.slane %v2169_v50, 7  ;;  %v1854_v48 = vunpack.c.l.bf16 %v1820_v60  ;;  %v2827_v45 = vrot.slane %v2825_v42, 4  ;;  %17626 = vst [vmem:[#allocation28_spill] sm:$0xff] %v12007_v31  ;;  %3822 = vmatpush.bf16.msrb.mxu3 %v11113_v16 }
 0x159   : > { %v12019_v6 = vsel %vm1943_vm10, %v11723_v23, %v17393_v43  ;;  %v1603_v50 = vadd.f32 %v11637_v63, %v1474_v51  ;;  %v1475_v63 = vmul.f32 %v11677_v25, %v1419_v1  ;;  %v1422_v51 = vpop.f32.mrf.mxu2  ;;  %v11112_v1 = vld [vmem:[%s17356_s4 + $0x30] sm:$0xff] }
 0x15a   : > { %v2174_v26 = vor.u32 %v2172_v54, %v2171_v35  ;;  %v2699_v57 = vmul.f32 %v11993_v13, %v1854_v48  ;;  %v2048_v37 = vmul.f32 %v11997_v34, %v1854_v48  ;;  %v2824_v24 = vsel %vm11883_vm12, %v2819_v53, %v2823_v52  ;;  %17627 = vst [vmem:[#allocation29_spill] sm:$0xff] %v12019_v6 }
 0x15b   : > { %v2828_v42 = vor.u32 %v2827_v45, %v2823_v52  ;;  %v2082_v48 = vpack.c.bf16 %v2049_v11, %v2049_v11  ;;  %v1635_v41 = vpack.c.bf16 %v1603_v50, %v1603_v50  ;;  %v1604_v16 = vadd.f32 %v11645_v7, %v1475_v63 }
 0x15c   : > { %v2175_v2 = vsel %vm11768_vm3, %v2167_v29, %v2174_v26  ;;  %v2732_v47 = vpack.c.bf16 %v2699_v57, %v2699_v57  ;;  %v2081_v33 = vpack.c.bf16 %v2048_v37, %v2048_v37  ;;  %v2700_v26 = vmul.f32 %v12007_v31, %v1855_v36  ;;  %3823 = vmatpush.bf16.msrb.mxu3 %v11112_v1 }
 0x15d   : > { %1713 = vrot.lane.b32.xlu0 %v1634_v58, %s11433_s28  ;;  %3095 = vrot.lane.b32.xlu2 %v2824_v24, %s11433_s28  ;;  %v17628_v58 = vunpack.c.l.bf16 %v11891_v12  ;;  %v2829_v34 = vrot.slane %v2828_v42, 4  ;;  %v2176_v36 = vrot.slane %v2171_v35, 4  ;;  %v2187_v45 = vshrl.u32 %v2082_v48, 16 }
 0x15e   : > { %2413 = vrot.lane.b32.xlu1 %v2175_v2, %s11433_s28  ;;  %v2831_v29 = vshll.u32 %v2732_v47, 16  ;;  %v2835_v60 = vshrl.u32 %v2732_v47, 16  ;;  %v2178_v54 = vshrl.u32 %v2081_v33, 16  ;;  %v2181_v24 = vshll.u32 %v2081_v33, 16 }
 0x15f   : > { %v2050_v53 = vmul.f32 %v12019_v6, %v17628_v58  ;;  %v2733_v2 = vpack.c.bf16 %v2700_v26, %v2700_v26  ;;  %v2189_v35 = vrot.slane %v2187_v45, 7  ;;  %v1636_v42 = vpack.c.bf16 %v1604_v16, %v1604_v16  ;;  %v11109_v45 = vld [vmem:[%s17356_s4 + $0x18] sm:$0xff] }
 0x160   : > { %v2833_v57 = vrot.slane %v2831_v29, 5  ;;  %v2180_v37 = vrot.slane %v2178_v54, 7  ;;  %v2837_v43 = vrot.slane %v2835_v60, 4  ;;  %v2190_v29 = vshll.u32 %v2082_v48, 16  ;;  %v11110_v48 = vld [vmem:[%s17356_s4 + $0x20] sm:$0xff] }
 0x161   : > { %v2083_v33 = vpack.c.bf16 %v2050_v53, %v2050_v53  ;;  %v2845_v50 = vshrl.u32 %v2733_v2, 16  ;;  %v1476_v54 = vmul.f32 %v11677_v25, %v1422_v51  ;;  %v11127_v51 = vld [vmem:[%s17356_s4 + $0x98] sm:$0xff] }
 0x162   : > { %v2183_v47 = vor.u32 %v2181_v24, %v2180_v37  ;;  %v2834_v12 = vsel %vm11883_vm12, %v2829_v34, %v2833_v57  ;;  %v2838_v11 = vor.u32 %v2837_v43, %v2833_v57  ;;  %v11111_v34 = vld [vmem:[%s17356_s4 + $0x28] sm:$0xff]  ;;  %v2185_v43 = vrot.slane %v2180_v37, 4  ;;  %v1424_v57 = vpop.f32.mrf.mxu2  ;;  %3560 = vmatpush.bf16.msrb.mxu1 %v11127_v51 }
 0x163   : > { %v2196_v60 = vshrl.u32 %v2083_v33, 16  ;;  %v2192_v7 = vor.u32 %v2190_v29, %v2189_v35  ;;  %v2847_v53 = vrot.slane %v2845_v50, 4  ;;  %3824 = vmatpush.bf16.msrb.mxu3 %v11111_v34  ;;  %v1477_v1 = vmul.f32 %v11677_v25, %v1424_v57  ;;  %v11126_v50 = vld [vmem:[%s17356_s4 + $0x90] sm:$0xff]  ;;  %v11125_v29 = vld [vmem:[%s17356_s4 + $0x88] sm:$0xff]  ;;  %v10694_v57 = vld [vmem:[#allocation2] sm:$0xf] }
 0x164   : > { %v2184_v52 = vsel %vm11768_vm3, %v2176_v36, %v2183_v47  ;;  %v2839_v26 = vrot.slane %v2838_v11, 4  ;;  %v2199_v47 = vshll.u32 %v2083_v33, 16  ;;  %v11108_v34 = vld [vmem:[%s17356_s4 + $0x10] sm:$0xff] }
 0x165   : > { %1715 = vrot.lane.b32.xlu0 %v1635_v41, %s11433_s28  ;;  %2415 = vrot.lane.b32.xlu2 %v2184_v52, %s11433_s28  ;;  %v2841_v41 = vshll.u32 %v2733_v2, 16  ;;  %v2193_v24 = vsel %vm11768_vm3, %v2185_v43, %v2192_v7  ;;  %v12051_v37 = vrot.slane %v2196_v60, 7  ;;  %v1605_v2 = vadd.f32 %v11651_v9, %v1476_v54  ;;  %v1432_v52 = vpop.f32.mrf.mxu3  ;;  %v11106_v7 = vld [vmem:[%s17356_s4] sm:$0xff] }
 0x166   : > { %3097 = vrot.lane.b32.xlu1 %v2834_v12, %s11433_s28  ;;  %3561 = vmatpush.bf16.msrb.mxu1 %v11126_v50 }
 0x167   : > { %v2843_v58 = vrot.slane %v2841_v41, 5  ;;  %3825 = vmatpush.bf16.msrb.mxu3 %v11110_v48  ;;  %v2201_v12 = vor.u32 %v2199_v47, %v12051_v37  ;;  %v1637_v11 = vpack.c.bf16 %v1605_v2, %v1605_v2  ;;  %v2194_v41 = vrot.slane %v2189_v35, 4 }
 0x168   : > { %v1606_v35 = vadd.f32 %v11657_v17, %v1477_v1  ;;  %v11124_v17 = vld [vmem:[%s17356_s4 + $0x80] sm:$0xff] }
 0x169   : > { %v2844_v63 = vsel %vm11883_vm12, %v2839_v26, %v2843_v58  ;;  %v2848_v36 = vor.u32 %v2847_v53, %v2843_v58  ;;  %v2202_v33 = vsel %vm11768_vm3, %v2194_v41, %v2201_v12  ;;  %v11107_v26 = vld [vmem:[%s17356_s4 + $0x8] sm:$0xff]  ;;  %v1480_v12 = vmul.f32 %v11677_v25, %v1432_v52  ;;  %v11120_v1 = vld [vmem:[%s17356_s4 + $0x60] sm:$0xff]  ;;  %v11130_v52 = vld [vmem:[%s17356_s4 + $0xb0] sm:$0xff] }
 0x16a   : > { %v1427_v43 = vpop.f32.mrf.mxu2  ;;  %3562 = vmatpush.bf16.msrb.mxu1 %v11125_v29  ;;  %v11128_v29 = vld [vmem:[%s17356_s4 + $0xa0] sm:$0xff] }
 0x16b   : > { %v2849_v16 = vrot.slane %v2848_v36, 4  ;;  %3826 = vmatpush.bf16.msrb.mxu3 %v11109_v45  ;;  %v1478_v60 = vmul.f32 %v11677_v25, %v1427_v43  ;;  %v11121_v45 = vld [vmem:[%s17356_s4 + $0x68] sm:$0xff] }
 0x16d   : > { %1717 = vrot.lane.b32.xlu0 %v1636_v42, %s11433_s28  ;;  %3099 = vrot.lane.b32.xlu2 %v2844_v63, %s11433_s28  ;;  %v2854_v9 = vsel %vm11883_vm12, %v2849_v16, %v11934_v30  ;;  %v1638_v42 = vpack.c.bf16 %v1606_v35, %v1606_v35  ;;  %v1434_v54 = vpop.f32.mrf.mxu3  ;;  %v1607_v58 = vadd.f32 %v11663_v19, %v1478_v60  ;;  %v11123_v63 = vld [vmem:[%s17356_s4 + $0x78] sm:$0xff]  ;;  %v11122_v19 = vld [vmem:[%s17356_s4 + $0x70] sm:$0xff] }
 0x16e   : > { %2417 = vrot.lane.b32.xlu1 %v2193_v24, %s11433_s28  ;;  %3563 = vmatpush.bf16.msrb.mxu1 %v11124_v17  ;;  %v11075_v24 = vld [vmem:[#allocation2 + $0x4] sm:$0xf0]  ;;  %v1609_v16 = vadd.f32 %v11606_v44, %v1480_v12 }
 0x16f   : > { %3827 = vmatpush.bf16.msrb.mxu3 %v11108_v34  ;;  %v10695_v48 = vor.u32 %v11075_v24, %v10694_v57  ;;  %v1639_v51 = vpack.c.bf16 %v1607_v58, %v1607_v58  ;;  %v11129_v34 = vld [vmem:[%s17356_s4 + $0xa8] sm:$0xff]  ;;  %v491_v58 = vadd.s32 96, %v11714_v62 }
 0x172   : > { %v1429_v53 = vpop.f32.mrf.mxu2  ;;  %3564 = vmatpush.bf16.msrb.mxu1 %v11123_v63 }
 0x173   : > { %3828 = vmatpush.bf16.msrb.mxu3 %v11107_v26  ;;  %v1479_v2 = vmul.f32 %v11677_v25, %v1429_v53 }
 0x175   : > { %1719 = vrot.lane.b32.xlu0 %v1637_v11, %s11433_s28  ;;  %2419 = vrot.lane.b32.xlu2 %v2202_v33, %s11433_s28  ;;  %v1437_v36 = vpop.f32.mrf.mxu3  ;;  %v1608_v47 = vadd.f32 %v11669_v21, %v1479_v2  ;;  %v1641_v21 = vpack.c.bf16 %v1609_v16, %v1609_v16  ;;  %v11131_v33 = vld [vmem:[%s17356_s4 + $0xb8] sm:$0xff] }
 0x176   : > { %3101 = vrot.lane.b32.xlu1 %v2854_v9, %s11433_s28  ;;  %3565 = vmatpush.bf16.msrb.mxu1 %v11122_v19  ;;  %v1481_v9 = vmul.f32 %v11677_v25, %v1434_v54  ;;  %v1482_v43 = vmul.f32 %v11677_v25, %v1437_v36 }
 0x177   : > { %3829 = vmatpush.bf16.msrb.mxu3 %v11106_v7  ;;  %v1640_v11 = vpack.c.bf16 %v1608_v47, %v1608_v47  ;;  %11275 = vmatpush.bf16.msrb.mxu2 %v11131_v33  ;;  %v490_v7 = vadd.s32 88, %v11714_v62 }
 0x178   : > { %v1610_v50 = vadd.f32 %v11612_v46, %v1481_v9  ;;  %v1611_v46 = vadd.f32 %v11623_v55, %v1482_v43 }
 0x179   : > { %v592_v63 = vand.u32 15, %v490_v7 }
 0x17a   : > { %3830 = vmatmul.bf16.vlgmr.msrb.gmra.mxu3 %v10695_v48  ;;  %3566 = vmatpush.bf16.msrb.mxu1 %v11121_v45  ;;  %v1642_v35 = vpack.c.bf16 %v1610_v50, %v1610_v50  ;;  %v599_v48 = vand.u32 15, %v491_v58 }
 0x17b   : > { %11276 = vmatpush.bf16.msrb.mxu2 %v11130_v52  ;;  %vm1034_vm4 = vcmp.lt.s32.totalorder %v592_v63, 15 }
 0x17c   : > { %vm907_vm6 = vcmp.ge.s32.totalorder %v599_v48, 1 }
 0x17d   : > { %1721 = vrot.lane.b32.xlu0 %v1638_v42, %s11433_s28  ;;  %v1439_v41 = vpop.f32.mrf.mxu3  ;;  %v1643_v42 = vpack.c.bf16 %v1611_v46, %v1611_v46  ;;  %v12164_v9 = vsel %vm907_vm6, 1.0, %v17618_v49 }
 0x17e   : > { %3567 = vmatpush.bf16.msrb.mxu1 %v11120_v1  ;;  %v1483_v54 = vmul.f32 %v11677_v25, %v1439_v41  ;;  %v17629_v1 = vrot.slane %v11837_v4, 7  ;;  %v17631_v41 = vrot.slane %v11989_v14, 1  ;;  %v493_v14 = vadd.s32 112, %v11714_v62 }
 0x17f   : > { %11277 = vmatpush.bf16.msrb.mxu2 %v11129_v34 }
 0x180   : > { %v1612_v55 = vadd.f32 %v11633_v61, %v1483_v54  ;;  %v12152_v16 = vsel %vm2595_vm2, %v17629_v1, %v11751_v56  ;;  %v613_v7 = vand.u32 15, %v493_v14 }
 0x181   : > { %17630 = vst [vmem:[#allocation30_spill] sm:$0xff] %v12152_v16 }
 0x182   : > { %3653 = vmatpush.bf16.msra.mxu1 %v11131_v33  ;;  %v1644_v2 = vpack.c.bf16 %v1612_v55, %v1612_v55  ;;  %vm909_vm8 = vcmp.ge.s32.totalorder %v613_v7, 1 }
 0x183   : > { %11278 = vmatpush.bf16.msrb.mxu2 %v11128_v29 }
 0x185   : > { %1723 = vrot.lane.b32.xlu0 %v1639_v51, %s11433_s28  ;;  %v1442_v44 = vpop.f32.mrf.mxu3 }
 0x186   : > { %3654 = vmatpush.bf16.msra.mxu1 %v11130_v52  ;;  %v1484_v51 = vmul.f32 %v11677_v25, %v1442_v44  ;;  %v492_v44 = vadd.s32 104, %v11714_v62 }
 0x188   : > { %v1613_v61 = vadd.f32 %v11640_v0, %v1484_v51  ;;  %v12161_v0 = vsel %vm1034_vm4, 1.0, %v17618_v49  ;;  %v17633_v51 = vor.u32 %v11936_v40, %v11934_v30  ;;  %v2203_v40 = vrot.slane %v12051_v37, 4 }
 0x18a   : > { %3655 = vmatpush.bf16.msra.mxu1 %v11129_v34  ;;  %v1645_v34 = vpack.c.bf16 %v1613_v61, %v1613_v61 }
 0x18d   : > { %1725 = vrot.lane.b32.xlu0 %v1640_v11, %s11433_s28  ;;  %v1444_v17 = vpop.f32.mrf.mxu3 }
 0x18e   : > { %3656 = vmatpush.bf16.msra.mxu1 %v11128_v29  ;;  %v1485_v36 = vmul.f32 %v11677_v25, %v1444_v17  ;;  %v606_v17 = vand.u32 15, %v492_v44 }
 0x190   : > { %v1614_v43 = vadd.f32 %v11648_v8, %v1485_v36  ;;  %vm1036_vm7 = vcmp.lt.s32.totalorder %v606_v17, 15 }
 0x191   : > { %v12213_v14 = vsel %vm1036_vm7, 1.0, %v17618_v49 }
 0x195   : > { %1727 = vrot.lane.b32.xlu0 %v1641_v21, %s11433_s28  ;;  %v1447_v19 = vpop.f32.mrf.mxu3  ;;  %v12158_v21 = vsel %vm1943_vm10, %v17631_v41, %v11723_v23 }
 0x196   : > { %17632 = vst [vmem:[#allocation31_spill] sm:$0xff] %v12158_v21  ;;  %v1486_v46 = vmul.f32 %v11677_v25, %v1447_v19 }
 0x198   : > { %v12178_v63 = vadd.f32 %v11654_v10, %v1486_v46 }
 0x19a   : > { %v1647_v44 = vpack.c.bf16 %v12178_v63, %v12178_v63  ;;  %v494_v63 = vadd.s32 120, %v11714_v62 }
 0x19d   : > { %1729 = vrot.lane.b32.xlu0 %v1642_v35, %s11433_s28  ;;  %v1449_v10 = vpop.f32.mrf.mxu3 }
 0x19f   : > { %v2408_v26 = vpop.permute.xlu2 %2407  ;;  %v2402_v60 = vpop.permute.xlu0 %2401 }
 0x1a0   : > { %2501 = vst.msk [vmem:[#allocation2 + $0x28] sm:$0xf] %vm2497_vm1, %v2408_v26  ;;  %v2617_v26 = vrot.slane %v12161_v0, 7 }
 0x1a1   : > { %2498 = vst.msk [vmem:[#allocation2 + $0x10] sm:$0xf] %vm2497_vm1, %v2402_v60  ;;  %v1967_v60 = vrot.slane %v12164_v9, 1 }
 0x1a2   : > { %v12188_v61 = vsel %vm2595_vm2, %v11751_v56, %v2617_v26 }
 0x1a3   : > { %17634 = vst [vmem:[#allocation32_spill] sm:$0xff] %v12188_v61  ;;  %v12192_v36 = vsel %vm1943_vm10, %v11723_v23, %v1967_v60 }
 0x1a4   : > { %17635 = vst [vmem:[#allocation33_spill] sm:$0xff] %v12192_v36 }
 0x1a5   : > { %1731 = vrot.lane.b32.xlu0 %v1643_v42, %s11433_s28 }
 0x1a7   : > { %v3092_v53 = vpop.permute.xlu2 %3091  ;;  %v1704_v57 = vpop.permute.xlu0 %1703 }
 0x1a8   : > { %3184 = vst.msk [vmem:[#allocation2 + $0x2c] sm:$0xf] %vm2497_vm1, %v3092_v53  ;;  %v2404_v24 = vpop.permute.xlu1 %2403  ;;  %v10502_v33 = vld [vmem:[#allocation2 + $0x10] sm:$0xf]  ;;  %v1646_v53 = vpack.c.bf16 %v1614_v43, %v1614_v43 }
 0x1a9   : > { %1790 = vst.msk [vmem:[#allocation2 + $0x60] sm:$0xf] %vm1779_vm9, %v1704_v57 }
 0x1aa   : > { %2499 = vst.msk [vmem:[#allocation2 + $0x18] sm:$0xf] %vm2497_vm1, %v2404_v24 }
 0x1ad   : > { %1733 = vrot.lane.b32.xlu0 %v1644_v2, %s11433_s28  ;;  %v2859_v2 = vrot.slane %v17633_v51, 4 }
 0x1af   : > { %v2412_v47 = vpop.permute.xlu2 %2411  ;;  %v1706_v45 = vpop.permute.xlu0 %1705  ;;  %v10512_v46 = vld [vmem:[#allocation2 + $0x28] sm:$0xf0] }
 0x1b0   : > { %2503 = vst.msk [vmem:[#allocation2 + $0x38] sm:$0xf] %vm2497_vm1, %v2412_v47  ;;  %v2406_v12 = vpop.permute.xlu1 %2405  ;;  %v1823_v11 = vld [vmem:[#allocation2 + $0x60] sm:$0xf] }
 0x1b1   : > { %1791 = vst.msk [vmem:[#allocation2 + $0x68] sm:$0xf] %vm1779_vm9, %v1706_v45  ;;  %v11077_v52 = vld [vmem:[#allocation2 + $0x14] sm:$0xf0]  ;;  %v1857_v4 = vunpack.c.l.bf16 %v1823_v11 }
 0x1b2   : > { %2500 = vst.msk [vmem:[#allocation2 + $0x20] sm:$0xf] %vm2497_vm1, %v2406_v12  ;;  %v10503_v50 = vor.u32 %v11077_v52, %v10502_v33  ;;  %v1487_v52 = vmul.f32 %v11677_v25, %v1449_v10 }
 0x1b3   : > { %v2702_v35 = vmul.f32 %v12152_v16, %v1857_v4  ;;  %v2051_v29 = vmul.f32 %v12158_v21, %v1857_v4 }
 0x1b4   : > { %3568 = vmatmul.bf16.vlgmr.msrb.gmra.mxu1 %v10503_v50  ;;  %3835 = vmatmul.bf16.gmra.mxu3 %v10503_v50 }
 0x1b5   : > { %1735 = vrot.lane.b32.xlu0 %v1645_v34, %s11433_s28  ;;  %v2735_v42 = vpack.c.bf16 %v2702_v35, %v2702_v35  ;;  %v2084_v54 = vpack.c.bf16 %v2051_v29, %v2051_v29  ;;  %v12216_v34 = vsel %vm909_vm8, 1.0, %v17618_v49  ;;  %v11079_v29 = vld [vmem:[#allocation2 + $0x24] sm:$0xf0] }
 0x1b7   : > { %v3096_v58 = vpop.permute.xlu2 %3095  ;;  %v1708_v8 = vpop.permute.xlu0 %1707  ;;  %v2861_v55 = vshll.u32 %v2735_v42, 16  ;;  %v2205_v57 = vshrl.u32 %v2084_v54, 16  ;;  %v2865_v24 = vshrl.u32 %v2735_v42, 16  ;;  %v2208_v12 = vshll.u32 %v2084_v54, 16 }
 0x1b8   : > { %3186 = vst.msk [vmem:[#allocation2 + $0x3c] sm:$0xf] %vm2497_vm1, %v3096_v58  ;;  %v3090_v48 = vpop.permute.xlu1 %3089  ;;  %v1824_v19 = vld [vmem:[#allocation2 + $0x68] sm:$0xf]  ;;  %v12219_v58 = vadd.f32 %v11660_v18, %v1487_v52  ;;  %v12232_v18 = vsel %vm2595_vm2, %v2617_v26, %v11751_v56  ;;  %v1971_v26 = vrot.slane %v12216_v34, 1 }
 0x1b9   : > { %1792 = vst.msk [vmem:[#allocation2 + $0x70] sm:$0xf] %vm1779_vm9, %v1708_v8  ;;  %v2863_v47 = vrot.slane %v2861_v55, 5  ;;  %v12195_v45 = vrot.slane %v2205_v57, 7  ;;  %v1858_v30 = vunpack.c.l.bf16 %v1824_v19  ;;  %v2867_v11 = vrot.slane %v2865_v24, 4 }
 0x1ba   : > { %3183 = vst.msk [vmem:[#allocation2 + $0x24] sm:$0xf] %vm2497_vm1, %v3090_v48  ;;  %v10510_v35 = vld [vmem:[#allocation2 + $0x20] sm:$0xf]  ;;  %v12224_v24 = vsel %vm1943_vm10, %v1967_v60, %v11723_v23 }
 0x1bb   : > { %v2864_v1 = vsel %vm11883_vm12, %v2859_v2, %v2863_v47  ;;  %v2210_v41 = vor.u32 %v2208_v12, %v12195_v45  ;;  %v2703_v9 = vmul.f32 %v12188_v61, %v1858_v30  ;;  %v2052_v33 = vmul.f32 %v12192_v36, %v1858_v30  ;;  %17636 = vst [vmem:[#allocation34_spill] sm:$0xff] %v12224_v24  ;;  %v1452_v30 = vpop.f32.mrf.mxu3 }
 0x1bc   : > { %3103 = vrot.lane.b32.xlu2 %v2864_v1, %s11433_s28  ;;  %v2868_v42 = vor.u32 %v2867_v11, %v2863_v47  ;;  %17637 = vst [vmem:[#allocation35_spill] sm:$0xff] %v12232_v18  ;;  %v10511_v10 = vor.u32 %v11079_v29, %v10510_v35  ;;  %v2212_v60 = vrot.slane %v12195_v45, 4  ;;  %v2621_v12 = vrot.slane %v12213_v14, 7 }
 0x1bd   : > { %1737 = vrot.lane.b32.xlu0 %v1646_v53, %s11433_s28  ;;  %v2211_v37 = vsel %vm11768_vm3, %v2203_v40, %v2210_v41  ;;  %v2736_v4 = vpack.c.bf16 %v2703_v9, %v2703_v9  ;;  %v2085_v50 = vpack.c.bf16 %v2052_v33, %v2052_v33  ;;  %v620_v9 = vand.u32 15, %v494_v63 }
 0x1be   : > { %2421 = vrot.lane.b32.xlu1 %v2211_v37, %s11433_s28  ;;  %v2869_v40 = vrot.slane %v2868_v42, 4  ;;  %v495_v37 = vadd.s32 128, %v11714_v62 }
 0x1bf   : > { %v1710_v43 = vpop.permute.xlu0 %1709  ;;  %v2871_v54 = vshll.u32 %v2736_v4, 16  ;;  %v2214_v17 = vshrl.u32 %v2085_v50, 16  ;;  %v2875_v7 = vshrl.u32 %v2736_v4, 16  ;;  %v2416_v8 = vpop.permute.xlu2 %2415  ;;  %v2217_v53 = vshll.u32 %v2085_v50, 16 }
 0x1c0   : > { %1793 = vst.msk [vmem:[#allocation2 + $0x78] sm:$0xf] %vm1779_vm9, %v1710_v43  ;;  %v2410_v55 = vpop.permute.xlu1 %2409  ;;  %v1825_v57 = vld [vmem:[#allocation2 + $0x70] sm:$0xf]  ;;  %v1488_v4 = vmul.f32 %v11677_v25, %v1452_v30  ;;  %vm1038_vm11 = vcmp.lt.s32.totalorder %v620_v9, 15 }
 0x1c1   : > { %2505 = vst.msk [vmem:[#allocation2 + $0x48] sm:$0xf] %vm2497_vm1, %v2416_v8  ;;  %v11078_v48 = vld [vmem:[#allocation2 + $0x24] sm:$0xf]  ;;  %v2873_v51 = vrot.slane %v2871_v54, 5  ;;  %v2216_v2 = vrot.slane %v2214_v17, 7  ;;  %v1859_v19 = vunpack.c.l.bf16 %v1825_v57 }
 0x1c2   : > { %2502 = vst.msk [vmem:[#allocation2 + $0x30] sm:$0xf] %vm2497_vm1, %v2410_v55  ;;  %v12235_v47 = vor.u32 %v11078_v48, %v10512_v46  ;;  %v2877_v41 = vrot.slane %v2875_v7, 4  ;;  %v12259_v46 = vsel %vm2595_vm2, %v11751_v56, %v2621_v12  ;;  %v12264_v55 = vsel %vm1943_vm10, %v11723_v23, %v1971_v26 }
 0x1c3   : > { %v2219_v11 = vor.u32 %v2217_v53, %v2216_v2  ;;  %v2053_v1 = vmul.f32 %v12224_v24, %v1859_v19  ;;  %v2704_v0 = vmul.f32 %v12232_v18, %v1859_v19  ;;  %v2874_v45 = vsel %vm11883_vm12, %v2869_v40, %v2873_v51  ;;  %17638 = vst [vmem:[#allocation36_spill] sm:$0xff] %v12259_v46 }
 0x1c4   : > { %3573 = vmatmul.bf16.gmra.mxu1 %v10511_v10  ;;  %10677 = vmatmul.msk.bf16.vlgmr.msrb.gmra.mxu2 %vm1319_vm0, %v12235_v47  ;;  %v2878_v35 = vor.u32 %v2877_v41, %v2873_v51  ;;  %17639 = vst [vmem:[#allocation37_spill] sm:$0xff] %v12264_v55  ;;  %v627_v57 = vand.u32 15, %v495_v37  ;;  %v1617_v63 = vadd.f32 %v11666_v20, %v1488_v4  ;;  %v2221_v48 = vrot.slane %v2216_v2, 4 }
 0x1c5   : > { %3840 = vmatmul.bf16.gmra.mxu3 %v10511_v10  ;;  %1739 = vrot.lane.b32.xlu0 %v1647_v44, %s11433_s28  ;;  %v2220_v33 = vsel %vm11768_vm3, %v2212_v60, %v2219_v11  ;;  %v2086_v52 = vpack.c.bf16 %v2053_v1, %v2053_v1  ;;  %v2737_v50 = vpack.c.bf16 %v2704_v0, %v2704_v0  ;;  %v12275_v1 = vsel %vm1038_vm11, 1.0, %v17618_v49 }
 0x1c6   : > { %3105 = vrot.lane.b32.xlu1 %v2874_v45, %s11433_s28  ;;  %2423 = vrot.lane.b32.xlu2 %v2220_v33, %s11433_s28  ;;  %v1648_v44 = vpack.c.bf16 %v12219_v58, %v12219_v58  ;;  %v2879_v60 = vrot.slane %v2878_v35, 4  ;;  %vm12282_vm13 = vcmp.ge.s32.totalorder %v627_v57, 1  ;;  %v1649_v9 = vpack.c.bf16 %v1617_v63, %v1617_v63  ;;  %v1454_v45 = vpop.f32.mrf.mxu3 }
 0x1c7   : > { %v1712_v34 = vpop.permute.xlu0 %1711  ;;  %v2223_v43 = vshrl.u32 %v2086_v52, 16  ;;  %v1826_v29 = vld [vmem:[#allocation2 + $0x78] sm:$0xf]  ;;  %v3100_v42 = vpop.permute.xlu2 %3099  ;;  %v2881_v17 = vshll.u32 %v2737_v50, 16  ;;  %v2885_v8 = vshrl.u32 %v2737_v50, 16  ;;  %v2226_v53 = vshll.u32 %v2086_v52, 16 }
 0x1c8   : > { %1794 = vst.msk [vmem:[#allocation2 + $0x80] sm:$0xf] %vm1779_vm9, %v1712_v34  ;;  %v3094_v54 = vpop.permute.xlu1 %3093  ;;  %v1860_v7 = vunpack.c.l.bf16 %v1826_v29  ;;  %v11081_v52 = vld [vmem:[#allocation2 + $0x34] sm:$0xf0]  ;;  %v12290_v4 = vsel %vm1943_vm10, %v1971_v26, %v11723_v23  ;;  %v12296_v50 = vsel %vm2595_vm2, %v2621_v12, %v11751_v56  ;;  %v12303_v14 = vsel %vm12282_vm13, 1.0, %v17618_v49 }
 0x1c9   : > { %3188 = vst.msk [vmem:[#allocation2 + $0x4c] sm:$0xf] %vm2497_vm1, %v3100_v42  ;;  %v12267_v58 = vrot.slane %v2223_v43, 7  ;;  %v2883_v51 = vrot.slane %v2881_v17, 5  ;;  %v2887_v30 = vrot.slane %v2885_v8, 4  ;;  %v496_v12 = vadd.s32 136, %v11714_v62 }
 0x1ca   : > { %3185 = vst.msk [vmem:[#allocation2 + $0x34] sm:$0xf] %vm2497_vm1, %v3094_v54  ;;  %v2705_v19 = vmul.f32 %v12259_v46, %v1860_v7  ;;  %v2054_v40 = vmul.f32 %v12264_v55, %v1860_v7  ;;  %v10518_v33 = vld [vmem:[#allocation2 + $0x30] sm:$0xf]  ;;  %v2625_v54 = vrot.slane %v12275_v1, 7  ;;  %v1975_v0 = vrot.slane %v12303_v14, 1 }
 0x1cb   : > { %v2228_v10 = vor.u32 %v2226_v53, %v12267_v58  ;;  %v2884_v2 = vsel %vm11883_vm12, %v2879_v60, %v2883_v51  ;;  %17642 = vst [vmem:[#allocation38_spill] sm:$0xff] %v12290_v4  ;;  %v2888_v43 = vor.u32 %v2887_v30, %v2883_v51  ;;  %v1489_v53 = vmul.f32 %v11677_v25, %v1454_v45 }
 0x1cc   : > { %v2738_v11 = vpack.c.bf16 %v2705_v19, %v2705_v19  ;;  %v2087_v41 = vpack.c.bf16 %v2054_v40, %v2054_v40  ;;  %17643 = vst [vmem:[#allocation39_spill] sm:$0xff] %v12296_v50  ;;  %v10519_v57 = vor.u32 %v11081_v52, %v10518_v33  ;;  %v497_v30 = vadd.s32 144, %v11714_v62 }
 0x1cd   : > { %1741 = vrot.lane.b32.xlu0 %v1648_v44, %s11433_s28  ;;  %v2229_v20 = vsel %vm11768_vm3, %v2221_v48, %v2228_v10  ;;  %v10520_v44 = vld [vmem:[#allocation2 + $0x38] sm:$0xf0]  ;;  %v2889_v40 = vrot.slane %v2888_v43, 4 }
 0x1ce   : > { %2425 = vrot.lane.b32.xlu1 %v2229_v20, %s11433_s28  ;;  %3107 = vrot.lane.b32.xlu2 %v2884_v2, %s11433_s28  ;;  %v2891_v37 = vshll.u32 %v2738_v11, 16  ;;  %v2232_v35 = vshrl.u32 %v2087_v41, 16  ;;  %v2895_v42 = vshrl.u32 %v2738_v11, 16  ;;  %v2235_v26 = vshll.u32 %v2087_v41, 16 }
 0x1cf   : > { %v1714_v34 = vpop.permute.xlu0 %1713  ;;  %v1827_v29 = vld [vmem:[#allocation2 + $0x80] sm:$0xf]  ;;  %v2420_v17 = vpop.permute.xlu2 %2419  ;;  %v2230_v11 = vrot.slane %v12267_v58, 4  ;;  %v634_v58 = vand.u32 15, %v496_v12 }
 0x1d0   : > { %1795 = vst.msk [vmem:[#allocation2 + $0x88] sm:$0xf] %vm1779_vm9, %v1714_v34  ;;  %v2414_v7 = vpop.permute.xlu1 %2413  ;;  %v1861_v8 = vunpack.c.l.bf16 %v1827_v29  ;;  %v2893_v48 = vrot.slane %v2891_v37, 5  ;;  %v2234_v51 = vrot.slane %v2232_v35, 7  ;;  %v2897_v20 = vrot.slane %v2895_v42, 4 }
 0x1d1   : > { %2507 = vst.msk [vmem:[#allocation2 + $0x58] sm:$0xf] %vm2497_vm1, %v2420_v17  ;;  %v11080_v63 = vld [vmem:[#allocation2 + $0x34] sm:$0xf]  ;;  %v641_v34 = vand.u32 15, %v497_v30  ;;  %vm1040_vm14 = vcmp.lt.s32.totalorder %v634_v58, 15 }
 0x1d2   : > { %2504 = vst.msk [vmem:[#allocation2 + $0x40] sm:$0xf] %vm2497_vm1, %v2414_v7  ;;  %v12309_v19 = vor.u32 %v11080_v63, %v10520_v44  ;;  %v2055_v10 = vmul.f32 %v12290_v4, %v1861_v8  ;;  %v2706_v60 = vmul.f32 %v12296_v50, %v1861_v8  ;;  %v2237_v25 = vor.u32 %v2235_v26, %v2234_v51 }
 0x1d3   : > { %v2894_v45 = vsel %vm11883_vm12, %v2889_v40, %v2893_v48  ;;  %v1618_v44 = vadd.f32 %v11672_v22, %v1489_v53  ;;  %v2898_v35 = vor.u32 %v2897_v20, %v2893_v48  ;;  %v12337_v22 = vsel %vm1943_vm10, %v11723_v23, %v1975_v0 }
 0x1d4   : > { %3578 = vmatmul.bf16.gmra.mxu1 %v10519_v57  ;;  %10678 = vmatmul.msk.bf16.gmra.mxu2 %vm1319_vm0, %v12309_v19  ;;  %v2088_v2 = vpack.c.bf16 %v2055_v10, %v2055_v10  ;;  %v2739_v41 = vpack.c.bf16 %v2706_v60, %v2706_v60  ;;  %v2238_v33 = vsel %vm11768_vm3, %v2230_v11, %v2237_v25  ;;  %v2239_v12 = vrot.slane %v2234_v51, 4 }
 0x1d5   : > { %3845 = vmatmul.bf16.gmra.mxu3 %v10519_v57  ;;  %1743 = vrot.lane.b32.xlu0 %v1649_v9, %s11433_s28  ;;  %v12330_v9 = vsel %vm2595_vm2, %v11751_v56, %v2625_v54  ;;  %17645 = vst [vmem:[#allocation41_spill] sm:$0xff] %v12337_v22  ;;  %vm913_vm15 = vcmp.ge.s32.totalorder %v641_v34, 1  ;;  %v1650_v63 = vpack.c.bf16 %v1618_v44, %v1618_v44  ;;  %v2899_v48 = vrot.slane %v2898_v35, 4 }
 0x1d6   : > { %3109 = vrot.lane.b32.xlu1 %v2894_v45, %s11433_s28  ;;  %2427 = vrot.lane.b32.xlu2 %v2238_v33, %s11433_s28  ;;  %v2241_v52 = vshrl.u32 %v2088_v2, 16  ;;  %v2901_v37 = vshll.u32 %v2739_v41, 16  ;;  %17644 = vst [vmem:[#allocation40_spill] sm:$0xff] %v12330_v9  ;;  %v2905_v42 = vshrl.u32 %v2739_v41, 16  ;;  %v2244_v26 = vshll.u32 %v2088_v2, 16 }
 0x1d7   : > { %v1716_v43 = vpop.permute.xlu0 %1715  ;;  %v1828_v29 = vld [vmem:[#allocation2 + $0x88] sm:$0xf]  ;;  %v12349_v20 = vsel %vm1040_vm14, 1.0, %v17618_v49  ;;  %v12352_v2 = vsel %vm913_vm15, 1.0, %v17618_v49  ;;  %v12358_v33 = vsel %vm1943_vm10, %v1975_v0, %v11723_v23 }
 0x1d8   : > { %1796 = vst.msk [vmem:[#allocation2 + $0x90] sm:$0xf] %vm1779_vm9, %v1716_v43  ;;  %v3098_v17 = vpop.permute.xlu1 %3097  ;;  %v12333_v7 = vrot.slane %v2241_v52, 7  ;;  %v1862_v8 = vunpack.c.l.bf16 %v1828_v29  ;;  %v2903_v14 = vrot.slane %v2901_v37, 5  ;;  %v2907_v10 = vrot.slane %v2905_v42, 4 }
 0x1d9   : > { %3187 = vst.msk [vmem:[#allocation2 + $0x44] sm:$0xf] %vm2497_vm1, %v3098_v17  ;;  %v10526_v51 = vld [vmem:[#allocation2 + $0x40] sm:$0xf]  ;;  %v11083_v41 = vld [vmem:[#allocation2 + $0x44] sm:$0xf0]  ;;  %v12364_v43 = vsel %vm2595_vm2, %v2625_v54, %v11751_v56 }
 0x1da   : > { %v2246_v53 = vor.u32 %v2244_v26, %v12333_v7  ;;  %v2707_v57 = vmul.f32 %v12330_v9, %v1862_v8  ;;  %v2056_v60 = vmul.f32 %v12337_v22, %v1862_v8  ;;  %v2904_v11 = vsel %vm11883_vm12, %v2899_v48, %v2903_v14  ;;  %17646 = vst [vmem:[#allocation42_spill] sm:$0xff] %v12358_v33  ;;  %v10528_v52 = vld [vmem:[#allocation2 + $0x48] sm:$0xf0] }
 0x1db   : > { %v2908_v37 = vor.u32 %v2907_v10, %v2903_v14  ;;  %17647 = vst [vmem:[#allocation43_spill] sm:$0xff] %v12364_v43  ;;  %v10527_v42 = vor.u32 %v11083_v41, %v10526_v51  ;;  %v2629_v0 = vrot.slane %v12349_v20, 7  ;;  %v1979_v8 = vrot.slane %v12352_v2, 1 }
 0x1dc   : > { %v2247_v30 = vsel %vm11768_vm3, %v2239_v12, %v2246_v53  ;;  %v2740_v40 = vpack.c.bf16 %v2707_v57, %v2707_v57  ;;  %v2089_v25 = vpack.c.bf16 %v2056_v60, %v2056_v60  ;;  %v2248_v54 = vrot.slane %v12333_v7, 4 }
 0x1dd   : > { %1745 = vrot.lane.b32.xlu0 %v1650_v63, %s11433_s28  ;;  %v498_v48 = vadd.s32 152, %v11714_v62  ;;  %v2909_v10 = vrot.slane %v2908_v37, 4  ;;  %v500_v20 = vadd.s32 168, %v11714_v62 }
 0x1de   : > { %2429 = vrot.lane.b32.xlu1 %v2247_v30, %s11433_s28  ;;  %3111 = vrot.lane.b32.xlu2 %v2904_v11, %s11433_s28  ;;  %v2911_v45 = vshll.u32 %v2740_v40, 16  ;;  %v2250_v34 = vshrl.u32 %v2089_v25, 16  ;;  %v2915_v35 = vshrl.u32 %v2740_v40, 16  ;;  %v2253_v53 = vshll.u32 %v2089_v25, 16 }
 0x1df   : > { %v1718_v58 = vpop.permute.xlu0 %1717  ;;  %v1829_v44 = vld [vmem:[#allocation2 + $0x90] sm:$0xf]  ;;  %v499_v40 = vadd.s32 160, %v11714_v62 }
 0x1e0   : > { %1797 = vst.msk [vmem:[#allocation2 + $0x98] sm:$0xf] %vm1779_vm9, %v1718_v58  ;;  %v2418_v29 = vpop.permute.xlu1 %2417  ;;  %v11082_v17 = vld [vmem:[#allocation2 + $0x44] sm:$0xf]  ;;  %v1863_v26 = vunpack.c.l.bf16 %v1829_v44  ;;  %v2913_v12 = vrot.slane %v2911_v45, 5  ;;  %v2252_v1 = vrot.slane %v2250_v34, 7  ;;  %v12389_v58 = vsel %vm2595_vm2, %v11751_v56, %v2629_v0 }
 0x1e1   : > { %2506 = vst.msk [vmem:[#allocation2 + $0x50] sm:$0xf] %vm2497_vm1, %v2418_v29  ;;  %v12370_v14 = vor.u32 %v11082_v17, %v10528_v52  ;;  %v2917_v30 = vrot.slane %v2915_v35, 4  ;;  %v12395_v52 = vsel %vm1943_vm10, %v11723_v23, %v1979_v8  ;;  %v648_v29 = vand.u32 15, %v498_v48 }
 0x1e2   : > { %v2057_v57 = vmul.f32 %v12358_v33, %v1863_v26  ;;  %v2708_v63 = vmul.f32 %v12364_v43, %v1863_v26  ;;  %v2255_v60 = vor.u32 %v2253_v53, %v2252_v1  ;;  %v2914_v7 = vsel %vm11883_vm12, %v2909_v10, %v2913_v12  ;;  %17648 = vst [vmem:[#allocation44_spill] sm:$0xff] %v12389_v58 }
 0x1e3   : > { %17649 = vst [vmem:[#allocation45_spill] sm:$0xff] %v12395_v52  ;;  %v2918_v34 = vor.u32 %v2917_v30, %v2913_v12  ;;  %v2257_v10 = vrot.slane %v2252_v1, 4  ;;  %vm1042_vm4 = vcmp.lt.s32.totalorder %v648_v29, 15 }
 0x1e4   : > { %3583 = vmatmul.bf16.gmra.mxu1 %v10527_v42  ;;  %10679 = vmatmul.msk.bf16.gmra.mxu2 %vm1319_vm0, %v12370_v14  ;;  %v2090_v11 = vpack.c.bf16 %v2057_v57, %v2057_v57  ;;  %v2741_v51 = vpack.c.bf16 %v2708_v63, %v2708_v63  ;;  %v2256_v25 = vsel %vm11768_vm3, %v2248_v54, %v2255_v60  ;;  %v11171_v63 = vld [vmem:[%s17356_s4 + $0xf8] sm:$0xff] }
 0x1e5   : > { %3850 = vmatmul.bf16.gmra.mxu3 %v10527_v42  ;;  %v655_v42 = vand.u32 15, %v499_v40  ;;  %v2919_v30 = vrot.slane %v2918_v34, 4  ;;  %4321 = vmatpush.bf16.msra.mxu2 %v11171_v63 }
 0x1e6   : > { %3113 = vrot.lane.b32.xlu1 %v2914_v7, %s11433_s28  ;;  %2431 = vrot.lane.b32.xlu2 %v2256_v25, %s11433_s28  ;;  %v2259_v41 = vshrl.u32 %v2090_v11, 16  ;;  %v2921_v45 = vshll.u32 %v2741_v51, 16  ;;  %v2925_v35 = vshrl.u32 %v2741_v51, 16  ;;  %v2262_v53 = vshll.u32 %v2090_v11, 16 }
 0x1e7   : > { %v1720_v37 = vpop.permute.xlu0 %1719  ;;  %v1830_v44 = vld [vmem:[#allocation2 + $0x98] sm:$0xf]  ;;  %vm915_vm6 = vcmp.ge.s32.totalorder %v655_v42, 1  ;;  %v12420_v42 = vsel %vm1943_vm10, %v1979_v8, %v11723_v23 }
 0x1e8   : > { %1798 = vst.msk [vmem:[#allocation2 + $0xa0] sm:$0xf] %vm1779_vm9, %v1720_v37  ;;  %v3102_v17 = vpop.permute.xlu1 %3101  ;;  %v2261_v26 = vrot.slane %v2259_v41, 7  ;;  %v1864_v54 = vunpack.c.l.bf16 %v1830_v44  ;;  %v2923_v57 = vrot.slane %v2921_v45, 5  ;;  %v2927_v40 = vrot.slane %v2925_v35, 4 }
 0x1e9   : > { %3189 = vst.msk [vmem:[#allocation2 + $0x54] sm:$0xf] %vm2497_vm1, %v3102_v17  ;;  %v12411_v45 = vsel %vm1042_vm4, 1.0, %v17618_v49  ;;  %v12414_v37 = vsel %vm915_vm6, 1.0, %v17618_v49  ;;  %v10534_v44 = vld [vmem:[#allocation2 + $0x50] sm:$0xf] }
 0x1ea   : > { %v2264_v60 = vor.u32 %v2262_v53, %v2261_v26  ;;  %v2709_v12 = vmul.f32 %v12389_v58, %v1864_v54  ;;  %v2058_v48 = vmul.f32 %v12395_v52, %v1864_v54  ;;  %v2924_v25 = vsel %vm11883_vm12, %v2919_v30, %v2923_v57  ;;  %17650 = vst [vmem:[#allocation46_spill] sm:$0xff] %v12420_v42 }
 0x1eb   : > { %v2928_v35 = vor.u32 %v2927_v40, %v2923_v57  ;;  %v11085_v57 = vld [vmem:[#allocation2 + $0x54] sm:$0xf0]  ;;  %v1983_v2 = vrot.slane %v12414_v37, 1 }
 0x1ec   : > { %v2265_v11 = vsel %vm11768_vm3, %v2257_v10, %v2264_v60  ;;  %v2742_v51 = vpack.c.bf16 %v2709_v12, %v2709_v12  ;;  %v2091_v7 = vpack.c.bf16 %v2058_v48, %v2058_v48  ;;  %v12427_v10 = vsel %vm2595_vm2, %v2629_v0, %v11751_v56 }
 0x1ed   : > { %17651 = vst [vmem:[#allocation47_spill] sm:$0xff] %v12427_v10  ;;  %v2633_v12 = vrot.slane %v12411_v45, 7  ;;  %v10535_v8 = vor.u32 %v11085_v57, %v10534_v44  ;;  %v2266_v48 = vrot.slane %v2261_v26, 4 }
 0x1ee   : > { %2433 = vrot.lane.b32.xlu1 %v2265_v11, %s11433_s28  ;;  %3115 = vrot.lane.b32.xlu2 %v2924_v25, %s11433_s28  ;;  %v2931_v1 = vshll.u32 %v2742_v51, 16  ;;  %v2268_v41 = vshrl.u32 %v2091_v7, 16  ;;  %v2935_v17 = vshrl.u32 %v2742_v51, 16  ;;  %v2271_v54 = vshll.u32 %v2091_v7, 16 }
 0x1ef   : > { %v1722_v34 = vpop.permute.xlu0 %1721  ;;  %v1831_v29 = vld [vmem:[#allocation2 + $0xa0] sm:$0xf]  ;;  %v2929_v11 = vrot.slane %v2928_v35, 4  ;;  %v12443_v37 = vsel %vm2595_vm2, %v11751_v56, %v2633_v12 }
 0x1f0   : > { %1799 = vst.msk [vmem:[#allocation2 + $0xa8] sm:$0xf] %vm1779_vm9, %v1722_v34  ;;  %v2270_v53 = vrot.slane %v2268_v41, 7  ;;  %v1865_v63 = vunpack.c.l.bf16 %v1831_v29  ;;  %v2933_v60 = vrot.slane %v2931_v1, 5  ;;  %v2937_v7 = vrot.slane %v2935_v17, 4 }
 0x1f1   : > { %v501_v1 = vadd.s32 176, %v11714_v62  ;;  %17652 = vst [vmem:[#allocation48_spill] sm:$0xff] %v12443_v37  ;;  %v12447_v34 = vsel %vm1943_vm10, %v11723_v23, %v1983_v2 }
 0x1f2   : > { %v2273_v30 = vor.u32 %v2271_v54, %v2270_v53  ;;  %v2059_v40 = vmul.f32 %v12420_v42, %v1865_v63  ;;  %v2710_v51 = vmul.f32 %v12427_v10, %v1865_v63  ;;  %v2934_v26 = vsel %vm11883_vm12, %v2929_v11, %v2933_v60  ;;  %17653 = vst [vmem:[#allocation49_spill] sm:$0xff] %v12447_v34 }
 0x1f3   : > { %v2938_v35 = vor.u32 %v2937_v7, %v2933_v60  ;;  %v662_v63 = vand.u32 15, %v500_v20  ;;  %v2275_v11 = vrot.slane %v2270_v53, 4 }
 0x1f4   : > { %3588 = vmatmul.bf16.gmra.mxu1 %v10535_v8  ;;  %v2274_v0 = vsel %vm11768_vm3, %v2266_v48, %v2273_v30  ;;  %v2092_v25 = vpack.c.bf16 %v2059_v40, %v2059_v40  ;;  %v2743_v41 = vpack.c.bf16 %v2710_v51, %v2710_v51  ;;  %v669_v30 = vand.u32 15, %v501_v1 }
 0x1f5   : > { %3855 = vmatmul.bf16.gmra.mxu3 %v10535_v8  ;;  %v2939_v42 = vrot.slane %v2938_v35, 4  ;;  %vm1044_vm7 = vcmp.lt.s32.totalorder %v662_v63, 15 }
 0x1f6   : > { %3117 = vrot.lane.b32.xlu1 %v2934_v26, %s11433_s28  ;;  %2435 = vrot.lane.b32.xlu2 %v2274_v0, %s11433_s28  ;;  %v2277_v45 = vshrl.u32 %v2092_v25, 16  ;;  %v2941_v29 = vshll.u32 %v2743_v41, 16  ;;  %v2945_v54 = vshrl.u32 %v2743_v41, 16  ;;  %v2280_v8 = vshll.u32 %v2092_v25, 16 }
 0x1f7   : > { %v1724_v44 = vpop.permute.xlu0 %1723  ;;  %v1832_v17 = vld [vmem:[#allocation2 + $0xa8] sm:$0xf]  ;;  %vm917_vm8 = vcmp.ge.s32.totalorder %v669_v30, 1  ;;  %v12459_v41 = vsel %vm1044_vm7, 1.0, %v17618_v49 }
 0x1f8   : > { %1800 = vst.msk [vmem:[#allocation2 + $0xb0] sm:$0xf] %vm1779_vm9, %v1724_v44  ;;  %v2279_v57 = vrot.slane %v2277_v45, 7  ;;  %v1866_v48 = vunpack.c.l.bf16 %v1832_v17  ;;  %v2943_v40 = vrot.slane %v2941_v29, 5  ;;  %v2947_v52 = vrot.slane %v2945_v54, 4 }
 0x1f9   : > { %v12463_v29 = vsel %vm1943_vm10, %v1983_v2, %v11723_v23  ;;  %v10357_v54 = vsel %vm917_vm8, 1.0, %v17618_v49 }
 0x1fa   : > { %v2282_v51 = vor.u32 %v2280_v8, %v2279_v57  ;;  %v2711_v0 = vmul.f32 %v12443_v37, %v1866_v48  ;;  %v2060_v26 = vmul.f32 %v12447_v34, %v1866_v48  ;;  %v2944_v25 = vsel %vm11883_vm12, %v2939_v42, %v2943_v40  ;;  %17654 = vst [vmem:[#allocation50_spill] sm:$0xff] %v12463_v29 }
 0x1fb   : > { %v2948_v44 = vor.u32 %v2947_v52, %v2943_v40  ;;  %v12469_v48 = vsel %vm2595_vm2, %v2633_v12, %v11751_v56  ;;  %v2637_v52 = vrot.slane %v12459_v41, 7  ;;  %v2284_v40 = vrot.slane %v2279_v57, 4 }
 0x1fc   : > { %v2283_v60 = vsel %vm11768_vm3, %v2275_v11, %v2282_v51  ;;  %v2744_v7 = vpack.c.bf16 %v2711_v0, %v2711_v0  ;;  %v2093_v20 = vpack.c.bf16 %v2060_v26, %v2060_v26  ;;  %17655 = vst [vmem:[#allocation51_spill] sm:$0xff] %v12469_v48  ;;  %v1987_v51 = vrot.slane %v10357_v54, 1 }
 0x1fd   : > { %v2949_v0 = vrot.slane %v2948_v44, 4  ;;  %v503_v57 = vadd.s32 192, %v11714_v62  ;;  %v12484_v41 = vsel %vm2595_vm2, %v11751_v56, %v2637_v52 }
 0x1fe   : > { %2437 = vrot.lane.b32.xlu1 %v2283_v60, %s11433_s28  ;;  %3119 = vrot.lane.b32.xlu2 %v2944_v25, %s11433_s28  ;;  %v2951_v53 = vshll.u32 %v2744_v7, 16  ;;  %v2286_v1 = vshrl.u32 %v2093_v20, 16  ;;  %v2955_v17 = vshrl.u32 %v2744_v7, 16  ;;  %v2289_v63 = vshll.u32 %v2093_v20, 16  ;;  %17656 = vst [vmem:[#allocation52_spill] sm:$0xff] %v12484_v41 }
 0x1ff   : > { %v1726_v45 = vpop.permute.xlu0 %1725  ;;  %v1833_v35 = vld [vmem:[#allocation2 + $0xb0] sm:$0xf]  ;;  %v502_v7 = vadd.s32 184, %v11714_v62 }
 0x200   : > { %1801 = vst.msk [vmem:[#allocation2 + $0xb8] sm:$0xf] %vm1779_vm9, %v1726_v45  ;;  %v2288_v42 = vrot.slane %v2286_v1, 7  ;;  %v1867_v8 = vunpack.c.l.bf16 %v1833_v35  ;;  %v2953_v30 = vrot.slane %v2951_v53, 5  ;;  %v2957_v60 = vrot.slane %v2955_v17, 4 }
 0x201   : > { %v12488_v45 = vsel %vm1943_vm10, %v11723_v23, %v1987_v51 }
 0x202   : > { %v2291_v11 = vor.u32 %v2289_v63, %v2288_v42  ;;  %v2061_v2 = vmul.f32 %v12463_v29, %v1867_v8  ;;  %v2712_v26 = vmul.f32 %v12469_v48, %v1867_v8  ;;  %v2954_v12 = vsel %vm11883_vm12, %v2949_v0, %v2953_v30  ;;  %17657 = vst [vmem:[#allocation53_spill] sm:$0xff] %v12488_v45 }
 0x203   : > { %v2958_v35 = vor.u32 %v2957_v60, %v2953_v30  ;;  %v676_v8 = vand.u32 15, %v502_v7 }
 0x204   : > { %v2292_v20 = vsel %vm11768_vm3, %v2284_v40, %v2291_v11  ;;  %v2094_v25 = vpack.c.bf16 %v2061_v2, %v2061_v2  ;;  %v2745_v53 = vpack.c.bf16 %v2712_v26, %v2712_v26  ;;  %v683_v26 = vand.u32 15, %v503_v57 }
 0x205   : > { %v2959_v60 = vrot.slane %v2958_v35, 4  ;;  %vm1046_vm11 = vcmp.lt.s32.totalorder %v676_v8, 15  ;;  %v12515_v8 = vsel %vm2595_vm2, %v2637_v52, %v11751_v56  ;;  %v505_v52 = vadd.s32 208, %v11714_v62 }
 0x206   : > { %3121 = vrot.lane.b32.xlu1 %v2954_v12, %s11433_s28  ;;  %2439 = vrot.lane.b32.xlu2 %v2292_v20, %s11433_s28  ;;  %v2295_v1 = vshrl.u32 %v2094_v25, 16  ;;  %v2961_v17 = vshll.u32 %v2745_v53, 16  ;;  %v2965_v63 = vshrl.u32 %v2745_v53, 16  ;;  %v2298_v11 = vshll.u32 %v2094_v25, 16  ;;  %v11170_v20 = vld [vmem:[%s17356_s4 + $0xf0] sm:$0xff]  ;;  %17661 = vst [vmem:[#allocation55_spill] sm:$0xff] %v12515_v8 }
 0x207   : > { %v1728_v44 = vpop.permute.xlu0 %1727  ;;  %v1834_v54 = vld [vmem:[#allocation2 + $0xb8] sm:$0xf]  ;;  %v2293_v12 = vrot.slane %v2288_v42, 4  ;;  %4322 = vmatpush.bf16.msra.mxu2 %v11170_v20  ;;  %vm12500_vm13 = vcmp.ge.s32.totalorder %v683_v26, 1 }
 0x208   : > { %1802 = vst.msk [vmem:[#allocation2 + $0xc0] sm:$0xf] %vm1779_vm9, %v1728_v44  ;;  %v2297_v40 = vrot.slane %v2295_v1, 7  ;;  %v1868_v2 = vunpack.c.l.bf16 %v1834_v54  ;;  %v2963_v0 = vrot.slane %v2961_v17, 5  ;;  %v2967_v53 = vrot.slane %v2965_v63, 4 }
 0x209   : > { %v12507_v17 = vsel %vm1046_vm11, 1.0, %v17618_v49  ;;  %v12511_v63 = vsel %vm1943_vm10, %v1987_v51, %v11723_v23  ;;  %v504_v44 = vadd.s32 200, %v11714_v62 }
 0x20a   : > { %v2300_v29 = vor.u32 %v2298_v11, %v2297_v40  ;;  %v2713_v48 = vmul.f32 %v12484_v41, %v1868_v2  ;;  %v2062_v30 = vmul.f32 %v12488_v45, %v1868_v2  ;;  %v2964_v57 = vsel %vm11883_vm12, %v2959_v60, %v2963_v0  ;;  %17660 = vst [vmem:[#allocation54_spill] sm:$0xff] %v12511_v63 }
 0x20b   : > { %v2302_v60 = vrot.slane %v2297_v40, 4 }
 0x20c   : > { %v2301_v7 = vsel %vm11768_vm3, %v2293_v12, %v2300_v29  ;;  %v2746_v25 = vpack.c.bf16 %v2713_v48, %v2713_v48  ;;  %v2095_v1 = vpack.c.bf16 %v2062_v30, %v2062_v30  ;;  %v2968_v29 = vor.u32 %v2967_v53, %v2963_v0 }
 0x20d   : > { %v10358_v12 = vsel %vm12500_vm13, 1.0, %v17618_v49  ;;  %v17408_v30 = vrot.slane %v12507_v17, 7 }
 0x20e   : > { %2441 = vrot.lane.b32.xlu1 %v2301_v7, %s11433_s28  ;;  %3123 = vrot.lane.b32.xlu2 %v2964_v57, %s11433_s28  ;;  %v2971_v42 = vshll.u32 %v2746_v25, 16  ;;  %v2304_v35 = vshrl.u32 %v2095_v1, 16  ;;  %v2975_v11 = vshrl.u32 %v2746_v25, 16  ;;  %v2307_v26 = vshll.u32 %v2095_v1, 16 }
 0x20f   : > { %v1730_v54 = vpop.permute.xlu0 %1729  ;;  %v1835_v48 = vld [vmem:[#allocation2 + $0xc0] sm:$0xf]  ;;  %v2969_v7 = vrot.slane %v2968_v29, 4 }
 0x210   : > { %1803 = vst.msk [vmem:[#allocation2 + $0xc8] sm:$0xf] %vm1779_vm9, %v1730_v54  ;;  %v2306_v2 = vrot.slane %v2304_v35, 7  ;;  %v1869_v20 = vunpack.c.l.bf16 %v1835_v48  ;;  %v2973_v0 = vrot.slane %v2971_v42, 5  ;;  %v2977_v57 = vrot.slane %v2975_v11, 4 }
 0x211   : > { %v1991_v35 = vrot.slane %v10358_v12, 1  ;;  %v12536_v11 = vsel %vm2595_vm2, %v11751_v56, %v17408_v30 }
 0x212   : > { %v2309_v51 = vor.u32 %v2307_v26, %v2306_v2  ;;  %v2063_v53 = vmul.f32 %v12511_v63, %v1869_v20  ;;  %v2714_v25 = vmul.f32 %v12515_v8, %v1869_v20  ;;  %v2974_v42 = vsel %vm11883_vm12, %v2969_v7, %v2973_v0  ;;  %17662 = vst [vmem:[#allocation56_spill] sm:$0xff] %v12536_v11 }
 0x213   : > { %v697_v26 = vand.u32 15, %v505_v52  ;;  %v2978_v12 = vor.u32 %v2977_v57, %v2973_v0  ;;  %v12541_v7 = vsel %vm1943_vm10, %v11723_v23, %v1991_v35  ;;  %v690_v8 = vand.u32 15, %v504_v44  ;;  %v11084_v44 = vld [vmem:[#allocation2 + $0x54] sm:$0xf] }
 0x214   : > { %v2310_v1 = vsel %vm11768_vm3, %v2302_v60, %v2309_v51  ;;  %v2096_v54 = vpack.c.bf16 %v2063_v53, %v2063_v53  ;;  %v2747_v40 = vpack.c.bf16 %v2714_v25, %v2714_v25  ;;  %17663 = vst [vmem:[#allocation57_spill] sm:$0xff] %v12541_v7  ;;  %v2311_v63 = vrot.slane %v2306_v2, 4 }
 0x215   : > { %v2979_v57 = vrot.slane %v2978_v12, 4  ;;  %vm921_vm14 = vcmp.ge.s32.totalorder %v697_v26, 1  ;;  %vm1048_vm15 = vcmp.lt.s32.totalorder %v690_v8, 15  ;;  %v12554_v26 = vsel %vm1943_vm10, %v1991_v35, %v11723_v23 }
 0x216   : > { %3125 = vrot.lane.b32.xlu1 %v2974_v42, %s11433_s28  ;;  %2443 = vrot.lane.b32.xlu2 %v2310_v1, %s11433_s28  ;;  %v3104_v48 = vpop.permute.xlu2 %3103  ;;  %v2313_v29 = vshrl.u32 %v2096_v54, 16  ;;  %v2981_v60 = vshll.u32 %v2747_v40, 16  ;;  %v2985_v53 = vshrl.u32 %v2747_v40, 16  ;;  %v2316_v1 = vshll.u32 %v2096_v54, 16  ;;  %17664 = vst [vmem:[#allocation58_spill] sm:$0xff] %v12554_v26 }
 0x217   : > { %3190 = vst.msk [vmem:[#allocation2 + $0x5c] sm:$0xf] %vm2497_vm1, %v3104_v48  ;;  %v1732_v20 = vpop.permute.xlu0 %1731  ;;  %v1836_v51 = vld [vmem:[#allocation2 + $0xc8] sm:$0xf]  ;;  %v17665_v35 = vrot.slane %v12507_v17, 7 }
 0x218   : > { %1804 = vst.msk [vmem:[#allocation2 + $0xd0] sm:$0xf] %vm1779_vm9, %v1732_v20  ;;  %v2315_v25 = vrot.slane %v2313_v29, 7  ;;  %v1870_v42 = vunpack.c.l.bf16 %v1836_v51  ;;  %v2983_v30 = vrot.slane %v2981_v60, 5  ;;  %v2987_v45 = vrot.slane %v2985_v53, 4 }
 0x21a   : > { %v2318_v52 = vor.u32 %v2316_v1, %v2315_v25  ;;  %v2715_v48 = vmul.f32 %v12536_v11, %v1870_v42  ;;  %v2064_v0 = vmul.f32 %v12541_v7, %v1870_v42  ;;  %v2984_v54 = vsel %vm11883_vm12, %v2979_v57, %v2983_v30 }
 0x21b   : > { %v2988_v60 = vor.u32 %v2987_v45, %v2983_v30  ;;  %v10374_v1 = vsel %vm1048_vm15, 1.0, %v17618_v49  ;;  %v12567_v57 = vsel %vm2595_vm2, %v17665_v35, %v11751_v56  ;;  %v506_v30 = vadd.s32 216, %v11714_v62 }
 0x21c   : > { %v2319_v40 = vsel %vm11768_vm3, %v2311_v63, %v2318_v52  ;;  %v2748_v41 = vpack.c.bf16 %v2715_v48, %v2715_v48  ;;  %v2097_v37 = vpack.c.bf16 %v2064_v0, %v2064_v0  ;;  %v12557_v63 = vsel %vm921_vm14, 1.0, %v17618_v49  ;;  %17666 = vst [vmem:[#allocation59_spill] sm:$0xff] %v12567_v57 }
 0x21d   : > { %v1995_v45 = vrot.slane %v12557_v63, 1  ;;  %v704_v35 = vand.u32 15, %v506_v30 }
 0x21e   : > { %2445 = vrot.lane.b32.xlu1 %v2319_v40, %s11433_s28  ;;  %3127 = vrot.lane.b32.xlu2 %v2984_v54, %s11433_s28  ;;  %v10536_v2 = vld [vmem:[#allocation2 + $0x58] sm:$0xf0]  ;;  %v2991_v29 = vshll.u32 %v2748_v41, 16  ;;  %v2322_v20 = vshrl.u32 %v2097_v37, 16  ;;  %v2995_v53 = vshrl.u32 %v2748_v41, 16  ;;  %v2325_v48 = vshll.u32 %v2097_v37, 16 }
 0x21f   : > { %v1734_v12 = vpop.permute.xlu0 %1733  ;;  %v12559_v8 = vor.u32 %v11084_v44, %v10536_v2  ;;  %v1837_v51 = vld [vmem:[#allocation2 + $0xd0] sm:$0xf]  ;;  %v2320_v40 = vrot.slane %v2315_v25, 4  ;;  %v2645_v44 = vrot.slane %v10374_v1, 7  ;;  %v2989_v2 = vrot.slane %v2988_v60, 4 }
 0x220   : > { %1805 = vst.msk [vmem:[#allocation2 + $0xd8] sm:$0xf] %vm1779_vm9, %v1734_v12  ;;  %v2424_v42 = vpop.permute.xlu2 %2423  ;;  %v2324_v52 = vrot.slane %v2322_v20, 7  ;;  %v1871_v0 = vunpack.c.l.bf16 %v1837_v51  ;;  %v2993_v41 = vrot.slane %v2991_v29, 5  ;;  %v2997_v20 = vrot.slane %v2995_v53, 4 }
 0x221   : > { %2509 = vst.msk [vmem:[#allocation2 + $0x68] sm:$0xf] %vm2497_vm1, %v2424_v42  ;;  %10680 = vmatmul.msk.bf16.gmra.mxu2 %vm1319_vm0, %v12559_v8  ;;  %v507_v12 = vadd.s32 224, %v11714_v62  ;;  %v12585_v60 = vsel %vm1943_vm10, %v11723_v23, %v1995_v45  ;;  %v12589_v53 = vsel %vm2595_vm2, %v11751_v56, %v2645_v44  ;;  %vm12593_vm4 = vcmp.lt.s32.totalorder %v704_v35, 15 }
 0x222   : > { %v2327_v54 = vor.u32 %v2325_v48, %v2324_v52  ;;  %v2065_v37 = vmul.f32 %v12554_v26, %v1871_v0  ;;  %v2716_v17 = vmul.f32 %v12567_v57, %v1871_v0  ;;  %v2994_v29 = vsel %vm11883_vm12, %v2989_v2, %v2993_v41  ;;  %17667 = vst [vmem:[#allocation60_spill] sm:$0xff] %v12585_v60 }
 0x223   : > { %17668 = vst [vmem:[#allocation61_spill] sm:$0xff] %v12589_v53  ;;  %v2998_v48 = vor.u32 %v2997_v20, %v2993_v41  ;;  %v2329_v7 = vrot.slane %v2324_v52, 4 }
 0x224   : > { %v2328_v51 = vsel %vm11768_vm3, %v2320_v40, %v2327_v54  ;;  %v2098_v42 = vpack.c.bf16 %v2065_v37, %v2065_v37  ;;  %v2749_v63 = vpack.c.bf16 %v2716_v17, %v2716_v17  ;;  %v711_v37 = vand.u32 15, %v507_v12  ;;  %v11169_v12 = vld [vmem:[%s17356_s4 + $0xe8] sm:$0xff] }
 0x225   : > { %4323 = vmatpush.bf16.msra.mxu2 %v11169_v12 }
 0x226   : > { %3129 = vrot.lane.b32.xlu1 %v2994_v29, %s11433_s28  ;;  %2447 = vrot.lane.b32.xlu2 %v2328_v51, %s11433_s28  ;;  %v2331_v25 = vshrl.u32 %v2098_v42, 16  ;;  %v3001_v0 = vshll.u32 %v2749_v63, 16  ;;  %v3005_v54 = vshrl.u32 %v2749_v63, 16  ;;  %v2334_v17 = vshll.u32 %v2098_v42, 16 }
 0x227   : > { %v1736_v1 = vpop.permute.xlu0 %1735  ;;  %v1838_v40 = vld [vmem:[#allocation2 + $0xd8] sm:$0xf]  ;;  %v2999_v63 = vrot.slane %v2998_v48, 4  ;;  %vm923_vm6 = vcmp.ge.s32.totalorder %v711_v37, 1  ;;  %v12615_v48 = vsel %vm1943_vm10, %v1995_v45, %v11723_v23  ;;  %v508_v45 = vadd.s32 232, %v11714_v62 }
 0x228   : > { %1806 = vst.msk [vmem:[#allocation2 + $0xe0] sm:$0xf] %vm1779_vm9, %v1736_v1  ;;  %v3108_v30 = vpop.permute.xlu2 %3107  ;;  %v2333_v2 = vrot.slane %v2331_v25, 7  ;;  %v1872_v51 = vunpack.c.l.bf16 %v1838_v40  ;;  %v3003_v29 = vrot.slane %v3001_v0, 5  ;;  %v3007_v42 = vrot.slane %v3005_v54, 4  ;;  %v12604_v0 = vpop.f32.mrf.mxu3 }
 0x229   : > { %3192 = vst.msk [vmem:[#allocation2 + $0x6c] sm:$0xf] %vm2497_vm1, %v3108_v30  ;;  %v12611_v40 = vsel %vm2595_vm2, %v2645_v44, %v11751_v56  ;;  %v12624_v30 = vsel %vm923_vm6, 1.0, %v17618_v49 }
 0x22a   : > { %v2336_v57 = vor.u32 %v2334_v17, %v2333_v2  ;;  %v2066_v41 = vmul.f32 %v12585_v60, %v1872_v51  ;;  %v2717_v20 = vmul.f32 %v12589_v53, %v1872_v51  ;;  %v3004_v52 = vsel %vm11883_vm12, %v2999_v63, %v3003_v29  ;;  %17671 = vst [vmem:[#allocation62_spill] sm:$0xff] %v12611_v40 }
 0x22b   : > { %17672 = vst [vmem:[#allocation63_spill] sm:$0xff] %v12615_v48  ;;  %v3008_v51 = vor.u32 %v3007_v42, %v3003_v29  ;;  %v2338_v29 = vrot.slane %v2333_v2, 4 }
 0x22c   : > { %v2337_v25 = vsel %vm11768_vm3, %v2329_v7, %v2336_v57  ;;  %v2099_v35 = vpack.c.bf16 %v2066_v41, %v2066_v41  ;;  %v2750_v1 = vpack.c.bf16 %v2717_v20, %v2717_v20  ;;  %v12620_v7 = vsel %vm12593_vm4, 1.0, %v17618_v49 }
 0x22d   : > { %2449 = vrot.lane.b32.xlu0 %v2337_v25, %s11433_s28  ;;  %v509_v20 = vadd.s32 240, %v11714_v62  ;;  %v3009_v11 = vrot.slane %v3008_v51, 4 }
 0x22e   : > { %3131 = vrot.lane.b32.xlu2 %v3004_v52, %s11433_s28  ;;  %v2340_v57 = vshrl.u32 %v2099_v35, 16  ;;  %v3011_v54 = vshll.u32 %v2750_v1, 16  ;;  %v3015_v37 = vshrl.u32 %v2750_v1, 16  ;;  %v2343_v44 = vshll.u32 %v2099_v35, 16 }
 0x22f   : > { %v1738_v17 = vpop.permute.xlu0 %1737  ;;  %v1839_v41 = vld [vmem:[#allocation2 + $0xe0] sm:$0xf]  ;;  %v2649_v35 = vrot.slane %v12620_v7, 7 }
 0x230   : > { %1807 = vst.msk [vmem:[#allocation2 + $0xe8] sm:$0xf] %vm1779_vm9, %v1738_v17  ;;  %v2428_v26 = vpop.permute.xlu2 %2427  ;;  %v2422_v12 = vpop.permute.xlu1 %2421  ;;  %v2342_v63 = vrot.slane %v2340_v57, 7  ;;  %v3013_v25 = vrot.slane %v3011_v54, 5  ;;  %v1873_v52 = vunpack.c.l.bf16 %v1839_v41  ;;  %v3017_v53 = vrot.slane %v3015_v37, 4 }
 0x231   : > { %2511 = vst.msk [vmem:[#allocation2 + $0x78] sm:$0xf] %vm2497_vm1, %v2428_v26  ;;  %v12630_v1 = vpop.f32.mrf.mxu1  ;;  %v1999_v17 = vrot.slane %v12624_v30, 1  ;;  %v718_v54 = vand.u32 15, %v508_v45  ;;  %v725_v41 = vand.u32 15, %v509_v20  ;;  %v12645_v30 = vsel %vm2595_vm2, %v11751_v56, %v2649_v35  ;;  %v12647_v45 = vpop.f32.mrf.mxu3 }
 0x232   : > { %2508 = vst.msk [vmem:[#allocation2 + $0x60] sm:$0xf] %vm2497_vm1, %v2422_v12  ;;  %v2345_v42 = vor.u32 %v2343_v44, %v2342_v63  ;;  %v2718_v60 = vmul.f32 %v12611_v40, %v1873_v52  ;;  %v2067_v57 = vmul.f32 %v12615_v48, %v1873_v52  ;;  %v3018_v34 = vor.u32 %v3017_v53, %v3013_v25  ;;  %v11087_v12 = vld [vmem:[#allocation2 + $0x64] sm:$0xf0] }
 0x233   : > { %v3014_v2 = vsel %vm11883_vm12, %v3009_v11, %v3013_v25  ;;  %17673 = vst [vmem:[#allocation64_spill] sm:$0xff] %v12645_v30  ;;  %v12651_v52 = vsel %vm1943_vm10, %v11723_v23, %v1999_v17  ;;  %vm12653_vm7 = vcmp.lt.s32.totalorder %v718_v54, 15  ;;  %vm12657_vm8 = vcmp.ge.s32.totalorder %v725_v41, 1  ;;  %v10544_v25 = vld [vmem:[#allocation2 + $0x68] sm:$0xf0] }
 0x234   : > { %v2346_v37 = vsel %vm11768_vm3, %v2338_v29, %v2345_v42  ;;  %v2751_v26 = vpack.c.bf16 %v2718_v60, %v2718_v60  ;;  %v2100_v7 = vpack.c.bf16 %v2067_v57, %v2067_v57  ;;  %17674 = vst [vmem:[#allocation65_spill] sm:$0xff] %v12651_v52  ;;  %v3019_v57 = vrot.slane %v3018_v34, 4 }
 0x235   : > { %2451 = vrot.lane.b32.xlu1 %v2346_v37, %s11433_s28  ;;  %v2347_v34 = vrot.slane %v2342_v63, 4  ;;  %v12690_v11 = vsel %vm1943_vm10, %v1999_v17, %v11723_v23 }
 0x236   : > { %3133 = vrot.lane.b32.xlu2 %v3014_v2, %s11433_s28  ;;  %v3021_v44 = vshll.u32 %v2751_v26, 16  ;;  %v3025_v51 = vshrl.u32 %v2751_v26, 16  ;;  %v2349_v60 = vshrl.u32 %v2100_v7, 16  ;;  %v2352_v10 = vshll.u32 %v2100_v7, 16  ;;  %17680 = vst [vmem:[#allocation67_spill] sm:$0xff] %v12690_v11 }
 0x237   : > { %v1740_v20 = vpop.permute.xlu0 %1739  ;;  %v1840_v53 = vld [vmem:[#allocation2 + $0xe8] sm:$0xf]  ;;  %v12674_v7 = vsel %vm12653_vm7, 1.0, %v17618_v49 }
 0x238   : > { %1808 = vst.msk [vmem:[#allocation2 + $0xf0] sm:$0xf] %vm1779_vm9, %v1740_v20  ;;  %v3112_v29 = vpop.permute.xlu2 %3111  ;;  %v3106_v42 = vpop.permute.xlu1 %3105  ;;  %v3023_v37 = vrot.slane %v3021_v44, 5  ;;  %v1874_v26 = vunpack.c.l.bf16 %v1840_v53  ;;  %v3027_v2 = vrot.slane %v3025_v51, 4  ;;  %v2351_v40 = vrot.slane %v2349_v60, 7 }
 0x239   : > { %3194 = vst.msk [vmem:[#allocation2 + $0x7c] sm:$0xf] %vm2497_vm1, %v3112_v29  ;;  %v12663_v48 = vpop.f32.mrf.mxu1  ;;  %v10542_v54 = vld [vmem:[#allocation2 + $0x60] sm:$0xf]  ;;  %v12686_v60 = vsel %vm2595_vm2, %v2649_v35, %v11751_v56  ;;  %v3836_v17 = vpop.f32.mrf.mxu3 }
 0x23a   : > { %3191 = vst.msk [vmem:[#allocation2 + $0x64] sm:$0xf] %vm2497_vm1, %v3106_v42  ;;  %v10543_v41 = vor.u32 %v11087_v12, %v10542_v54  ;;  %v3024_v33 = vsel %vm11883_vm12, %v3019_v57, %v3023_v37  ;;  %v2719_v20 = vmul.f32 %v12645_v30, %v1874_v26  ;;  %v2354_v44 = vor.u32 %v2352_v10, %v2351_v40 }
 0x23b   : > { %3135 = vrot.lane.b32.xlu0 %v3024_v33, %s11433_s28  ;;  %v2068_v51 = vmul.f32 %v12651_v52, %v1874_v26  ;;  %v3028_v29 = vor.u32 %v3027_v2, %v3023_v37  ;;  %v12679_v12 = vsel %vm12657_vm8, 1.0, %v17618_v49  ;;  %17679 = vst [vmem:[#allocation66_spill] sm:$0xff] %v12686_v60  ;;  %v17445_v2 = vrot.slane %v12674_v7, 7 }
 0x23c   : > { %3593 = vmatmul.bf16.gmra.mxu1 %v10543_v41  ;;  %3860 = vmatmul.bf16.gmra.mxu3 %v10543_v41  ;;  %v2752_v53 = vpack.c.bf16 %v2719_v20, %v2719_v20  ;;  %v2355_v33 = vsel %vm11768_vm3, %v2347_v34, %v2354_v44  ;;  %v510_v41 = vadd.s32 248, %v11714_v62 }
 0x23d   : > { %v2101_v10 = vpack.c.bf16 %v2068_v51, %v2068_v51  ;;  %2453 = vrot.lane.b32.xlu1 %v2355_v33, %s11433_s28  ;;  %v3029_v34 = vrot.slane %v3028_v29, 4 }
 0x23e   : > { %v3031_v63 = vshll.u32 %v2752_v53, 16  ;;  %v3035_v42 = vshrl.u32 %v2752_v53, 16 }
 0x23f   : > { %v1742_v57 = vpop.permute.xlu0 %1741  ;;  %v2358_v37 = vshrl.u32 %v2101_v10, 16  ;;  %v1841_v26 = vld [vmem:[#allocation2 + $0xf0] sm:$0xf]  ;;  %v2361_v43 = vshll.u32 %v2101_v10, 16 }
 0x240   : > { %1809 = vst.msk [vmem:[#allocation2 + $0xf8] sm:$0xf] %vm1779_vm9, %v1742_v57  ;;  %v2432_v20 = vpop.permute.xlu2 %2431  ;;  %v2426_v35 = vpop.permute.xlu1 %2425  ;;  %v3033_v44 = vrot.slane %v3031_v63, 5  ;;  %v1875_v51 = vunpack.c.l.bf16 %v1841_v26  ;;  %v3037_v53 = vrot.slane %v3035_v42, 4  ;;  %v2356_v57 = vrot.slane %v2351_v40, 4 }
 0x241   : > { %2513 = vst.msk [vmem:[#allocation2 + $0x88] sm:$0xf] %vm2497_vm1, %v2432_v20  ;;  %v3574_v33 = vpop.f32.mrf.mxu1  ;;  %v11086_v52 = vld [vmem:[#allocation2 + $0x64] sm:$0xf]  ;;  %v2360_v30 = vrot.slane %v2358_v37, 7  ;;  %v732_v20 = vand.u32 15, %v510_v41 }
 0x242   : > { %2510 = vst.msk [vmem:[#allocation2 + $0x70] sm:$0xf] %vm2497_vm1, %v2426_v35  ;;  %v12698_v54 = vor.u32 %v11086_v52, %v10544_v25  ;;  %v3034_v62 = vsel %vm11883_vm12, %v3029_v34, %v3033_v44  ;;  %v2720_v29 = vmul.f32 %v12686_v60, %v1875_v51  ;;  %v3038_v42 = vor.u32 %v3037_v53, %v3033_v44 }
 0x243   : > { %3137 = vrot.lane.b32.xlu0 %v3034_v62, %s11433_s28  ;;  %v2363_v63 = vor.u32 %v2361_v43, %v2360_v30  ;;  %v2069_v26 = vmul.f32 %v12690_v11, %v1875_v51  ;;  %v12714_v43 = vsel %vm2595_vm2, %v11751_v56, %v17445_v2  ;;  %v17682_v41 = vrot.slane %v12679_v12, 1 }
 0x244   : > { %10681 = vmatmul.msk.bf16.gmra.mxu2 %vm1319_vm0, %v12698_v54  ;;  %v2753_v10 = vpack.c.bf16 %v2720_v29, %v2720_v29  ;;  %17681 = vst [vmem:[#allocation68_spill] sm:$0xff] %v12714_v43  ;;  %v3039_v51 = vrot.slane %v3038_v42, 4  ;;  %vm12722_vm11 = vcmp.lt.s32.totalorder %v732_v20, 15  ;;  %v11168_v20 = vld [vmem:[%s17356_s4 + $0xe0] sm:$0xff]  ;;  %v17686_v29 = vrot.slane %v12674_v7, 7 }
 0x245   : > { %v2364_v52 = vsel %vm11768_vm3, %v2356_v57, %v2363_v63  ;;  %v2102_v25 = vpack.c.bf16 %v2069_v26, %v2069_v26  ;;  %v12720_v35 = vsel %vm1943_vm10, %v11723_v23, %v17682_v41  ;;  %4324 = vmatpush.bf16.msra.mxu2 %v11168_v20 }
 0x246   : > { %2455 = vrot.lane.b32.xlu2 %v2364_v52, %s11433_s28  ;;  %v3041_v40 = vshll.u32 %v2753_v10, 16  ;;  %v3045_v37 = vshrl.u32 %v2753_v10, 16  ;;  %17683 = vst [vmem:[#allocation69_spill] sm:$0xff] %v12720_v35  ;;  %v11089_v10 = vld [vmem:[#allocation2 + $0x74] sm:$0xf0] }
 0x247   : > { %v3663_v34 = vpop.f32.mrf.mxu2  ;;  %v1744_v44 = vpop.permute.xlu0 %1743  ;;  %v2367_v53 = vshrl.u32 %v2102_v25, 16  ;;  %v2370_v62 = vshll.u32 %v2102_v25, 16  ;;  %v1842_v57 = vld [vmem:[#allocation2 + $0xf8] sm:$0xf] }
 0x248   : > { %v3664_v63 = vadd.f32 %v3663_v34, %v3574_v33  ;;  %1810 = vst.msk [vmem:[#allocation2 + $0x100] sm:$0xf] %vm1779_vm9, %v1744_v44  ;;  %v3116_v26 = vpop.permute.xlu2 %3115  ;;  %v3043_v52 = vrot.slane %v3041_v40, 5  ;;  %v1876_v2 = vunpack.c.l.bf16 %v1842_v57  ;;  %v3047_v60 = vrot.slane %v3045_v37, 4  ;;  %v3110_v42 = vpop.permute.xlu1 %3109 }
 0x249   : > { %3196 = vst.msk [vmem:[#allocation2 + $0x8c] sm:$0xf] %vm2497_vm1, %v3116_v26  ;;  %v12728_v41 = vpop.f32.mrf.mxu1  ;;  %v10550_v11 = vld [vmem:[#allocation2 + $0x70] sm:$0xf]  ;;  %v2369_v25 = vrot.slane %v2367_v53, 7  ;;  %v12737_v37 = vpop.f32.mrf.mxu3  ;;  %v2365_v44 = vrot.slane %v2360_v30, 4 }
 0x24a   : > { %3193 = vst.msk [vmem:[#allocation2 + $0x74] sm:$0xf] %vm2497_vm1, %v3110_v42  ;;  %v10551_v33 = vor.u32 %v11089_v10, %v10550_v11  ;;  %v3044_v34 = vsel %vm11883_vm12, %v3039_v51, %v3043_v52  ;;  %v2721_v40 = vmul.f32 %v12714_v43, %v1876_v2  ;;  %v2070_v53 = vmul.f32 %v12720_v35, %v1876_v2 }
 0x24b   : > { %3139 = vrot.lane.b32.xlu1 %v3044_v34, %s11433_s28  ;;  %v2372_v57 = vor.u32 %v2370_v62, %v2369_v25  ;;  %v3048_v58 = vor.u32 %v3047_v60, %v3043_v52  ;;  %v10377_v11 = vsel %vm12722_vm11, 1.0, %v17618_v49  ;;  %v12744_v51 = vadd.f32 %v3836_v17, %v3664_v63 }
 0x24c   : > { %3598 = vmatmul.bf16.gmra.mxu1 %v10551_v33  ;;  %3865 = vmatmul.bf16.gmra.mxu3 %v10551_v33  ;;  %v2754_v26 = vpack.c.bf16 %v2721_v40, %v2721_v40  ;;  %v2103_v42 = vpack.c.bf16 %v2070_v53, %v2070_v53  ;;  %v10552_v33 = vld [vmem:[#allocation2 + $0x78] sm:$0xf0]  ;;  %v12755_v49 = vsel %vm2595_vm2, %v17686_v29, %v11751_v56  ;;  %v17688_v17 = vrot.slane %v12679_v12, 1  ;;  %v1845_v40 = vld [vmem:[#allocation2 + $0x110] sm:$0x1] }
 0x24d   : > { %v2373_v10 = vsel %vm11768_vm3, %v2365_v44, %v2372_v57  ;;  %17687 = vst [vmem:[#allocation70_spill] sm:$0xff] %v12755_v49  ;;  %v12763_v52 = vrot.slane %v10377_v11, 7  ;;  %v3049_v57 = vrot.slane %v3048_v58, 4 }
 0x24e   : > { %2457 = vrot.lane.b32.xlu2 %v2373_v10, %s11433_s28  ;;  %v3051_v30 = vshll.u32 %v2754_v26, 16  ;;  %v3055_v62 = vshrl.u32 %v2754_v26, 16  ;;  %v2376_v34 = vshrl.u32 %v2103_v42, 16  ;;  %v12761_v63 = vsel %vm1943_vm10, %v17688_v17, %v11723_v23 }
 0x24f   : > { %v12749_v2 = vpop.f32.mrf.mxu2  ;;  %v1746_v20 = vpop.permute.xlu0 %1745  ;;  %v1843_v60 = vld [vmem:[#allocation2 + $0x100] sm:$0xf]  ;;  %17689 = vst [vmem:[#allocation71_spill] sm:$0xff] %v12761_v63  ;;  %v2379_v43 = vshll.u32 %v2103_v42, 16  ;;  %v2530_v17 = vunpack.c.l.bf16 %v1845_v40  ;;  %vm5023_vm10 = vcmask 31744  }
 0x250   : > { %17690 = vst [vmem:[#allocation72_spill] sm:$0xff] %v12763_v52  ;;  %v2436_v44 = vpop.permute.xlu2 %2435  ;;  %v3053_v53 = vrot.slane %v3051_v30, 5  ;;  %v1877_v26 = vunpack.c.l.bf16 %v1843_v60  ;;  %v3057_v10 = vrot.slane %v3055_v62, 4  ;;  %v2430_v7 = vpop.permute.xlu1 %2429  ;;  %v2378_v35 = vrot.slane %v2376_v34, 7 }
 0x251   : > { %1811 = vst.msk [vmem:[#allocation2 + $0x108] sm:$0xf] %vm1779_vm9, %v1746_v20  ;;  %v11088_v29 = vld [vmem:[#allocation2 + $0x74] sm:$0xf]  ;;  %v3579_v58 = vpop.f32.mrf.mxu1  ;;  %v2374_v30 = vrot.slane %v2369_v25, 4 }
 0x252   : > { %2515 = vst.msk [vmem:[#allocation2 + $0x98] sm:$0xf] %vm2497_vm1, %v2436_v44  ;;  %v12768_v12 = vor.u32 %v11088_v29, %v10552_v33  ;;  %v3054_v11 = vsel %vm11883_vm12, %v3049_v57, %v3053_v53  ;;  %v2722_v20 = vmul.f32 %v12755_v49, %v1877_v26  ;;  %v2381_v62 = vor.u32 %v2379_v43, %v2378_v35  ;;  %v3841_v33 = vpop.f32.mrf.mxu3 }
 0x253   : > { %2512 = vst.msk [vmem:[#allocation2 + $0x80] sm:$0xf] %vm2497_vm1, %v2430_v7  ;;  %3141 = vrot.lane.b32.xlu1 %v3054_v11, %s11433_s28  ;;  %v3058_v60 = vor.u32 %v3057_v10, %v3053_v53  ;;  %v2071_v44 = vmul.f32 %v12761_v63, %v1877_v26  ;;  %v2724_v29 = vmul.f32 %v12763_v52, %v2530_v17  ;;  %v11091_v63 = vld [vmem:[#allocation2 + $0x84] sm:$0xf0] }
 0x254   : > { %10682 = vmatmul.msk.bf16.gmra.mxu2 %vm1319_vm0, %v12768_v12  ;;  %v2755_v42 = vpack.c.bf16 %v2722_v20, %v2722_v20  ;;  %v2382_v34 = vsel %vm11768_vm3, %v2374_v30, %v2381_v62  ;;  %v12784_v26 = vsel %vm2595_vm2, %v11751_v56, %v12763_v52 }
 0x255   : > { %v2104_v57 = vpack.c.bf16 %v2071_v44, %v2071_v44  ;;  %2459 = vrot.lane.b32.xlu0 %v2382_v34, %s11433_s28  ;;  %v3059_v43 = vrot.slane %v3058_v60, 4  ;;  %17691 = vst [vmem:[#allocation73_spill] sm:$0xff] %v12784_v26 }
 0x256   : > { %v3061_v40 = vshll.u32 %v2755_v42, 16  ;;  %v3065_v7 = vshrl.u32 %v2755_v42, 16 }
 0x257   : > { %v3668_v25 = vpop.f32.mrf.mxu2  ;;  %v2385_v53 = vshrl.u32 %v2104_v57, 16  ;;  %v2388_v49 = vshll.u32 %v2104_v57, 16 }
 0x258   : > { %v1844_v10 = vld [vmem:[#allocation2 + $0x108] sm:$0xf]  ;;  %v3669_v11 = vadd.f32 %v3668_v25, %v3579_v58  ;;  %v3120_v20 = vpop.permute.xlu2 %3119  ;;  %v3063_v30 = vrot.slane %v3061_v40, 5  ;;  %v3067_v44 = vrot.slane %v3065_v7, 4  ;;  %v3114_v42 = vpop.permute.xlu1 %3113  ;;  %v2757_v58 = vpack.c.bf16 %v2724_v29, %v2724_v29 }
 0x259   : > { %v1878_v62 = vunpack.c.l.bf16 %v1844_v10  ;;  %3198 = vst.msk [vmem:[#allocation2 + $0x9c] sm:$0xf] %vm2497_vm1, %v3120_v20  ;;  %v2387_v17 = vrot.slane %v2385_v53, 7  ;;  %v2383_v40 = vrot.slane %v2378_v35, 4  ;;  %v12795_v20 = vpop.f32.mrf.mxu1 }
 0x25a   : > { %v10558_v34 = vld [vmem:[#allocation2 + $0x80] sm:$0xf]  ;;  %3195 = vst.msk [vmem:[#allocation2 + $0x84] sm:$0xf] %vm2497_vm1, %v3114_v42  ;;  %v3064_v9 = vsel %vm11883_vm12, %v3059_v43, %v3063_v30  ;;  %v3068_v53 = vor.u32 %v3067_v44, %v3063_v30  ;;  %v12793_v57 = vadd.f32 %v3841_v33, %v3669_v11  ;;  %v3081_v35 = vshll.u32 %v2757_v58, 16 }
 0x25b   : > { %v10559_v60 = vor.u32 %v11091_v63, %v10558_v34  ;;  %v2723_v52 = vmul.f32 %v12784_v26, %v1878_v62  ;;  %3143 = vrot.lane.b32.xlu2 %v3064_v9, %s11433_s28  ;;  %v2390_v25 = vor.u32 %v2388_v49, %v2387_v17  ;;  %v2072_v7 = vmul.f32 %v11723_v23, %v1878_v62  ;;  %v12800_v49 = vpop.f32.mrf.mxu3  ;;  %v10560_v30 = vld [vmem:[#allocation2 + $0x88] sm:$0xf0] }
 0x25c   : > { %v3069_v33 = vrot.slane %v3068_v53, 4  ;;  %v2392_v53 = vrot.slane %v2387_v17, 4 }
 0x25d   : > { %3603 = vmatmul.bf16.gmra.mxu1 %v10559_v60  ;;  %3870 = vmatmul.bf16.gmra.mxu3 %v10559_v60  ;;  %v2756_v10 = vpack.c.bf16 %v2723_v52, %v2723_v52  ;;  %v2391_v63 = vsel %vm11768_vm3, %v2383_v40, %v2390_v25  ;;  %v2105_v43 = vpack.c.bf16 %v2072_v7, %v2072_v7 }
 0x25e   : > { %2461 = vrot.lane.b32.xlu0 %v2391_v63, %s11433_s28  ;;  %v3083_v63 = vrot.slane %v3081_v35, 5 }
 0x25f   : > { %v3071_v29 = vshll.u32 %v2756_v10, 16  ;;  %v3075_v9 = vshrl.u32 %v2756_v10, 16  ;;  %v12802_v62 = vpop.f32.mrf.mxu2  ;;  %v2394_v42 = vshrl.u32 %v2105_v43, 16  ;;  %v2397_v25 = vshll.u32 %v2105_v43, 16  ;;  %v11167_v43 = vld [vmem:[%s17356_s4 + $0xd8] sm:$0xff] }
 0x260   : > { %v2440_v52 = vpop.permute.xlu2 %2439  ;;  %v2434_v34 = vpop.permute.xlu1 %2433  ;;  %4325 = vmatpush.bf16.msra.mxu2 %v11167_v43 }
 0x261   : > { %v3073_v11 = vrot.slane %v3071_v29, 5  ;;  %v3077_v44 = vrot.slane %v3075_v9, 4  ;;  %2517 = vst.msk [vmem:[#allocation2 + $0xa8] sm:$0xf] %vm2497_vm1, %v2440_v52  ;;  %v11090_v60 = vld [vmem:[#allocation2 + $0x84] sm:$0xf]  ;;  %v3584_v52 = vpop.f32.mrf.mxu1 }
 0x262   : > { %v2396_v40 = vrot.slane %v2394_v42, 7  ;;  %2514 = vst.msk [vmem:[#allocation2 + $0x90] sm:$0xf] %vm2497_vm1, %v2434_v34  ;;  %v12806_v7 = vor.u32 %v11090_v60, %v10560_v30  ;;  %v11093_v60 = vld [vmem:[#allocation2 + $0x94] sm:$0xf0] }
 0x263   : > { %v3074_v58 = vsel %vm11883_vm12, %v3069_v33, %v3073_v11  ;;  %v3078_v10 = vor.u32 %v3077_v44, %v3073_v11  ;;  %v3846_v11 = vpop.f32.mrf.mxu3 }
 0x264   : > { %3145 = vrot.lane.b32.xlu2 %v3074_v58, %s11433_s28  ;;  %v2399_v29 = vor.u32 %v2397_v25, %v2396_v40  ;;  %10683 = vmatmul.msk.bf16.gmra.mxu2 %vm1319_vm0, %v12806_v7  ;;  %v17692_v58 = vsel %vm11883_vm12, %v11908_v38, %v11856_v5 }
 0x265   : > { %v3079_v9 = vrot.slane %v3078_v10, 4  ;;  %v17693_v10 = vsel %vm11883_vm12, %v11887_v39, %v11850_v3 }
 0x266   : > { %v2400_v42 = vsel %vm11768_vm3, %v2392_v53, %v2399_v29 }
 0x267   : > { %2463 = vrot.lane.b32.xlu1 %v2400_v42, %s11433_s28  ;;  %v3084_v35 = vsel %vm11883_vm12, %v3079_v9, %v3083_v63  ;;  %v3673_v17 = vpop.f32.mrf.mxu2  ;;  %v10568_v9 = vld [vmem:[#allocation2 + $0x98] sm:$0xf0] }
 0x268   : > { %3147 = vrot.lane.b32.xlu0 %v3084_v35, %s11433_s28  ;;  %v3674_v30 = vadd.f32 %v3673_v17, %v3584_v52  ;;  %v3124_v33 = vpop.permute.xlu2 %3123  ;;  %v3118_v44 = vpop.permute.xlu1 %3117  ;;  %v11095_v3 = vld [vmem:[#allocation2 + $0xa4] sm:$0xf0]  ;;  %v11296_v35 = vld [vmem:[%s17359_s7 + $0x1] ss:$0 sm:$0xff] }
 0x269   : > { %3200 = vst.msk [vmem:[#allocation2 + $0xac] sm:$0xf] %vm2497_vm1, %v3124_v33  ;;  %v10566_v34 = vld [vmem:[#allocation2 + $0x90] sm:$0xf] }
 0x26a   : > { %3197 = vst.msk [vmem:[#allocation2 + $0x94] sm:$0xf] %vm2497_vm1, %v3118_v44  ;;  %v10567_v40 = vor.u32 %v11093_v60, %v10566_v34  ;;  %v12824_v25 = vadd.f32 %v3846_v11, %v3674_v30  ;;  %v11166_v11 = vld [vmem:[%s17356_s4 + $0xd0] sm:$0xff]  ;;  %v11297_v34 = vld [vmem:[%s17359_s7 + $0x4] ss:$0 sm:$0xff] }
 0x26b   : > { %4326 = vmatpush.bf16.msra.mxu2 %v11166_v11 }
 0x26c   : > { %3087 = vrot.lane.b32.xlu2 %v17692_v58, %s11433_s28 }
 0x26d   : > { %3608 = vmatmul.bf16.gmra.mxu1 %v10567_v40  ;;  %3875 = vmatmul.bf16.gmra.mxu3 %v10567_v40 }
 0x26f   : > { %3085 = vrot.lane.b32.xlu1 %v17693_v10, %s11433_s28 }
 0x270   : > { %v2444_v63 = vpop.permute.xlu2 %2443  ;;  %v2438_v53 = vpop.permute.xlu1 %2437  ;;  %6355 = vrot.lane.b32.xlu0 %v11296_v35, %s11433_s28  ;;  %v10576_v17 = vld [vmem:[#allocation2 + $0xa8] sm:$0xf0] }
 0x271   : > { %2519 = vst.msk [vmem:[#allocation2 + $0xb8] sm:$0xf] %vm2497_vm1, %v2444_v63  ;;  %v11092_v29 = vld [vmem:[#allocation2 + $0x94] sm:$0xf]  ;;  %v11298_v63 = vld [vmem:[%s17359_s7 + $0x7] ss:$0 sm:$0xff] }
 0x272   : > { %2516 = vst.msk [vmem:[#allocation2 + $0xa0] sm:$0xf] %vm2497_vm1, %v2438_v53  ;;  %v12840_v43 = vor.u32 %v11092_v29, %v10568_v9 }
 0x274   : > { %10684 = vmatmul.msk.bf16.gmra.mxu2 %vm1319_vm0, %v12840_v43 }
 0x278   : > { %v3128_v5 = vpop.permute.xlu2 %3127  ;;  %v3122_v38 = vpop.permute.xlu1 %3121  ;;  %6753 = vrot.lane.b32.xlu0 %v11297_v34, %s11433_s28  ;;  %v11097_v40 = vld [vmem:[#allocation2 + $0xb4] sm:$0xf0] }
 0x279   : > { %3202 = vst.msk [vmem:[#allocation2 + $0xbc] sm:$0xf] %vm2497_vm1, %v3128_v5  ;;  %v10574_v42 = vld [vmem:[#allocation2 + $0xa0] sm:$0xf] }
 0x27a   : > { %3199 = vst.msk [vmem:[#allocation2 + $0xa4] sm:$0xf] %vm2497_vm1, %v3122_v38  ;;  %v10575_v39 = vor.u32 %v11095_v3, %v10574_v42 }
 0x27d   : > { %3613 = vmatmul.bf16.gmra.mxu1 %v10575_v39  ;;  %3880 = vmatmul.bf16.gmra.mxu3 %v10575_v39 }
 0x280   : > { %v2448_v52 = vpop.permute.xlu2 %2447  ;;  %v2442_v30 = vpop.permute.xlu1 %2441  ;;  %7091 = vrot.lane.b32.xlu0 %v11298_v63, %s11433_s28  ;;  %v10584_v38 = vld [vmem:[#allocation2 + $0xb8] sm:$0xf0] }
 0x281   : > { %2521 = vst.msk [vmem:[#allocation2 + $0xc8] sm:$0xf] %vm2497_vm1, %v2448_v52  ;;  %v11094_v33 = vld [vmem:[#allocation2 + $0xa4] sm:$0xf]  ;;  %v12875_v52 = vpop.f32.mrf.mxu1 }
 0x282   : > { %2518 = vst.msk [vmem:[#allocation2 + $0xb0] sm:$0xf] %vm2497_vm1, %v2442_v30  ;;  %v12855_v44 = vor.u32 %v11094_v33, %v10576_v17  ;;  %v12878_v30 = vpop.f32.mrf.mxu2 }
 0x284   : > { %10685 = vmatmul.msk.bf16.gmra.mxu2 %vm1319_vm0, %v12855_v44 }
 0x288   : > { %v3132_v60 = vpop.permute.xlu2 %3131  ;;  %v3126_v58 = vpop.permute.xlu1 %3125  ;;  %v11099_v35 = vld [vmem:[#allocation2 + $0xc4] sm:$0xf0] }
 0x289   : > { %3204 = vst.msk [vmem:[#allocation2 + $0xcc] sm:$0xf] %vm2497_vm1, %v3132_v60  ;;  %v10582_v10 = vld [vmem:[#allocation2 + $0xb0] sm:$0xf]  ;;  %v3589_v63 = vpop.f32.mrf.mxu1 }
 0x28a   : > { %3201 = vst.msk [vmem:[#allocation2 + $0xb4] sm:$0xf] %vm2497_vm1, %v3126_v58  ;;  %v10583_v53 = vor.u32 %v11097_v40, %v10582_v10  ;;  %v11165_v40 = vld [vmem:[%s17356_s4 + $0xc8] sm:$0xff]  ;;  %v11117_v10 = vld [vmem:[%s17356_s4 + $0x58] sm:$0xff] }
 0x28b   : > { %4327 = vmatpush.bf16.msra.mxu2 %v11165_v40  ;;  %3915 = vmatpush.bf16.msrb.mxu0 %v11117_v10 }
 0x28d   : > { %3618 = vmatmul.bf16.gmra.mxu1 %v10583_v53  ;;  %3885 = vmatmul.bf16.gmra.mxu3 %v10583_v53 }
 0x290   : > { %v3134_v29 = vpop.permute.xlu2 %3133  ;;  %v2446_v9 = vpop.permute.xlu1 %2445  ;;  %v10592_v34 = vld [vmem:[#allocation2 + $0xc8] sm:$0xf0] }
 0x291   : > { %3205 = vst.msk [vmem:[#allocation2 + $0xd4] sm:$0xf] %vm2497_vm1, %v3134_v29  ;;  %v11096_v5 = vld [vmem:[#allocation2 + $0xb4] sm:$0xf] }
 0x292   : > { %2520 = vst.msk [vmem:[#allocation2 + $0xc0] sm:$0xf] %vm2497_vm1, %v2446_v9  ;;  %v12871_v42 = vor.u32 %v11096_v5, %v10584_v38 }
 0x294   : > { %10686 = vmatmul.msk.bf16.gmra.mxu2 %vm1319_vm0, %v12871_v42 }
 0x298   : > { %v3130_v3 = vpop.permute.xlu1 %3129  ;;  %v11100_v10 = vld [vmem:[#allocation2 + $0xd4] sm:$0xf] }
 0x299   : > { %v10590_v39 = vld [vmem:[#allocation2 + $0xc0] sm:$0xf]  ;;  %3203 = vst.msk [vmem:[#allocation2 + $0xc4] sm:$0xf] %vm2497_vm1, %v3130_v3 }
 0x29a   : > { %v10591_v17 = vor.u32 %v11099_v35, %v10590_v39 }
 0x29d   : > { %3623 = vmatmul.bf16.gmra.mxu1 %v10591_v17  ;;  %3890 = vmatmul.bf16.gmra.mxu3 %v10591_v17 }
 0x29f   : > { %v2450_v33 = vpop.permute.xlu0 %2449 }
 0x2a0   : > { %2522 = vst.msk [vmem:[#allocation2 + $0xd0] sm:$0xf] %vm2497_vm1, %v2450_v33  ;;  %v2456_v11 = vpop.permute.xlu2 %2455  ;;  %v11098_v60 = vld [vmem:[#allocation2 + $0xc4] sm:$0xf]  ;;  %v11116_v33 = vld [vmem:[%s17356_s4 + $0x50] sm:$0xff] }
 0x2a1   : > { %2525 = vst.msk [vmem:[#allocation2 + $0xe8] sm:$0xf] %vm2497_vm1, %v2456_v11  ;;  %v12885_v58 = vor.u32 %v11098_v60, %v10592_v34  ;;  %v12900_v11 = vpop.f32.mrf.mxu1  ;;  %3916 = vmatpush.bf16.msrb.mxu0 %v11116_v33  ;;  %v11115_v34 = vld [vmem:[%s17356_s4 + $0x48] sm:$0xff] }
 0x2a4   : > { %10687 = vmatmul.msk.bf16.gmra.mxu2 %vm1319_vm0, %v12885_v58  ;;  %v3678_v53 = vpop.f32.mrf.mxu2 }
 0x2a5   : > { %v12892_v29 = vadd.f32 %v3678_v53, %v3589_v63  ;;  %3917 = vmatpush.bf16.msrb.mxu0 %v11115_v34 }
 0x2a7   : > { %v2452_v9 = vpop.permute.xlu1 %2451  ;;  %v10598_v3 = vld [vmem:[#allocation2 + $0xd0] sm:$0xf] }
 0x2a8   : > { %v2458_v5 = vpop.permute.xlu2 %2457  ;;  %2523 = vst.msk [vmem:[#allocation2 + $0xd8] sm:$0xf] %vm2497_vm1, %v2452_v9 }
 0x2a9   : > { %2526 = vst.msk [vmem:[#allocation2 + $0xf0] sm:$0xf] %vm2497_vm1, %v2458_v5  ;;  %v11114_v5 = vld [vmem:[%s17356_s4 + $0x40] sm:$0xff] }
 0x2aa   : > { %3918 = vmatpush.bf16.msrb.mxu0 %v11114_v5 }
 0x2ac   : > { %v12917_v34 = vpop.f32.mrf.mxu2 }
 0x2ad   : > { %v3136_v38 = vpop.permute.xlu0 %3135 }
 0x2ae   : > { %3206 = vst.msk [vmem:[#allocation2 + $0xdc] sm:$0xf] %vm2497_vm1, %v3136_v38  ;;  %v11074_v38 = vld [vmem:[#allocation2 + $0x4] sm:$0xf] }
 0x2af   : > { %v11101_v39 = vld [vmem:[#allocation2 + $0xd4] sm:$0xf0]  ;;  %v2454_v35 = vpop.permute.xlu1 %2453 }
 0x2b0   : > { %v10599_v17 = vor.u32 %v11101_v39, %v10598_v3  ;;  %2524 = vst.msk [vmem:[#allocation2 + $0xe0] sm:$0xf] %vm2497_vm1, %v2454_v35  ;;  %v10696_v3 = vld [vmem:[#allocation2 + $0x8] sm:$0xf0]  ;;  %v10614_v23 = vld [vmem:[#allocation2 + $0xf0] sm:$0xf] }
 0x2b1   : > { %v10699_v39 = vor.u32 %v11074_v38, %v10696_v3 }
 0x2b2   : > { %3628 = vmatmul.bf16.gmra.mxu1 %v10599_v17  ;;  %3895 = vmatmul.bf16.gmra.mxu3 %v10599_v17 }
 0x2b3   : > { %10748 = vmatmul.msk.bf16.vlgmr.msrb.gmra.mxu0 %vm1319_vm0, %v10699_v39 }
 0x2b5   : > { %v3138_v60 = vpop.permute.xlu0 %3137  ;;  %v3144_v40 = vpop.permute.xlu2 %3143  ;;  %v10600_v63 = vld [vmem:[#allocation2 + $0xd8] sm:$0xf0] }
 0x2b6   : > { %3207 = vst.msk [vmem:[#allocation2 + $0xe4] sm:$0xf] %vm2497_vm1, %v3138_v60  ;;  %v12907_v53 = vor.u32 %v11100_v10, %v10600_v63  ;;  %v11103_v60 = vld [vmem:[#allocation2 + $0xe4] sm:$0xf0]  ;;  %v11164_v10 = vld [vmem:[%s17356_s4 + $0xc0] sm:$0xff] }
 0x2b7   : > { %3210 = vst.msk [vmem:[#allocation2 + $0xfc] sm:$0xf] %vm2497_vm1, %v3144_v40  ;;  %v10606_v33 = vld [vmem:[#allocation2 + $0xe0] sm:$0xf]  ;;  %4328 = vmatpush.bf16.msra.mxu2 %v11164_v10 }
 0x2b8   : > { %10688 = vmatmul.msk.bf16.gmra.mxu2 %vm1319_vm0, %v12907_v53  ;;  %v10607_v40 = vor.u32 %v11103_v60, %v10606_v33 }
 0x2b9   : > { %v3594_v9 = vpop.f32.mrf.mxu1 }
 0x2bd   : > { %v3140_v17 = vpop.permute.xlu1 %3139  ;;  %v11102_v3 = vld [vmem:[#allocation2 + $0xe4] sm:$0xf] }
 0x2be   : > { %v3146_v35 = vpop.permute.xlu2 %3145  ;;  %3208 = vst.msk [vmem:[#allocation2 + $0xec] sm:$0xf] %vm2497_vm1, %v3140_v17 }
 0x2bf   : > { %3211 = vst.msk [vmem:[#allocation2 + $0x104] sm:$0xf] %vm2497_vm1, %v3146_v35 }
 0x2c1   : > { %v3596_v63 = vpop.f32.mrf.mxu1 }
 0x2c2   : > { %3633 = vmatmul.bf16.gmra.mxu1 %v10607_v40  ;;  %3900 = vmatmul.bf16.gmra.mxu3 %v10607_v40 }
 0x2c5   : > { %v3142_v38 = vpop.permute.xlu1 %3141  ;;  %v10608_v39 = vld [vmem:[#allocation2 + $0xe8] sm:$0xf0] }
 0x2c6   : > { %v3088_v5 = vpop.permute.xlu2 %3087  ;;  %3209 = vst.msk [vmem:[#allocation2 + $0xf4] sm:$0xf] %vm2497_vm1, %v3142_v38  ;;  %v12925_v17 = vor.u32 %v11102_v3, %v10608_v39  ;;  %v12935_v39 = vpop.f32.mrf.mxu3  ;;  %v11118_v46 = vld [vmem:[#allocation2 + $0x104] sm:$0xf] }
 0x2c7   : > { %3182 = vst.msk [vmem:[#allocation2 + $0x1c] sm:$0xf] %vm2497_vm1, %v3088_v5  ;;  %v3683_v35 = vpop.f32.mrf.mxu2  ;;  %v2460_v60 = vpop.permute.xlu0 %2459 }
 0x2c8   : > { %v12927_v33 = vadd.f32 %v3683_v35, %v3594_v9  ;;  %2527 = vst.msk [vmem:[#allocation2 + $0xf8] sm:$0xf] %vm2497_vm1, %v2460_v60  ;;  %10689 = vmatmul.msk.bf16.gmra.mxu2 %vm1319_vm0, %v12925_v17  ;;  %v11175_v9 = vld [vmem:[%s17356_s4 + $0x118] sm:$0xff] }
 0x2c9   : > { %v3599_v26 = vpop.f32.mrf.mxu1  ;;  %4414 = vmatpush.bf16.msrb.mxu1 %v11175_v9  ;;  %v10616_v60 = vld [vmem:[#allocation2 + $0xf8] sm:$0xf0] }
 0x2cd   : > { %v11104_v35 = vld [vmem:[#allocation2 + $0xf4] sm:$0xf] }
 0x2cf   : > { %v3685_v40 = vpop.f32.mrf.mxu2  ;;  %v11105_v22 = vld [vmem:[#allocation2 + $0xf4] sm:$0xf0] }
 0x2d0   : > { %v12932_v10 = vadd.f32 %v3685_v40, %v3596_v63  ;;  %v2462_v5 = vpop.permute.xlu0 %2461  ;;  %v10615_v3 = vor.u32 %v11105_v22, %v10614_v23  ;;  %v12940_v40 = vor.u32 %v11104_v35, %v10616_v60  ;;  %v11174_v23 = vld [vmem:[%s17356_s4 + $0x110] sm:$0xff] }
 0x2d1   : > { %2528 = vst.msk [vmem:[#allocation2 + $0x100] sm:$0xf] %vm2497_vm1, %v2462_v5  ;;  %v3601_v38 = vpop.f32.mrf.mxu1  ;;  %4415 = vmatpush.bf16.msrb.mxu1 %v11174_v23 }
 0x2d2   : > { %3638 = vmatmul.bf16.gmra.mxu1 %v10615_v3  ;;  %3905 = vmatmul.bf16.gmra.mxu3 %v10615_v3 }
 0x2d7   : > { %v3688_v63 = vpop.f32.mrf.mxu2 }
 0x2d8   : > { %v12942_v55 = vadd.f32 %v3688_v63, %v3599_v26  ;;  %10690 = vmatmul.msk.bf16.gmra.mxu2 %vm1319_vm0, %v12940_v40  ;;  %v11173_v26 = vld [vmem:[%s17356_s4 + $0x108] sm:$0xff]  ;;  %v10622_v60 = vld [vmem:[#allocation2 + $0x100] sm:$0xf] }
 0x2d9   : > { %v2464_v4 = vpop.permute.xlu1 %2463  ;;  %4416 = vmatpush.bf16.msrb.mxu1 %v11173_v26 }
 0x2da   : > { %v3604_v22 = vpop.f32.mrf.mxu1  ;;  %2529 = vst.msk [vmem:[#allocation2 + $0x108] sm:$0xf] %vm2497_vm1, %v2464_v4  ;;  %v3148_v5 = vpop.permute.xlu0 %3147  ;;  %v11172_v4 = vld [vmem:[%s17356_s4 + $0x100] sm:$0xff] }
 0x2db   : > { %3212 = vst.msk [vmem:[#allocation2 + $0x10c] sm:$0xf] %vm2497_vm1, %v3148_v5 }
 0x2dd   : > { %4417 = vmatpush.bf16.msrb.mxu1 %v11172_v4 }
 0x2df   : > { %v3690_v3 = vpop.f32.mrf.mxu2 }
 0x2e0   : > { %v12954_v9 = vadd.f32 %v3690_v3, %v3601_v38  ;;  %v10504_v3 = vld [vmem:[#allocation2 + $0x18] sm:$0xf0] }
 0x2e1   : > { %v3086_v35 = vpop.permute.xlu1 %3085  ;;  %v11119_v63 = vld [vmem:[#allocation2 + $0x104] sm:$0xf0] }
 0x2e2   : > { %v3606_v50 = vpop.f32.mrf.mxu1  ;;  %3181 = vst.msk [vmem:[#allocation2 + $0x14] sm:$0xf] %vm2497_vm1, %v3086_v35  ;;  %v10623_v5 = vor.u32 %v11119_v63, %v10622_v60  ;;  %v10624_v23 = vld [vmem:[#allocation2 + $0x108] sm:$0xf0]  ;;  %v12966_v35 = vpop.permute.xlu0 %6355  ;;  %v10790_v63 = vld [vmem:[#allocation2 + $0x20] sm:$0xf] }
 0x2e3   : > { %v10627_v26 = vor.u32 %v11118_v46, %v10624_v23  ;;  %17694 = vst [vmem:[#allocation74_spill] sm:$0xff] %v12966_v35  ;;  %v11133_v46 = vld [vmem:[#allocation2 + $0x24] sm:$0xf0]  ;;  %v12973_v23 = vld [vmem:[#allocation2] sm:$0xff]  }
 0x2e4   : > { %3643 = vmatmul.bf16.gmra.mxu1 %v10623_v5  ;;  %17696 = vst [vmem:[#allocation76_spill] sm:$0xff] %v12973_v23 }
 0x2e7   : > { %v3693_v24 = vpop.f32.mrf.mxu2 }
 0x2e8   : > { %v12960_v18 = vadd.f32 %v3693_v24, %v3604_v22  ;;  %10691 = vmatmul.msk.bf16.gmra.mxu2 %vm1319_vm0, %v10627_v26  ;;  %v10791_v22 = vor.u32 %v11133_v46, %v10790_v63  ;;  %v12975_v26 = vld [vmem:[#allocation2 + $0x8] sm:$0xff]  }
 0x2e9   : > { %v11076_v38 = vld [vmem:[#allocation2 + $0x14] sm:$0xf]  ;;  %17697 = vst [vmem:[#allocation77_spill] sm:$0xff] %v12975_v26 }
 0x2ea   : > { %v3609_v36 = vpop.f32.mrf.mxu1  ;;  %v10507_v21 = vor.u32 %v11076_v38, %v10504_v3  ;;  %v12971_v5 = vpop.permute.xlu0 %6753  ;;  %v11132_v3 = vld [vmem:[#allocation2 + $0x24] sm:$0xf] }
 0x2eb   : > { %17695 = vst [vmem:[#allocation75_spill] sm:$0xff] %v12971_v5 }
 0x2ec   : > { %10749 = vmatmul.msk.bf16.gmra.mxu0 %vm1319_vm0, %v10507_v21 }
 0x2ef   : > { %v3695_v61 = vpop.f32.mrf.mxu2 }
 0x2f0   : > { %v12964_v16 = vadd.f32 %v3695_v61, %v3606_v50  ;;  %v17492_v61 = vunpack.c.l.bf16 %v12973_v23  ;;  %v17493_v50 = vunpack.c.l.bf16 %v12975_v26 }
 0x2f2   : > { %v3611_v60 = vpop.f32.mrf.mxu1 }
 0x2f4   : > { %10676 = vmatmul.msk.bf16.vlgmr.msra.gmra.mxu1 %vm1319_vm0, %v10507_v21  ;;  %v6358_v21 = vmul.f32 %v12966_v35, %v17492_v61 }
 0x2f6   : > { %6422 = vrot.lane.b32.xlu1 %v6358_v21, %s11433_s28 }
 0x2f7   : > { %v3698_v24 = vpop.f32.mrf.mxu2 }
 0x2f8   : > { %v12969_v4 = vadd.f32 %v3698_v24, %v3609_v36  ;;  %4329 = vmatmul.bf16.vlgmr.msra.gmra.mxu2 %v10791_v22  ;;  %v6359_v36 = vmul.f32 %v12966_v35, %v17493_v50  ;;  %v10792_v24 = vld [vmem:[#allocation2 + $0x28] sm:$0xf0]  ;;  %v12991_v22 = vpop.permute.xlu0 %7091  ;;  %v13003_v35 = vld [vmem:[#allocation2 + $0x110] sm:$0xf] }
 0x2f9   : > { %17698 = vst [vmem:[#allocation78_spill] sm:$0xff] %v12991_v22  ;;  %v10795_v5 = vor.u32 %v11132_v3, %v10792_v24  ;;  %v17504_v3 = vunpack.c.l.bf16 %v13003_v35 }
 0x2fa   : > { %v3614_v38 = vpop.f32.mrf.mxu1  ;;  %6424 = vrot.lane.b32.xlu2 %v6359_v36, %s11433_s28  ;;  %v10798_v36 = vld [vmem:[#allocation2 + $0x30] sm:$0xf]  ;;  %17700 = vst [vmem:[#allocation80_spill] sm:$0xff] %v13003_v35 }
 0x2fb   : > { %v7124_v24 = vmul.f32 %v12991_v22, %v17504_v3 }
 0x2fc   : > { %10750 = vmatmul.msk.bf16.gmra.mxu0 %vm1319_vm0, %v12235_v47  ;;  %v12993_v47 = vld [vmem:[#allocation2 + $0x118] sm:$0xf] }
 0x2fd   : > { %17699 = vst [vmem:[#allocation79_spill] sm:$0xff] %v12993_v47  ;;  %v17499_v61 = vunpack.c.l.bf16 %v12993_v47  ;;  %v11137_v47 = vld [vmem:[#allocation2 + $0x44] sm:$0xf0] }
 0x2fe   : > { %7218 = vrot.lane.b32.xlu1 %v7124_v24, %s11433_s28  ;;  %v11136_v24 = vld [vmem:[#allocation2 + $0x44] sm:$0xf] }
 0x2ff   : > { %v3700_v63 = vpop.f32.mrf.mxu2  ;;  %v7125_v21 = vmul.f32 %v12991_v22, %v17499_v61  ;;  %v10806_v61 = vld [vmem:[#allocation2 + $0x40] sm:$0xf] }
 0x300   : > { %v12989_v46 = vadd.f32 %v3700_v63, %v3611_v60  ;;  %v11135_v60 = vld [vmem:[#allocation2 + $0x34] sm:$0xf0]  ;;  %v10807_v31 = vor.u32 %v11137_v47, %v10806_v61 }
 0x301   : > { %v10799_v50 = vor.u32 %v11135_v60, %v10798_v36  ;;  %v10800_v36 = vld [vmem:[#allocation2 + $0x38] sm:$0xf0] }
 0x302   : > { %v3616_v23 = vpop.f32.mrf.mxu1  ;;  %7220 = vrot.lane.b32.xlu2 %v7125_v21, %s11433_s28 }
 0x304   : > { %10964 = vmatmul.msk.bf16.vlgmr.msrb.gmra.mxu1 %vm1319_vm0, %v10795_v5  ;;  %v11299_v5 = vld [vmem:[%s17363_s11 + $0x1] ss:$0 sm:$0xff] }
 0x307   : > { %v3703_v63 = vpop.f32.mrf.mxu2 }
 0x308   : > { %v13001_v26 = vadd.f32 %v3703_v63, %v3614_v38  ;;  %4334 = vmatmul.bf16.gmra.mxu2 %v10799_v50  ;;  %v11134_v38 = vld [vmem:[#allocation2 + $0x34] sm:$0xf] }
 0x309   : > { %v10803_v60 = vor.u32 %v11134_v38, %v10800_v36  ;;  %v10814_v36 = vld [vmem:[#allocation2 + $0x50] sm:$0xf] }
 0x30a   : > { %v3619_v6 = vpop.f32.mrf.mxu1  ;;  %8950 = vrot.lane.b32.xlu2 %v11299_v5, %s11433_s28 }
 0x30c   : > { %10751 = vmatmul.msk.bf16.gmra.mxu0 %vm1319_vm0, %v12309_v19 }
 0x30f   : > { %v3705_v21 = vpop.f32.mrf.mxu2 }
 0x310   : > { %v13016_v50 = vadd.f32 %v3705_v21, %v3616_v23  ;;  %v10808_v21 = vld [vmem:[#allocation2 + $0x48] sm:$0xf0] }
 0x311   : > { %v10811_v38 = vor.u32 %v11136_v24, %v10808_v21  ;;  %v10822_v24 = vld [vmem:[#allocation2 + $0x60] sm:$0xf]  ;;  %v11141_v21 = vld [vmem:[#allocation2 + $0x64] sm:$0xf0] }
 0x312   : > { %17701 = vst [vmem:[#allocation81_spill] sm:$0xff] %v13016_v50  ;;  %v3621_v63 = vpop.f32.mrf.mxu1 }
 0x314   : > { %10965 = vmatmul.msk.bf16.gmra.mxu1 %vm1319_vm0, %v10803_v60  ;;  %v11139_v60 = vld [vmem:[#allocation2 + $0x54] sm:$0xf0] }
 0x315   : > { %v10815_v61 = vor.u32 %v11139_v60, %v10814_v36  ;;  %v10824_v60 = vld [vmem:[#allocation2 + $0x68] sm:$0xf0] }
 0x317   : > { %v3708_v19 = vpop.f32.mrf.mxu2 }
 0x318   : > { %v13019_v35 = vadd.f32 %v3708_v19, %v3619_v6  ;;  %4339 = vmatmul.bf16.gmra.mxu2 %v10807_v31  ;;  %v10816_v31 = vld [vmem:[#allocation2 + $0x58] sm:$0xf0] }
 0x31a   : > { %17702 = vst [vmem:[#allocation82_spill] sm:$0xff] %v13019_v35  ;;  %v3624_v5 = vpop.f32.mrf.mxu1 }
 0x31c   : > { %10752 = vmatmul.msk.bf16.gmra.mxu0 %vm1319_vm0, %v12370_v14 }
 0x31f   : > { %v3710_v3 = vpop.f32.mrf.mxu2 }
 0x320   : > { %v13023_v23 = vadd.f32 %v3710_v3, %v3621_v63  ;;  %v11138_v63 = vld [vmem:[#allocation2 + $0x54] sm:$0xf] }
 0x321   : > { %v10819_v19 = vor.u32 %v11138_v63, %v10816_v31  ;;  %v11143_v63 = vld [vmem:[#allocation2 + $0x74] sm:$0xf0] }
 0x322   : > { %17703 = vst [vmem:[#allocation83_spill] sm:$0xff] %v13023_v23  ;;  %v3626_v22 = vpop.f32.mrf.mxu1  ;;  %v10823_v23 = vor.u32 %v11141_v21, %v10822_v24 }
 0x324   : > { %10966 = vmatmul.msk.bf16.gmra.mxu1 %vm1319_vm0, %v10811_v38 }
 0x327   : > { %v3713_v13 = vpop.f32.mrf.mxu2 }
 0x328   : > { %v13026_v6 = vadd.f32 %v3713_v13, %v3624_v5  ;;  %4344 = vmatmul.bf16.gmra.mxu2 %v10815_v61 }
 0x32a   : > { %17704 = vst [vmem:[#allocation84_spill] sm:$0xff] %v13026_v6 }
 0x32c   : > { %10753 = vmatmul.msk.bf16.gmra.mxu0 %vm1319_vm0, %v12559_v8  ;;  %v11140_v8 = vld [vmem:[#allocation2 + $0x64] sm:$0xf] }
 0x32f   : > { %v3715_v14 = vpop.f32.mrf.mxu2  ;;  %v3629_v47 = vpop.f32.mrf.mxu1 }
 0x330   : > { %v13030_v3 = vadd.f32 %v3715_v14, %v3626_v22  ;;  %v10827_v22 = vor.u32 %v11140_v8, %v10824_v60  ;;  %v10830_v14 = vld [vmem:[#allocation2 + $0x70] sm:$0xf] }
 0x331   : > { %v10831_v24 = vor.u32 %v11143_v63, %v10830_v14  ;;  %v11145_v63 = vld [vmem:[#allocation2 + $0x84] sm:$0xf0] }
 0x332   : > { %17705 = vst [vmem:[#allocation85_spill] sm:$0xff] %v13030_v3  ;;  %v10854_v3 = vld [vmem:[#allocation2 + $0xa0] sm:$0xf] }
 0x334   : > { %10967 = vmatmul.msk.bf16.gmra.mxu1 %vm1319_vm0, %v10819_v19 }
 0x337   : > { %v3631_v38 = vpop.f32.mrf.mxu1 }
 0x338   : > { %4349 = vmatmul.bf16.gmra.mxu2 %v10823_v23 }
 0x33b   : > { %v3718_v13 = vpop.f32.mrf.mxu2 }
 0x33c   : > { %10754 = vmatmul.msk.bf16.gmra.mxu0 %vm1319_vm0, %v12698_v54  ;;  %v13035_v5 = vadd.f32 %v3718_v13, %v3629_v47  ;;  %v11142_v47 = vld [vmem:[#allocation2 + $0x74] sm:$0xf]  ;;  %v10832_v13 = vld [vmem:[#allocation2 + $0x78] sm:$0xf0] }
 0x33d   : > { %v10835_v8 = vor.u32 %v11142_v47, %v10832_v13  ;;  %v11302_v47 = vld [vmem:[%s17363_s11 + $0x7] ss:$0 sm:$0xff] }
 0x33e   : > { %17706 = vst [vmem:[#allocation86_spill] sm:$0xff] %v13035_v5  ;;  %9686 = vrot.lane.b32.xlu0 %v11302_v47, %s11433_s28 }
 0x33f   : > { %v3634_v36 = vpop.f32.mrf.mxu1 }
 0x343   : > { %v3720_v61 = vpop.f32.mrf.mxu2 }
 0x344   : > { %10968 = vmatmul.msk.bf16.gmra.mxu1 %vm1319_vm0, %v10827_v22  ;;  %v13038_v31 = vadd.f32 %v3720_v61, %v3631_v38  ;;  %v13045_v38 = vpop.f32.mrf.mxu0  ;;  %v10838_v22 = vld [vmem:[#allocation2 + $0x80] sm:$0xf]  ;;  %v13047_v61 = vpop.f32.mrf.mxu3 }
 0x346   : > { %17707 = vst [vmem:[#allocation87_spill] sm:$0xff] %v13038_v31 }
 0x347   : > { %v3636_v19 = vpop.f32.mrf.mxu1 }
 0x348   : > { %4354 = vmatmul.bf16.gmra.mxu2 %v10831_v24  ;;  %v10839_v24 = vor.u32 %v11145_v63, %v10838_v22  ;;  %v10840_v63 = vld [vmem:[#allocation2 + $0x88] sm:$0xf0] }
 0x34b   : > { %v3723_v54 = vpop.f32.mrf.mxu2 }
 0x34c   : > { %10755 = vmatmul.msk.bf16.gmra.mxu0 %vm1319_vm0, %v12768_v12  ;;  %v13042_v23 = vadd.f32 %v3723_v54, %v3634_v36 }
 0x34e   : > { %17708 = vst [vmem:[#allocation88_spill] sm:$0xff] %v13042_v23 }
 0x34f   : > { %v3639_v21 = vpop.f32.mrf.mxu1 }
 0x353   : > { %v3725_v60 = vpop.f32.mrf.mxu2 }
 0x354   : > { %10969 = vmatmul.msk.bf16.gmra.mxu1 %vm1319_vm0, %v10835_v8  ;;  %v13049_v14 = vadd.f32 %v3725_v60, %v3636_v19  ;;  %v13051_v36 = vpop.permute.xlu2 %6424  ;;  %v13060_v8 = vpop.f32.mrf.mxu0  ;;  %v11144_v19 = vld [vmem:[#allocation2 + $0x84] sm:$0xf] }
 0x355   : > { %17710 = vst [vmem:[#allocation90_spill] sm:$0xff] %v13051_v36  ;;  %v13063_v60 = vpop.f32.mrf.mxu3 }
 0x356   : > { %17709 = vst [vmem:[#allocation89_spill] sm:$0xff] %v13049_v14  ;;  %v10846_v14 = vld [vmem:[#allocation2 + $0x90] sm:$0xf] }
 0x357   : > { %v3641_v12 = vpop.f32.mrf.mxu1 }
 0x358   : > { %4359 = vmatmul.bf16.gmra.mxu2 %v10839_v24  ;;  %v10843_v24 = vor.u32 %v11144_v19, %v10840_v63  ;;  %v13078_v19 = vld [vmem:[#allocation2 + $0x8] sm:$0xf] }
 0x359   : > { %17715 = vst [vmem:[#allocation95_spill] sm:$0xff] %v13078_v19 }
 0x35b   : > { %v3728_v54 = vpop.f32.mrf.mxu2 }
 0x35c   : > { %10756 = vmatmul.msk.bf16.gmra.mxu0 %vm1319_vm0, %v12806_v7  ;;  %v13058_v13 = vadd.f32 %v3728_v54, %v3639_v21  ;;  %v13065_v36 = vpop.permute.xlu2 %7220  ;;  %v11147_v21 = vld [vmem:[#allocation2 + $0x94] sm:$0xf0] }
 0x35d   : > { %17712 = vst [vmem:[#allocation92_spill] sm:$0xff] %v13065_v36  ;;  %v10847_v54 = vor.u32 %v11147_v21, %v10846_v14  ;;  %v13072_v5 = vpop.f32.mrf.mxu3 }
 0x35e   : > { %17711 = vst [vmem:[#allocation91_spill] sm:$0xff] %v13058_v13 }
 0x361   : > { %v3644_v22 = vpop.f32.mrf.mxu1 }
 0x363   : > { %v3730_v7 = vpop.f32.mrf.mxu2 }
 0x364   : > { %10970 = vmatmul.msk.bf16.gmra.mxu1 %vm1319_vm0, %v10843_v24  ;;  %v13068_v23 = vadd.f32 %v3730_v7, %v3641_v12  ;;  %v13076_v47 = vpop.permute.xlu2 %8950  ;;  %v17509_v24 = vunpack.c.l.bf16 %v13078_v19  ;;  %v11146_v7 = vld [vmem:[#allocation2 + $0x94] sm:$0xf] }
 0x365   : > { %17714 = vst [vmem:[#allocation94_spill] sm:$0xff] %v13076_v47 }
 0x366   : > { %17713 = vst [vmem:[#allocation93_spill] sm:$0xff] %v13068_v23  ;;  %v8954_v14 = vmul.f32 %v13076_v47, %v17509_v24  ;;  %v13089_v23 = vpop.f32.mrf.mxu3  ;;  %v11304_v24 = vld [vmem:[%s17363_s11 + $0x4] ss:$0 sm:$0xff] }
 0x367   : > { %9348 = vrot.lane.b32.xlu1 %v11304_v24, %s11433_s28 }
 0x368   : > { %4364 = vmatmul.bf16.gmra.mxu2 %v10847_v54  ;;  %v10848_v54 = vld [vmem:[#allocation2 + $0x98] sm:$0xf0]  ;;  %9019 = vrot.lane.b32.xlu0 %v8954_v14, %s11433_s28  ;;  %v11149_v14 = vld [vmem:[#allocation2 + $0xa4] sm:$0xf0] }
 0x369   : > { %v3646_v13 = vpop.f32.mrf.mxu1  ;;  %v13070_v31 = vpop.f32.mrf.mxu0 }
 0x36b   : > { %v3733_v63 = vpop.f32.mrf.mxu2 }
 0x36c   : > { %10757 = vmatmul.msk.bf16.gmra.mxu0 %vm1319_vm0, %v12840_v43  ;;  %v13081_v12 = vadd.f32 %v3733_v63, %v3644_v22  ;;  %v10851_v43 = vor.u32 %v11146_v7, %v10848_v54  ;;  %v11179_v22 = vld [vmem:[%s17358_s6 + $0x18] sm:$0xff]  ;;  %v13095_v63 = vld [vmem:[#allocation2] sm:$0xff]   ;;  %v11178_v54 = vld [vmem:[%s17358_s6 + $0x10] sm:$0xff] }
 0x36d   : > { %17717 = vst [vmem:[#allocation97_spill] sm:$0xff] %v13095_v63  ;;  %v17513_v7 = vunpack.c.l.bf16 %v13095_v63  ;;  %4827 = vmatpush.bf16.msra.mxu3 %v11179_v22  ;;  %v13132_v63 = vld [vmem:[%s17357_s5] ss:$0 sm:$0xff] }
 0x36e   : > { %17716 = vst [vmem:[#allocation96_spill] sm:$0xff] %v13081_v12 }
 0x36f   : > { %v8953_v12 = vmul.f32 %v13076_v47, %v17513_v7  ;;  %v10862_v47 = vld [vmem:[#allocation2 + $0xb0] sm:$0xf] }
 0x371   : > { %v3658_v21 = vpop.f32.mrf.mxu1  ;;  %v13086_v36 = vpop.f32.mrf.mxu0  ;;  %9017 = vrot.lane.b32.xlu2 %v8953_v12, %s11433_s28  ;;  %4828 = vmatpush.bf16.msra.mxu3 %v11178_v54  ;;  %v10856_v54 = vld [vmem:[#allocation2 + $0xa8] sm:$0xf0] }
 0x373   : > { %v3735_v6 = vpop.f32.mrf.mxu2 }
 0x374   : > { %10971 = vmatmul.msk.bf16.gmra.mxu1 %vm1319_vm0, %v10851_v43  ;;  %v13100_v19 = vadd.f32 %v3735_v6, %v3646_v13  ;;  %v10855_v43 = vor.u32 %v11149_v14, %v10854_v3  ;;  %v3659_v6 = vadd.f32 %v3658_v21, %v12630_v1  ;;  %v13114_v13 = vpop.f32.mrf.mxu3  ;;  %v11177_v3 = vld [vmem:[%s17358_s6 + $0x8] sm:$0xff]  ;;  %v11148_v14 = vld [vmem:[#allocation2 + $0xa4] sm:$0xf] }
 0x375   : > { %4829 = vmatpush.bf16.msra.mxu3 %v11177_v3  ;;  %v11176_v1 = vld [vmem:[%s17358_s6] sm:$0xff] }
 0x376   : > { %17718 = vst [vmem:[#allocation98_spill] sm:$0xff] %v13100_v19  ;;  %v3832_v22 = vadd.f32 %v12604_v0, %v3659_v6  ;;  %v10859_v0 = vor.u32 %v11148_v14, %v10856_v54 }
 0x378   : > { %4369 = vmatmul.bf16.gmra.mxu2 %v10855_v43 }
 0x379   : > { %v3660_v35 = vpop.f32.mrf.mxu1  ;;  %v13110_v28 = vpop.f32.mrf.mxu0  ;;  %4830 = vmatpush.bf16.msra.mxu3 %v11176_v1 }
 0x37a   : > { %v3661_v43 = vadd.f32 %v3660_v35, %v12663_v48  ;;  %v11151_v35 = vld [vmem:[#allocation2 + $0xb4] sm:$0xf0] }
 0x37b   : > { %v4330_v24 = vpop.f32.mrf.mxu2 }
 0x37c   : > { %10758 = vmatmul.msk.bf16.gmra.mxu0 %vm1319_vm0, %v12855_v44  ;;  %v3921_v44 = vadd.f32 %v13045_v38, %v3832_v22  ;;  %v13135_v19 = vpop.f32.mrf.mxu3  ;;  %v3834_v27 = vadd.f32 %v12647_v45, %v3661_v43 }
 0x381   : > { %v13125_v12 = vpop.f32.mrf.mxu0  ;;  %v4419_v21 = vpop.f32.mrf.mxu1 }
 0x382   : > { %v4420_v7 = vadd.f32 %v4419_v21, %v4330_v24  ;;  %v10863_v24 = vor.u32 %v11151_v35, %v10862_v47  ;;  %v11150_v47 = vld [vmem:[#allocation2 + $0xb4] sm:$0xf] }
 0x383   : > { %v4332_v3 = vpop.f32.mrf.mxu2 }
 0x384   : > { %v4499_v6 = vadd.f32 %v4420_v7, %v3921_v44  ;;  %10972 = vmatmul.msk.bf16.gmra.mxu1 %vm1319_vm0, %v10859_v0  ;;  %v3923_v7 = vadd.f32 %v13060_v8, %v3834_v27  ;;  %v13150_v44 = vpop.f32.mrf.mxu3  ;;  %v10864_v8 = vld [vmem:[#allocation2 + $0xb8] sm:$0xf0] }
 0x385   : > { %v10867_v35 = vor.u32 %v11150_v47, %v10864_v8 }
 0x386   : > { %v4535_v48 = vadd.f32 %v13132_v63, %v4499_v6 }
 0x388   : > { %v4567_v38 = vmax.f32 %v4535_v48, 0.0  ;;  %4374 = vmatmul.bf16.gmra.mxu2 %v10863_v24 }
 0x389   : > { %v13139_v22 = vpop.f32.mrf.mxu0  ;;  %v4421_v21 = vpop.f32.mrf.mxu1 }
 0x38a   : > { %v13141_v50 = vmin.f32 %v4567_v38, 6.0  ;;  %v4422_v14 = vadd.f32 %v4421_v21, %v4332_v3  ;;  %v3926_v3 = vadd.f32 %v13070_v31, %v12744_v51  ;;  %v3666_v38 = vadd.f32 %v12749_v2, %v12728_v41  ;;  %v11153_v31 = vld [vmem:[#allocation2 + $0xc4] sm:$0xf0] }
 0x38b   : > { %v4335_v54 = vpop.f32.mrf.mxu2 }
 0x38c   : > { %17719 = vst [vmem:[#allocation99_spill] sm:$0xff] %v13141_v50  ;;  %v4500_v1 = vadd.f32 %v4422_v14, %v3923_v7  ;;  %10759 = vmatmul.msk.bf16.gmra.mxu0 %vm1319_vm0, %v12871_v42  ;;  %v4631_v45 = vpack.c.bf16 %v13141_v50, %v13141_v50  ;;  %v10870_v14 = vld [vmem:[#allocation2 + $0xc0] sm:$0xf]  ;;  %v13168_v8 = vpop.f32.mrf.mxu3 }
 0x38d   : > { %v10871_v41 = vor.u32 %v11153_v31, %v10870_v14 }
 0x38e   : > { %v4536_v43 = vadd.f32 %v13132_v63, %v4500_v1  ;;  %5054 = vrot.lane.b32.xlu0 %v4631_v45, %s11433_s28  ;;  %v4703_v1 = vunpack.c.l.b16 %v4631_v45 }
 0x390   : > { %v4568_v0 = vmax.f32 %v4536_v43, 0.0 }
 0x391   : > { %v13152_v6 = vpop.f32.mrf.mxu0  ;;  %v4424_v27 = vpop.f32.mrf.mxu1 }
 0x392   : > { %v13156_v42 = vmin.f32 %v4568_v0, 6.0  ;;  %v4425_v48 = vadd.f32 %v4424_v27, %v4335_v54  ;;  %v3839_v54 = vadd.f32 %v12737_v37, %v3666_v38 }
 0x393   : > { %v4337_v7 = vpop.f32.mrf.mxu2 }
 0x394   : > { %17720 = vst [vmem:[#allocation100_spill] sm:$0xff] %v13156_v42  ;;  %v4501_v24 = vadd.f32 %v4425_v48, %v3926_v3  ;;  %10973 = vmatmul.msk.bf16.gmra.mxu1 %vm1319_vm0, %v10867_v35  ;;  %v4632_v21 = vpack.c.bf16 %v13156_v42, %v13156_v42  ;;  %v3928_v3 = vadd.f32 %v13086_v36, %v3839_v54 }
 0x395   : > { %v3671_v54 = vadd.f32 %v12802_v62, %v12795_v20 }
 0x396   : > { %v4537_v43 = vadd.f32 %v13132_v63, %v4501_v24  ;;  %5056 = vrot.lane.b32.xlu1 %v4632_v21, %s11433_s28  ;;  %v4704_v51 = vunpack.c.l.b16 %v4632_v21  ;;  %v11152_v21 = vld [vmem:[#allocation2 + $0xc4] sm:$0xf] }
 0x398   : > { %v4569_v47 = vmax.f32 %v4537_v43, 0.0  ;;  %v4735_v0 = vpack.c.b16 %v4704_v51, %v4703_v1  ;;  %4379 = vmatmul.bf16.gmra.mxu2 %v10871_v41  ;;  %v10872_v1 = vld [vmem:[#allocation2 + $0xc8] sm:$0xf0]  ;;  %v3931_v43 = vadd.f32 %v13110_v28, %v12793_v57 }
 0x399   : > { %v13166_v2 = vpop.f32.mrf.mxu0  ;;  %v4426_v27 = vpop.f32.mrf.mxu1  ;;  %v10875_v31 = vor.u32 %v11152_v21, %v10872_v1 }
 0x39a   : > { %v13171_v48 = vmin.f32 %v4569_v47, 6.0  ;;  %v4427_v45 = vadd.f32 %v4426_v27, %v4337_v7  ;;  %10996 = vmatmul.msk.bf16.vlgmr.msra.gmra.mxu3 %vm1319_vm0, %v4735_v0  ;;  %v13188_v47 = vpop.f32.mrf.mxu3 }
 0x39b   : > { %v4340_v38 = vpop.f32.mrf.mxu2 }
 0x39c   : > { %17721 = vst [vmem:[#allocation101_spill] sm:$0xff] %v13171_v48  ;;  %v4502_v35 = vadd.f32 %v4427_v45, %v3928_v3  ;;  %10760 = vmatmul.msk.bf16.gmra.mxu0 %vm1319_vm0, %v12885_v58  ;;  %v4633_v37 = vpack.c.bf16 %v13171_v48, %v13171_v48  ;;  %v11155_v3 = vld [vmem:[#allocation2 + $0xd4] sm:$0xf0] }
 0x39e   : > { %v4538_v24 = vadd.f32 %v13132_v63, %v4502_v35  ;;  %5058 = vrot.lane.b32.xlu2 %v4633_v37, %s11433_s28  ;;  %v4705_v45 = vunpack.c.l.b16 %v4633_v37  ;;  %v10878_v35 = vld [vmem:[#allocation2 + $0xd0] sm:$0xf] }
 0x39f   : > { %v10879_v62 = vor.u32 %v11155_v3, %v10878_v35  ;;  %v11154_v3 = vld [vmem:[#allocation2 + $0xd4] sm:$0xf]  ;;  %v3676_v35 = vadd.f32 %v12878_v30, %v12875_v52  ;;  %v11157_v52 = vld [vmem:[#allocation2 + $0xe4] sm:$0xf0] }
 0x3a0   : > { %v4570_v36 = vmax.f32 %v4538_v24, 0.0 }
 0x3a1   : > { %v13180_v14 = vpop.f32.mrf.mxu0  ;;  %v4429_v7 = vpop.f32.mrf.mxu1 }
 0x3a2   : > { %v13184_v51 = vmin.f32 %v4570_v36, 6.0  ;;  %v4430_v58 = vadd.f32 %v4429_v7, %v4340_v38  ;;  %v3844_v38 = vadd.f32 %v12800_v49, %v3671_v54 }
 0x3a3   : > { %v4342_v27 = vpop.f32.mrf.mxu2 }
 0x3a4   : > { %17722 = vst [vmem:[#allocation102_spill] sm:$0xff] %v13184_v51  ;;  %v4503_v0 = vadd.f32 %v4430_v58, %v3931_v43  ;;  %10974 = vmatmul.msk.bf16.gmra.mxu1 %vm1319_vm0, %v10875_v31  ;;  %v4634_v41 = vpack.c.bf16 %v13184_v51, %v13184_v51  ;;  %v3933_v7 = vadd.f32 %v13125_v12, %v3844_v38  ;;  %v13206_v31 = vpop.f32.mrf.mxu3  ;;  %v10880_v12 = vld [vmem:[#allocation2 + $0xd8] sm:$0xf0] }
 0x3a6   : > { %v4539_v28 = vadd.f32 %v13132_v63, %v4503_v0  ;;  %v4706_v57 = vunpack.c.l.b16 %v4634_v41  ;;  %5060 = vrot.lane.b32.xlu0 %v4634_v41, %s11433_s28 }
 0x3a8   : > { %v4571_v20 = vmax.f32 %v4539_v28, 0.0  ;;  %v4736_v24 = vpack.c.b16 %v4706_v57, %v4705_v45  ;;  %4384 = vmatmul.bf16.gmra.mxu2 %v10879_v62  ;;  %v3936_v45 = vadd.f32 %v13139_v22, %v12824_v25  ;;  %v10883_v57 = vor.u32 %v11154_v3, %v10880_v12 }
 0x3a9   : > { %v13196_v21 = vpop.f32.mrf.mxu0  ;;  %v4431_v36 = vpop.f32.mrf.mxu1 }
 0x3aa   : > { %v13199_v1 = vmin.f32 %v4571_v20, 6.0  ;;  %v4432_v43 = vadd.f32 %v4431_v36, %v4342_v27  ;;  %10997 = vmatmul.msk.bf16.gmra.mxu3 %vm1319_vm0, %v4736_v24  ;;  %v10886_v24 = vld [vmem:[#allocation2 + $0xe0] sm:$0xf]  ;;  %v4996_v36 = vld [vmem:[%s17361_s9 + $0x38] sm:$0xff] }
 0x3ab   : > { %v4345_v58 = vpop.f32.mrf.mxu2  ;;  %5008 = vmatpush.msra.mxu1 %v4996_v36 }
 0x3ac   : > { %17723 = vst [vmem:[#allocation103_spill] sm:$0xff] %v13199_v1  ;;  %v4504_v37 = vadd.f32 %v4432_v43, %v3933_v7  ;;  %10761 = vmatmul.msk.bf16.gmra.mxu0 %vm1319_vm0, %v12907_v53  ;;  %v4635_v49 = vpack.c.bf16 %v13199_v1, %v13199_v1  ;;  %v13226_v30 = vpop.f32.mrf.mxu3  ;;  %v3849_v43 = vadd.f32 %v12935_v39, %v3676_v35  ;;  %v10888_v35 = vld [vmem:[#allocation2 + $0xe8] sm:$0xf0] }
 0x3ae   : > { %v4540_v54 = vadd.f32 %v13132_v63, %v4504_v37  ;;  %5062 = vrot.lane.b32.xlu1 %v4635_v49, %s11433_s28  ;;  %v4707_v25 = vunpack.c.l.b16 %v4635_v49 }
 0x3b0   : > { %v4572_v0 = vmax.f32 %v4540_v54, 0.0 }
 0x3b1   : > { %v13210_v41 = vpop.f32.mrf.mxu0  ;;  %v4434_v27 = vpop.f32.mrf.mxu1 }
 0x3b2   : > { %v13214_v53 = vmin.f32 %v4572_v0, 6.0  ;;  %v4435_v28 = vadd.f32 %v4434_v27, %v4345_v58  ;;  %v10887_v58 = vor.u32 %v11157_v52, %v10886_v24  ;;  %v3938_v27 = vadd.f32 %v13152_v6, %v3849_v43 }
 0x3b3   : > { %v4347_v62 = vpop.f32.mrf.mxu2  ;;  %v3852_v6 = vadd.f32 %v13047_v61, %v12892_v29  ;;  %v3681_v52 = vadd.f32 %v12917_v34, %v12900_v11 }
 0x3b4   : > { %17724 = vst [vmem:[#allocation104_spill] sm:$0xff] %v13214_v53  ;;  %v4505_v38 = vadd.f32 %v4435_v28, %v3936_v45  ;;  %10975 = vmatmul.msk.bf16.gmra.mxu1 %vm1319_vm0, %v10883_v57  ;;  %v4636_v20 = vpack.c.bf16 %v13214_v53, %v13214_v53  ;;  %v13243_v24 = vpop.f32.mrf.mxu3 }
 0x3b5   : > { %v3941_v36 = vadd.f32 %v13166_v2, %v3852_v6 }
 0x3b6   : > { %v4541_v22 = vadd.f32 %v13132_v63, %v4505_v38  ;;  %v4708_v7 = vunpack.c.l.b16 %v4636_v20  ;;  %5064 = vrot.lane.b32.xlu2 %v4636_v20, %s11433_s28 }
 0x3b8   : > { %v4573_v37 = vmax.f32 %v4541_v22, 0.0  ;;  %v4737_v54 = vpack.c.b16 %v4708_v7, %v4707_v25  ;;  %4389 = vmatmul.bf16.gmra.mxu2 %v10887_v58 }
 0x3b9   : > { %v13229_v12 = vpop.f32.mrf.mxu0  ;;  %v4436_v0 = vpop.f32.mrf.mxu1 }
 0x3ba   : > { %v13232_v49 = vmin.f32 %v4573_v37, 6.0  ;;  %v4437_v3 = vadd.f32 %v4436_v0, %v4347_v62  ;;  %10998 = vmatmul.msk.bf16.gmra.mxu3 %vm1319_vm0, %v4737_v54  ;;  %v11156_v62 = vld [vmem:[#allocation2 + $0xe4] sm:$0xf]  ;;  %v11159_v37 = vld [vmem:[#allocation2 + $0xf4] sm:$0xf0] }
 0x3bb   : > { %v4350_v28 = vpop.f32.mrf.mxu2  ;;  %v10891_v22 = vor.u32 %v11156_v62, %v10888_v35  ;;  %v10894_v0 = vld [vmem:[#allocation2 + $0xf0] sm:$0xf]  ;;  %v11158_v62 = vld [vmem:[#allocation2 + $0xf4] sm:$0xf] }
 0x3bc   : > { %17725 = vst [vmem:[#allocation105_spill] sm:$0xff] %v13232_v49  ;;  %v4506_v45 = vadd.f32 %v4437_v3, %v3938_v27  ;;  %10762 = vmatmul.msk.bf16.gmra.mxu0 %vm1319_vm0, %v12925_v17  ;;  %v4637_v39 = vpack.c.bf16 %v13232_v49, %v13232_v49  ;;  %v3854_v27 = vadd.f32 %v13063_v60, %v3681_v52  ;;  %v10896_v52 = vld [vmem:[#allocation2 + $0xf8] sm:$0xf0] }
 0x3be   : > { %v4542_v57 = vadd.f32 %v13132_v63, %v4506_v45  ;;  %5066 = vrot.lane.b32.xlu0 %v4637_v39, %s11433_s28  ;;  %v4709_v58 = vunpack.c.l.b16 %v4637_v39  ;;  %v10895_v45 = vor.u32 %v11159_v37, %v10894_v0  ;;  %v13262_v39 = vpop.f32.mrf.mxu3 }
 0x3c0   : > { %v4574_v38 = vmax.f32 %v4542_v57, 0.0 }
 0x3c1   : > { %v4439_v20 = vpop.f32.mrf.mxu1  ;;  %v13248_v7 = vpop.f32.mrf.mxu0 }
 0x3c2   : > { %v13246_v17 = vmin.f32 %v4574_v38, 6.0  ;;  %v4440_v25 = vadd.f32 %v4439_v20, %v4350_v28  ;;  %v3943_v28 = vadd.f32 %v13180_v14, %v3854_v27 }
 0x3c3   : > { %v4352_v61 = vpop.f32.mrf.mxu2 }
 0x3c4   : > { %17726 = vst [vmem:[#allocation106_spill] sm:$0xff] %v13246_v17  ;;  %v4507_v43 = vadd.f32 %v4440_v25, %v3941_v36  ;;  %10976 = vmatmul.msk.bf16.gmra.mxu1 %vm1319_vm0, %v10891_v22  ;;  %v4638_v29 = vpack.c.bf16 %v13246_v17, %v13246_v17  ;;  %v3857_v36 = vadd.f32 %v13072_v5, %v12927_v33  ;;  %v4995_v33 = vld [vmem:[%s17361_s9 + $0x30] sm:$0xff] }
 0x3c5   : > { %5009 = vmatpush.msra.mxu1 %v4995_v33  ;;  %v10910_v33 = vld [vmem:[#allocation2 + $0x110] sm:$0xf] }
 0x3c6   : > { %v4543_v2 = vadd.f32 %v13132_v63, %v4507_v43  ;;  %v4710_v54 = vunpack.c.l.b16 %v4638_v29  ;;  %5068 = vrot.lane.b32.xlu1 %v4638_v29, %s11433_s28  ;;  %v3946_v43 = vadd.f32 %v13196_v21, %v3857_v36  ;;  %v13283_v5 = vpop.f32.mrf.mxu3 }
 0x3c8   : > { %v4575_v3 = vmax.f32 %v4543_v2, 0.0  ;;  %v4738_v11 = vpack.c.b16 %v4710_v54, %v4709_v58  ;;  %4394 = vmatmul.bf16.gmra.mxu2 %v10895_v45  ;;  %v11161_v54 = vld [vmem:[#allocation2 + $0x104] sm:$0xf0]  ;;  %v10902_v45 = vld [vmem:[#allocation2 + $0x100] sm:$0xf] }
 0x3c9   : > { %v4441_v34 = vpop.f32.mrf.mxu1  ;;  %v13268_v38 = vpop.f32.mrf.mxu0 }
 0x3ca   : > { %v13259_v57 = vmin.f32 %v4575_v3, 6.0  ;;  %v4442_v35 = vadd.f32 %v4441_v34, %v4352_v61  ;;  %10999 = vmatmul.msk.bf16.gmra.mxu3 %vm1319_vm0, %v4738_v11  ;;  %v10899_v61 = vor.u32 %v11158_v62, %v10896_v52  ;;  %v3859_v11 = vadd.f32 %v13089_v23, %v12932_v10  ;;  %v10904_v10 = vld [vmem:[#allocation2 + $0x108] sm:$0xf0] }
 0x3cb   : > { %v4355_v20 = vpop.f32.mrf.mxu2 }
 0x3cc   : > { %17727 = vst [vmem:[#allocation107_spill] sm:$0xff] %v13259_v57  ;;  %v4508_v6 = vadd.f32 %v4442_v35, %v3943_v28  ;;  %10763 = vmatmul.msk.bf16.gmra.mxu0 %vm1319_vm0, %v12940_v40  ;;  %v4639_v60 = vpack.c.bf16 %v13259_v57, %v13259_v57  ;;  %v10903_v28 = vor.u32 %v11161_v54, %v10902_v45 }
 0x3ce   : > { %v4544_v14 = vadd.f32 %v13132_v63, %v4508_v6  ;;  %5070 = vrot.lane.b32.xlu2 %v4639_v60, %s11433_s28  ;;  %v4711_v0 = vunpack.c.l.b16 %v4639_v60  ;;  %v13299_v23 = vpop.f32.mrf.mxu3 }
 0x3d0   : > { %v4576_v25 = vmax.f32 %v4544_v14, 0.0 }
 0x3d1   : > { %v4444_v22 = vpop.f32.mrf.mxu1  ;;  %v13287_v3 = vpop.f32.mrf.mxu0 }
 0x3d2   : > { %v13275_v40 = vmin.f32 %v4576_v25, 6.0  ;;  %v4445_v29 = vadd.f32 %v4444_v22, %v4355_v20  ;;  %v3948_v20 = vadd.f32 %v13210_v41, %v3859_v11  ;;  %v3862_v41 = vadd.f32 %v13114_v13, %v12942_v55 }
 0x3d3   : > { %v4357_v2 = vpop.f32.mrf.mxu2 }
 0x3d4   : > { %17728 = vst [vmem:[#allocation108_spill] sm:$0xff] %v13275_v40  ;;  %v4509_v37 = vadd.f32 %v4445_v29, %v3946_v43  ;;  %10977 = vmatmul.msk.bf16.gmra.mxu1 %vm1319_vm0, %v10899_v61  ;;  %v4640_v58 = vpack.c.bf16 %v13275_v40, %v13275_v40  ;;  %v11160_v61 = vld [vmem:[#allocation2 + $0x104] sm:$0xf] }
 0x3d5   : > { %v10907_v54 = vor.u32 %v11160_v61, %v10904_v10  ;;  %v3867_v61 = vadd.f32 %v13150_v44, %v12960_v18  ;;  %v4994_v44 = vld [vmem:[%s17361_s9 + $0x28] sm:$0xff] }
 0x3d6   : > { %v4545_v21 = vadd.f32 %v13132_v63, %v4509_v37  ;;  %v4712_v27 = vunpack.c.l.b16 %v4640_v58  ;;  %5072 = vrot.lane.b32.xlu0 %v4640_v58, %s11433_s28  ;;  %v3951_v37 = vadd.f32 %v13229_v12, %v3862_v41  ;;  %v11162_v41 = vld [vmem:[#allocation2 + $0x114] sm:$0xf]  ;;  %5010 = vmatpush.msra.mxu1 %v4994_v44 }
 0x3d8   : > { %v4577_v34 = vmax.f32 %v4545_v21, 0.0  ;;  %v4739_v35 = vpack.c.b16 %v4712_v27, %v4711_v0  ;;  %4399 = vmatmul.bf16.gmra.mxu2 %v10903_v28  ;;  %v11163_v0 = vld [vmem:[#allocation2 + $0x114] sm:$0xf0] }
 0x3d9   : > { %v4446_v6 = vpop.f32.mrf.mxu1  ;;  %v13303_v43 = vpop.f32.mrf.mxu0  ;;  %v10911_v12 = vor.u32 %v11163_v0, %v10910_v33  ;;  %v3956_v0 = vadd.f32 %v13268_v38, %v3867_v61 }
 0x3da   : > { %v13292_v14 = vmin.f32 %v4577_v34, 6.0  ;;  %v4447_v60 = vadd.f32 %v4446_v6, %v4357_v2  ;;  %11000 = vmatmul.msk.bf16.gmra.mxu3 %vm1319_vm0, %v4739_v35  ;;  %v3864_v34 = vadd.f32 %v13135_v19, %v12954_v9  ;;  %v13325_v9 = vpop.permute.xlu0 %9686 }
 0x3db   : > { %v4360_v25 = vpop.f32.mrf.mxu2  ;;  %17732 = vst [vmem:[#allocation112_spill] sm:$0xff] %v13325_v9 }
 0x3dc   : > { %17729 = vst [vmem:[#allocation109_spill] sm:$0xff] %v13292_v14  ;;  %v4510_v62 = vadd.f32 %v4447_v60, %v3948_v20  ;;  %v4641_v36 = vpack.c.bf16 %v13292_v14, %v13292_v14  ;;  %v13315_v20 = vpop.f32.mrf.mxu3  ;;  %v3953_v60 = vadd.f32 %v13248_v7, %v3864_v34 }
 0x3de   : > { %v4546_v22 = vadd.f32 %v13132_v63, %v4510_v62  ;;  %5074 = vrot.lane.b32.xlu1 %v4641_v36, %s11433_s28  ;;  %v4713_v13 = vunpack.c.l.b16 %v4641_v36 }
 0x3e0   : > { %v4578_v52 = vmax.f32 %v4546_v22, 0.0 }
 0x3e1   : > { %v4449_v29 = vpop.f32.mrf.mxu1  ;;  %v13321_v36 = vpop.f32.mrf.mxu0 }
 0x3e2   : > { %v13306_v58 = vmin.f32 %v4578_v52, 6.0  ;;  %v4450_v2 = vadd.f32 %v4449_v29, %v4360_v25  ;;  %v10912_v52 = vld [vmem:[#allocation2 + $0x118] sm:$0xf0]  ;;  %v13327_v29 = vpop.permute.xlu1 %6422 }
 0x3e3   : > { %v4362_v55 = vpop.f32.mrf.mxu2 }
 0x3e4   : > { %17730 = vst [vmem:[#allocation110_spill] sm:$0xff] %v13306_v58  ;;  %v4511_v21 = vadd.f32 %v4450_v2, %v3951_v37  ;;  %10978 = vmatmul.msk.bf16.gmra.mxu1 %vm1319_vm0, %v10907_v54  ;;  %v4642_v27 = vpack.c.bf16 %v13306_v58, %v13306_v58  ;;  %v13333_v37 = vpop.permute.xlu2 %9017  ;;  %v10915_v54 = vor.u32 %v11162_v41, %v10912_v52 }
 0x3e5   : > { %17733 = vst [vmem:[#allocation113_spill] sm:$0xff] %v13333_v37 }
 0x3e6   : > { %v4547_v45 = vadd.f32 %v13132_v63, %v4511_v21  ;;  %v4714_v11 = vunpack.c.l.b16 %v4642_v27  ;;  %5076 = vrot.lane.b32.xlu2 %v4642_v27, %s11433_s28 }
 0x3e8   : > { %v4579_v28 = vmax.f32 %v4547_v45, 0.0  ;;  %v4740_v35 = vpack.c.b16 %v4714_v11, %v4713_v13  ;;  %4404 = vmatmul.bf16.gmra.mxu2 %v10911_v12 }
 0x3e9   : > { %v4451_v6 = vpop.f32.mrf.mxu1  ;;  %v13343_v11 = vpop.f32.mrf.mxu0 }
 0x3ea   : > { %v13318_v62 = vmin.f32 %v4579_v28, 6.0  ;;  %v4452_v25 = vadd.f32 %v4451_v6, %v4362_v55  ;;  %11001 = vmatmul.msk.bf16.gmra.mxu3 %vm1319_vm0, %v4740_v35  ;;  %v13338_v55 = vpop.f32.mrf.mxu3  ;;  %v13348_v12 = vpop.permute.xlu1 %7218  ;;  %v3869_v6 = vadd.f32 %v13168_v8, %v12964_v16 }
 0x3eb   : > { %v4365_v19 = vpop.f32.mrf.mxu2  ;;  %17735 = vst [vmem:[#allocation115_spill] sm:$0xff] %v13348_v12  ;;  %v13352_v35 = vpop.permute.xlu0 %9019 }
 0x3ec   : > { %17731 = vst [vmem:[#allocation111_spill] sm:$0xff] %v13318_v62  ;;  %v4512_v22 = vadd.f32 %v4452_v25, %v3953_v60  ;;  %v4643_v10 = vpack.c.bf16 %v13318_v62, %v13318_v62  ;;  %v3958_v41 = vadd.f32 %v13287_v3, %v3869_v6  ;;  %v3872_v3 = vadd.f32 %v13188_v47, %v12969_v4  ;;  %v5182_v6 = vld [vmem:[#allocation2 + $0x8] sm:$0x8] }
 0x3ed   : > { %17736 = vst [vmem:[#allocation116_spill] sm:$0xff] %v13352_v35 }
 0x3ee   : > { %v4548_v7 = vadd.f32 %v13132_v63, %v4512_v22  ;;  %5078 = vrot.lane.b32.xlu0 %v4643_v10, %s11433_s28  ;;  %v4715_v38 = vunpack.c.l.b16 %v4643_v10 }
 0x3f0   : > { %v4580_v2 = vmax.f32 %v4548_v7, 0.0 }
 0x3f1   : > { %v4454_v33 = vpop.f32.mrf.mxu1 }
 0x3f2   : > { %v13336_v21 = vmin.f32 %v4580_v2, 6.0  ;;  %v4455_v27 = vadd.f32 %v4454_v33, %v4365_v19  ;;  %v13365_v8 = vpop.permute.xlu1 %9348  ;;  %v13369_v33 = vpop.f32.mrf.mxu3 }
 0x3f3   : > { %v4367_v18 = vpop.f32.mrf.mxu2  ;;  %17738 = vst [vmem:[#allocation118_spill] sm:$0xff] %v13365_v8 }
 0x3f4   : > { %17734 = vst [vmem:[#allocation114_spill] sm:$0xff] %v13336_v21  ;;  %v4513_v13 = vadd.f32 %v4455_v27, %v3956_v0  ;;  %10979 = vmatmul.msk.bf16.gmra.mxu1 %vm1319_vm0, %v10915_v54  ;;  %v4644_v45 = vpack.c.bf16 %v13336_v21, %v13336_v21  ;;  %v13367_v54 = vpop.f32.mrf.mxu0 }
 0x3f6   : > { %v4549_v34 = vadd.f32 %v13132_v63, %v4513_v13  ;;  %v4716_v28 = vunpack.c.l.b16 %v4644_v45  ;;  %5080 = vrot.lane.b32.xlu1 %v4644_v45, %s11433_s28  ;;  %v3961_v45 = vadd.f32 %v13303_v43, %v3872_v3  ;;  %v3874_v43 = vadd.f32 %v13206_v31, %v12989_v46 }
 0x3f8   : > { %v4581_v60 = vmax.f32 %v4549_v34, 0.0  ;;  %v5059_v25 = vpop.permute.xlu2 %5058  ;;  %v4741_v22 = vpack.c.b16 %v4716_v28, %v4715_v38  ;;  %v3963_v3 = vadd.f32 %v13321_v36, %v3874_v43 }
 0x3f9   : > { %5152 = vst.msk [vmem:[#allocation2 + $0x20] sm:$0xf] %vm1779_vm9, %v5059_v25  ;;  %v4456_v19 = vpop.f32.mrf.mxu1 }
 0x3fa   : > { %v13358_v10 = vmin.f32 %v4581_v60, 6.0  ;;  %v4457_v52 = vadd.f32 %v4456_v19, %v4367_v18  ;;  %11002 = vmatmul.msk.bf16.gmra.mxu3 %vm1319_vm0, %v4741_v22  ;;  %v13381_v47 = vpop.f32.mrf.mxu3 }
 0x3fb   : > { %v4370_v2 = vpop.f32.mrf.mxu2 }
 0x3fc   : > { %17737 = vst [vmem:[#allocation117_spill] sm:$0xff] %v13358_v10  ;;  %v4514_v7 = vadd.f32 %v4457_v52, %v3958_v41  ;;  %v4645_v61 = vpack.c.bf16 %v13358_v10, %v13358_v10 }
 0x3fe   : > { %v4550_v16 = vadd.f32 %v13132_v63, %v4514_v7  ;;  %5082 = vrot.lane.b32.xlu2 %v4645_v61, %s11433_s28  ;;  %v4717_v60 = vunpack.c.l.b16 %v4645_v61  ;;  %v5216_v7 = vunpack.c.l.bf16 %v5182_v6 }
 0x400   : > { %v4582_v0 = vmax.f32 %v4550_v16, 0.0  ;;  %v5055_v27 = vpop.permute.xlu0 %5054 }
 0x401   : > { %5150 = vst.msk [vmem:[#allocation2 + $0x10] sm:$0xf] %vm1779_vm9, %v5055_v27  ;;  %v4459_v13 = vpop.f32.mrf.mxu1 }
 0x402   : > { %v13375_v18 = vmin.f32 %v4582_v0, 6.0  ;;  %v4460_v44 = vadd.f32 %v4459_v13, %v4370_v2  ;;  %v13385_v2 = vpop.f32.mrf.mxu0  ;;  %v13408_v37 = vpop.f32.mrf.mxu3 }
 0x403   : > { %v4372_v28 = vpop.f32.mrf.mxu2 }
 0x404   : > { %17739 = vst [vmem:[#allocation119_spill] sm:$0xff] %v13375_v18  ;;  %v4515_v38 = vadd.f32 %v4460_v44, %v3961_v45  ;;  %v4646_v34 = vpack.c.bf16 %v13375_v18, %v13375_v18  ;;  %v5249_v44 = vmul.f32 %v5216_v7, %v11721_v15  ;;  %v17754_v15 = vld [vmem:[#allocation16_spill] sm:$0xff] }
 0x406   : > { %v4551_v25 = vadd.f32 %v13132_v63, %v4515_v38  ;;  %v4718_v4 = vunpack.c.l.b16 %v4646_v34  ;;  %5084 = vrot.lane.b32.xlu0 %v4646_v34, %s11433_s28  ;;  %v4913_v38 = vsel %vm1319_vm0, %v13156_v42, 0.0 }
 0x408   : > { %v4583_v22 = vmax.f32 %v4551_v25, 0.0  ;;  %v5057_v19 = vpop.permute.xlu1 %5056  ;;  %v4742_v41 = vpack.c.b16 %v4718_v4, %v4717_v60  ;;  %v5183_v52 = vld [vmem:[#allocation2 + $0x10] sm:$0xf]  ;;  %v4912_v60 = vsel %vm1319_vm0, %v13141_v50, 0.0  ;;  %v3877_v25 = vadd.f32 %v13226_v30, %v13001_v26 }
 0x409   : > { %5151 = vst.msk [vmem:[#allocation2 + $0x18] sm:$0xf] %vm1779_vm9, %v5057_v19  ;;  %v4461_v61 = vpop.f32.mrf.mxu1  ;;  %v5217_v16 = vunpack.c.l.bf16 %v5183_v52  ;;  %v4915_v19 = vsel %vm1319_vm0, %v13171_v48, 0.0  ;;  %v4917_v26 = vsel %vm1319_vm0, %v13184_v51, 0.0 }
 0x40a   : > { %v13389_v0 = vmin.f32 %v4583_v22, 6.0  ;;  %v4462_v27 = vadd.f32 %v4461_v61, %v4372_v28  ;;  %11003 = vmatmul.msk.bf16.gmra.mxu3 %vm1319_vm0, %v4742_v41  ;;  %v4914_v22 = vadd.f32 %v4913_v38, %v4912_v60  ;;  %v5282_v61 = vpack.c.bf16 %v5249_v44, %v5249_v44  ;;  %v13415_v44 = vpop.f32.mrf.mxu0 }
 0x40b   : > { %v5736_v46 = vmul.f32 %v5217_v16, %v11751_v56  ;;  %v5250_v31 = vmul.f32 %v5217_v16, %v11731_v32  ;;  %v4375_v34 = vpop.f32.mrf.mxu2  ;;  %v5185_v16 = vld [vmem:[#allocation2 + $0x20] sm:$0xf]  ;;  %v3966_v30 = vadd.f32 %v13343_v11, %v3877_v25 }
 0x40c   : > { %17740 = vst [vmem:[#allocation120_spill] sm:$0xff] %v13389_v0  ;;  %v4516_v13 = vadd.f32 %v4462_v27, %v3963_v3  ;;  %v4647_v45 = vpack.c.bf16 %v13389_v0, %v13389_v0  ;;  %v5316_v56 = vshrl.u32 %v5282_v61, 16 }
 0x40d   : > { %v5769_v36 = vpack.c.bf16 %v5736_v46, %v5736_v46  ;;  %v5283_v6 = vpack.c.bf16 %v5250_v31, %v5250_v31 }
 0x40e   : > { %v4552_v28 = vadd.f32 %v13132_v63, %v4516_v13  ;;  %5086 = vrot.lane.b32.xlu1 %v4647_v45, %s11433_s28 }
 0x40f   : > { %v5803_v4 = vshrl.u32 %v5769_v36, 16  ;;  %v5806_v43 = vshll.u32 %v5769_v36, 16  ;;  %v5321_v13 = vshrl.u32 %v5283_v6, 16  ;;  %v5324_v61 = vshll.u32 %v5283_v6, 16 }
 0x410   : > { %v4584_v41 = vmax.f32 %v4552_v28, 0.0  ;;  %v5065_v52 = vpop.permute.xlu2 %5064  ;;  %v5184_v7 = vld [vmem:[#allocation2 + $0x18] sm:$0xf]  ;;  %v4916_v28 = vadd.f32 %v4915_v19, %v4914_v22  ;;  %v4993_v19 = vld [vmem:[%s17361_s9 + $0x20] sm:$0xff] }
 0x411   : > { %5155 = vst.msk [vmem:[#allocation2 + $0x38] sm:$0xf] %vm1779_vm9, %v5065_v52  ;;  %v4464_v3 = vpop.f32.mrf.mxu1  ;;  %v5218_v27 = vunpack.c.l.bf16 %v5184_v7  ;;  %v5805_v46 = vrot.slane %v5803_v4, 4  ;;  %v5808_v31 = vrot.slane %v5806_v43, 5  ;;  %v5219_v52 = vunpack.c.l.bf16 %v5185_v16  ;;  %v17742_v7 = vld [vmem:[#allocation10_spill] sm:$0xff]  ;;  %v17743_v43 = vld [vmem:[#allocation81_spill] sm:$0xff]  ;;  %5011 = vmatpush.msra.mxu1 %v4993_v19 }
 0x412   : > { %v13413_v38 = vmin.f32 %v4584_v41, 6.0  ;;  %v4465_v36 = vadd.f32 %v4464_v3, %v4375_v34  ;;  %v3879_v35 = vadd.f32 %v13243_v24, %v17743_v43  ;;  %v4918_v11 = vadd.f32 %v4917_v26, %v4916_v28  ;;  %v17744_v26 = vld [vmem:[#allocation14_spill] sm:$0xff] }
 0x413   : > { %v5737_v60 = vmul.f32 %v5218_v27, %v11779_v59  ;;  %v5251_v4 = vmul.f32 %v5218_v27, %v17742_v7  ;;  %v4377_v25 = vpop.f32.mrf.mxu2  ;;  %v5809_v34 = vor.u32 %v5808_v31, %v5805_v46  ;;  %v13423_v22 = vrot.slane %v5321_v13, 7  ;;  %v17751_v7 = vld [vmem:[#allocation84_spill] sm:$0xff] }
 0x414   : > { %17741 = vst [vmem:[#allocation121_spill] sm:$0xff] %v13413_v38  ;;  %v4517_v9 = vadd.f32 %v4465_v36, %v3966_v30  ;;  %v4648_v8 = vpack.c.bf16 %v13413_v38, %v13413_v38  ;;  %v4719_v16 = vunpack.c.l.b16 %v4647_v45  ;;  %v5738_v36 = vmul.f32 %v5219_v52, %v17744_v26 }
 0x415   : > { %v5770_v41 = vpack.c.bf16 %v5737_v60, %v5737_v60  ;;  %v5284_v24 = vpack.c.bf16 %v5251_v4, %v5251_v4  ;;  %v4919_v46 = vsel %vm1319_vm0, %v13199_v1, 0.0  ;;  %v11015_v43 = vrot.slane %v5316_v56, 11 }
 0x416   : > { %v4553_v3 = vadd.f32 %v13132_v63, %v4517_v9  ;;  %v4720_v27 = vunpack.c.l.b16 %v4648_v8  ;;  %5088 = vrot.lane.b32.xlu2 %v4648_v8, %s11433_s28  ;;  %v5810_v45 = vrot.slane %v5809_v34, 4  ;;  %v5326_v8 = vor.u32 %v5324_v61, %v13423_v22  ;;  %v17747_v34 = vld [vmem:[#allocation13_spill] sm:$0xff] }
 0x417   : > { %v5812_v30 = vshll.u32 %v5770_v41, 16  ;;  %v5816_v28 = vshrl.u32 %v5770_v41, 16  ;;  %v3968_v6 = vadd.f32 %v13367_v54, %v3879_v35  ;;  %v5330_v26 = vshrl.u32 %v5284_v24, 16 }
 0x418   : > { %v4585_v31 = vmax.f32 %v4553_v3, 0.0  ;;  %v5061_v13 = vpop.permute.xlu0 %5060  ;;  %v4743_v60 = vpack.c.b16 %v4720_v27, %v4719_v16  ;;  %v4921_v16 = vsel %vm1319_vm0, %v13214_v53, 0.0  ;;  %v5771_v27 = vpack.c.bf16 %v5738_v36, %v5738_v36 }
 0x419   : > { %5153 = vst.msk [vmem:[#allocation2 + $0x28] sm:$0xf] %vm1779_vm9, %v5061_v13  ;;  %v4466_v9 = vpop.f32.mrf.mxu1  ;;  %v5814_v59 = vrot.slane %v5812_v30, 5  ;;  %v5818_v4 = vrot.slane %v5816_v28, 4  ;;  %v5252_v30 = vmul.f32 %v5219_v52, %v17747_v34  ;;  %v13444_v13 = vpop.f32.mrf.mxu3  ;;  %v4920_v61 = vadd.f32 %v4919_v46, %v4918_v11 }
 0x41a   : > { %v13436_v19 = vmin.f32 %v4585_v31, 6.0  ;;  %v4467_v41 = vadd.f32 %v4466_v9, %v4377_v25  ;;  %11004 = vmatmul.msk.bf16.gmra.mxu3 %vm1319_vm0, %v4743_v60  ;;  %v4923_v54 = vsel %vm1319_vm0, %v13232_v49, 0.0  ;;  %v13451_v25 = vpop.f32.mrf.mxu0  ;;  %v5327_v36 = vsel %vm11768_vm3, %v11015_v43, %v5326_v8 }
 0x41b   : > { %v5815_v3 = vsel %vm11883_vm12, %v5810_v45, %v5814_v59  ;;  %v4380_v31 = vpop.f32.mrf.mxu2  ;;  %v5819_v9 = vor.u32 %v5818_v4, %v5814_v59  ;;  %v4922_v52 = vadd.f32 %v4921_v16, %v4920_v61  ;;  %v17749_v45 = vld [vmem:[#allocation82_spill] sm:$0xff]  ;;  %v13466_v32 = vadd.f32 %v13299_v23, %v17751_v7 }
 0x41c   : > { %17745 = vst [vmem:[#allocation81_spill] sm:$0xff] %v13436_v19  ;;  %v4518_v28 = vadd.f32 %v4467_v41, %v3968_v6  ;;  %6126 = vrot.lane.b32.xlu1 %v5815_v3, %s11433_s28  ;;  %v4649_v35 = vpack.c.bf16 %v13436_v19, %v13436_v19  ;;  %v3882_v11 = vadd.f32 %v13262_v39, %v17749_v45  ;;  %v13460_v6 = vrot.slane %v5330_v26, 7  ;;  %v17750_v41 = vld [vmem:[#allocation83_spill] sm:$0xff] }
 0x41d   : > { %v3884_v3 = vadd.f32 %v13283_v5, %v17750_v41  ;;  %v5822_v59 = vshll.u32 %v5771_v27, 16  ;;  %v13468_v43 = vpack.c.bf16 %v5252_v30, %v5252_v30  ;;  %v4924_v8 = vadd.f32 %v4923_v54, %v4922_v52 }
 0x41e   : > { %v4554_v46 = vadd.f32 %v13132_v63, %v4518_v28  ;;  %5090 = vrot.lane.b32.xlu0 %v4649_v35, %s11433_s28  ;;  %5607 = vrot.lane.b32.xlu2 %v5327_v36, %s11433_s28  ;;  %v5333_v16 = vshll.u32 %v5284_v24, 16  ;;  %v5826_v28 = vshrl.u32 %v5771_v27, 16  ;;  %v4925_v26 = vsel %vm1319_vm0, %v13246_v17, 0.0 }
 0x41f   : > { %v4927_v36 = vsel %vm1319_vm0, %v13259_v57, 0.0  ;;  %v5820_v23 = vrot.slane %v5819_v9, 4  ;;  %v3971_v30 = vadd.f32 %v13385_v2, %v3882_v11  ;;  %v5824_v52 = vrot.slane %v5822_v59, 5 }
 0x420   : > { %v4586_v39 = vmax.f32 %v4554_v46, 0.0  ;;  %v5063_v4 = vpop.permute.xlu1 %5062  ;;  %v5186_v61 = vld [vmem:[#allocation2 + $0x28] sm:$0xf]  ;;  %v5335_v24 = vor.u32 %v5333_v16, %v13460_v6  ;;  %v5339_v27 = vshrl.u32 %v13468_v43, 16  ;;  %v17753_v46 = vld [vmem:[#allocation17_spill] sm:$0xff]  ;;  %v5328_v9 = vrot.slane %v13423_v22, 4 }
 0x421   : > { %5154 = vst.msk [vmem:[#allocation2 + $0x30] sm:$0xf] %vm1779_vm9, %v5063_v4  ;;  %v4469_v5 = vpop.f32.mrf.mxu1  ;;  %v5220_v7 = vunpack.c.l.bf16 %v5186_v61  ;;  %v5828_v61 = vrot.slane %v5826_v28, 4  ;;  %v4926_v2 = vadd.f32 %v4925_v26, %v4924_v8  ;;  %v13489_v16 = vpop.f32.mrf.mxu3  ;;  %v5188_v8 = vld [vmem:[#allocation2 + $0x38] sm:$0xf] }
 0x422   : > { %v13476_v45 = vmin.f32 %v4586_v39, 6.0  ;;  %v4470_v54 = vadd.f32 %v4469_v5, %v4380_v31  ;;  %v5825_v31 = vsel %vm11883_vm12, %v5820_v23, %v5824_v52  ;;  %v4721_v5 = vunpack.c.l.b16 %v4649_v35  ;;  %v13496_v26 = vpop.f32.mrf.mxu0 }
 0x423   : > { %v5739_v41 = vmul.f32 %v5220_v7, %v17753_v46  ;;  %v5253_v34 = vmul.f32 %v5220_v7, %v17754_v15  ;;  %v4382_v11 = vpop.f32.mrf.mxu2  ;;  %v5336_v22 = vsel %vm11768_vm3, %v5328_v9, %v5335_v24  ;;  %v4928_v28 = vadd.f32 %v4927_v36, %v4926_v2 }
 0x424   : > { %17752 = vst [vmem:[#allocation82_spill] sm:$0xff] %v13476_v45  ;;  %v4519_v12 = vadd.f32 %v4470_v54, %v3971_v30  ;;  %v4650_v4 = vpack.c.bf16 %v13476_v45, %v13476_v45  ;;  %v5829_v46 = vor.u32 %v5828_v61, %v5824_v52  ;;  %v5337_v36 = vrot.slane %v13460_v6, 4  ;;  %v17756_v61 = vld [vmem:[#allocation18_spill] sm:$0xff] }
 0x425   : > { %v5772_v39 = vpack.c.bf16 %v5739_v41, %v5739_v41  ;;  %v13487_v59 = vpack.c.bf16 %v5253_v34, %v5253_v34  ;;  %v13499_v34 = vrot.slane %v5339_v27, 7  ;;  %v3973_v27 = vadd.f32 %v13415_v44, %v3884_v3  ;;  %v17757_v3 = vld [vmem:[#allocation15_spill] sm:$0xff] }
 0x426   : > { %v4555_v7 = vadd.f32 %v13132_v63, %v4519_v12  ;;  %6128 = vrot.lane.b32.xlu2 %v5825_v31, %s11433_s28  ;;  %v4722_v30 = vunpack.c.l.b16 %v4650_v4  ;;  %5092 = vrot.lane.b32.xlu1 %v4650_v4, %s11433_s28  ;;  %v5342_v31 = vshll.u32 %v13468_v43, 16  ;;  %v4929_v43 = vsel %vm1319_vm0, %v13275_v40, 0.0 }
 0x427   : > { %5609 = vrot.lane.b32.xlu0 %v5336_v22, %s11433_s28  ;;  %v5832_v23 = vshll.u32 %v5772_v39, 16  ;;  %v5836_v35 = vshrl.u32 %v5772_v39, 16  ;;  %v5348_v9 = vshrl.u32 %v13487_v59, 16  ;;  %v5222_v22 = vunpack.c.l.bf16 %v5188_v8 }
 0x428   : > { %v4587_v54 = vmax.f32 %v4555_v7, 0.0  ;;  %v5071_v12 = vpop.permute.xlu2 %5070  ;;  %v4744_v41 = vpack.c.b16 %v4722_v30, %v4721_v5  ;;  %v5187_v4 = vld [vmem:[#allocation2 + $0x30] sm:$0xf]  ;;  %v5344_v52 = vor.u32 %v5342_v31, %v13499_v34  ;;  %v5830_v44 = vrot.slane %v5829_v46, 4 }
 0x429   : > { %5158 = vst.msk [vmem:[#allocation2 + $0x50] sm:$0xf] %vm1779_vm9, %v5071_v12  ;;  %v4471_v24 = vpop.f32.mrf.mxu1  ;;  %v5221_v2 = vunpack.c.l.bf16 %v5187_v4  ;;  %v5834_v5 = vrot.slane %v5832_v23, 5  ;;  %v5838_v6 = vrot.slane %v5836_v35, 4  ;;  %v13520_v12 = vrot.slane %v5348_v9, 7  ;;  %v17758_v4 = vld [vmem:[#allocation22_spill] sm:$0xff] }
 0x42a   : > { %v13506_v15 = vmin.f32 %v4587_v54, 6.0  ;;  %v4472_v39 = vadd.f32 %v4471_v24, %v4382_v11  ;;  %11005 = vmatmul.msk.bf16.gmra.mxu3 %vm1319_vm0, %v4744_v41  ;;  %v5345_v23 = vsel %vm11768_vm3, %v5337_v36, %v5344_v52  ;;  %v5741_v31 = vmul.f32 %v5222_v22, %v17758_v4 }
 0x42b   : > { %v5740_v7 = vmul.f32 %v5221_v2, %v17756_v61  ;;  %v5254_v54 = vmul.f32 %v5221_v2, %v17757_v3  ;;  %v4385_v11 = vpop.f32.mrf.mxu2  ;;  %v5835_v46 = vsel %vm11883_vm12, %v5830_v44, %v5834_v5  ;;  %v5351_v36 = vshll.u32 %v13487_v59, 16 }
 0x42c   : > { %17755 = vst [vmem:[#allocation83_spill] sm:$0xff] %v13506_v15  ;;  %v4520_v30 = vadd.f32 %v4472_v39, %v3973_v27  ;;  %v13515_v8 = vpack.c.bf16 %v13506_v15, %v13506_v15  ;;  %v5839_v9 = vor.u32 %v5838_v6, %v5834_v5  ;;  %v13533_v39 = vpop.f32.mrf.mxu3  ;;  %v4931_v52 = vsel %vm1319_vm0, %v13292_v14, 0.0 }
 0x42d   : > { %v5773_v41 = vpack.c.bf16 %v5740_v7, %v5740_v7  ;;  %v13529_v35 = vpack.c.bf16 %v5254_v54, %v5254_v54  ;;  %v17759_v7 = vld [vmem:[#allocation85_spill] sm:$0xff]  ;;  %v13539_v54 = vpop.f32.mrf.mxu0  ;;  %v5353_v59 = vor.u32 %v5351_v36, %v13520_v12  ;;  %v5774_v36 = vpack.c.bf16 %v5741_v31, %v5741_v31 }
 0x42e   : > { %v4556_v24 = vadd.f32 %v13132_v63, %v4520_v30  ;;  %5094 = vrot.lane.b32.xlu2 %v13515_v8, %s11433_s28  ;;  %5611 = vrot.lane.b32.xlu1 %v5345_v23, %s11433_s28  ;;  %v4930_v63 = vadd.f32 %v4929_v43, %v4928_v28  ;;  %v3889_v30 = vadd.f32 %v13315_v20, %v17759_v7  ;;  %v5840_v3 = vrot.slane %v5839_v9, 4  ;;  %v13574_v9 = vld [vmem:[%s17357_s5] ss:$0 sm:$0xff] }
 0x42f   : > { %6130 = vrot.lane.b32.xlu0 %v5835_v46, %s11433_s28  ;;  %v5842_v2 = vshll.u32 %v5773_v41, 16  ;;  %v5846_v27 = vshrl.u32 %v5773_v41, 16  ;;  %v17760_v41 = vld [vmem:[#allocation19_spill] sm:$0xff]  ;;  %v3976_v28 = vadd.f32 %v13451_v25, %v13466_v32  ;;  %v5357_v20 = vshrl.u32 %v13529_v35, 16 }
 0x430   : > { %v4588_v23 = vmax.f32 %v4556_v24, 0.0  ;;  %v5067_v44 = vpop.permute.xlu0 %5066  ;;  %v5255_v4 = vmul.f32 %v5222_v22, %v17760_v41  ;;  %v17762_v24 = vld [vmem:[#allocation86_spill] sm:$0xff]  ;;  %v4933_v22 = vsel %vm1319_vm0, %v13306_v58, 0.0  ;;  %v4723_v31 = vunpack.c.l.b16 %v13515_v8 }
 0x431   : > { %5156 = vst.msk [vmem:[#allocation2 + $0x40] sm:$0xf] %vm1779_vm9, %v5067_v44  ;;  %v4474_v46 = vpop.f32.mrf.mxu1  ;;  %v5844_v5 = vrot.slane %v5842_v2, 5  ;;  %v5848_v6 = vrot.slane %v5846_v27, 4  ;;  %v13551_v7 = vadd.f32 %v13338_v55, %v17762_v24  ;;  %v5346_v44 = vrot.slane %v13499_v34, 4  ;;  %v4992_v34 = vld [vmem:[%s17361_s9 + $0x18] sm:$0xff] }
 0x432   : > { %v13546_v43 = vmin.f32 %v4588_v23, 6.0  ;;  %v4475_v61 = vadd.f32 %v4474_v46, %v4385_v11  ;;  %v4932_v2 = vadd.f32 %v4931_v52, %v4930_v63  ;;  %v13562_v46 = vpack.c.bf16 %v5255_v4, %v5255_v4  ;;  %5012 = vmatpush.msra.mxu1 %v4992_v34 }
 0x433   : > { %v4387_v25 = vpop.f32.mrf.mxu2  ;;  %v5354_v11 = vsel %vm11768_vm3, %v5346_v44, %v5353_v59  ;;  %v5845_v55 = vsel %vm11883_vm12, %v5840_v3, %v5844_v5  ;;  %v5849_v23 = vor.u32 %v5848_v6, %v5844_v5  ;;  %v13579_v63 = vrot.slane %v5357_v20, 7  ;;  %v17763_v59 = vld [vmem:[#allocation87_spill] sm:$0xff] }
 0x434   : > { %17761 = vst [vmem:[#allocation84_spill] sm:$0xff] %v13546_v43  ;;  %v4521_v27 = vadd.f32 %v4475_v61, %v3976_v28  ;;  %v4652_v32 = vpack.c.bf16 %v13546_v43, %v13546_v43  ;;  %v5022_v61 = vld [vmem:[%s17362_s10] sm:$0xf]  ;;  %v4934_v52 = vadd.f32 %v4933_v22, %v4932_v2  ;;  %v13583_v5 = vadd.f32 %v13369_v33, %v17763_v59 }
 0x435   : > { %v5852_v8 = vshll.u32 %v5774_v36, 16  ;;  %v5856_v6 = vshrl.u32 %v5774_v36, 16  ;;  %v4935_v28 = vsel %vm1319_vm0, %v13318_v62, 0.0  ;;  %11013 = vmatpush.msk.msrb.mxu2 %vm471_vm5, %v5022_v61  ;;  %v4937_v33 = vsel %vm1319_vm0, %v13336_v21, 0.0  ;;  %v13599_v61 = vpop.f32.mrf.mxu3  ;;  %v17771_v21 = vld [vmem:[#allocation27_spill] sm:$0xff] }
 0x436   : > { %v4557_v3 = vadd.f32 %v13574_v9, %v4521_v27  ;;  %5613 = vrot.lane.b32.xlu2 %v5354_v11, %s11433_s28  ;;  %v4724_v4 = vunpack.c.l.b16 %v4652_v32  ;;  %6132 = vrot.lane.b32.xlu1 %v5845_v55, %s11433_s28  ;;  %v5360_v11 = vshll.u32 %v13529_v35, 16  ;;  %v3978_v2 = vadd.f32 %v13496_v26, %v3889_v30  ;;  %v17765_v26 = vld [vmem:[#allocation23_spill] sm:$0xff] }
 0x437   : > { %5096 = vrot.lane.b32.xlu0 %v4652_v32, %s11433_s28  ;;  %v5850_v22 = vrot.slane %v5849_v23, 4  ;;  %v5858_v59 = vrot.slane %v5856_v6, 4  ;;  %v13616_v6 = vld [vmem:[#allocation2 + $0x50] sm:$0xf] }
 0x438   : > { %v4589_v24 = vmax.f32 %v4557_v3, 0.0  ;;  %v5069_v44 = vpop.permute.xlu1 %5068  ;;  %v4745_v27 = vpack.c.b16 %v4724_v4, %v4723_v31  ;;  %v5189_v20 = vld [vmem:[#allocation2 + $0x40] sm:$0xf]  ;;  %v5362_v35 = vor.u32 %v5360_v11, %v13579_v63  ;;  %v5366_v31 = vshrl.u32 %v13562_v46, 16  ;;  %v13601_v3 = vpop.f32.mrf.mxu0 }
 0x439   : > { %5157 = vst.msk [vmem:[#allocation2 + $0x48] sm:$0xf] %vm1779_vm9, %v5069_v44  ;;  %v4476_v36 = vpop.f32.mrf.mxu1  ;;  %v5223_v32 = vunpack.c.l.bf16 %v5189_v20  ;;  %v5854_v4 = vrot.slane %v5852_v8, 5  ;;  %v17766_v44 = vld [vmem:[#allocation24_spill] sm:$0xff]  ;;  %v4936_v20 = vadd.f32 %v4935_v28, %v4934_v52  ;;  %v4939_v11 = vsel %vm1319_vm0, %v13358_v10, 0.0 }
 0x43a   : > { %v13594_v55 = vmin.f32 %v4589_v24, 6.0  ;;  %v4477_v34 = vadd.f32 %v4476_v36, %v4387_v25  ;;  %11006 = vmatmul.msk.bf16.gmra.mxu3 %vm1319_vm0, %v4745_v27  ;;  %v5355_v27 = vrot.slane %v13520_v12, 4 }
 0x43b   : > { %v5742_v30 = vmul.f32 %v5223_v32, %v17765_v26  ;;  %v5256_v23 = vmul.f32 %v5223_v32, %v17766_v44  ;;  %v4390_v36 = vpop.f32.mrf.mxu2  ;;  %v5855_v8 = vsel %vm11883_vm12, %v5850_v22, %v5854_v4  ;;  %v4938_v52 = vadd.f32 %v4937_v33, %v4936_v20 }
 0x43c   : > { %17764 = vst [vmem:[#allocation85_spill] sm:$0xff] %v13594_v55  ;;  %v4522_v24 = vadd.f32 %v4477_v34, %v3978_v2  ;;  %v13607_v25 = vpack.c.bf16 %v13594_v55, %v13594_v55  ;;  %v5363_v12 = vsel %vm11768_vm3, %v5355_v27, %v5362_v35  ;;  %v13625_v2 = vrot.slane %v5366_v31, 7 }
 0x43d   : > { %v5775_v41 = vpack.c.bf16 %v5742_v30, %v5742_v30  ;;  %v13614_v26 = vpack.c.bf16 %v5256_v23, %v5256_v23  ;;  %v5859_v22 = vor.u32 %v5858_v59, %v5854_v4  ;;  %v4940_v30 = vadd.f32 %v4939_v11, %v4938_v52 }
 0x43e   : > { %v4558_v28 = vadd.f32 %v13574_v9, %v4522_v24  ;;  %6134 = vrot.lane.b32.xlu2 %v5855_v8, %s11433_s28  ;;  %5098 = vrot.lane.b32.xlu1 %v13607_v25, %s11433_s28  ;;  %v4941_v33 = vsel %vm1319_vm0, %v13375_v18, 0.0  ;;  %v5225_v8 = vunpack.c.l.bf16 %v13616_v6  ;;  %v5364_v35 = vrot.slane %v13579_v63, 4 }
 0x43f   : > { %5615 = vrot.lane.b32.xlu0 %v5363_v12, %s11433_s28  ;;  %v5862_v32 = vshll.u32 %v5775_v41, 16  ;;  %v5866_v34 = vshrl.u32 %v5775_v41, 16  ;;  %v5369_v31 = vshll.u32 %v13562_v46, 16  ;;  %v5375_v4 = vshrl.u32 %v13614_v26, 16 }
 0x440   : > { %v4590_v23 = vmax.f32 %v4558_v28, 0.0  ;;  %v5077_v20 = vpop.permute.xlu2 %5076  ;;  %v5190_v24 = vld [vmem:[#allocation2 + $0x48] sm:$0xf]  ;;  %v3981_v41 = vadd.f32 %v13539_v54, %v13551_v7  ;;  %v13638_v28 = vpop.f32.mrf.mxu3  ;;  %v5860_v12 = vrot.slane %v5859_v22, 4 }
 0x441   : > { %5161 = vst.msk [vmem:[#allocation2 + $0x68] sm:$0xf] %vm1779_vm9, %v5077_v20  ;;  %v4479_v44 = vpop.f32.mrf.mxu1  ;;  %v5224_v59 = vunpack.c.l.bf16 %v5190_v24  ;;  %v5864_v52 = vrot.slane %v5862_v32, 5  ;;  %v5371_v6 = vor.u32 %v5369_v31, %v13625_v2  ;;  %v17769_v20 = vld [vmem:[#allocation26_spill] sm:$0xff]  ;;  %v5868_v63 = vrot.slane %v5866_v34, 4  ;;  %v17770_v24 = vld [vmem:[#allocation28_spill] sm:$0xff]  ;;  %v13646_v7 = vpop.f32.mrf.mxu0 }
 0x442   : > { %v13636_v27 = vmin.f32 %v4590_v23, 6.0  ;;  %v4480_v11 = vadd.f32 %v4479_v44, %v4390_v36  ;;  %17768 = vst [vmem:[#allocation87_spill] sm:$0xff] %v13638_v28  ;;  %v5744_v58 = vmul.f32 %v5225_v8, %v17770_v24  ;;  %v4725_v44 = vunpack.c.l.b16 %v13607_v25 }
 0x443   : > { %v5743_v10 = vmul.f32 %v5224_v59, %v17769_v20  ;;  %v5257_v54 = vmul.f32 %v5224_v59, %v17771_v21  ;;  %v4392_v36 = vpop.f32.mrf.mxu2  ;;  %v5372_v32 = vsel %vm11768_vm3, %v5364_v35, %v5371_v6  ;;  %v13651_v22 = vrot.slane %v5375_v4, 7 }
 0x444   : > { %17767 = vst [vmem:[#allocation86_spill] sm:$0xff] %v13636_v27  ;;  %v4523_v18 = vadd.f32 %v4480_v11, %v3981_v41  ;;  %v4654_v46 = vpack.c.bf16 %v13636_v27, %v13636_v27  ;;  %v5865_v59 = vsel %vm11883_vm12, %v5860_v12, %v5864_v52  ;;  %v5378_v25 = vshll.u32 %v13614_v26, 16 }
 0x445   : > { %v5776_v23 = vpack.c.bf16 %v5743_v10, %v5743_v10  ;;  %v5290_v41 = vpack.c.bf16 %v5257_v54, %v5257_v54  ;;  %v5869_v11 = vor.u32 %v5868_v63, %v5864_v52  ;;  %v4942_v6 = vadd.f32 %v4941_v33, %v4940_v30  ;;  %v17773_v33 = vld [vmem:[#allocation25_spill] sm:$0xff] }
 0x446   : > { %v4559_v34 = vadd.f32 %v13574_v9, %v4523_v18  ;;  %v4726_v31 = vunpack.c.l.b16 %v4654_v46  ;;  %5100 = vrot.lane.b32.xlu2 %v4654_v46, %s11433_s28  ;;  %5617 = vrot.lane.b32.xlu1 %v5372_v32, %s11433_s28  ;;  %v4943_v10 = vsel %vm1319_vm0, %v13389_v0, 0.0  ;;  %v3983_v32 = vadd.f32 %v13601_v3, %v13583_v5 }
 0x447   : > { %6136 = vrot.lane.b32.xlu0 %v5865_v59, %s11433_s28  ;;  %v5872_v35 = vshll.u32 %v5776_v23, 16  ;;  %v5876_v4 = vshrl.u32 %v5776_v23, 16  ;;  %v5380_v54 = vor.u32 %v5378_v25, %v13651_v22  ;;  %v5384_v30 = vshrl.u32 %v5290_v41, 16 }
 0x448   : > { %v4591_v18 = vmax.f32 %v4559_v34, 0.0  ;;  %v5073_v28 = vpop.permute.xlu0 %5072  ;;  %v4746_v46 = vpack.c.b16 %v4726_v31, %v4725_v44  ;;  %v5258_v23 = vmul.f32 %v5225_v8, %v17773_v33  ;;  %v4945_v44 = vsel %vm1319_vm0, %v13413_v38, 0.0 }
 0x449   : > { %5159 = vst.msk [vmem:[#allocation2 + $0x58] sm:$0xf] %vm1779_vm9, %v5073_v28  ;;  %v4481_v12 = vpop.f32.mrf.mxu1  ;;  %v5874_v59 = vrot.slane %v5872_v35, 5  ;;  %v5878_v26 = vrot.slane %v5876_v4, 4  ;;  %v5373_v5 = vrot.slane %v13625_v2, 4  ;;  %v5870_v3 = vrot.slane %v5869_v11, 4  ;;  %v13679_v35 = vpop.f32.mrf.mxu3 }
 0x44a   : > { %v13666_v52 = vmin.f32 %v4591_v18, 6.0  ;;  %v4482_v63 = vadd.f32 %v4481_v12, %v4392_v36  ;;  %11007 = vmatmul.msk.bf16.gmra.mxu3 %vm1319_vm0, %v4746_v46  ;;  %v5777_v28 = vpack.c.bf16 %v5744_v58, %v5744_v58  ;;  %v4944_v34 = vadd.f32 %v4943_v10, %v4942_v6  ;;  %17774 = vst [vmem:[#allocation123_spill] sm:$0xff] %v13679_v35  ;;  %v17775_v46 = vld [vmem:[#allocation88_spill] sm:$0xff]  ;;  %v17776_v12 = vld [vmem:[#allocation89_spill] sm:$0xff] }
 0x44b   : > { %v4947_v36 = vsel %vm1319_vm0, %v13436_v19, 0.0  ;;  %v4395_v4 = vpop.f32.mrf.mxu2  ;;  %v5381_v8 = vsel %vm11768_vm3, %v5373_v5, %v5380_v54  ;;  %v5875_v2 = vsel %vm11883_vm12, %v5870_v3, %v5874_v59  ;;  %v5879_v11 = vor.u32 %v5878_v26, %v5874_v59  ;;  %v17777_v5 = vld [vmem:[#allocation91_spill] sm:$0xff]  ;;  %v17780_v35 = vld [vmem:[#allocation29_spill] sm:$0xff] }
 0x44c   : > { %17772 = vst [vmem:[#allocation122_spill] sm:$0xff] %v13666_v52  ;;  %v4524_v31 = vadd.f32 %v4482_v63, %v3983_v32  ;;  %v13675_v25 = vpack.c.bf16 %v13666_v52, %v13666_v52  ;;  %v4946_v58 = vadd.f32 %v4945_v44, %v4944_v34  ;;  %v13688_v10 = vrot.slane %v5384_v30, 7  ;;  %v3987_v63 = vpop.f32.mrf.mxu0 }
 0x44d   : > { %v13690_v18 = vpack.c.bf16 %v5258_v23, %v5258_v23  ;;  %v3897_v32 = vadd.f32 %v13381_v47, %v17775_v46  ;;  %v3899_v54 = vadd.f32 %v13408_v37, %v17776_v12  ;;  %v5882_v59 = vshll.u32 %v5777_v28, 16 }
 0x44e   : > { %v4560_v6 = vadd.f32 %v13574_v9, %v4524_v31  ;;  %5619 = vrot.lane.b32.xlu2 %v5381_v8, %s11433_s28  ;;  %6138 = vrot.lane.b32.xlu1 %v5875_v2, %s11433_s28  ;;  %v5886_v26 = vshrl.u32 %v5777_v28, 16  ;;  %v4948_v44 = vadd.f32 %v4947_v36, %v4946_v58  ;;  %v13700_v3 = vadd.f32 %v13444_v13, %v17777_v5 }
 0x44f   : > { %5102 = vrot.lane.b32.xlu0 %v13675_v25, %s11433_s28  ;;  %v5387_v34 = vshll.u32 %v5290_v41, 16  ;;  %v4949_v47 = vsel %vm1319_vm0, %v13476_v45, 0.0  ;;  %v3986_v37 = vadd.f32 %v13646_v7, %v3897_v32  ;;  %v5880_v2 = vrot.slane %v5879_v11, 4  ;;  %v17779_v41 = vld [vmem:[#allocation20_spill] sm:$0xff] }
 0x450   : > { %v4592_v30 = vmax.f32 %v4560_v6, 0.0  ;;  %v5075_v23 = vpop.permute.xlu1 %5074  ;;  %v5192_v31 = vld [vmem:[#allocation2 + $0x58] sm:$0xf]  ;;  %v5393_v58 = vshrl.u32 %v13690_v18, 16  ;;  %v5884_v6 = vrot.slane %v5882_v59, 5  ;;  %v5888_v5 = vrot.slane %v5886_v26, 4 }
 0x451   : > { %5160 = vst.msk [vmem:[#allocation2 + $0x60] sm:$0xf] %vm1779_vm9, %v5075_v23  ;;  %v4484_v8 = vpop.f32.mrf.mxu1  ;;  %v5226_v46 = vunpack.c.l.bf16 %v5192_v31  ;;  %v5389_v13 = vor.u32 %v5387_v34, %v13688_v10  ;;  %v4950_v20 = vadd.f32 %v4949_v47, %v4948_v44  ;;  %v5382_v11 = vrot.slane %v13651_v22, 4  ;;  %v4991_v26 = vld [vmem:[%s17361_s9 + $0x10] sm:$0xff]  ;;  %v5194_v44 = vld [vmem:[#allocation2 + $0x68] sm:$0xf] }
 0x452   : > { %v13706_v28 = vmin.f32 %v4592_v30, 6.0  ;;  %v4485_v36 = vadd.f32 %v4484_v8, %v4395_v4  ;;  %v4951_v4 = vsel %vm1319_vm0, %v13506_v15, 0.0  ;;  %v5885_v23 = vsel %vm11883_vm12, %v5880_v2, %v5884_v6  ;;  %v13730_v8 = vpop.f32.mrf.mxu3  ;;  %5013 = vmatpush.msra.mxu1 %v4991_v26 }
 0x453   : > { %v5745_v12 = vmul.f32 %v5226_v46, %v17779_v41  ;;  %v5259_v24 = vmul.f32 %v5226_v46, %v17780_v35  ;;  %v4397_v30 = vpop.f32.mrf.mxu2  ;;  %v5390_v47 = vsel %vm11768_vm3, %v5382_v11, %v5389_v13  ;;  %17781 = vst [vmem:[#allocation89_spill] sm:$0xff] %v13730_v8  ;;  %v5889_v2 = vor.u32 %v5888_v5, %v5884_v6 }
 0x454   : > { %17778 = vst [vmem:[#allocation88_spill] sm:$0xff] %v13706_v28  ;;  %v4525_v7 = vadd.f32 %v4485_v36, %v3986_v37  ;;  %v4656_v32 = vpack.c.bf16 %v13706_v28, %v13706_v28  ;;  %v4727_v37 = vunpack.c.l.b16 %v13675_v25  ;;  %v5228_v35 = vunpack.c.l.bf16 %v5194_v44  ;;  %v3990_v21 = vpop.f32.mrf.mxu0 }
 0x455   : > { %v5778_v59 = vpack.c.bf16 %v5745_v12, %v5745_v12  ;;  %v13719_v34 = vpack.c.bf16 %v5259_v24, %v5259_v24  ;;  %v13733_v24 = vrot.slane %v5393_v58, 7  ;;  %v4952_v12 = vadd.f32 %v4951_v4, %v4950_v20 }
 0x456   : > { %v4561_v31 = vadd.f32 %v13574_v9, %v4525_v7  ;;  %6140 = vrot.lane.b32.xlu2 %v5885_v23, %s11433_s28  ;;  %v4728_v22 = vunpack.c.l.b16 %v4656_v32  ;;  %5104 = vrot.lane.b32.xlu1 %v4656_v32, %s11433_s28  ;;  %v5391_v13 = vrot.slane %v13688_v10, 4  ;;  %v5396_v11 = vshll.u32 %v13690_v18, 16  ;;  %v17784_v18 = vld [vmem:[#allocation32_spill] sm:$0xff] }
 0x457   : > { %5621 = vrot.lane.b32.xlu0 %v5390_v47, %s11433_s28  ;;  %v5892_v46 = vshll.u32 %v5778_v59, 16  ;;  %v5896_v36 = vshrl.u32 %v5778_v59, 16  ;;  %v5402_v58 = vshrl.u32 %v13719_v34, 16  ;;  %v3988_v5 = vadd.f32 %v3987_v63, %v3899_v54  ;;  %v17785_v54 = vld [vmem:[#allocation31_spill] sm:$0xff] }
 0x458   : > { %v4593_v7 = vmax.f32 %v4561_v31, 0.0  ;;  %v5083_v23 = vpop.permute.xlu2 %5082  ;;  %v4747_v41 = vpack.c.b16 %v4728_v22, %v4727_v37  ;;  %v5193_v32 = vld [vmem:[#allocation2 + $0x60] sm:$0xf]  ;;  %v5398_v26 = vor.u32 %v5396_v11, %v13733_v24  ;;  %v5890_v44 = vrot.slane %v5889_v2, 4  ;;  %v17786_v2 = vld [vmem:[#allocation33_spill] sm:$0xff] }
 0x459   : > { %5164 = vst.msk [vmem:[#allocation2 + $0x80] sm:$0xf] %vm1779_vm9, %v5083_v23  ;;  %v4486_v25 = vpop.f32.mrf.mxu1  ;;  %v5227_v6 = vunpack.c.l.bf16 %v5193_v32  ;;  %v5894_v4 = vrot.slane %v5892_v46, 5  ;;  %v17783_v31 = vld [vmem:[#allocation30_spill] sm:$0xff]  ;;  %v5898_v47 = vrot.slane %v5896_v36, 4  ;;  %v5747_v23 = vmul.f32 %v5228_v35, %v17784_v18 }
 0x45a   : > { %v13739_v59 = vmin.f32 %v4593_v7, 6.0  ;;  %v4487_v20 = vadd.f32 %v4486_v25, %v4397_v30  ;;  %11008 = vmatmul.msk.bf16.gmra.mxu3 %vm1319_vm0, %v4747_v41  ;;  %v5399_v41 = vsel %vm11768_vm3, %v5391_v13, %v5398_v26  ;;  %v13752_v30 = vrot.slane %v5402_v58, 7  ;;  %v17787_v26 = vld [vmem:[#allocation93_spill] sm:$0xff] }
 0x45b   : > { %v5746_v22 = vmul.f32 %v5227_v6, %v17783_v31  ;;  %v5260_v63 = vmul.f32 %v5227_v6, %v17785_v54  ;;  %v4400_v7 = vpop.f32.mrf.mxu2  ;;  %v5261_v32 = vmul.f32 %v5228_v35, %v17786_v2  ;;  %v4953_v36 = vsel %vm1319_vm0, %v13546_v43, 0.0  ;;  %v17827_v2 = vld [vmem:[#allocation56_spill] sm:$0xff] }
 0x45c   : > { %17782 = vst [vmem:[#allocation91_spill] sm:$0xff] %v13739_v59  ;;  %v4526_v37 = vadd.f32 %v4487_v20, %v3988_v5  ;;  %v13746_v10 = vpack.c.bf16 %v13739_v59, %v13739_v59  ;;  %v5895_v11 = vsel %vm11883_vm12, %v5890_v44, %v5894_v4  ;;  %v5405_v13 = vshll.u32 %v13719_v34, 16  ;;  %v13771_v44 = vpop.f32.mrf.mxu3 }
 0x45d   : > { %v5779_v46 = vpack.c.bf16 %v5746_v22, %v5746_v22  ;;  %v13763_v6 = vpack.c.bf16 %v5260_v63, %v5260_v63  ;;  %v5899_v35 = vor.u32 %v5898_v47, %v5894_v4  ;;  %v4955_v20 = vsel %vm1319_vm0, %v13594_v55, 0.0  ;;  %17788 = vst [vmem:[#allocation93_spill] sm:$0xff] %v13771_v44  ;;  %v17795_v44 = vld [vmem:[#allocation34_spill] sm:$0xff] }
 0x45e   : > { %v4562_v25 = vadd.f32 %v13574_v9, %v4526_v37  ;;  %5106 = vrot.lane.b32.xlu2 %v13746_v10, %s11433_s28  ;;  %5623 = vrot.lane.b32.xlu1 %v5399_v41, %s11433_s28  ;;  %v3904_v22 = vadd.f32 %v13489_v16, %v17787_v26  ;;  %v5780_v8 = vpack.c.bf16 %v5747_v23, %v5747_v23  ;;  %v3992_v26 = vpop.f32.mrf.mxu0 }
 0x45f   : > { %6142 = vrot.lane.b32.xlu0 %v5895_v11, %s11433_s28  ;;  %v5902_v58 = vshll.u32 %v5779_v46, 16  ;;  %v5906_v5 = vshrl.u32 %v5779_v46, 16  ;;  %v4954_v31 = vadd.f32 %v4953_v36, %v4952_v12  ;;  %v5407_v34 = vor.u32 %v5405_v13, %v13752_v30 }
 0x460   : > { %v4594_v37 = vmax.f32 %v4562_v25, 0.0  ;;  %v5079_v41 = vpop.permute.xlu0 %5078  ;;  %v3991_v46 = vadd.f32 %v3990_v21, %v13700_v3  ;;  %v5411_v16 = vshrl.u32 %v13763_v6, 16  ;;  %v5400_v12 = vrot.slane %v13733_v24, 4 }
 0x461   : > { %5162 = vst.msk [vmem:[#allocation2 + $0x70] sm:$0xf] %vm1779_vm9, %v5079_v41  ;;  %v4489_v63 = vpop.f32.mrf.mxu1  ;;  %v5904_v4 = vrot.slane %v5902_v58, 5  ;;  %v5908_v47 = vrot.slane %v5906_v5, 4  ;;  %v4956_v25 = vadd.f32 %v4955_v20, %v4954_v31  ;;  %v5900_v23 = vrot.slane %v5899_v35, 4 }
 0x462   : > { %v13776_v11 = vmin.f32 %v4594_v37, 6.0  ;;  %v4490_v18 = vadd.f32 %v4489_v63, %v4400_v7  ;;  %v13780_v36 = vpack.c.bf16 %v5261_v32, %v5261_v32  ;;  %v4957_v41 = vsel %vm1319_vm0, %v13636_v27, 0.0  ;;  %v17790_v63 = vld [vmem:[#allocation96_spill] sm:$0xff] }
 0x463   : > { %v5912_v21 = vshll.u32 %v5780_v8, 16  ;;  %v4402_v3 = vpop.f32.mrf.mxu2  ;;  %v5408_v7 = vsel %vm11768_vm3, %v5400_v12, %v5407_v34  ;;  %v5905_v31 = vsel %vm11883_vm12, %v5900_v23, %v5904_v4  ;;  %v5909_v5 = vor.u32 %v5908_v47, %v5904_v4 }
 0x464   : > { %17789 = vst [vmem:[#allocation124_spill] sm:$0xff] %v13776_v11  ;;  %v4527_v13 = vadd.f32 %v4490_v18, %v3991_v46  ;;  %v4658_v58 = vpack.c.bf16 %v13776_v11, %v13776_v11  ;;  %v5916_v24 = vshrl.u32 %v5780_v8, 16  ;;  %v4729_v18 = vunpack.c.l.b16 %v13746_v10  ;;  %v17791_v46 = vld [vmem:[#allocation98_spill] sm:$0xff] }
 0x465   : > { %v13794_v20 = vrot.slane %v5411_v16, 7  ;;  %v4958_v37 = vadd.f32 %v4957_v41, %v4956_v25  ;;  %v3907_v34 = vadd.f32 %v13533_v39, %v17790_v63  ;;  %v13800_v12 = vadd.f32 %v13599_v61, %v17791_v46  ;;  %v13812_v46 = vpop.f32.mrf.mxu3 }
 0x466   : > { %v4563_v32 = vadd.f32 %v13574_v9, %v4527_v13  ;;  %5625 = vrot.lane.b32.xlu2 %v5408_v7, %s11433_s28  ;;  %6144 = vrot.lane.b32.xlu1 %v5905_v31, %s11433_s28  ;;  %v4730_v35 = vunpack.c.l.b16 %v4658_v58  ;;  %v5420_v8 = vshrl.u32 %v13780_v36, 16  ;;  %v4959_v4 = vsel %vm1319_vm0, %v13666_v52, 0.0  ;;  %17793 = vst [vmem:[#allocation98_spill] sm:$0xff] %v13812_v46 }
 0x467   : > { %5108 = vrot.lane.b32.xlu0 %v4658_v58, %s11433_s28  ;;  %v5414_v16 = vshll.u32 %v13763_v6, 16  ;;  %v5910_v41 = vrot.slane %v5909_v5, 4  ;;  %v5914_v13 = vrot.slane %v5912_v21, 5  ;;  %v5918_v7 = vrot.slane %v5916_v24, 4  ;;  %v5197_v24 = vld [vmem:[#allocation2 + $0x80] sm:$0xf] }
 0x468   : > { %v4595_v47 = vmax.f32 %v4563_v32, 0.0  ;;  %v5081_v10 = vpop.permute.xlu1 %5080  ;;  %v4748_v23 = vpack.c.b16 %v4730_v35, %v4729_v18  ;;  %v5195_v25 = vld [vmem:[#allocation2 + $0x70] sm:$0xf]  ;;  %v3993_v31 = vadd.f32 %v3992_v26, %v3904_v22  ;;  %v4960_v18 = vadd.f32 %v4959_v4, %v4958_v37  ;;  %v17794_v35 = vld [vmem:[#allocation35_spill] sm:$0xff] }
 0x469   : > { %5163 = vst.msk [vmem:[#allocation2 + $0x78] sm:$0xf] %vm1779_vm9, %v5081_v10  ;;  %v4491_v39 = vpop.f32.mrf.mxu1  ;;  %v5229_v61 = vunpack.c.l.bf16 %v5195_v25  ;;  %v5416_v32 = vor.u32 %v5414_v16, %v13794_v20  ;;  %v13814_v6 = vrot.slane %v5420_v8, 7  ;;  %v4961_v21 = vsel %vm1319_vm0, %v13706_v28, 0.0 }
 0x46a   : > { %v13808_v58 = vmin.f32 %v4595_v47, 6.0  ;;  %v4492_v63 = vadd.f32 %v4491_v39, %v4402_v3  ;;  %11009 = vmatmul.msk.bf16.gmra.mxu3 %vm1319_vm0, %v4748_v23  ;;  %v5409_v3 = vrot.slane %v13752_v30, 4  ;;  %v3995_v47 = vpop.f32.mrf.mxu0  ;;  %v5915_v37 = vsel %vm11883_vm12, %v5910_v41, %v5914_v13 }
 0x46b   : > { %v5748_v10 = vmul.f32 %v5229_v61, %v17794_v35  ;;  %v5262_v5 = vmul.f32 %v5229_v61, %v17795_v44  ;;  %v5919_v4 = vor.u32 %v5918_v7, %v5914_v13  ;;  %v4963_v16 = vsel %vm1319_vm0, %v13739_v59, 0.0  ;;  %v4405_v61 = vpop.f32.mrf.mxu2  ;;  %v14237_v59 = vld [vmem:[%s17359_s7 + $0x6] ss:$0 sm:$0xff] }
 0x46c   : > { %17792 = vst [vmem:[#allocation96_spill] sm:$0xff] %v13808_v58  ;;  %v4528_v22 = vadd.f32 %v4492_v63, %v3993_v31  ;;  %v13822_v26 = vpack.c.bf16 %v13808_v58, %v13808_v58  ;;  %v5417_v30 = vsel %vm11768_vm3, %v5409_v3, %v5416_v32  ;;  %v5423_v39 = vshll.u32 %v13780_v36, 16  ;;  %v4990_v3 = vld [vmem:[%s17361_s9 + $0x8] sm:$0xff] }
 0x46d   : > { %v5781_v8 = vpack.c.bf16 %v5748_v10, %v5748_v10  ;;  %v13827_v23 = vpack.c.bf16 %v5262_v5, %v5262_v5  ;;  %v4962_v41 = vadd.f32 %v4961_v21, %v4960_v18  ;;  %v5231_v31 = vunpack.c.l.bf16 %v5197_v24  ;;  %5014 = vmatpush.msra.mxu1 %v4990_v3 }
 0x46e   : > { %v4564_v25 = vadd.f32 %v13574_v9, %v4528_v22  ;;  %6146 = vrot.lane.b32.xlu2 %v5915_v37, %s11433_s28  ;;  %5110 = vrot.lane.b32.xlu1 %v13822_v26, %s11433_s28  ;;  %v3996_v63 = vadd.f32 %v3995_v47, %v3907_v34  ;;  %v5418_v22 = vrot.slane %v13794_v20, 4  ;;  %v5425_v37 = vor.u32 %v5423_v39, %v13814_v6  ;;  %v4989_v20 = vld [vmem:[%s17361_s9] sm:$0xff] }
 0x46f   : > { %5627 = vrot.lane.b32.xlu0 %v5417_v30, %s11433_s28  ;;  %v5922_v13 = vshll.u32 %v5781_v8, 16  ;;  %v5926_v7 = vshrl.u32 %v5781_v8, 16  ;;  %v4964_v35 = vadd.f32 %v4963_v16, %v4962_v41  ;;  %v5920_v36 = vrot.slane %v5919_v4, 4  ;;  %v17797_v8 = vld [vmem:[#allocation36_spill] sm:$0xff]  ;;  %v17798_v4 = vld [vmem:[#allocation39_spill] sm:$0xff]  ;;  %v17799_v39 = vld [vmem:[#allocation38_spill] sm:$0xff]  ;;  %5015 = vmatpush.msra.mxu1 %v4989_v20 }
 0x470   : > { %v4596_v10 = vmax.f32 %v4564_v25, 0.0  ;;  %v5089_v5 = vpop.permute.xlu2 %5088  ;;  %v5196_v46 = vld [vmem:[#allocation2 + $0x78] sm:$0xf]  ;;  %v5429_v18 = vshrl.u32 %v13827_v23, 16  ;;  %v5750_v30 = vmul.f32 %v5231_v31, %v17798_v4  ;;  %v4731_v3 = vunpack.c.l.b16 %v13822_v26 }
 0x471   : > { %5167 = vst.msk [vmem:[#allocation2 + $0x98] sm:$0xf] %vm1779_vm9, %v5089_v5  ;;  %v4494_v32 = vpop.f32.mrf.mxu1  ;;  %v5230_v21 = vunpack.c.l.bf16 %v5196_v46  ;;  %v5924_v47 = vrot.slane %v5922_v13, 5  ;;  %v5928_v25 = vrot.slane %v5926_v7, 4  ;;  %v5264_v46 = vmul.f32 %v5231_v31, %v17799_v39  ;;  %v17800_v13 = vld [vmem:[#allocation37_spill] sm:$0xff] }
 0x472   : > { %v13846_v34 = vmin.f32 %v4596_v10, 6.0  ;;  %v4495_v24 = vadd.f32 %v4494_v32, %v4405_v61  ;;  %v5426_v61 = vsel %vm11768_vm3, %v5418_v22, %v5425_v37  ;;  %v13859_v32 = vpop.f32.mrf.mxu3  ;;  %v11437_v4 = vmov 256.0  }
 0x473   : > { %v5749_v16 = vmul.f32 %v5230_v21, %v17797_v8  ;;  %v5263_v10 = vmul.f32 %v5230_v21, %v17800_v13  ;;  %17801 = vst [vmem:[#allocation126_spill] sm:$0xff] %v13859_v32  ;;  %v13862_v8 = vrot.slane %v5429_v18, 7  ;;  %11319 = vrcp.f32 %v11437_v4  ;;  %v3997_v21 = vpop.f32.mrf.mxu0  ;;  %v4407_v44 = vpop.f32.mrf.mxu2 }
 0x474   : > { %17796 = vst [vmem:[#allocation125_spill] sm:$0xff] %v13846_v34  ;;  %v4529_v41 = vadd.f32 %v4495_v24, %v3996_v63  ;;  %v4660_v5 = vpack.c.bf16 %v13846_v34, %v13846_v34  ;;  %v5925_v63 = vsel %vm11883_vm12, %v5920_v36, %v5924_v47  ;;  %v5432_v26 = vshll.u32 %v13827_v23, 16 }
 0x475   : > { %v5782_v7 = vpack.c.bf16 %v5749_v16, %v5749_v16  ;;  %v5296_v37 = vpack.c.bf16 %v5263_v10, %v5263_v10  ;;  %v5929_v18 = vor.u32 %v5928_v25, %v5924_v47  ;;  %v4965_v16 = vsel %vm1319_vm0, %v13776_v11, 0.0 }
 0x476   : > { %v4565_v31 = vadd.f32 %v13574_v9, %v4529_v41  ;;  %5112 = vrot.lane.b32.xlu2 %v4660_v5, %s11433_s28  ;;  %5629 = vrot.lane.b32.xlu1 %v5426_v61, %s11433_s28  ;;  %v4732_v22 = vunpack.c.l.b16 %v4660_v5  ;;  %v5783_v13 = vpack.c.bf16 %v5750_v30, %v5750_v30  ;;  %v5434_v5 = vor.u32 %v5432_v26, %v13862_v8 }
 0x477   : > { %6148 = vrot.lane.b32.xlu0 %v5925_v63, %s11433_s28  ;;  %v5932_v24 = vshll.u32 %v5782_v7, 16  ;;  %v5936_v20 = vshrl.u32 %v5782_v7, 16  ;;  %v5438_v23 = vshrl.u32 %v5296_v37, 16  ;;  %v3998_v47 = vadd.f32 %v3997_v21, %v13800_v12 }
 0x478   : > { %v4597_v4 = vmax.f32 %v4565_v31, 0.0  ;;  %v5608_v41 = vpop.permute.xlu2 %5607  ;;  %v5085_v32 = vpop.permute.xlu0 %5084  ;;  %v4749_v61 = vpack.c.b16 %v4732_v22, %v4731_v3  ;;  %v4966_v30 = vadd.f32 %v4965_v16, %v4964_v35  ;;  %v5427_v31 = vrot.slane %v13814_v6, 4 }
 0x479   : > { %5703 = vst.msk [vmem:[#allocation2 + $0x10] sm:$0xf] %vm2497_vm1, %v5608_v41  ;;  %v4496_v36 = vpop.f32.mrf.mxu1  ;;  %v5934_v10 = vrot.slane %v5932_v24, 5  ;;  %v5938_v63 = vrot.slane %v5936_v20, 4  ;;  %v13880_v3 = vpop.eup %11319  ;;  %v5930_v22 = vrot.slane %v5929_v18, 4  ;;  %v13883_v41 = vpack.c.bf16 %v5264_v46, %v5264_v46 }
 0x47a   : > { %v13876_v25 = vmin.f32 %v4597_v4, 6.0  ;;  %5165 = vst.msk [vmem:[#allocation2 + $0x88] sm:$0xf] %vm1779_vm9, %v5085_v32  ;;  %v4497_v7 = vadd.f32 %v4496_v36, %v4407_v44  ;;  %11010 = vmatmul.msk.bf16.gmra.mxu3 %vm1319_vm0, %v4749_v61  ;;  %v4967_v26 = vsel %vm1319_vm0, %v13808_v58, 0.0  ;;  %v5942_v21 = vshll.u32 %v5783_v13, 16  ;;  %v13900_v16 = vpop.f32.mrf.mxu3 }
 0x47b   : > { %v5435_v44 = vsel %vm11768_vm3, %v5427_v31, %v5434_v5  ;;  %v5935_v32 = vsel %vm11883_vm12, %v5930_v22, %v5934_v10  ;;  %v5939_v35 = vor.u32 %v5938_v63, %v5934_v10  ;;  %v13893_v20 = vrot.slane %v5438_v23, 7  ;;  %17803 = vst [vmem:[#allocation128_spill] sm:$0xff] %v13900_v16 }
 0x47c   : > { %17802 = vst [vmem:[#allocation127_spill] sm:$0xff] %v13876_v25  ;;  %v4530_v24 = vadd.f32 %v4497_v7, %v3998_v47  ;;  %v4661_v12 = vpack.c.bf16 %v13876_v25, %v13876_v25  ;;  %v4969_v6 = vsel %vm1319_vm0, %v13846_v34, 0.0  ;;  %v5946_v18 = vshrl.u32 %v5783_v13, 16 }
 0x47d   : > { %v4968_v4 = vadd.f32 %v4967_v26, %v4966_v30  ;;  %v5441_v61 = vshll.u32 %v5296_v37, 16  ;;  %v5447_v36 = vshrl.u32 %v13883_v41, 16  ;;  %v4982_v5 = vmul.f32 256.0, %v13880_v3 }
 0x47e   : > { %v4566_v46 = vadd.f32 %v13574_v9, %v4530_v24  ;;  %5631 = vrot.lane.b32.xlu2 %v5435_v44, %s11433_s28  ;;  %6150 = vrot.lane.b32.xlu1 %v5935_v32, %s11433_s28  ;;  %v4971_v10 = vsel %vm1319_vm0, %v13876_v25, 0.0  ;;  %v5940_v13 = vrot.slane %v5939_v35, 4  ;;  %v5944_v7 = vrot.slane %v5942_v21, 5  ;;  %v13912_v24 = vld [vmem:[#allocation2 + $0x98] sm:$0xf] }
 0x47f   : > { %5114 = vrot.lane.b32.xlu0 %v4661_v12, %s11433_s28  ;;  %v4970_v47 = vadd.f32 %v4969_v6, %v4968_v4  ;;  %v5443_v30 = vor.u32 %v5441_v61, %v13893_v20  ;;  %v5948_v26 = vrot.slane %v5946_v18, 4  ;;  %v5436_v32 = vrot.slane %v13862_v8, 4  ;;  %v17805_v4 = vld [vmem:[#allocation41_spill] sm:$0xff] }
 0x480   : > { %v4598_v63 = vmax.f32 %v4566_v46, 0.0  ;;  %v6129_v9 = vpop.permute.xlu2 %6128  ;;  %v5087_v23 = vpop.permute.xlu1 %5086  ;;  %v5449_v46 = vrot.slane %v5447_v36, 7  ;;  %v4983_v6 = vsub.f32 1.0, %v4982_v5  ;;  %v5945_v18 = vsel %vm11883_vm12, %v5940_v13, %v5944_v7 }
 0x481   : > { %6223 = vst.msk [vmem:[#allocation2 + $0x1c] sm:$0xf] %vm2497_vm1, %v6129_v9  ;;  %v5198_v31 = vld [vmem:[#allocation2 + $0x88] sm:$0xf]  ;;  %v4972_v44 = vadd.f32 %v4971_v10, %v4970_v47  ;;  %v5444_v10 = vsel %vm11768_vm3, %v5436_v32, %v5443_v30  ;;  %v4733_v36 = vunpack.c.l.b16 %v4661_v12  ;;  %v5949_v13 = vor.u32 %v5948_v26, %v5944_v7 }
 0x482   : > { %v13909_v22 = vmin.f32 %v4598_v63, 6.0  ;;  %5166 = vst.msk [vmem:[#allocation2 + $0x90] sm:$0xf] %vm1779_vm9, %v5087_v23  ;;  %v5232_v37 = vunpack.c.l.bf16 %v5198_v31  ;;  %v17806_v63 = vld [vmem:[#allocation40_spill] sm:$0xff]  ;;  %v4984_v8 = vmul.f32 %v13880_v3, %v4983_v6  ;;  %v5445_v12 = vrot.slane %v13893_v20, 4  ;;  %v13936_v39 = vpop.f32.mrf.mxu3 }
 0x483   : > { %17809 = vst [vmem:[#allocation130_spill] sm:$0xff] %v13936_v39  ;;  %vm4986_vm5 = vweird.f32 %v13880_v3 }
 0x484   : > { %17804 = vst [vmem:[#allocation129_spill] sm:$0xff] %v13909_v22  ;;  %v4973_v35 = vsel %vm1319_vm0, %v13909_v22, 0.0  ;;  %v4662_v21 = vpack.c.bf16 %v13909_v22, %v13909_v22  ;;  %v5265_v61 = vmul.f32 %v5232_v37, %v17805_v4  ;;  %v5751_v9 = vmul.f32 %v5232_v37, %v17806_v63 }
 0x485   : > { %v4974_v23 = vadd.f32 %v4973_v35, %v4972_v44  ;;  %v5454_v37 = vrot.slane %v5449_v46, 4  ;;  %v5450_v44 = vshll.u32 %v13883_v41, 16 }
 0x486   : > { %6152 = vrot.lane.b32.xlu2 %v5945_v18, %s11433_s28  ;;  %5116 = vrot.lane.b32.xlu1 %v4662_v21, %s11433_s28  ;;  %v4734_v5 = vunpack.c.l.b16 %v4662_v21  ;;  %v5298_v47 = vpack.c.bf16 %v5265_v61, %v5265_v61  ;;  %v5784_v31 = vpack.c.bf16 %v5751_v9, %v5751_v9  ;;  %v17807_v9 = vld [vmem:[#allocation44_spill] sm:$0xff] }
 0x487   : > { %v4975_v16 = vrot.slane %v4974_v23, 4  ;;  %5633 = vrot.lane.b32.xlu0 %v5444_v10, %s11433_s28  ;;  %v17808_v10 = vunpack.c.l.bf16 %v13912_v24 }
 0x488   : > { %v5095_v35 = vpop.permute.xlu2 %5094  ;;  %v4750_v63 = vpack.c.b16 %v4734_v5, %v4733_v36  ;;  %v5456_v30 = vshrl.u32 %v5298_v47, 16  ;;  %v5952_v32 = vshll.u32 %v5784_v31, 16  ;;  %v5956_v61 = vshrl.u32 %v5784_v31, 16 }
 0x489   : > { %v4976_v18 = vadd.f32 %v4975_v16, %v4974_v23  ;;  %5170 = vst.msk [vmem:[#allocation2 + $0xb0] sm:$0xf] %vm1779_vm9, %v5095_v35  ;;  %v5199_v21 = vld [vmem:[#allocation2 + $0x90] sm:$0xf]  ;;  %v5753_v4 = vmul.f32 %v17808_v10, %v17807_v9  ;;  %v5459_v7 = vshll.u32 %v5298_v47, 16  ;;  %v5452_v23 = vor.u32 %v5450_v44, %v5449_v46  ;;  %v17810_v35 = vld [vmem:[#allocation43_spill] sm:$0xff] }
 0x48a   : > { %11011 = vmatmul.msk.bf16.gmra.mxu3 %vm1319_vm0, %v4750_v63  ;;  %v13939_v41 = vrot.slane %v5456_v30, 7  ;;  %v5954_v26 = vrot.slane %v5952_v32, 5  ;;  %v5233_v6 = vunpack.c.l.bf16 %v5199_v21  ;;  %v5950_v36 = vrot.slane %v5949_v13, 4  ;;  %v17811_v10 = vld [vmem:[#allocation42_spill] sm:$0xff]  ;;  %v6256_v13 = vld [vmem:[#allocation2 + $0x10] sm:$0xf] }
 0x48b   : > { %v4977_v16 = vrot.slane %v4976_v18, 2  ;;  %v5958_v5 = vrot.slane %v5956_v61, 4  ;;  %v4985_v31 = vadd.f32 %v13880_v3, %v4984_v8  ;;  %v5453_v63 = vsel %vm11768_vm3, %v5445_v12, %v5452_v23 }
 0x48c   : > { %v5461_v20 = vor.u32 %v5459_v7, %v13939_v41  ;;  %v5752_v54 = vmul.f32 %v5233_v6, %v17810_v35  ;;  %v5266_v9 = vmul.f32 %v5233_v6, %v17811_v10  ;;  %v5786_v47 = vpack.c.bf16 %v5753_v4, %v5753_v4 }
 0x48d   : > { %v4978_v39 = vadd.f32 %v4977_v16, %v4976_v18  ;;  %v5955_v44 = vsel %vm11883_vm12, %v5950_v36, %v5954_v26  ;;  %v5959_v4 = vor.u32 %v5958_v5, %v5954_v26 }
 0x48e   : > { %v5462_v46 = vsel %vm11768_vm3, %v5454_v37, %v5461_v20  ;;  %5635 = vrot.lane.b32.xlu1 %v5453_v63, %s11433_s28  ;;  %v6127_v8 = vpop.permute.xlu1 %6126  ;;  %v5785_v30 = vpack.c.bf16 %v5752_v54, %v5752_v54  ;;  %v5299_v32 = vpack.c.bf16 %v5266_v9, %v5266_v9  ;;  %v4987_v37 = vsel %vm4986_vm5, %v13880_v3, %v4985_v31  ;;  %v17812_v3 = vld [vmem:[#allocation74_spill] sm:$0xff] }
 0x48f   : > { %v4979_v21 = vrot.slane %v4978_v39, 1  ;;  %5637 = vrot.lane.b32.xlu2 %v5462_v46, %s11433_s28  ;;  %6154 = vrot.lane.b32.xlu0 %v5955_v44, %s11433_s28  ;;  %6222 = vst.msk [vmem:[#allocation2 + $0x14] sm:$0xf] %vm2497_vm1, %v6127_v8  ;;  %v13960_v54 = vunpack.c.l.bf16 %v6256_v13  ;;  %v5972_v23 = vshll.u32 %v5786_v47, 16  ;;  %v5960_v5 = vrot.slane %v5959_v4, 4 }
 0x490   : > { %v5091_v18 = vpop.permute.xlu0 %5090  ;;  %v5614_v12 = vpop.permute.xlu2 %5613  ;;  %v5962_v61 = vshll.u32 %v5785_v30, 16  ;;  %v5966_v7 = vshrl.u32 %v5785_v30, 16  ;;  %v5465_v36 = vshrl.u32 %v5299_v32, 16 }
 0x491   : > { %v4980_v6 = vadd.f32 %v4979_v21, %v4978_v39  ;;  %5168 = vst.msk [vmem:[#allocation2 + $0xa0] sm:$0xf] %vm1779_vm9, %v5091_v18  ;;  %v6360_v31 = vmul.f32 %v17812_v3, %v13960_v54  ;;  %v5974_v46 = vrot.slane %v5972_v23, 5  ;;  %v5468_v21 = vshll.u32 %v5299_v32, 16 }
 0x492   : > { %5706 = vst.msk [vmem:[#allocation2 + $0x28] sm:$0xf] %vm2497_vm1, %v5614_v12  ;;  %v5964_v9 = vrot.slane %v5962_v61, 5  ;;  %v5968_v16 = vrot.slane %v5966_v7, 4  ;;  %v13969_v44 = vrot.slane %v5465_v36, 7  ;;  %v5976_v18 = vshrl.u32 %v5786_v47, 16 }
 0x493   : > { %v4988_v26 = vmul.f32 %v4987_v37, %v4980_v6  ;;  %v17813_v7 = vld [vmem:[#allocation47_spill] sm:$0xff]  ;;  %v5463_v36 = vrot.slane %v13939_v41, 4 }
 0x494   : > { %v5969_v20 = vor.u32 %v5968_v16, %v5964_v9  ;;  %v5965_v39 = vsel %vm11883_vm12, %v5960_v5, %v5964_v9  ;;  %v5470_v61 = vor.u32 %v5468_v21, %v13969_v44  ;;  %v17814_v9 = vld [vmem:[#allocation45_spill] sm:$0xff]  ;;  %v17815_v16 = vunpack.c.l.bf16 %v13912_v24  ;;  %v17816_v47 = vld [vmem:[#allocation75_spill] sm:$0xff] }
 0x495   : > { %11012 = vmatmul.msk.f32.vlgmr.msra.gmra.mxu1 %vm1319_vm0, %v4988_v26  ;;  %v6756_v23 = vmul.f32 %v17816_v47, %v13960_v54  ;;  %v5978_v26 = vrot.slane %v5976_v18, 4 }
 0x496   : > { %6156 = vrot.lane.b32.xlu1 %v5965_v39, %s11433_s28  ;;  %v5970_v63 = vrot.slane %v5969_v20, 4  ;;  %v5267_v32 = vmul.f32 %v17815_v16, %v17814_v9  ;;  %v5471_v20 = vsel %vm11768_vm3, %v5463_v36, %v5470_v61 }
 0x497   : > { %6426 = vrot.lane.b32.xlu0 %v6360_v31, %s11433_s28 }
 0x498   : > { %v6135_v8 = vpop.permute.xlu2 %6134  ;;  %v5975_v13 = vsel %vm11883_vm12, %v5970_v63, %v5974_v46  ;;  %v5093_v30 = vpop.permute.xlu1 %5092  ;;  %v5201_v4 = vld [vmem:[#allocation2 + $0xa0] sm:$0xf]  ;;  %v5300_v39 = vpack.c.bf16 %v5267_v32, %v5267_v32 }
 0x499   : > { %v5610_v12 = vpop.permute.xlu0 %5609  ;;  %6226 = vst.msk [vmem:[#allocation2 + $0x34] sm:$0xf] %vm2497_vm1, %v6135_v8  ;;  %6158 = vrot.lane.b32.xlu2 %v5975_v13, %s11433_s28  ;;  %v5235_v37 = vunpack.c.l.bf16 %v5201_v4  ;;  %v5979_v8 = vor.u32 %v5978_v26, %v5974_v46  ;;  %v17817_v4 = vld [vmem:[#allocation46_spill] sm:$0xff] }
 0x49a   : > { %5704 = vst.msk [vmem:[#allocation2 + $0x18] sm:$0xf] %vm2497_vm1, %v5610_v12  ;;  %v5474_v12 = vshrl.u32 %v5300_v39, 16 }
 0x49b   : > { %5169 = vst.msk [vmem:[#allocation2 + $0xa8] sm:$0xf] %vm1779_vm9, %v5093_v30  ;;  %v5754_v6 = vmul.f32 %v5235_v37, %v17813_v7  ;;  %v5268_v18 = vmul.f32 %v5235_v37, %v17817_v4  ;;  %v5980_v16 = vrot.slane %v5979_v8, 4  ;;  %v17821_v4 = vld [vmem:[#allocation51_spill] sm:$0xff] }
 0x49c   : > { %v5476_v36 = vrot.slane %v5474_v12, 7 }
 0x49d   : > { %v13986_v5 = vpack.c.bf16 %v5754_v6, %v5754_v6  ;;  %v5301_v37 = vpack.c.bf16 %v5268_v18, %v5268_v18 }
 0x49e   : > { %6820 = vrot.lane.b32.xlu1 %v6756_v23, %s11433_s28 }
 0x49f   : > { %5639 = vrot.lane.b32.xlu0 %v5471_v20, %s11433_s28  ;;  %v5982_v31 = vshll.u32 %v13986_v5, 16 }
 0x4a0   : > { %v5101_v24 = vpop.permute.xlu2 %5100  ;;  %v5612_v63 = vpop.permute.xlu1 %5611 }
 0x4a1   : > { %v6131_v13 = vpop.permute.xlu0 %6130  ;;  %5173 = vst.msk [vmem:[#allocation2 + $0xc8] sm:$0xf] %vm1779_vm9, %v5101_v24  ;;  %v6257_v41 = vld [vmem:[#allocation2 + $0x18] sm:$0xf]  ;;  %v13997_v21 = vrot.slane %v5982_v31, 5  ;;  %v5472_v24 = vrot.slane %v13969_v44, 4 }
 0x4a2   : > { %6224 = vst.msk [vmem:[#allocation2 + $0x24] sm:$0xf] %vm2497_vm1, %v6131_v13  ;;  %v13995_v30 = vunpack.c.l.bf16 %v6257_v41  ;;  %v5202_v61 = vld [vmem:[#allocation2 + $0xa8] sm:$0xf]  ;;  %v5483_v13 = vshrl.u32 %v5301_v37, 16  ;;  %v17818_v41 = vld [vmem:[#allocation49_spill] sm:$0xff] }
 0x4a3   : > { %5705 = vst.msk [vmem:[#allocation2 + $0x20] sm:$0xf] %vm2497_vm1, %v5612_v63  ;;  %v5985_v32 = vsel %vm11883_vm12, %v5980_v16, %v13997_v21  ;;  %v5236_v23 = vunpack.c.l.bf16 %v5202_v61  ;;  %v5477_v63 = vshll.u32 %v5300_v39, 16  ;;  %v17819_v39 = vld [vmem:[#allocation48_spill] sm:$0xff] }
 0x4a4   : > { %v6757_v6 = vmul.f32 %v17816_v47, %v13995_v30  ;;  %v6361_v46 = vmul.f32 %v17812_v3, %v13995_v30 }
 0x4a5   : > { %v5479_v61 = vor.u32 %v5477_v63, %v5476_v36  ;;  %v5755_v16 = vmul.f32 %v5236_v23, %v17819_v39 }
 0x4a6   : > { %6822 = vrot.lane.b32.xlu2 %v6757_v6, %s11433_s28  ;;  %6428 = vrot.lane.b32.xlu1 %v6361_v46, %s11433_s28  ;;  %v5269_v6 = vmul.f32 %v5236_v23, %v17818_v41 }
 0x4a7   : > { %6160 = vrot.lane.b32.xlu0 %v5985_v32, %s11433_s28  ;;  %v5480_v46 = vsel %vm11768_vm3, %v5472_v24, %v5479_v61  ;;  %v5485_v32 = vrot.slane %v5483_v13, 7  ;;  %v5486_v24 = vshll.u32 %v5301_v37, 16  ;;  %v5203_v13 = vld [vmem:[#allocation2 + $0xb0] sm:$0xf] }
 0x4a8   : > { %v5620_v26 = vpop.permute.xlu2 %5619  ;;  %v6133_v20 = vpop.permute.xlu1 %6132  ;;  %v5237_v37 = vunpack.c.l.bf16 %v5203_v13 }
 0x4a9   : > { %v5097_v31 = vpop.permute.xlu0 %5096  ;;  %5709 = vst.msk [vmem:[#allocation2 + $0x40] sm:$0xf] %vm2497_vm1, %v5620_v26  ;;  %v14026_v26 = vld [vmem:[#allocation2 + $0x24] sm:$0xff]  }
 0x4aa   : > { %5171 = vst.msk [vmem:[#allocation2 + $0xb8] sm:$0xf] %vm1779_vm9, %v5097_v31  ;;  %v6258_v8 = vld [vmem:[#allocation2 + $0x20] sm:$0xf]  ;;  %v5986_v31 = vshrl.u32 %v13986_v5, 16  ;;  %v14033_v23 = vunpack.c.h.bf16 %v14026_v26  ;;  %v5756_v9 = vmul.f32 %v5237_v37, %v17821_v4 }
 0x4ab   : > { %6225 = vst.msk [vmem:[#allocation2 + $0x2c] sm:$0xf] %vm2497_vm1, %v6133_v20  ;;  %v14016_v18 = vunpack.c.l.bf16 %v6258_v8  ;;  %v5302_v20 = vpack.c.bf16 %v5269_v6, %v5269_v6  ;;  %v5488_v6 = vor.u32 %v5486_v24, %v5485_v32  ;;  %v17820_v5 = vld [vmem:[#allocation78_spill] sm:$0xff] }
 0x4ad   : > { %v6362_v12 = vmul.f32 %v17812_v3, %v14016_v18  ;;  %v6758_v44 = vmul.f32 %v17816_v47, %v14016_v18  ;;  %v5492_v41 = vshrl.u32 %v5302_v20, 16  ;;  %v7094_v35 = vmul.f32 %v17820_v5, %v14016_v18 }
 0x4ae   : > { %5641 = vrot.lane.b32.xlu1 %v5480_v46, %s11433_s28  ;;  %v5788_v46 = vpack.c.bf16 %v5755_v16, %v5755_v16  ;;  %v5495_v39 = vshll.u32 %v5302_v20, 16  ;;  %v7095_v20 = vmul.f32 %v17820_v5, %v14033_v23 }
 0x4af   : > { %6430 = vrot.lane.b32.xlu2 %v6362_v12, %s11433_s28  ;;  %6824 = vrot.lane.b32.xlu0 %v6758_v44, %s11433_s28  ;;  %v5988_v12 = vrot.slane %v5986_v31, 4  ;;  %v5481_v44 = vrot.slane %v5476_v36, 4 }
 0x4b0   : > { %v6141_v63 = vpop.permute.xlu2 %6140  ;;  %v5099_v8 = vpop.permute.xlu1 %5098  ;;  %v5992_v7 = vshll.u32 %v5788_v46, 16  ;;  %v5996_v24 = vshrl.u32 %v5788_v46, 16 }
 0x4b1   : > { %v5616_v61 = vpop.permute.xlu0 %5615  ;;  %6229 = vst.msk [vmem:[#allocation2 + $0x4c] sm:$0xf] %vm2497_vm1, %v6141_v63  ;;  %v6363_v63 = vmul.f32 %v17812_v3, %v14033_v23  ;;  %v5489_v16 = vsel %vm11768_vm3, %v5481_v44, %v5488_v6  ;;  %v5989_v36 = vor.u32 %v5988_v12, %v13997_v21  ;;  %v5204_v31 = vld [vmem:[#allocation2 + $0xb8] sm:$0xf]  ;;  %v5490_v21 = vrot.slane %v5485_v32, 4 }
 0x4b2   : > { %5707 = vst.msk [vmem:[#allocation2 + $0x30] sm:$0xf] %vm2497_vm1, %v5616_v61  ;;  %v14044_v61 = vrot.slane %v5492_v41, 7  ;;  %v5994_v6 = vrot.slane %v5992_v7, 5  ;;  %v5998_v41 = vrot.slane %v5996_v24, 4  ;;  %v5238_v46 = vunpack.c.l.bf16 %v5204_v31 }
 0x4b3   : > { %5172 = vst.msk [vmem:[#allocation2 + $0xc0] sm:$0xf] %vm1779_vm9, %v5099_v8  ;;  %v5990_v44 = vrot.slane %v5989_v36, 4  ;;  %v5789_v12 = vpack.c.bf16 %v5756_v9, %v5756_v9 }
 0x4b4   : > { %v5999_v7 = vor.u32 %v5998_v41, %v5994_v6  ;;  %v17823_v41 = vld [vmem:[#allocation50_spill] sm:$0xff] }
 0x4b5   : > { %v6002_v36 = vshll.u32 %v5789_v12, 16  ;;  %v6006_v31 = vshrl.u32 %v5789_v12, 16 }
 0x4b6   : > { %7158 = vrot.lane.b32.xlu1 %v7094_v35, %s11433_s28  ;;  %v5497_v35 = vor.u32 %v5495_v39, %v14044_v61 }
 0x4b7   : > { %5643 = vrot.lane.b32.xlu2 %v5489_v16, %s11433_s28  ;;  %6432 = vrot.lane.b32.xlu0 %v6363_v63, %s11433_s28  ;;  %v5995_v63 = vsel %vm11883_vm12, %v5990_v44, %v5994_v6  ;;  %v17822_v16 = vld [vmem:[#allocation52_spill] sm:$0xff]  ;;  %v5270_v44 = vmul.f32 %v5237_v37, %v17823_v41 }
 0x4b8   : > { %v5107_v8 = vpop.permute.xlu2 %5106  ;;  %v5618_v13 = vpop.permute.xlu1 %5617  ;;  %v5757_v24 = vmul.f32 %v5238_v46, %v17822_v16 }
 0x4b9   : > { %v6137_v10 = vpop.permute.xlu0 %6136  ;;  %5176 = vst.msk [vmem:[#allocation2 + $0xe0] sm:$0xf] %vm1779_vm9, %v5107_v8  ;;  %v6260_v39 = vld [vmem:[#allocation2 + $0x30] sm:$0xf]  ;;  %v5303_v37 = vpack.c.bf16 %v5270_v44, %v5270_v44 }
 0x4ba   : > { %6227 = vst.msk [vmem:[#allocation2 + $0x3c] sm:$0xf] %vm2497_vm1, %v6137_v10  ;;  %v5498_v10 = vsel %vm11768_vm3, %v5490_v21, %v5497_v35  ;;  %v6000_v35 = vrot.slane %v5999_v7, 4  ;;  %v14068_v6 = vpack.c.bf16 %v5757_v24, %v5757_v24  ;;  %v6004_v21 = vrot.slane %v6002_v36, 5 }
 0x4bb   : > { %5708 = vst.msk [vmem:[#allocation2 + $0x38] sm:$0xf] %vm2497_vm1, %v5618_v13  ;;  %v14065_v13 = vunpack.c.l.bf16 %v6260_v39 }
 0x4bc   : > { %v6012_v7 = vshll.u32 %v14068_v6, 16 }
 0x4bd   : > { %v7096_v12 = vmul.f32 %v17820_v5, %v14065_v13 }
 0x4be   : > { %6162 = vrot.lane.b32.xlu1 %v5995_v63, %s11433_s28  ;;  %v6008_v63 = vrot.slane %v6006_v31, 4  ;;  %v14084_v36 = vrot.slane %v6012_v7, 5  ;;  %v17824_v31 = vld [vmem:[#allocation53_spill] sm:$0xff] }
 0x4bf   : > { %7160 = vrot.lane.b32.xlu2 %v7095_v20, %s11433_s28  ;;  %5645 = vrot.lane.b32.xlu0 %v5498_v10, %s11433_s28  ;;  %v6759_v20 = vmul.f32 %v17816_v47, %v14033_v23  ;;  %v6005_v10 = vsel %vm11883_vm12, %v6000_v35, %v6004_v21  ;;  %v5501_v35 = vshrl.u32 %v5303_v37, 16 }
 0x4c0   : > { %v5626_v9 = vpop.permute.xlu2 %5625  ;;  %v6139_v32 = vpop.permute.xlu1 %6138 }
 0x4c1   : > { %v5103_v8 = vpop.permute.xlu0 %5102  ;;  %5712 = vst.msk [vmem:[#allocation2 + $0x58] sm:$0xf] %vm2497_vm1, %v5626_v9  ;;  %v6009_v9 = vor.u32 %v6008_v63, %v6004_v21  ;;  %v6760_v21 = vmul.f32 %v17816_v47, %v14065_v13 }
 0x4c2   : > { %5174 = vst.msk [vmem:[#allocation2 + $0xd0] sm:$0xf] %vm1779_vm9, %v5103_v8  ;;  %v5271_v8 = vmul.f32 %v5238_v46, %v17824_v31  ;;  %v5504_v31 = vshll.u32 %v5303_v37, 16 }
 0x4c3   : > { %6228 = vst.msk [vmem:[#allocation2 + $0x44] sm:$0xf] %vm2497_vm1, %v6139_v32  ;;  %v6010_v44 = vrot.slane %v6009_v9, 4 }
 0x4c4   : > { %v5304_v7 = vpack.c.bf16 %v5271_v8, %v5271_v8  ;;  %v17825_v8 = vld [vmem:[#allocation54_spill] sm:$0xff] }
 0x4c5   : > { %v6015_v63 = vsel %vm11883_vm12, %v6010_v44, %v14084_v36 }
 0x4c6   : > { %6826 = vrot.lane.b32.xlu1 %v6759_v20, %s11433_s28  ;;  %v5205_v20 = vld [vmem:[#allocation2 + $0xc0] sm:$0xf]  ;;  %v5510_v44 = vshrl.u32 %v5304_v7, 16  ;;  %v5513_v4 = vshll.u32 %v5304_v7, 16 }
 0x4c7   : > { %6164 = vrot.lane.b32.xlu2 %v6005_v10, %s11433_s28  ;;  %7162 = vrot.lane.b32.xlu0 %v7096_v12, %s11433_s28  ;;  %v6364_v12 = vmul.f32 %v17812_v3, %v14065_v13  ;;  %v6261_v10 = vld [vmem:[#allocation2 + $0x38] sm:$0xf]  ;;  %v5239_v46 = vunpack.c.l.bf16 %v5205_v20 }
 0x4c8   : > { %v6147_v39 = vpop.permute.xlu2 %6146  ;;  %v5105_v24 = vpop.permute.xlu1 %5104  ;;  %v14099_v41 = vunpack.c.l.bf16 %v6261_v10  ;;  %v5512_v37 = vrot.slane %v5510_v44, 7 }
 0x4c9   : > { %v5622_v32 = vpop.permute.xlu0 %5621  ;;  %6232 = vst.msk [vmem:[#allocation2 + $0x64] sm:$0xf] %vm2497_vm1, %v6147_v39  ;;  %v5503_v39 = vrot.slane %v5501_v35, 7  ;;  %v5272_v20 = vmul.f32 %v5239_v46, %v17825_v8 }
 0x4ca   : > { %5710 = vst.msk [vmem:[#allocation2 + $0x48] sm:$0xf] %vm2497_vm1, %v5622_v32  ;;  %v6365_v35 = vmul.f32 %v17812_v3, %v14099_v41  ;;  %v6761_v10 = vmul.f32 %v17816_v47, %v14099_v41  ;;  %v5515_v44 = vor.u32 %v5513_v4, %v5512_v37 }
 0x4cb   : > { %5175 = vst.msk [vmem:[#allocation2 + $0xd8] sm:$0xf] %vm1779_vm9, %v5105_v24  ;;  %v5305_v16 = vpack.c.bf16 %v5272_v20, %v5272_v20 }
 0x4cd   : > { %v5519_v20 = vshrl.u32 %v5305_v16, 16 }
 0x4ce   : > { %6434 = vrot.lane.b32.xlu1 %v6364_v12, %s11433_s28  ;;  %v5499_v12 = vrot.slane %v14044_v61, 4 }
 0x4cf   : > { %6828 = vrot.lane.b32.xlu2 %v6760_v21, %s11433_s28  ;;  %6166 = vrot.lane.b32.xlu0 %v6015_v63, %s11433_s28  ;;  %v5506_v21 = vor.u32 %v5504_v31, %v5503_v39  ;;  %v6016_v31 = vshrl.u32 %v14068_v6, 16  ;;  %v7097_v6 = vmul.f32 %v17820_v5, %v14099_v41 }
 0x4d0   : > { %v5113_v24 = vpop.permute.xlu2 %5112  ;;  %v5624_v32 = vpop.permute.xlu1 %5623 }
 0x4d1   : > { %v6143_v9 = vpop.permute.xlu0 %6142  ;;  %5179 = vst.msk [vmem:[#allocation2 + $0xf8] sm:$0xf] %vm1779_vm9, %v5113_v24  ;;  %v5507_v63 = vsel %vm11768_vm3, %v5499_v12, %v5506_v21  ;;  %v17826_v24 = vld [vmem:[#allocation55_spill] sm:$0xff] }
 0x4d2   : > { %6230 = vst.msk [vmem:[#allocation2 + $0x54] sm:$0xf] %vm2497_vm1, %v6143_v9  ;;  %v5758_v61 = vmul.f32 %v5239_v46, %v17826_v24  ;;  %v6262_v9 = vld [vmem:[#allocation2 + $0x40] sm:$0xf]  ;;  %v5206_v24 = vld [vmem:[#allocation2 + $0xc8] sm:$0xf] }
 0x4d3   : > { %5711 = vst.msk [vmem:[#allocation2 + $0x50] sm:$0xf] %vm2497_vm1, %v5624_v32  ;;  %v14117_v21 = vunpack.c.l.bf16 %v6262_v9  ;;  %v14128_v9 = vrot.slane %v5519_v20, 7 }
 0x4d4   : > { %v5791_v46 = vpack.c.bf16 %v5758_v61, %v5758_v61 }
 0x4d5   : > { %v6366_v7 = vmul.f32 %v17812_v3, %v14117_v21 }
 0x4d6   : > { %5647 = vrot.lane.b32.xlu1 %v5507_v63, %s11433_s28  ;;  %v5508_v63 = vrot.slane %v5503_v39, 4  ;;  %v6026_v4 = vshrl.u32 %v5791_v46, 16 }
 0x4d7   : > { %6436 = vrot.lane.b32.xlu2 %v6365_v35, %s11433_s28  ;;  %6830 = vrot.lane.b32.xlu0 %v6761_v10, %s11433_s28  ;;  %v6018_v35 = vrot.slane %v6016_v31, 4  ;;  %v5240_v10 = vunpack.c.l.bf16 %v5206_v24 }
 0x4d8   : > { %v5632_v32 = vpop.permute.xlu2 %5631  ;;  %v6145_v8 = vpop.permute.xlu1 %6144  ;;  %v5516_v61 = vsel %vm11768_vm3, %v5508_v63, %v5515_v44  ;;  %v6028_v20 = vrot.slane %v6026_v4, 4  ;;  %v17828_v4 = vld [vmem:[#allocation59_spill] sm:$0xff] }
 0x4d9   : > { %v5109_v12 = vpop.permute.xlu0 %5108  ;;  %5715 = vst.msk [vmem:[#allocation2 + $0x70] sm:$0xf] %vm2497_vm1, %v5632_v32  ;;  %v6022_v32 = vshll.u32 %v5791_v46, 16  ;;  %v6019_v39 = vor.u32 %v6018_v35, %v14084_v36  ;;  %v5759_v33 = vmul.f32 %v5240_v10, %v17827_v2  ;;  %v5517_v36 = vrot.slane %v5512_v37, 4  ;;  %v11388_v2 = vld [vmem:[#allocation2 + $0x8] sm:$0xff]  }
 0x4da   : > { %5177 = vst.msk [vmem:[#allocation2 + $0xe8] sm:$0xf] %vm1779_vm9, %v5109_v12  ;;  %v5522_v12 = vshll.u32 %v5305_v16, 16  ;;  %v7098_v16 = vmul.f32 %v17820_v5, %v14117_v21 }
 0x4db   : > { %6231 = vst.msk [vmem:[#allocation2 + $0x5c] sm:$0xf] %vm2497_vm1, %v6145_v8  ;;  %v5207_v8 = vld [vmem:[#allocation2 + $0xd0] sm:$0xf]  ;;  %v6024_v44 = vrot.slane %v6022_v32, 5  ;;  %v5792_v35 = vpack.c.bf16 %v5759_v33, %v5759_v33 }
 0x4dc   : > { %v5524_v46 = vor.u32 %v5522_v12, %v14128_v9  ;;  %v5241_v63 = vunpack.c.l.bf16 %v5207_v8 }
 0x4dd   : > { %v6029_v32 = vor.u32 %v6028_v20, %v6024_v44  ;;  %v6032_v37 = vshll.u32 %v5792_v35, 16  ;;  %v17829_v20 = vld [vmem:[#allocation57_spill] sm:$0xff] }
 0x4de   : > { %7164 = vrot.lane.b32.xlu1 %v7097_v6, %s11433_s28  ;;  %v6020_v6 = vrot.slane %v6019_v39, 4  ;;  %v5760_v8 = vmul.f32 %v5241_v63, %v17828_v4  ;;  %v6036_v39 = vshrl.u32 %v5792_v35, 16 }
 0x4df   : > { %5649 = vrot.lane.b32.xlu2 %v5516_v61, %s11433_s28  ;;  %6438 = vrot.lane.b32.xlu0 %v6366_v7, %s11433_s28  ;;  %v6263_v61 = vld [vmem:[#allocation2 + $0x48] sm:$0xf] }
 0x4e0   : > { %v6153_v24 = vpop.permute.xlu2 %6152  ;;  %v5111_v31 = vpop.permute.xlu1 %5110  ;;  %v6025_v7 = vsel %vm11883_vm12, %v6020_v6, %v6024_v44  ;;  %v14149_v12 = vunpack.c.l.bf16 %v6263_v61  ;;  %v14152_v44 = vpack.c.bf16 %v5760_v8, %v5760_v8  ;;  %v5273_v6 = vmul.f32 %v5240_v10, %v17829_v20  ;;  %v14169_v61 = vld [vmem:[%s17359_s7] ss:$0 sm:$0xff] }
 0x4e1   : > { %v5628_v25 = vpop.permute.xlu0 %5627  ;;  %6235 = vst.msk [vmem:[#allocation2 + $0x7c] sm:$0xf] %vm2497_vm1, %v6153_v24  ;;  %v6038_v35 = vrot.slane %v6036_v39, 4  ;;  %v6584_v20 = vunpack.c.h.bf16 %v11388_v2 }
 0x4e2   : > { %5713 = vst.msk [vmem:[#allocation2 + $0x60] sm:$0xf] %vm2497_vm1, %v5628_v25  ;;  %v5525_v25 = vsel %vm11768_vm3, %v5517_v36, %v5524_v46  ;;  %v6030_v46 = vrot.slane %v6029_v32, 4  ;;  %v6034_v36 = vrot.slane %v6032_v37, 5  ;;  %v6042_v32 = vshll.u32 %v14152_v44, 16 }
 0x4e3   : > { %5178 = vst.msk [vmem:[#allocation2 + $0xf0] sm:$0xf] %vm1779_vm9, %v5111_v31  ;;  %v5306_v10 = vpack.c.bf16 %v5273_v6, %v5273_v6  ;;  %v17831_v6 = vld [vmem:[#allocation77_spill] sm:$0xff] }
 0x4e4   : > { %v14173_v39 = vrot.slane %v6042_v32, 5  ;;  %v6763_v32 = vmul.f32 %v17816_v47, %v14149_v12 }
 0x4e6   : > { %6168 = vrot.lane.b32.xlu1 %v6025_v7, %s11433_s28  ;;  %v7099_v7 = vmul.f32 %v17820_v5, %v14149_v12 }
 0x4e7   : > { %7166 = vrot.lane.b32.xlu2 %v7098_v16, %s11433_s28  ;;  %5651 = vrot.lane.b32.xlu0 %v5525_v25, %s11433_s28  ;;  %v6762_v16 = vmul.f32 %v17816_v47, %v14117_v21  ;;  %v6035_v25 = vsel %vm11883_vm12, %v6030_v46, %v6034_v36 }
 0x4e8   : > { %v5630_v33 = vpop.permute.xlu1 %5629 }
 0x4e9   : > { %v6149_v24 = vpop.permute.xlu0 %6148  ;;  %v5638_v31 = vpop.permute.xlu2 %5637  ;;  %5714 = vst.msk [vmem:[#allocation2 + $0x68] sm:$0xf] %vm2497_vm1, %v5630_v33  ;;  %v6039_v33 = vor.u32 %v6038_v35, %v6034_v36  ;;  %v14182_v36 = vld [vmem:[%s17359_s7 + $0x2] ss:$0 sm:$0xff]  ;;  %v6367_v35 = vmul.f32 %v17812_v3, %v14149_v12 }
 0x4ea   : > { %6233 = vst.msk [vmem:[#allocation2 + $0x6c] sm:$0xf] %vm2497_vm1, %v6149_v24  ;;  %v17830_v24 = vld [vmem:[#allocation58_spill] sm:$0xff] }
 0x4eb   : > { %5718 = vst.msk [vmem:[#allocation2 + $0x88] sm:$0xf] %vm2497_vm1, %v5638_v31  ;;  %v5274_v31 = vmul.f32 %v5241_v63, %v17830_v24  ;;  %v6040_v63 = vrot.slane %v6039_v33, 4  ;;  %v6617_v33 = vmul.f32 %v14182_v36, %v6584_v20 }
 0x4ed   : > { %v6045_v2 = vsel %vm11883_vm12, %v6040_v63, %v14173_v39 }
 0x4ee   : > { %6832 = vrot.lane.b32.xlu1 %v6762_v16, %s11433_s28  ;;  %v5528_v16 = vshrl.u32 %v5306_v10, 16 }
 0x4ef   : > { %6170 = vrot.lane.b32.xlu2 %v6035_v25, %s11433_s28  ;;  %7168 = vrot.lane.b32.xlu0 %v7099_v7, %s11433_s28  ;;  %v5208_v7 = vld [vmem:[#allocation2 + $0xd8] sm:$0xf]  ;;  %v17832_v25 = vunpack.c.l.bf16 %v17831_v6 }
 0x4f0   : > { %v6151_v8 = vpop.permute.xlu1 %6150  ;;  %v5242_v6 = vunpack.c.l.bf16 %v5208_v7  ;;  %v5526_v7 = vrot.slane %v14128_v9, 4 }
 0x4f1   : > { %v5115_v37 = vpop.permute.xlu0 %5114  ;;  %6234 = vst.msk [vmem:[#allocation2 + $0x74] sm:$0xf] %vm2497_vm1, %v6151_v8  ;;  %v6321_v4 = vmul.f32 %v14169_v61, %v17832_v25  ;;  %v6264_v8 = vld [vmem:[#allocation2 + $0x50] sm:$0xf]  ;;  %v17833_v25 = vld [vmem:[#allocation90_spill] sm:$0xff] }
 0x4f2   : > { %5180 = vst.msk [vmem:[#allocation2 + $0x100] sm:$0xf] %vm1779_vm9, %v5115_v37  ;;  %v5307_v37 = vpack.c.bf16 %v5274_v31, %v5274_v31  ;;  %v14205_v31 = vunpack.c.l.bf16 %v6264_v8 }
 0x4f3   : > { %v6159_v46 = vpop.permute.xlu2 %6158  ;;  %v6519_v24 = vadd.f32 %v17833_v25, %v6321_v4  ;;  %v17834_v4 = vld [vmem:[#allocation60_spill] sm:$0xff] }
 0x4f4   : > { %6238 = vst.msk [vmem:[#allocation2 + $0x94] sm:$0xf] %vm2497_vm1, %v6159_v46  ;;  %v14195_v46 = vrot.slane %v5528_v16, 7  ;;  %v14208_v16 = vld [vmem:[#allocation2 + $0x1c] sm:$0xf]  ;;  %v5537_v20 = vshrl.u32 %v5307_v37, 16  ;;  %v6368_v8 = vmul.f32 %v17812_v3, %v14205_v31 }
 0x4f5   : > { %v6649_v22 = vadd.f32 %v6617_v33, %v6519_v24  ;;  %v6265_v33 = vld [vmem:[#allocation2 + $0x58] sm:$0xf] }
 0x4f6   : > { %6440 = vrot.lane.b32.xlu1 %v6367_v35, %s11433_s28  ;;  %v14202_v35 = vld [vmem:[%s17359_s7 + $0x3] ss:$0 sm:$0xff]  ;;  %v14229_v24 = vrot.slane %v5537_v20, 7  ;;  %v17836_v20 = vunpack.c.l.bf16 %v14208_v16 }
 0x4f7   : > { %6834 = vrot.lane.b32.xlu2 %v6763_v32, %s11433_s28  ;;  %6172 = vrot.lane.b32.xlu0 %v6045_v2, %s11433_s28  ;;  %v5531_v32 = vshll.u32 %v5306_v10, 16  ;;  %v5275_v2 = vmul.f32 %v5242_v6, %v17834_v4  ;;  %v6687_v11 = vmul.f32 %v14202_v35, %v13995_v30  ;;  %v6764_v10 = vmul.f32 %v17816_v47, %v14205_v31 }
 0x4f8   : > { %v5117_v34 = vpop.permute.xlu1 %5116  ;;  %v6690_v0 = vmul.f32 %v14202_v35, %v14065_v13  ;;  %v6693_v40 = vmul.f32 %v14202_v35, %v14149_v12 }
 0x4f9   : > { %v5634_v63 = vpop.permute.xlu0 %5633  ;;  %5181 = vst.msk [vmem:[#allocation2 + $0x108] sm:$0xf] %vm1779_vm9, %v5117_v34  ;;  %v5533_v25 = vor.u32 %v5531_v32, %v14195_v46  ;;  %v17835_v32 = vld [vmem:[#allocation61_spill] sm:$0xff]  ;;  %v5308_v34 = vpack.c.bf16 %v5275_v2, %v5275_v2 }
 0x4fa   : > { %5716 = vst.msk [vmem:[#allocation2 + $0x78] sm:$0xf] %vm2497_vm1, %v5634_v63  ;;  %v14225_v63 = vld [vmem:[%s17359_s7 + $0x5] ss:$0 sm:$0xff]  ;;  %v5761_v4 = vmul.f32 %v5242_v6, %v17835_v32  ;;  %v5540_v32 = vshll.u32 %v5307_v37, 16 }
 0x4fb   : > { %v5534_v9 = vsel %vm11768_vm3, %v5526_v7, %v5533_v25  ;;  %v6719_v7 = vadd.f32 %v6687_v11, %v6649_v22  ;;  %v6046_v25 = vshrl.u32 %v14152_v44, 16  ;;  %v6955_v2 = vmul.f32 %v14225_v63, %v17836_v20  ;;  %v14247_v44 = vld [vmem:[#allocation2 + $0xe0] sm:$0xf] }
 0x4fc   : > { %v14245_v11 = vunpack.c.l.bf16 %v6265_v33  ;;  %v5794_v22 = vpack.c.bf16 %v5761_v4, %v5761_v4  ;;  %v11389_v37 = vld [vmem:[#allocation2] sm:$0xff]   ;;  %v5542_v15 = vor.u32 %v5540_v32, %v14229_v24  ;;  %v5546_v20 = vshrl.u32 %v5308_v34, 16 }
 0x4fd   : > { %v6583_v43 = vunpack.c.h.bf16 %v11389_v37  ;;  %v7025_v4 = vmul.f32 %v14237_v59, %v14033_v23  ;;  %v5535_v33 = vrot.slane %v14195_v46, 4 }
 0x4fe   : > { %5653 = vrot.lane.b32.xlu1 %v5534_v9, %s11433_s28  ;;  %v14239_v9 = vld [vmem:[#allocation2 + $0x14] sm:$0xf]  ;;  %v6369_v32 = vmul.f32 %v17812_v3, %v14245_v11  ;;  %v14271_v46 = vrot.slane %v5546_v20, 7  ;;  %v7031_v42 = vmul.f32 %v14237_v59, %v14245_v11 }
 0x4ff   : > { %6442 = vrot.lane.b32.xlu2 %v6368_v8, %s11433_s28  ;;  %6836 = vrot.lane.b32.xlu0 %v6764_v10, %s11433_s28  ;;  %v17837_v10 = vld [vmem:[#allocation76_spill] sm:$0xff]  ;;  %v6616_v37 = vmul.f32 %v14182_v36, %v6583_v43  ;;  %v17840_v43 = vunpack.c.l.bf16 %v14247_v44 }
 0x500   : > { %v6823_v58 = vpop.permute.xlu2 %6822  ;;  %v5636_v6 = vpop.permute.xlu1 %5635  ;;  %v17838_v27 = vunpack.c.l.bf16 %v17837_v10  ;;  %v7100_v10 = vmul.f32 %v17820_v5, %v14205_v31 }
 0x501   : > { %v6917_v8 = vadd.f32 %v6823_v58, %v6719_v7  ;;  %v6155_v52 = vpop.permute.xlu0 %6154  ;;  %5717 = vst.msk [vmem:[#allocation2 + $0x80] sm:$0xf] %vm2497_vm1, %v5636_v6  ;;  %v6585_v7 = vunpack.c.l.bf16 %v14239_v9  ;;  %v6048_v6 = vrot.slane %v6046_v25, 4  ;;  %v5543_v25 = vsel %vm11768_vm3, %v5535_v33, %v5542_v15  ;;  %v17839_v33 = vld [vmem:[#allocation62_spill] sm:$0xff] }
 0x502   : > { %v6320_v28 = vmul.f32 %v14169_v61, %v17838_v27  ;;  %6236 = vst.msk [vmem:[#allocation2 + $0x84] sm:$0xf] %vm2497_vm1, %v6155_v52  ;;  %v14261_v27 = vunpack.c.l.bf16 %v14026_v26  ;;  %v6322_v15 = vmul.f32 %v14169_v61, %v13960_v54 }
 0x503   : > { %v6987_v58 = vadd.f32 %v6955_v2, %v6917_v8  ;;  %v6052_v2 = vshll.u32 %v5794_v22, 16  ;;  %v6056_v8 = vshrl.u32 %v5794_v22, 16  ;;  %v6049_v52 = vor.u32 %v6048_v6, %v14173_v39  ;;  %v14278_v22 = vld [vmem:[#allocation2 + $0xe8] sm:$0xf] }
 0x504   : > { %v6518_v26 = vadd.f32 %v13327_v29, %v6320_v28  ;;  %v5762_v29 = vmul.f32 %v17840_v43, %v17839_v33  ;;  %v6620_v28 = vmul.f32 %v14182_v36, %v14261_v27  ;;  %v6618_v39 = vmul.f32 %v14182_v36, %v6585_v7 }
 0x505   : > { %v14266_v9 = vadd.f32 %v7025_v4, %v6987_v58  ;;  %v6324_v58 = vmul.f32 %v14169_v61, %v14016_v18  ;;  %v5549_v4 = vshll.u32 %v5308_v34, 16  ;;  %v6054_v6 = vrot.slane %v6052_v2, 5 }
 0x506   : > { %7170 = vrot.lane.b32.xlu1 %v7100_v10, %s11433_s28  ;;  %v5244_v34 = vunpack.c.l.bf16 %v14278_v22  ;;  %v6050_v45 = vrot.slane %v6049_v52, 4  ;;  %v6686_v43 = vmul.f32 %v14202_v35, %v13960_v54  ;;  %v6688_v33 = vmul.f32 %v14202_v35, %v14016_v18 }
 0x507   : > { %5655 = vrot.lane.b32.xlu2 %v5543_v25, %s11433_s28  ;;  %6444 = vrot.lane.b32.xlu0 %v6369_v32, %s11433_s28  ;;  %v6058_v25 = vrot.slane %v6056_v8, 4  ;;  %v5551_v38 = vor.u32 %v5549_v4, %v14271_v46  ;;  %v5544_v2 = vrot.slane %v14229_v24, 4  ;;  %v5795_v8 = vpack.c.bf16 %v5762_v29, %v5762_v29  ;;  %v6266_v4 = vld [vmem:[#allocation2 + $0x60] sm:$0xf] }
 0x508   : > { %v6157_v20 = vpop.permute.xlu1 %6156  ;;  %v6055_v52 = vsel %vm11883_vm12, %v6050_v45, %v6054_v6 }
 0x509   : > { %v6431_v10 = vpop.permute.xlu2 %6430  ;;  %v6427_v32 = vpop.permute.xlu0 %6426  ;;  %6237 = vst.msk [vmem:[#allocation2 + $0x8c] sm:$0xf] %vm2497_vm1, %v6157_v20  ;;  %v6059_v22 = vor.u32 %v6058_v25, %v6054_v6  ;;  %v5552_v54 = vsel %vm11768_vm3, %v5544_v2, %v5551_v38  ;;  %v6062_v45 = vshll.u32 %v5795_v8, 16  ;;  %v6066_v29 = vshrl.u32 %v5795_v8, 16  ;;  %v17842_v25 = vld [vmem:[#allocation63_spill] sm:$0xff] }
 0x50a   : > { %v6522_v55 = vadd.f32 %v6431_v10, %v6324_v58  ;;  %v6520_v19 = vadd.f32 %v6427_v32, %v6322_v15  ;;  %v6648_v58 = vadd.f32 %v6616_v37, %v6518_v26  ;;  %v7101_v15 = vmul.f32 %v17820_v5, %v14245_v11  ;;  %v17841_v10 = vld [vmem:[#allocation64_spill] sm:$0xff] }
 0x50b   : > { %v14315_v6 = vunpack.c.l.bf16 %v6266_v4 }
 0x50c   : > { %v6652_v62 = vadd.f32 %v6620_v28, %v6522_v55  ;;  %v6650_v20 = vadd.f32 %v6618_v39, %v6520_v19  ;;  %v5763_v55 = vmul.f32 %v5244_v34, %v17841_v10  ;;  %v6718_v37 = vadd.f32 %v6686_v43, %v6648_v58 }
 0x50d   : > { %v6954_v39 = vmul.f32 %v14225_v63, %v6585_v7  ;;  %v7024_v7 = vmul.f32 %v14237_v59, %v14016_v18  ;;  %v6064_v58 = vrot.slane %v6062_v45, 5 }
 0x50e   : > { %6174 = vrot.lane.b32.xlu1 %v6055_v52, %s11433_s28  ;;  %v14308_v19 = vadd.f32 %v6688_v33, %v6650_v20  ;;  %v14310_v24 = vadd.f32 %v6690_v0, %v6652_v62  ;;  %v6060_v62 = vrot.slane %v6059_v22, 4  ;;  %v14318_v0 = vpack.c.bf16 %v5763_v55, %v5763_v55 }
 0x50f   : > { %7172 = vrot.lane.b32.xlu2 %v7101_v15, %s11433_s28  ;;  %5657 = vrot.lane.b32.xlu0 %v5552_v54, %s11433_s28  ;;  %v17843_v20 = vunpack.c.l.bf16 %v14247_v44  ;;  %v6765_v15 = vmul.f32 %v17816_v47, %v14245_v11  ;;  %v6068_v52 = vrot.slane %v6066_v29, 4  ;;  %v7102_v22 = vmul.f32 %v17820_v5, %v14315_v6 }
 0x510   : > { %v6821_v26 = vpop.permute.xlu1 %6820  ;;  %v6065_v44 = vsel %vm11883_vm12, %v6060_v62, %v6064_v58  ;;  %v6072_v55 = vshll.u32 %v14318_v0, 16 }
 0x511   : > { %v5644_v28 = vpop.permute.xlu2 %5643  ;;  %v5640_v32 = vpop.permute.xlu0 %5639  ;;  %v6916_v38 = vadd.f32 %v6821_v26, %v6718_v37  ;;  %v5276_v43 = vmul.f32 %v17843_v20, %v17842_v25  ;;  %v6323_v37 = vmul.f32 %v14169_v61, %v13995_v30  ;;  %v6069_v45 = vor.u32 %v6068_v52, %v6064_v58  ;;  %v5211_v30 = vld [vmem:[#allocation2 + $0xf0] sm:$0xf] }
 0x512   : > { %5721 = vst.msk [vmem:[#allocation2 + $0xa0] sm:$0xf] %vm2497_vm1, %v5644_v28  ;;  %v5017_v33 = vpop.f32.mrf.mxu1  ;;  %v14347_v20 = vrot.slane %v6072_v55, 5 }
 0x513   : > { %5719 = vst.msk [vmem:[#allocation2 + $0x90] sm:$0xf] %vm2497_vm1, %v5640_v32  ;;  %v6986_v2 = vadd.f32 %v6954_v39, %v6916_v38  ;;  %v5020_v8 = vmax.f32 %v5017_v33, 0.0  ;;  %v5309_v18 = vpack.c.bf16 %v5276_v43, %v5276_v43  ;;  %v17844_v32 = vunpack.c.l.bf16 %v14208_v16  ;;  %v17845_v33 = vld [vmem:[#allocation65_spill] sm:$0xff] }
 0x514   : > { %v5277_v62 = vmul.f32 %v5244_v34, %v17845_v33  ;;  %v6070_v58 = vrot.slane %v6069_v45, 4  ;;  %v6766_v16 = vmul.f32 %v17816_v47, %v14315_v6  ;;  %v7028_v33 = vmul.f32 %v14237_v59, %v14117_v21 }
 0x515   : > { %v5021_v54 = vmin.f32 %v5020_v8, 6.0  ;;  %v14330_v4 = vadd.f32 %v7024_v7, %v6986_v2  ;;  %v6619_v39 = vmul.f32 %v14182_v36, %v17844_v32  ;;  %v5555_v43 = vshrl.u32 %v5309_v18, 16 }
 0x516   : > { %6838 = vrot.lane.b32.xlu1 %v6765_v15, %s11433_s28  ;;  %v6689_v8 = vmul.f32 %v14202_v35, %v14033_v23  ;;  %v6370_v7 = vmul.f32 %v17812_v3, %v14315_v6  ;;  %v5310_v15 = vpack.c.bf16 %v5277_v62, %v5277_v62  ;;  %v6075_v34 = vsel %vm11883_vm12, %v6070_v58, %v14347_v20 }
 0x517   : > { %6176 = vrot.lane.b32.xlu2 %v6065_v44, %s11433_s28  ;;  %7174 = vrot.lane.b32.xlu0 %v7102_v22, %s11433_s28  ;;  %v5557_v22 = vrot.slane %v5555_v43, 7  ;;  %v5245_v44 = vunpack.c.l.bf16 %v5211_v30  ;;  %v6956_v62 = vmul.f32 %v14225_v63, %v14261_v27  ;;  %v17846_v30 = vld [vmem:[#allocation67_spill] sm:$0xff] }
 0x518   : > { %11014 = vmatmul.msk.f32.vlgmr.msrb.gmra.mxu2 %vm5023_vm10, %v5021_v54  ;;  %v6429_v26 = vpop.permute.xlu1 %6428  ;;  %v6267_v54 = vld [vmem:[#allocation2 + $0x68] sm:$0xf] }
 0x519   : > { %v14340_v29 = vpop.permute.xlu2 %7160  ;;  %v6161_v28 = vpop.permute.xlu0 %6160  ;;  %v6521_v38 = vadd.f32 %v6429_v26, %v6323_v37  ;;  %v5553_v37 = vrot.slane %v14271_v46, 4  ;;  %v5558_v26 = vshll.u32 %v5309_v18, 16  ;;  %v14365_v32 = vunpack.c.l.bf16 %v6267_v54  ;;  %v6555_v46 = vld [vmem:[#allocation2 + $0x2c] sm:$0xf] }
 0x51a   : > { %6239 = vst.msk [vmem:[#allocation2 + $0x9c] sm:$0xf] %vm2497_vm1, %v6161_v28 }
 0x51b   : > { %v6651_v2 = vadd.f32 %v6619_v39, %v6521_v38  ;;  %v6556_v39 = vld [vmem:[#allocation2 + $0x34] sm:$0xf]  ;;  %v5564_v38 = vshrl.u32 %v5310_v15, 16  ;;  %v6767_v54 = vmul.f32 %v17816_v47, %v14365_v32  ;;  %v7103_v10 = vmul.f32 %v17820_v5, %v14365_v32 }
 0x51c   : > { %v14374_v58 = vunpack.c.l.bf16 %v6556_v39 }
 0x51d   : > { %v14355_v52 = vadd.f32 %v6689_v8, %v6651_v2  ;;  %v5560_v2 = vor.u32 %v5558_v26, %v5557_v22  ;;  %v5278_v8 = vmul.f32 %v5245_v44, %v17846_v30  ;;  %v5562_v30 = vrot.slane %v5557_v22, 4 }
 0x51e   : > { %6446 = vrot.lane.b32.xlu1 %v6370_v7, %s11433_s28 }
 0x51f   : > { %6840 = vrot.lane.b32.xlu2 %v6766_v16, %s11433_s28  ;;  %6178 = vrot.lane.b32.xlu0 %v6075_v34, %s11433_s28  ;;  %v5561_v7 = vsel %vm11768_vm3, %v5553_v37, %v5560_v2  ;;  %v7026_v16 = vmul.f32 %v14237_v59, %v14065_v13  ;;  %v6371_v34 = vmul.f32 %v17812_v3, %v14365_v32  ;;  %v6268_v37 = vld [vmem:[#allocation2 + $0x70] sm:$0xf] }
 0x520   : > { %v5642_v55 = vpop.permute.xlu1 %5641 }
 0x521   : > { %v6165_v45 = vpop.permute.xlu2 %6164  ;;  %v6825_v28 = vpop.permute.xlu0 %6824  ;;  %5720 = vst.msk [vmem:[#allocation2 + $0x98] sm:$0xf] %vm2497_vm1, %v5642_v55  ;;  %v17847_v55 = vld [vmem:[#allocation66_spill] sm:$0xff] }
 0x522   : > { %6241 = vst.msk [vmem:[#allocation2 + $0xac] sm:$0xf] %vm2497_vm1, %v6165_v45  ;;  %v6918_v43 = vadd.f32 %v6825_v28, %v14308_v19  ;;  %v14382_v19 = vrot.slane %v5564_v38, 7  ;;  %v5764_v26 = vmul.f32 %v5245_v44, %v17847_v55  ;;  %v14385_v45 = vunpack.c.l.bf16 %v6555_v46 }
 0x523   : > { %v5311_v28 = vpack.c.bf16 %v5278_v8, %v5278_v8  ;;  %v6325_v38 = vmul.f32 %v14169_v61, %v14033_v23  ;;  %v6958_v44 = vmul.f32 %v14225_v63, %v14374_v58 }
 0x524   : > { %v6988_v18 = vadd.f32 %v6956_v62, %v6918_v43  ;;  %v5567_v62 = vshll.u32 %v5310_v15, 16  ;;  %v6076_v43 = vshrl.u32 %v14318_v0, 16  ;;  %v6621_v23 = vmul.f32 %v14182_v36, %v14385_v45 }
 0x525   : > { %v5573_v55 = vshrl.u32 %v5311_v28, 16 }
 0x526   : > { %5659 = vrot.lane.b32.xlu1 %v5561_v7, %s11433_s28  ;;  %v14388_v39 = vadd.f32 %v7026_v16, %v6988_v18  ;;  %v5569_v8 = vor.u32 %v5567_v62, %v14382_v19  ;;  %v14400_v18 = vunpack.c.l.bf16 %v6268_v37  ;;  %v5797_v16 = vpack.c.bf16 %v5764_v26, %v5764_v26 }
 0x527   : > { %6448 = vrot.lane.b32.xlu2 %v6371_v34, %s11433_s28  ;;  %6842 = vrot.lane.b32.xlu0 %v6767_v54, %s11433_s28  ;;  %v14402_v34 = vld [vmem:[#allocation2 + $0xf8] sm:$0xf]  ;;  %v6557_v54 = vld [vmem:[#allocation2 + $0x3c] sm:$0xf]  ;;  %v6078_v25 = vrot.slane %v6076_v43, 4  ;;  %v6691_v37 = vmul.f32 %v14202_v35, %v14099_v41 }
 0x528   : > { %v14395_v2 = vpop.permute.xlu1 %7158  ;;  %v6372_v22 = vmul.f32 %v17812_v3, %v14400_v18  ;;  %v14418_v43 = vunpack.c.l.bf16 %v6557_v54 }
 0x529   : > { %v6829_v46 = vpop.permute.xlu2 %6828  ;;  %v6433_v7 = vpop.permute.xlu0 %6432 }
 0x52a   : > { %v6920_v15 = vadd.f32 %v6829_v46, %v14310_v24  ;;  %v6523_v0 = vadd.f32 %v6433_v7, %v6325_v38  ;;  %v5246_v24 = vunpack.c.l.bf16 %v14402_v34  ;;  %v5570_v38 = vsel %vm11768_vm3, %v5562_v30, %v5569_v8  ;;  %v14430_v8 = vld [vmem:[#allocation2 + $0x100] sm:$0xf] }
 0x52b   : > { %v6082_v46 = vshll.u32 %v5797_v16, 16  ;;  %v14421_v7 = vrot.slane %v5573_v55, 7  ;;  %v6079_v30 = vor.u32 %v6078_v25, %v14347_v20  ;;  %v6327_v34 = vmul.f32 %v14169_v61, %v14099_v41  ;;  %v17848_v55 = vld [vmem:[#allocation68_spill] sm:$0xff] }
 0x52c   : > { %v6990_v62 = vadd.f32 %v6958_v44, %v6920_v15  ;;  %v6653_v26 = vadd.f32 %v6621_v23, %v6523_v0  ;;  %v6086_v44 = vshrl.u32 %v5797_v16, 16  ;;  %v5765_v54 = vmul.f32 %v5246_v24, %v17848_v55 }
 0x52d   : > { %v5571_v55 = vrot.slane %v14382_v19, 4 }
 0x52e   : > { %7176 = vrot.lane.b32.xlu1 %v7103_v10, %s11433_s28  ;;  %v14423_v15 = vadd.f32 %v7028_v33, %v6990_v62  ;;  %v14425_v0 = vadd.f32 %v6691_v37, %v6653_v26  ;;  %v5576_v10 = vshll.u32 %v5311_v28, 16  ;;  %v6623_v33 = vmul.f32 %v14182_v36, %v14418_v43 }
 0x52f   : > { %5661 = vrot.lane.b32.xlu2 %v5570_v38, %s11433_s28  ;;  %6450 = vrot.lane.b32.xlu0 %v6372_v22, %s11433_s28  ;;  %v6084_v62 = vrot.slane %v6082_v46, 5  ;;  %v6088_v20 = vrot.slane %v6086_v44, 4  ;;  %v5247_v38 = vunpack.c.l.bf16 %v14430_v8  ;;  %v6080_v22 = vrot.slane %v6079_v30, 4  ;;  %v6269_v30 = vld [vmem:[#allocation2 + $0x78] sm:$0xf] }
 0x530   : > { %v6163_v23 = vpop.permute.xlu1 %6162  ;;  %v5578_v25 = vor.u32 %v5576_v10, %v14421_v7  ;;  %v5798_v57 = vpack.c.bf16 %v5765_v54, %v5765_v54 }
 0x531   : > { %v6437_v16 = vpop.permute.xlu2 %6436  ;;  %v5646_v37 = vpop.permute.xlu0 %5645  ;;  %6240 = vst.msk [vmem:[#allocation2 + $0xa4] sm:$0xf] %vm2497_vm1, %v6163_v23  ;;  %v7104_v23 = vmul.f32 %v17820_v5, %v14400_v18  ;;  %v6085_v46 = vsel %vm11883_vm12, %v6080_v22, %v6084_v62  ;;  %v6089_v8 = vor.u32 %v6088_v20, %v6084_v62  ;;  %v6957_v22 = vmul.f32 %v14225_v63, %v14385_v45  ;;  %v17850_v20 = vld [vmem:[#allocation69_spill] sm:$0xff] }
 0x532   : > { %v6525_v26 = vadd.f32 %v6437_v16, %v6327_v34  ;;  %5722 = vst.msk [vmem:[#allocation2 + $0xa8] sm:$0xf] %vm2497_vm1, %v5646_v37  ;;  %v5579_v44 = vsel %vm11768_vm3, %v5571_v55, %v5578_v25  ;;  %v17849_v34 = vld [vmem:[#allocation70_spill] sm:$0xff]  ;;  %v6096_v16 = vshrl.u32 %v5798_v57, 16  ;;  %v14461_v62 = vunpack.c.l.bf16 %v6269_v30 }
 0x533   : > { %v5766_v10 = vmul.f32 %v5247_v38, %v17849_v34 }
 0x534   : > { %v6655_v28 = vadd.f32 %v6623_v33, %v6525_v26  ;;  %v6092_v33 = vshll.u32 %v5798_v57, 16  ;;  %v7027_v57 = vmul.f32 %v14237_v59, %v14099_v41  ;;  %v6098_v34 = vrot.slane %v6096_v16, 4 }
 0x535   : > { %v14464_v25 = vpack.c.bf16 %v5766_v10, %v5766_v10  ;;  %v6326_v41 = vmul.f32 %v14169_v61, %v14065_v13  ;;  %v6692_v13 = vmul.f32 %v14202_v35, %v14117_v21 }
 0x536   : > { %6180 = vrot.lane.b32.xlu1 %v6085_v46, %s11433_s28  ;;  %v14452_v19 = vadd.f32 %v6693_v40, %v6655_v28  ;;  %v6090_v40 = vrot.slane %v6089_v8, 4  ;;  %v5279_v28 = vmul.f32 %v5246_v24, %v17850_v20  ;;  %v6094_v46 = vrot.slane %v6092_v33, 5 }
 0x537   : > { %7178 = vrot.lane.b32.xlu2 %v7104_v23, %s11433_s28  ;;  %5663 = vrot.lane.b32.xlu0 %v5579_v44, %s11433_s28  ;;  %v6768_v44 = vmul.f32 %v17816_v47, %v14400_v18  ;;  %v6102_v24 = vshll.u32 %v14464_v25, 16  ;;  %v6106_v53 = vshrl.u32 %v14464_v25, 16 }
 0x538   : > { %v6827_v54 = vpop.permute.xlu1 %6826  ;;  %v6095_v8 = vsel %vm11883_vm12, %v6090_v40, %v6094_v46  ;;  %v5312_v10 = vpack.c.bf16 %v5279_v28, %v5279_v28  ;;  %v6099_v33 = vor.u32 %v6098_v34, %v6094_v46  ;;  %v17851_v40 = vld [vmem:[#allocation71_spill] sm:$0xff]  ;;  %v6373_v34 = vmul.f32 %v17812_v3, %v14461_v62 }
 0x539   : > { %v5650_v37 = vpop.permute.xlu2 %5649  ;;  %v14456_v26 = vpop.permute.xlu0 %7162  ;;  %v6919_v55 = vadd.f32 %v6827_v54, %v14355_v52  ;;  %v7105_v52 = vmul.f32 %v17820_v5, %v14461_v62  ;;  %v14489_v28 = vrot.slane %v6102_v24, 5  ;;  %v6270_v24 = vld [vmem:[#allocation2 + $0x80] sm:$0xf]  ;;  %v6108_v51 = vrot.slane %v6106_v53, 4 }
 0x53a   : > { %5724 = vst.msk [vmem:[#allocation2 + $0xb8] sm:$0xf] %vm2497_vm1, %v5650_v37  ;;  %v6100_v46 = vrot.slane %v6099_v33, 4 }
 0x53b   : > { %v6989_v23 = vadd.f32 %v6957_v22, %v6919_v55  ;;  %v6622_v22 = vmul.f32 %v14182_v36, %v14374_v58 }
 0x53d   : > { %v14473_v30 = vadd.f32 %v7027_v57, %v6989_v23  ;;  %v5280_v23 = vmul.f32 %v5247_v38, %v17851_v40  ;;  %v5582_v57 = vshrl.u32 %v5312_v10, 16  ;;  %v6105_v38 = vsel %vm11883_vm12, %v6100_v46, %v14489_v28 }
 0x53e   : > { %6844 = vrot.lane.b32.xlu1 %v6768_v44, %s11433_s28  ;;  %v5585_v40 = vshll.u32 %v5312_v10, 16 }
 0x53f   : > { %6182 = vrot.lane.b32.xlu2 %v6095_v8, %s11433_s28  ;;  %7180 = vrot.lane.b32.xlu0 %v7105_v52, %s11433_s28  ;;  %v5214_v52 = vld [vmem:[#allocation2 + $0x108] sm:$0xf]  ;;  %v6769_v8 = vmul.f32 %v17816_v47, %v14461_v62 }
 0x540   : > { %v6435_v54 = vpop.permute.xlu1 %6434 }
 0x541   : > { %v14483_v16 = vpop.permute.xlu2 %7166  ;;  %v6167_v37 = vpop.permute.xlu0 %6166  ;;  %v6524_v55 = vadd.f32 %v6435_v54, %v6326_v41  ;;  %v5313_v41 = vpack.c.bf16 %v5280_v23, %v5280_v23 }
 0x542   : > { %6242 = vst.msk [vmem:[#allocation2 + $0xb4] sm:$0xf] %vm2497_vm1, %v6167_v37  ;;  %v5584_v37 = vrot.slane %v5582_v57, 7  ;;  %v6959_v57 = vmul.f32 %v14225_v63, %v14418_v43 }
 0x543   : > { %v6654_v44 = vadd.f32 %v6622_v22, %v6524_v55  ;;  %v5248_v22 = vunpack.c.l.bf16 %v5214_v52  ;;  %v5580_v55 = vrot.slane %v14421_v7, 4  ;;  %v5591_v20 = vshrl.u32 %v5313_v41, 16  ;;  %v6558_v7 = vld [vmem:[#allocation2 + $0x44] sm:$0xf] }
 0x544   : > { %v5587_v46 = vor.u32 %v5585_v40, %v5584_v37  ;;  %v17853_v40 = vld [vmem:[#allocation73_spill] sm:$0xff]  ;;  %v5589_v1 = vrot.slane %v5584_v37, 4 }
 0x545   : > { %v14497_v54 = vadd.f32 %v6692_v13, %v6654_v44  ;;  %v14507_v13 = vunpack.c.l.bf16 %v6270_v24  ;;  %v7029_v24 = vmul.f32 %v14237_v59, %v14149_v12 }
 0x546   : > { %6452 = vrot.lane.b32.xlu1 %v6373_v34, %s11433_s28  ;;  %v6559_v34 = vld [vmem:[#allocation2 + $0x4c] sm:$0xf]  ;;  %v5588_v14 = vsel %vm11768_vm3, %v5580_v55, %v5587_v46  ;;  %v6271_v55 = vld [vmem:[#allocation2 + $0x88] sm:$0xf]  ;;  %v5594_v46 = vshll.u32 %v5313_v41, 16 }
 0x547   : > { %6846 = vrot.lane.b32.xlu2 %v6769_v8, %s11433_s28  ;;  %6184 = vrot.lane.b32.xlu0 %v6105_v38, %s11433_s28  ;;  %v17852_v8 = vld [vmem:[#allocation7_spill] sm:$0xff]  ;;  %v6770_v17 = vmul.f32 %v17816_v47, %v14507_v13 }
 0x548   : > { %v5648_v33 = vpop.permute.xlu1 %5647  ;;  %v5281_v38 = vmul.f32 %v5248_v22, %v17852_v8  ;;  %v14527_v8 = vunpack.c.l.bf16 %v6558_v7 }
 0x549   : > { %v6171_v23 = vpop.permute.xlu2 %6170  ;;  %v6831_v44 = vpop.permute.xlu0 %6830  ;;  %5723 = vst.msk [vmem:[#allocation2 + $0xb0] sm:$0xf] %vm2497_vm1, %v5648_v33  ;;  %v14516_v33 = vunpack.c.l.bf16 %v6559_v34 }
 0x54a   : > { %6244 = vst.msk [vmem:[#allocation2 + $0xc4] sm:$0xf] %vm2497_vm1, %v6171_v23  ;;  %v6921_v52 = vadd.f32 %v6831_v44, %v14425_v0  ;;  %v6374_v23 = vmul.f32 %v17812_v3, %v14507_v13  ;;  %v14524_v0 = vrot.slane %v5591_v20, 7  ;;  %v5767_v44 = vmul.f32 %v5248_v22, %v17853_v40 }
 0x54b   : > { %v5314_v34 = vpack.c.bf16 %v5281_v38, %v5281_v38  ;;  %v6961_v20 = vmul.f32 %v14225_v63, %v14516_v33  ;;  %v6328_v22 = vmul.f32 %v14169_v61, %v14117_v21  ;;  %v14542_v40 = vunpack.c.l.bf16 %v6271_v55 }
 0x54c   : > { %v6991_v10 = vadd.f32 %v6959_v57, %v6921_v52  ;;  %v5215_v52 = vld [vmem:[#allocation2 + $0x110] sm:$0x1]  ;;  %v6624_v49 = vmul.f32 %v14182_v36, %v14527_v8 }
 0x54d   : > { %v5600_v48 = vshrl.u32 %v5314_v34, 16  ;;  %v6375_v37 = vmul.f32 %v17812_v3, %v14542_v40 }
 0x54e   : > { %5665 = vrot.lane.b32.xlu1 %v5588_v14, %s11433_s28  ;;  %v14530_v57 = vadd.f32 %v7029_v24, %v6991_v10  ;;  %v6560_v14 = vld [vmem:[#allocation2 + $0x54] sm:$0xf]  ;;  %v5596_v24 = vor.u32 %v5594_v46, %v14524_v0 }
 0x54f   : > { %6454 = vrot.lane.b32.xlu2 %v6374_v23, %s11433_s28  ;;  %6848 = vrot.lane.b32.xlu0 %v6770_v17, %s11433_s28  ;;  %v5800_v23 = vpack.c.bf16 %v5767_v44, %v5767_v44  ;;  %v5735_v17 = vunpack.c.l.bf16 %v5215_v52  ;;  %v14547_v21 = vunpack.c.l.bf16 %v6560_v14  ;;  %v7106_v44 = vmul.f32 %v17820_v5, %v14507_v13 }
 0x550   : > { %v14539_v7 = vpop.permute.xlu1 %7164  ;;  %v5597_v55 = vsel %vm11768_vm3, %v5589_v1, %v5596_v24  ;;  %v5602_v14 = vrot.slane %v5600_v48, 7  ;;  %v6109_v1 = vor.u32 %v6108_v51, %v14489_v28 }
 0x551   : > { %v6835_v38 = vpop.permute.xlu2 %6834  ;;  %v6439_v10 = vpop.permute.xlu0 %6438  ;;  %v6112_v52 = vshll.u32 %v5800_v23, 16 }
 0x552   : > { %v6923_v41 = vadd.f32 %v6835_v38, %v14452_v19  ;;  %v6526_v25 = vadd.f32 %v6439_v10, %v6328_v22  ;;  %v6694_v19 = vmul.f32 %v14202_v35, %v14205_v31  ;;  %v17854_v22 = vld [vmem:[#allocation72_spill] sm:$0xff]  ;;  %v6330_v10 = vmul.f32 %v14169_v61, %v14205_v31 }
 0x553   : > { %v5768_v53 = vmul.f32 %v5735_v17, %v17854_v22  ;;  %v6626_v17 = vmul.f32 %v14182_v36, %v14547_v21  ;;  %v6110_v51 = vrot.slane %v6109_v1, 4 }
 0x554   : > { %v6993_v50 = vadd.f32 %v6961_v20, %v6923_v41  ;;  %v6656_v46 = vadd.f32 %v6624_v49, %v6526_v25  ;;  %v6116_v20 = vshrl.u32 %v5800_v23, 16  ;;  %v5603_v41 = vshll.u32 %v5314_v34, 16 }
 0x555   : > { %v6696_v34 = vmul.f32 %v14202_v35, %v14315_v6 }
 0x556   : > { %7182 = vrot.lane.b32.xlu1 %v7106_v44, %s11433_s28  ;;  %v14561_v49 = vadd.f32 %v7031_v42, %v6993_v50  ;;  %v14563_v38 = vadd.f32 %v6694_v19, %v6656_v46  ;;  %v6114_v50 = vrot.slane %v6112_v52, 5  ;;  %v5605_v25 = vor.u32 %v5603_v41, %v5602_v14 }
 0x557   : > { %5667 = vrot.lane.b32.xlu2 %v5597_v55, %s11433_s28  ;;  %6456 = vrot.lane.b32.xlu0 %v6375_v37, %s11433_s28  ;;  %v5801_v46 = vpack.c.bf16 %v5768_v53, %v5768_v53  ;;  %v6118_v44 = vrot.slane %v6116_v20, 4  ;;  %v5598_v19 = vrot.slane %v14524_v0, 4  ;;  %v7107_v55 = vmul.f32 %v17820_v5, %v14542_v40  ;;  %v6272_v20 = vld [vmem:[#allocation2 + $0x90] sm:$0xf] }
 0x558   : > { %v6169_v24 = vpop.permute.xlu1 %6168  ;;  %v6115_v37 = vsel %vm11883_vm12, %v6110_v51, %v6114_v50  ;;  %v6960_v41 = vmul.f32 %v14225_v63, %v14527_v8 }
 0x559   : > { %v6443_v48 = vpop.permute.xlu2 %6442  ;;  %v5652_v23 = vpop.permute.xlu0 %5651  ;;  %6243 = vst.msk [vmem:[#allocation2 + $0xbc] sm:$0xf] %vm2497_vm1, %v6169_v24  ;;  %v5606_v52 = vsel %vm11768_vm3, %v5598_v19, %v5605_v25  ;;  %v6119_v53 = vor.u32 %v6118_v44, %v6114_v50  ;;  %v6122_v14 = vshll.u32 %v5801_v46, 16  ;;  %v7030_v25 = vmul.f32 %v14237_v59, %v14205_v31 }
 0x55a   : > { %v6528_v42 = vadd.f32 %v6443_v48, %v6330_v10  ;;  %5725 = vst.msk [vmem:[#allocation2 + $0xc0] sm:$0xf] %vm2497_vm1, %v5652_v23  ;;  %v14593_v48 = vunpack.c.l.bf16 %v6272_v20  ;;  %v6771_v46 = vmul.f32 %v17816_v47, %v14542_v40  ;;  %v6329_v31 = vmul.f32 %v14169_v61, %v14149_v12 }
 0x55b   : > { %v6120_v23 = vrot.slane %v6119_v53, 4  ;;  %v6124_v50 = vrot.slane %v6122_v14, 5  ;;  %v6695_v20 = vmul.f32 %v14202_v35, %v14245_v11 }
 0x55c   : > { %v6658_v28 = vadd.f32 %v6626_v17, %v6528_v42  ;;  %v7108_v44 = vmul.f32 %v17820_v5, %v14593_v48  ;;  %v6772_v12 = vmul.f32 %v17816_v47, %v14593_v48 }
 0x55e   : > { %6186 = vrot.lane.b32.xlu1 %v6115_v37, %s11433_s28  ;;  %v14584_v1 = vadd.f32 %v6696_v34, %v6658_v28  ;;  %v6273_v28 = vld [vmem:[#allocation2 + $0x98] sm:$0xf]  ;;  %v6625_v37 = vmul.f32 %v14182_v36, %v14516_v33 }
 0x55f   : > { %7184 = vrot.lane.b32.xlu2 %v7107_v55, %s11433_s28  ;;  %5669 = vrot.lane.b32.xlu0 %v5606_v52, %s11433_s28  ;;  %v14615_v53 = vunpack.c.l.bf16 %v6273_v28  ;;  %v6562_v28 = vld [vmem:[#allocation2 + $0x64] sm:$0xf] }
 0x560   : > { %v6833_v0 = vpop.permute.xlu1 %6832 }
 0x561   : > { %v5656_v10 = vpop.permute.xlu2 %5655  ;;  %v14588_v24 = vpop.permute.xlu0 %7168  ;;  %v6922_v17 = vadd.f32 %v6833_v0, %v14497_v54  ;;  %v6125_v54 = vsel %vm11883_vm12, %v6120_v23, %v6124_v50  ;;  %v6376_v0 = vmul.f32 %v17812_v3, %v14593_v48 }
 0x562   : > { %5727 = vst.msk [vmem:[#allocation2 + $0xd0] sm:$0xf] %vm2497_vm1, %v5656_v10  ;;  %v6773_v10 = vmul.f32 %v17816_v47, %v14615_v53 }
 0x563   : > { %v6992_v42 = vadd.f32 %v6960_v41, %v6922_v17  ;;  %v6274_v17 = vld [vmem:[#allocation2 + $0xa0] sm:$0xf] }
 0x565   : > { %v14602_v51 = vadd.f32 %v7030_v25, %v6992_v42  ;;  %v14632_v25 = vunpack.c.l.bf16 %v6274_v17 }
 0x566   : > { %6850 = vrot.lane.b32.xlu1 %v6771_v46, %s11433_s28  ;;  %v6962_v46 = vmul.f32 %v14225_v63, %v14547_v21 }
 0x567   : > { %6188 = vrot.lane.b32.xlu2 %v6125_v54, %s11433_s28  ;;  %7186 = vrot.lane.b32.xlu0 %v7108_v44, %s11433_s28  ;;  %v6561_v54 = vld [vmem:[#allocation2 + $0x5c] sm:$0xf] }
 0x568   : > { %v6441_v19 = vpop.permute.xlu1 %6440 }
 0x569   : > { %v14611_v34 = vpop.permute.xlu2 %7172  ;;  %v6173_v55 = vpop.permute.xlu0 %6172  ;;  %v6527_v52 = vadd.f32 %v6441_v19, %v6329_v31  ;;  %v7109_v19 = vmul.f32 %v17820_v5, %v14615_v53 }
 0x56a   : > { %6245 = vst.msk [vmem:[#allocation2 + $0xcc] sm:$0xf] %vm2497_vm1, %v6173_v55  ;;  %v7032_v55 = vmul.f32 %v14237_v59, %v14315_v6 }
 0x56b   : > { %v6657_v14 = vadd.f32 %v6625_v37, %v6527_v52  ;;  %v6377_v37 = vmul.f32 %v17812_v3, %v14615_v53  ;;  %v6378_v52 = vmul.f32 %v17812_v3, %v14632_v25 }
 0x56d   : > { %v14626_v41 = vadd.f32 %v6695_v20, %v6657_v14  ;;  %v14646_v14 = vunpack.c.l.bf16 %v6561_v54  ;;  %v6275_v20 = vld [vmem:[#allocation2 + $0xa8] sm:$0xf] }
 0x56e   : > { %6458 = vrot.lane.b32.xlu1 %v6376_v0, %s11433_s28 }
 0x56f   : > { %6852 = vrot.lane.b32.xlu2 %v6772_v12, %s11433_s28  ;;  %6854 = vrot.lane.b32.xlu0 %v6773_v10, %s11433_s28  ;;  %v6331_v12 = vmul.f32 %v14169_v61, %v14245_v11  ;;  %v6627_v54 = vmul.f32 %v14182_v36, %v14646_v14 }
 0x570   : > { %v5654_v23 = vpop.permute.xlu1 %5653 }
 0x571   : > { %v6177_v50 = vpop.permute.xlu2 %6176  ;;  %v6837_v42 = vpop.permute.xlu0 %6836  ;;  %5726 = vst.msk [vmem:[#allocation2 + $0xc8] sm:$0xf] %vm2497_vm1, %v5654_v23 }
 0x572   : > { %6247 = vst.msk [vmem:[#allocation2 + $0xdc] sm:$0xf] %vm2497_vm1, %v6177_v50  ;;  %v6924_v44 = vadd.f32 %v6837_v42, %v14563_v38  ;;  %v14649_v38 = vunpack.c.l.bf16 %v6562_v28  ;;  %v14659_v50 = vunpack.c.l.bf16 %v6275_v20  ;;  %v6563_v28 = vld [vmem:[#allocation2 + $0x6c] sm:$0xf]  ;;  %v6276_v20 = vld [vmem:[#allocation2 + $0xb0] sm:$0xf] }
 0x574   : > { %v6994_v31 = vadd.f32 %v6962_v46, %v6924_v44  ;;  %17855 = vst [vmem:[#allocation74_spill] sm:$0xff] %v14659_v50  ;;  %v6964_v42 = vmul.f32 %v14225_v63, %v14649_v38 }
 0x576   : > { %7188 = vrot.lane.b32.xlu1 %v7109_v19, %s11433_s28  ;;  %v14651_v0 = vadd.f32 %v7032_v55, %v6994_v31  ;;  %v7034_v31 = vmul.f32 %v14237_v59, %v14400_v18  ;;  %v6774_v19 = vmul.f32 %v17816_v47, %v14632_v25  ;;  %v6697_v55 = vmul.f32 %v14202_v35, %v14365_v32 }
 0x577   : > { %6460 = vrot.lane.b32.xlu2 %v6377_v37, %s11433_s28  ;;  %6462 = vrot.lane.b32.xlu0 %v6378_v52, %s11433_s28  ;;  %v7110_v37 = vmul.f32 %v17820_v5, %v14632_v25  ;;  %v14677_v52 = vunpack.c.l.bf16 %v6563_v28  ;;  %v14693_v28 = vunpack.c.l.bf16 %v6276_v20  ;;  %v6277_v20 = vld [vmem:[#allocation2 + $0xb8] sm:$0xf] }
 0x578   : > { %v14657_v10 = vpop.permute.xlu1 %7170 }
 0x579   : > { %v6841_v17 = vpop.permute.xlu2 %6840  ;;  %v6445_v23 = vpop.permute.xlu0 %6444  ;;  %17856 = vst [vmem:[#allocation75_spill] sm:$0xff] %v14693_v28 }
 0x57a   : > { %v6926_v46 = vadd.f32 %v6841_v17, %v14584_v1  ;;  %v6529_v44 = vadd.f32 %v6445_v23, %v6331_v12  ;;  %v7111_v1 = vmul.f32 %v17820_v5, %v14659_v50  ;;  %v14688_v23 = vld [vmem:[%s17359_s7] ss:$0 sm:$0xff] }
 0x57c   : > { %v6996_v61 = vadd.f32 %v6964_v42, %v6926_v46  ;;  %v6659_v11 = vadd.f32 %v6627_v54, %v6529_v44  ;;  %v6333_v42 = vmul.f32 %v14688_v23, %v14365_v32 }
 0x57e   : > { %6856 = vrot.lane.b32.xlu1 %v6774_v19, %s11433_s28  ;;  %v14679_v12 = vadd.f32 %v7034_v31, %v6996_v61  ;;  %v14681_v17 = vadd.f32 %v6697_v55, %v6659_v11  ;;  %v6629_v31 = vmul.f32 %v14182_v36, %v14677_v52  ;;  %v6379_v19 = vmul.f32 %v17812_v3, %v14659_v50 }
 0x57f   : > { %7190 = vrot.lane.b32.xlu2 %v7110_v37, %s11433_s28  ;;  %7192 = vrot.lane.b32.xlu0 %v7111_v1, %s11433_s28  ;;  %v6699_v55 = vmul.f32 %v14202_v35, %v14461_v62  ;;  %v6775_v37 = vmul.f32 %v17816_v47, %v14659_v50  ;;  %v6776_v1 = vmul.f32 %v17816_v47, %v14693_v28 }
 0x580   : > { %v6175_v46 = vpop.permute.xlu1 %6174  ;;  %v6963_v35 = vmul.f32 %v14225_v63, %v14646_v14 }
 0x581   : > { %v6449_v44 = vpop.permute.xlu2 %6448  ;;  %v5658_v54 = vpop.permute.xlu0 %5657  ;;  %6246 = vst.msk [vmem:[#allocation2 + $0xd4] sm:$0xf] %vm2497_vm1, %v6175_v46 }
 0x582   : > { %v6531_v61 = vadd.f32 %v6449_v44, %v6333_v42  ;;  %5728 = vst.msk [vmem:[#allocation2 + $0xd8] sm:$0xf] %vm2497_vm1, %v5658_v54 }
 0x584   : > { %v6661_v11 = vadd.f32 %v6629_v31, %v6531_v61  ;;  %v14716_v31 = vunpack.c.l.bf16 %v6277_v20 }
 0x586   : > { %6464 = vrot.lane.b32.xlu1 %v6379_v19, %s11433_s28  ;;  %v14707_v36 = vadd.f32 %v6699_v55, %v6661_v11  ;;  %17857 = vst [vmem:[#allocation78_spill] sm:$0xff] %v14716_v31  ;;  %v7033_v11 = vmul.f32 %v14237_v59, %v14365_v32  ;;  %v7112_v19 = vmul.f32 %v17820_v5, %v14693_v28 }
 0x587   : > { %6858 = vrot.lane.b32.xlu2 %v6775_v37, %s11433_s28  ;;  %6860 = vrot.lane.b32.xlu0 %v6776_v1, %s11433_s28  ;;  %v6380_v55 = vmul.f32 %v17812_v3, %v14693_v28  ;;  %v6381_v37 = vmul.f32 %v17812_v3, %v14716_v31  ;;  %v6332_v59 = vmul.f32 %v14688_v23, %v14315_v6  ;;  %v14749_v6 = vld [vmem:[%s17359_s7 + $0x3] ss:$0 sm:$0xff] }
 0x588   : > { %v6839_v42 = vpop.permute.xlu1 %6838  ;;  %v6334_v28 = vmul.f32 %v14688_v23, %v14400_v18 }
 0x589   : > { %v5662_v46 = vpop.permute.xlu2 %5661  ;;  %v14711_v44 = vpop.permute.xlu0 %7174  ;;  %v6925_v54 = vadd.f32 %v6839_v42, %v14626_v41  ;;  %v6278_v41 = vld [vmem:[#allocation2 + $0xc0] sm:$0xf] }
 0x58a   : > { %5730 = vst.msk [vmem:[#allocation2 + $0xe8] sm:$0xf] %vm2497_vm1, %v5662_v46  ;;  %v14739_v42 = vld [vmem:[%s17359_s7 + $0x2] ss:$0 sm:$0xff] }
 0x58b   : > { %v6995_v61 = vadd.f32 %v6963_v35, %v6925_v54  ;;  %17859 = vst [vmem:[#allocation90_spill] sm:$0xff] %v14739_v42  ;;  %v6628_v46 = vmul.f32 %v14739_v42, %v14649_v38  ;;  %v14743_v54 = vunpack.c.l.bf16 %v6278_v41 }
 0x58d   : > { %v14727_v63 = vadd.f32 %v7033_v11, %v6995_v61  ;;  %17860 = vst [vmem:[#allocation76_spill] sm:$0xff] %v14743_v54  ;;  %v6698_v11 = vmul.f32 %v14749_v6, %v14400_v18  ;;  %v6778_v56 = vmul.f32 %v17816_v47, %v14743_v54 }
 0x58e   : > { %7194 = vrot.lane.b32.xlu1 %v7112_v19, %s11433_s28  ;;  %v6777_v19 = vmul.f32 %v17816_v47, %v14716_v31 }
 0x58f   : > { %17858 = vst [vmem:[#allocation77_spill] sm:$0xff] %v14727_v63  ;;  %6466 = vrot.lane.b32.xlu2 %v6380_v55, %s11433_s28  ;;  %6468 = vrot.lane.b32.xlu0 %v6381_v37, %s11433_s28  ;;  %v7113_v55 = vmul.f32 %v17820_v5, %v14716_v31  ;;  %v7114_v37 = vmul.f32 %v17820_v5, %v14743_v54 }
 0x590   : > { %v6447_v32 = vpop.permute.xlu1 %6446 }
 0x591   : > { %v14734_v1 = vpop.permute.xlu2 %7178  ;;  %v6179_v20 = vpop.permute.xlu0 %6178  ;;  %v6530_v35 = vadd.f32 %v6447_v32, %v6332_v59  ;;  %v6279_v59 = vld [vmem:[#allocation2 + $0xc8] sm:$0xf] }
 0x592   : > { %6248 = vst.msk [vmem:[#allocation2 + $0xe4] sm:$0xf] %vm2497_vm1, %v6179_v20 }
 0x593   : > { %v6660_v61 = vadd.f32 %v6628_v46, %v6530_v35  ;;  %v14765_v35 = vunpack.c.l.bf16 %v6279_v59  ;;  %v14781_v59 = vld [vmem:[%s17359_s7 + $0x6] ss:$0 sm:$0xff] }
 0x595   : > { %v14759_v41 = vadd.f32 %v6698_v11, %v6660_v61  ;;  %17861 = vst [vmem:[#allocation131_spill] sm:$0xff] %v14765_v35  ;;  %v14771_v61 = vld [vmem:[%s17359_s7 + $0x5] ss:$0 sm:$0xff]  ;;  %v6383_v63 = vmul.f32 %v17812_v3, %v14765_v35 }
 0x596   : > { %6862 = vrot.lane.b32.xlu1 %v6777_v19, %s11433_s28  ;;  %v6965_v11 = vmul.f32 %v14771_v61, %v14677_v52 }
 0x597   : > { %7196 = vrot.lane.b32.xlu2 %v7113_v55, %s11433_s28  ;;  %7198 = vrot.lane.b32.xlu0 %v7114_v37, %s11433_s28  ;;  %v6564_v55 = vld [vmem:[#allocation2 + $0x74] sm:$0xf]  ;;  %v6565_v37 = vld [vmem:[#allocation2 + $0x7c] sm:$0xf] }
 0x598   : > { %v5660_v32 = vpop.permute.xlu1 %5659 }
 0x599   : > { %v6183_v20 = vpop.permute.xlu2 %6182  ;;  %v6843_v46 = vpop.permute.xlu0 %6842  ;;  %5729 = vst.msk [vmem:[#allocation2 + $0xe0] sm:$0xf] %vm2497_vm1, %v5660_v32  ;;  %v6382_v32 = vmul.f32 %v17812_v3, %v14743_v54 }
 0x59a   : > { %6250 = vst.msk [vmem:[#allocation2 + $0xf4] sm:$0xf] %vm2497_vm1, %v6183_v20  ;;  %v6927_v19 = vadd.f32 %v6843_v46, %v14681_v17  ;;  %v7035_v20 = vmul.f32 %v14781_v59, %v14461_v62  ;;  %v6779_v17 = vmul.f32 %v17816_v47, %v14765_v35  ;;  %v14789_v46 = vunpack.c.l.bf16 %v6564_v55 }
 0x59c   : > { %v6997_v22 = vadd.f32 %v6965_v11, %v6927_v19  ;;  %v14792_v11 = vunpack.c.l.bf16 %v6565_v37  ;;  %v6280_v19 = vld [vmem:[#allocation2 + $0xd0] sm:$0xf] }
 0x59d   : > { %v14802_v55 = vunpack.c.l.bf16 %v6280_v19  ;;  %v6700_v19 = vmul.f32 %v14749_v6, %v14507_v13 }
 0x59e   : > { %6470 = vrot.lane.b32.xlu1 %v6382_v32, %s11433_s28  ;;  %v14794_v60 = vadd.f32 %v7035_v20, %v6997_v22  ;;  %v6967_v37 = vmul.f32 %v14771_v61, %v14792_v11  ;;  %v6566_v20 = vld [vmem:[#allocation2 + $0x84] sm:$0xf] }
 0x59f   : > { %6864 = vrot.lane.b32.xlu2 %v6778_v56, %s11433_s28  ;;  %6866 = vrot.lane.b32.xlu0 %v6779_v17, %s11433_s28  ;;  %17864 = vst [vmem:[#allocation134_spill] sm:$0xff] %v14802_v55  ;;  %v6630_v56 = vmul.f32 %v14739_v42, %v14789_v46  ;;  %v7037_v17 = vmul.f32 %v14781_v59, %v14542_v40 }
 0x5a0   : > { %17862 = vst [vmem:[#allocation132_spill] sm:$0xff] %v14794_v60  ;;  %v14800_v54 = vpop.permute.xlu1 %7176 }
 0x5a1   : > { %17863 = vst [vmem:[#allocation133_spill] sm:$0xff] %v14800_v54  ;;  %v6847_v31 = vpop.permute.xlu2 %6846  ;;  %v6451_v50 = vpop.permute.xlu0 %6450  ;;  %v7115_v54 = vmul.f32 %v17820_v5, %v14765_v35 }
 0x5a2   : > { %v6929_v32 = vadd.f32 %v6847_v31, %v14707_v36  ;;  %v6532_v22 = vadd.f32 %v6451_v50, %v6334_v28  ;;  %v6384_v50 = vmul.f32 %v17812_v3, %v14802_v55  ;;  %v14820_v28 = vunpack.c.l.bf16 %v6566_v20  ;;  %v6281_v36 = vld [vmem:[#allocation2 + $0xd8] sm:$0xf]  ;;  %v14836_v20 = vld [vmem:[%s17359_s7 + $0x8] ss:$0 sm:$0xff] }
 0x5a4   : > { %v6999_v18 = vadd.f32 %v6967_v37, %v6929_v32  ;;  %v6662_v60 = vadd.f32 %v6630_v56, %v6532_v22  ;;  %v6336_v32 = vmul.f32 %v14688_v23, %v14507_v13 }
 0x5a6   : > { %7200 = vrot.lane.b32.xlu1 %v7115_v54, %s11433_s28  ;;  %v14822_v31 = vadd.f32 %v7037_v17, %v6999_v18  ;;  %v14824_v37 = vadd.f32 %v6700_v19, %v6662_v60  ;;  %v14831_v54 = vunpack.c.l.bf16 %v6281_v36  ;;  %v7255_v60 = vadd.f32 %v14340_v29, %v14266_v9  ;;  %v14856_v29 = vld [vmem:[%s17360_s8] ss:$0 sm:$0xff] }
 0x5a7   : > { %6472 = vrot.lane.b32.xlu2 %v6383_v63, %s11433_s28  ;;  %6474 = vrot.lane.b32.xlu0 %v6384_v50, %s11433_s28  ;;  %v6632_v63 = vmul.f32 %v14739_v42, %v14820_v28  ;;  %v7293_v18 = vmul.f32 %v14836_v20, %v14385_v45  ;;  %v6780_v50 = vmul.f32 %v17816_v47, %v14802_v55  ;;  %v6282_v45 = vld [vmem:[#allocation2 + $0xe0] sm:$0xf] }
 0x5a8   : > { %17865 = vst [vmem:[#allocation135_spill] sm:$0xff] %v14822_v31  ;;  %v6181_v22 = vpop.permute.xlu1 %6180  ;;  %v6702_v36 = vmul.f32 %v14749_v6, %v14593_v48  ;;  %v7117_v9 = vmul.f32 %v17820_v5, %v14831_v54  ;;  %v6966_v31 = vmul.f32 %v14771_v61, %v14789_v46 }
 0x5a9   : > { %v6455_v56 = vpop.permute.xlu2 %6454  ;;  %v5664_v35 = vpop.permute.xlu0 %5663  ;;  %6249 = vst.msk [vmem:[#allocation2 + $0xec] sm:$0xf] %vm2497_vm1, %v6181_v22  ;;  %v7116_v22 = vmul.f32 %v17820_v5, %v14802_v55 }
 0x5aa   : > { %17866 = vst [vmem:[#allocation136_spill] sm:$0xff] %v14831_v54  ;;  %v6534_v17 = vadd.f32 %v6455_v56, %v6336_v32  ;;  %v7254_v56 = vadd.f32 %v14395_v2, %v14330_v4  ;;  %v7036_v4 = vmul.f32 %v14781_v59, %v14507_v13 }
 0x5ab   : > { %5731 = vst.msk [vmem:[#allocation2 + $0xf0] sm:$0xf] %vm2497_vm1, %v5664_v35  ;;  %v7325_v35 = vadd.f32 %v7293_v18, %v7255_v60  ;;  %v14870_v18 = vunpack.c.l.bf16 %v6282_v45 }
 0x5ac   : > { %v6664_v19 = vadd.f32 %v6632_v63, %v6534_v17 }
 0x5ad   : > { %17867 = vst [vmem:[#allocation137_spill] sm:$0xff] %v14870_v18 }
 0x5ae   : > { %6868 = vrot.lane.b32.xlu1 %v6780_v50, %s11433_s28  ;;  %v14859_v32 = vadd.f32 %v6702_v36, %v6664_v19  ;;  %v7361_v19 = vadd.f32 %v14856_v29, %v7325_v35  ;;  %v7292_v50 = vmul.f32 %v14836_v20, %v14261_v27  ;;  %v14884_v35 = vmul.f32 %v14836_v20, %v14516_v33 }
 0x5af   : > { %7202 = vrot.lane.b32.xlu2 %v7116_v22, %s11433_s28  ;;  %7204 = vrot.lane.b32.xlu0 %v7117_v9, %s11433_s28  ;;  %v7294_v22 = vmul.f32 %v14836_v20, %v14374_v58  ;;  %v6568_v9 = vld [vmem:[#allocation2 + $0x94] sm:$0xf]  ;;  %v6781_v27 = vmul.f32 %v17816_v47, %v14831_v54  ;;  %v7296_v58 = vmul.f32 %v14836_v20, %v14527_v8 }
 0x5b0   : > { %v6845_v63 = vpop.permute.xlu1 %6844  ;;  %v7324_v2 = vadd.f32 %v7292_v50, %v7254_v56  ;;  %v7393_v13 = vmul.f32 0.5, %v7361_v19  ;;  %v14896_v56 = vmul.f32 %v14836_v20, %v14418_v43  ;;  %v14900_v33 = vmul.f32 %v14836_v20, %v14649_v38  ;;  %v6567_v43 = vld [vmem:[#allocation2 + $0x8c] sm:$0xf] }
 0x5b1   : > { %v5668_v17 = vpop.permute.xlu2 %5667  ;;  %v14865_v55 = vpop.permute.xlu0 %7180  ;;  %v6928_v60 = vadd.f32 %v6845_v63, %v14759_v41  ;;  %v6385_v41 = vmul.f32 %v17812_v3, %v14831_v54  ;;  %v6283_v63 = vld [vmem:[#allocation2 + $0xe8] sm:$0xf]  ;;  %v6335_v8 = vmul.f32 %v14688_v23, %v14461_v62  ;;  %v6601_v38 = vunpack.c.l.bf16 %v6568_v9 }
 0x5b2   : > { %5733 = vst.msk [vmem:[#allocation2 + $0x100] sm:$0xf] %vm2497_vm1, %v5668_v17  ;;  %v14905_v17 = vmul.f32 %v14836_v20, %v14646_v14  ;;  %v7360_v19 = vadd.f32 %v14856_v29, %v7324_v2  ;;  %v14918_v50 = vmul.f32 %v14836_v20, %v14677_v52  ;;  %v14922_v14 = vmul.f32 %v14836_v20, %v14792_v11 }
 0x5b3   : > { %v6998_v36 = vadd.f32 %v6966_v31, %v6928_v60  ;;  %v6782_v31 = vmul.f32 %v17816_v47, %v14870_v18  ;;  %v14909_v60 = vmul.f32 %v14836_v20, %v14547_v21  ;;  %v6631_v21 = vmul.f32 %v14739_v42, %v14792_v11 }
 0x5b4   : > { %v14930_v62 = vmul.f32 %v14836_v20, %v14789_v46  ;;  %v14934_v9 = vunpack.c.l.bf16 %v6283_v63  ;;  %11321 = vtanh.f32 %v7393_v13  ;;  %v14944_v46 = vmul.f32 %v14771_v61, %v6601_v38 }
 0x5b5   : > { %v14890_v45 = vadd.f32 %v7036_v4, %v6998_v36  ;;  %v7256_v4 = vadd.f32 %v14456_v26, %v14388_v39  ;;  %v14941_v39 = vmul.f32 %v14688_v23, %v14542_v40  ;;  %v14947_v11 = vmul.f32 %v14836_v20, %v6601_v38 }
 0x5b6   : > { %6476 = vrot.lane.b32.xlu1 %v6385_v41, %s11433_s28  ;;  %17868 = vst [vmem:[#allocation138_spill] sm:$0xff] %v14934_v9  ;;  %v6701_v13 = vmul.f32 %v14749_v6, %v14542_v40  ;;  %v7392_v63 = vmul.f32 0.5, %v7360_v19 }
 0x5b7   : > { %6870 = vrot.lane.b32.xlu2 %v6781_v27, %s11433_s28  ;;  %6872 = vrot.lane.b32.xlu0 %v6782_v31, %s11433_s28  ;;  %v7258_v27 = vadd.f32 %v14483_v16, %v14423_v15  ;;  %v6600_v31 = vunpack.c.l.bf16 %v6567_v43  ;;  %17869 = vst [vmem:[#allocation139_spill] sm:$0xff] %v14947_v11  ;;  %v7118_v15 = vmul.f32 %v17820_v5, %v14870_v18  ;;  %v6571_v11 = vld [vmem:[#allocation2 + $0xac] sm:$0xf] }
 0x5b8   : > { %v6453_v36 = vpop.permute.xlu1 %6452  ;;  %v6968_v16 = vmul.f32 %v14771_v61, %v14820_v28  ;;  %v14956_v43 = vmul.f32 %v14739_v42, %v6601_v38  ;;  %v7257_v38 = vadd.f32 %v14539_v7, %v14473_v30  ;;  %v7038_v30 = vmul.f32 %v14781_v59, %v14593_v48 }
 0x5b9   : > { %v14932_v2 = vpop.permute.xlu2 %7184  ;;  %v6185_v41 = vpop.permute.xlu0 %6184  ;;  %v6533_v52 = vadd.f32 %v6453_v36, %v6335_v8  ;;  %v7326_v8 = vadd.f32 %v7294_v22, %v7256_v4  ;;  %v6387_v36 = vmul.f32 %v17812_v3, %v14934_v9  ;;  %v7328_v40 = vadd.f32 %v7296_v58, %v7258_v27 }
 0x5ba   : > { %6251 = vst.msk [vmem:[#allocation2 + $0xfc] sm:$0xf] %vm2497_vm1, %v6185_v41  ;;  %v14965_v19 = vmul.f32 %v14836_v20, %v6600_v31  ;;  %v14969_v54 = vmul.f32 %v14739_v42, %v6600_v31  ;;  %v14973_v22 = vmul.f32 %v14836_v20, %v14820_v28  ;;  %v5047_v4 = vpop.f32.mrf.mxu2  ;;  %v14981_v58 = vmul.f32 %v14781_v59, %v14632_v25 }
 0x5bb   : > { %v6663_v26 = vadd.f32 %v6631_v21, %v6533_v52  ;;  %17870 = vst [vmem:[#allocation140_spill] sm:$0xff] %v14956_v43  ;;  %v6386_v21 = vmul.f32 %v17812_v3, %v14870_v18  ;;  %v6284_v52 = vld [vmem:[#allocation2 + $0xf0] sm:$0xf]  ;;  %v14984_v27 = vmul.f32 %v14771_v61, %v6600_v31  ;;  %v7259_v28 = vadd.f32 %v14588_v24, %v14530_v57 }
 0x5bc   : > { %v14992_v7 = vmul.f32 %v14688_v23, %v14593_v48  ;;  %11323 = vtanh.f32 %v7392_v63  ;;  %v7362_v31 = vadd.f32 %v14856_v29, %v7326_v8  ;;  %v15002_v18 = vunpack.c.l.bf16 %v6284_v52 }
 0x5bd   : > { %v14962_v41 = vadd.f32 %v6701_v13, %v6663_v26  ;;  %v11322_v26 = vpop.eup %11321  ;;  %v7364_v48 = vadd.f32 %v14856_v29, %v7328_v40  ;;  %v7260_v43 = vadd.f32 %v14657_v10, %v14602_v51  ;;  %v7329_v52 = vadd.f32 %v14884_v35, %v7259_v28 }
 0x5be   : > { %7206 = vrot.lane.b32.xlu1 %v7118_v15, %s11433_s28  ;;  %v6569_v15 = vld [vmem:[#allocation2 + $0x9c] sm:$0xf]  ;;  %17871 = vst [vmem:[#allocation141_spill] sm:$0xff] %v14992_v7  ;;  %v5050_v7 = vmul.f32 0.5, %v5047_v4  ;;  %v7457_v8 = vmul.f32 0.5, %v11322_v26  ;;  %v6783_v40 = vmul.f32 %v17816_v47, %v14934_v9  ;;  %v15017_v51 = vunpack.c.l.bf16 %v6571_v11 }
 0x5bf   : > { %6478 = vrot.lane.b32.xlu2 %v6386_v21, %s11433_s28  ;;  %6480 = vrot.lane.b32.xlu0 %v6387_v36, %s11433_s28  ;;  %v14996_v21 = vmul.f32 %v14688_v23, %v14632_v25  ;;  %v7261_v36 = vadd.f32 %v14611_v34, %v14561_v49  ;;  %17873 = vst [vmem:[#allocation143_spill] sm:$0xff] %v15002_v18  ;;  %v6602_v34 = vunpack.c.l.bf16 %v6569_v15  ;;  %v7394_v10 = vmul.f32 0.5, %v7362_v31 }
 0x5c0   : > { %v5666_v13 = vpop.permute.xlu1 %5665  ;;  %v7327_v49 = vadd.f32 %v14896_v56, %v7257_v38  ;;  %v7120_v56 = vmul.f32 %v17820_v5, %v15002_v18  ;;  %v7396_v38 = vmul.f32 0.5, %v7364_v48  ;;  %11325 = vtanh.f32 %v5050_v7 }
 0x5c1   : > { %17872 = vst [vmem:[#allocation142_spill] sm:$0xff] %v14996_v21  ;;  %v6189_v57 = vpop.permute.xlu2 %6188  ;;  %v6849_v24 = vpop.permute.xlu0 %6848  ;;  %v7331_v4 = vadd.f32 %v14905_v17, %v7261_v36  ;;  %v15032_v17 = vmul.f32 %v14739_v42, %v6602_v34  ;;  %v15035_v26 = vmul.f32 %v14771_v61, %v6602_v34  ;;  %v15037_v28 = vadd.f32 0.5, %v7457_v8 }
 0x5c2   : > { %5732 = vst.msk [vmem:[#allocation2 + $0xf8] sm:$0xf] %vm2497_vm1, %v5666_v13  ;;  %v6930_v63 = vadd.f32 %v6849_v24, %v14824_v37  ;;  %v15012_v13 = vmul.f32 %v14749_v6, %v14632_v25  ;;  %v7119_v37 = vmul.f32 %v17820_v5, %v14934_v9  ;;  %v7330_v25 = vadd.f32 %v14909_v60, %v7260_v43 }
 0x5c3   : > { %6253 = vst.msk [vmem:[#allocation2 + $0x10c] sm:$0xf] %vm2497_vm1, %v6189_v57  ;;  %v7363_v11 = vadd.f32 %v14856_v29, %v7327_v49  ;;  %v7365_v60 = vadd.f32 %v14856_v29, %v7329_v52  ;;  %v15045_v7 = vmul.f32 %v14836_v20, %v6602_v34  ;;  %11327 = vtanh.f32 %v7394_v10  ;;  %v6570_v49 = vld [vmem:[#allocation2 + $0xa4] sm:$0xf] }
 0x5c4   : > { %v7000_v21 = vadd.f32 %v6968_v16, %v6930_v63  ;;  %v11324_v16 = vpop.eup %11323  ;;  %v15052_v24 = vmul.f32 %v14771_v61, %v15017_v51  ;;  %11329 = vtanh.f32 %v7396_v38  ;;  %v7366_v48 = vadd.f32 %v14856_v29, %v7330_v25 }
 0x5c5   : > { %v7456_v34 = vmul.f32 0.5, %v11324_v16  ;;  %v7395_v52 = vmul.f32 0.5, %v7363_v11  ;;  %v6703_v10 = vmul.f32 %v14749_v6, %v14615_v53  ;;  %v6784_v16 = vmul.f32 %v17816_v47, %v15002_v18 }
 0x5c6   : > { %6874 = vrot.lane.b32.xlu1 %v6783_v40, %s11433_s28  ;;  %v15026_v35 = vadd.f32 %v7038_v30, %v7000_v21  ;;  %v6339_v30 = vmul.f32 %v14688_v23, %v14615_v53  ;;  %v7367_v21 = vadd.f32 %v14856_v29, %v7331_v4  ;;  %v11326_v4 = vpop.eup %11325  ;;  %v6603_v11 = vunpack.c.l.bf16 %v6570_v49 }
 0x5c7   : > { %7208 = vrot.lane.b32.xlu2 %v7119_v37, %s11433_s28  ;;  %7210 = vrot.lane.b32.xlu0 %v7120_v56, %s11433_s28  ;;  %v7397_v37 = vmul.f32 0.5, %v7365_v60  ;;  %11331 = vtanh.f32 %v7395_v52  ;;  %v15093_v49 = vmul.f32 %v14739_v42, %v15017_v51 }
 0x5c8   : > { %v15040_v43 = vpop.permute.xlu1 %7182  ;;  %v7399_v25 = vmul.f32 0.5, %v7367_v21  ;;  %v5052_v21 = vmul.f32 0.5, %v11326_v4 }
 0x5c9   : > { %v6285_v15 = vld [vmem:[#allocation2 + $0xf8] sm:$0xf]  ;;  %v6853_v31 = vpop.permute.xlu2 %6852  ;;  %v6457_v36 = vpop.permute.xlu0 %6456  ;;  %11333 = vtanh.f32 %v7397_v37 }
 0x5ca   : > { %v15048_v57 = vunpack.c.l.bf16 %v6285_v15  ;;  %v6932_v63 = vadd.f32 %v6853_v31, %v14859_v32  ;;  %v6535_v8 = vadd.f32 %v6457_v36, %v14941_v39  ;;  %v6388_v32 = vmul.f32 %v17812_v3, %v15002_v18  ;;  %v11328_v60 = vpop.eup %11327  ;;  %v17876_v36 = vld [vmem:[#allocation133_spill] sm:$0xff] }
 0x5cb   : > { %v7262_v39 = vadd.f32 %v14711_v44, %v14651_v0  ;;  %v7398_v15 = vmul.f32 0.5, %v7366_v48  ;;  %v7264_v31 = vadd.f32 %v14734_v1, %v14679_v12  ;;  %v15081_v0 = vmul.f32 %v14781_v59, %v14615_v53  ;;  %v11330_v44 = vpop.eup %11329 }
 0x5cc   : > { %17874 = vst [vmem:[#allocation144_spill] sm:$0xff] %v15048_v57  ;;  %v6785_v40 = vmul.f32 %v17816_v47, %v15048_v57  ;;  %v7002_v56 = vadd.f32 %v14944_v46, %v6932_v63  ;;  %v6665_v38 = vadd.f32 %v14969_v54, %v6535_v8  ;;  %v15085_v12 = vmul.f32 %v14836_v20, %v15017_v51  ;;  %v6572_v8 = vld [vmem:[#allocation2 + $0xb4] sm:$0xf] }
 0x5cd   : > { %v15087_v1 = vadd.f32 0.5, %v7456_v34  ;;  %11335 = vtanh.f32 %v7399_v25  ;;  %v7332_v53 = vadd.f32 %v14900_v33, %v7262_v39  ;;  %v15098_v34 = vmul.f32 %v14836_v20, %v6603_v11 }
 0x5ce   : > { %6482 = vrot.lane.b32.xlu1 %v6388_v32, %s11433_s28  ;;  %v15073_v46 = vadd.f32 %v14981_v58, %v7002_v56  ;;  %v15075_v54 = vadd.f32 %v6703_v10, %v6665_v38  ;;  %v17875_v58 = vld [vmem:[#allocation77_spill] sm:$0xff]  ;;  %v15101_v10 = vmul.f32 %v14739_v42, %v6603_v11  ;;  %11337 = vtanh.f32 %v7398_v15  ;;  %v17878_v15 = vld [vmem:[#allocation74_spill] sm:$0xff] }
 0x5cf   : > { %6876 = vrot.lane.b32.xlu2 %v6784_v16, %s11433_s28  ;;  %6878 = vrot.lane.b32.xlu0 %v6785_v40, %s11433_s28  ;;  %v7263_v48 = vadd.f32 %v17876_v36, %v17875_v58  ;;  %17877 = vst [vmem:[#allocation77_spill] sm:$0xff] %v15093_v49  ;;  %v7334_v4 = vadd.f32 %v14930_v62, %v7264_v31  ;;  %v7458_v33 = vmul.f32 0.5, %v11328_v60  ;;  %v7460_v56 = vmul.f32 0.5, %v11330_v44  ;;  %v6680_v60 = vld [vmem:[#allocation2 + $0x100] sm:$0xf] }
 0x5d0   : > { %v6187_v63 = vpop.permute.xlu1 %6186  ;;  %v15106_v51 = vmul.f32 %v14771_v61, %v6603_v11  ;;  %v5053_v38 = vadd.f32 0.5, %v5052_v21  ;;  %v15108_v32 = vunpack.c.l.bf16 %v6572_v8  ;;  %v7121_v16 = vmul.f32 %v17820_v5, %v15048_v57  ;;  %v17879_v36 = vld [vmem:[#allocation78_spill] sm:$0xff] }
 0x5d1   : > { %v6461_v52 = vpop.permute.xlu2 %6460  ;;  %v5670_v40 = vpop.permute.xlu0 %5669  ;;  %6252 = vst.msk [vmem:[#allocation2 + $0x104] sm:$0xf] %vm2497_vm1, %v6187_v63  ;;  %v7333_v25 = vadd.f32 %v14918_v50, %v7263_v48  ;;  %v6705_v62 = vmul.f32 %v14749_v6, %v17878_v15  ;;  %v7368_v31 = vadd.f32 %v14856_v29, %v7332_v53  ;;  %v6389_v11 = vmul.f32 %v17812_v3, %v15048_v57  ;;  %v17882_v57 = vld [vmem:[#allocation135_spill] sm:$0xff] }
 0x5d2   : > { %v6537_v37 = vadd.f32 %v6461_v52, %v6339_v30  ;;  %5734 = vst.msk [vmem:[#allocation2 + $0x108] sm:$0xf] %vm2497_vm1, %v5670_v40  ;;  %v11332_v30 = vpop.eup %11331  ;;  %v15121_v21 = vmul.f32 %v14781_v59, %v17878_v15  ;;  %v15125_v50 = vmul.f32 %v14688_v23, %v17878_v15  ;;  %v7370_v44 = vadd.f32 %v14856_v29, %v7334_v4 }
 0x5d3   : > { %v15133_v48 = vmul.f32 %v14781_v59, %v17879_v36  ;;  %v15137_v3 = vmul.f32 %v14749_v6, %v17879_v36  ;;  %v15139_v8 = vadd.f32 0.5, %v7458_v33  ;;  %v15141_v53 = vadd.f32 0.5, %v7460_v56 }
 0x5d4   : > { %v6667_v39 = vadd.f32 %v15032_v17, %v6537_v37  ;;  %v11334_v17 = vpop.eup %11333  ;;  %v15143_v52 = vperm.slane %v5053_v38, 0  ;;  %v15148_v40 = vmul.f32 %v14739_v42, %v15108_v32  ;;  %v7459_v37 = vmul.f32 0.5, %v11332_v30 }
 0x5d5   : > { %17880 = vst [vmem:[#allocation133_spill] sm:$0xff] %v15137_v3  ;;  %v11336_v63 = vpop.eup %11335  ;;  %v15151_v15 = vunpack.c.l.bf16 %v6680_v60  ;;  %v7461_v56 = vmul.f32 0.5, %v11334_v17  ;;  %v7400_v38 = vmul.f32 0.5, %v7368_v31  ;;  %v7402_v3 = vmul.f32 0.5, %v7370_v44 }
 0x5d6   : > { %7212 = vrot.lane.b32.xlu1 %v7121_v16, %s11433_s28  ;;  %v15129_v58 = vadd.f32 %v6705_v62, %v6667_v39  ;;  %v11338_v4 = vpop.eup %11337  ;;  %v7369_v39 = vadd.f32 %v14856_v29, %v7333_v25  ;;  %v17881_v62 = vld [vmem:[#allocation75_spill] sm:$0xff]  ;;  %v7463_v30 = vmul.f32 0.5, %v11336_v63  ;;  %v7266_v25 = vadd.f32 %v15040_v43, %v14890_v45 }
 0x5d7   : > { %6484 = vrot.lane.b32.xlu2 %v6389_v11, %s11433_s28  ;;  %v15155_v33 = vmul.f32 %v14688_v23, %v17881_v62  ;;  %v7267_v11 = vadd.f32 %v14932_v2, %v17882_v57  ;;  %v7462_v49 = vmul.f32 0.5, %v11338_v4  ;;  %v7521_v31 = vadd.f32 %v15143_v52, %v15087_v1  ;;  %v6573_v57 = vld [vmem:[#allocation2 + $0xbc] sm:$0xf]  ;;  %v17885_v4 = vld [vmem:[#allocation100_spill] sm:$0xff] }
 0x5d8   : > { %v6851_v16 = vpop.permute.xlu1 %6850  ;;  %v7522_v2 = vadd.f32 %v15143_v52, %v15037_v28  ;;  %v7401_v17 = vmul.f32 0.5, %v7369_v39  ;;  %v6786_v45 = vmul.f32 %v17816_v47, %v15151_v15  ;;  %11339 = vtanh.f32 %v7400_v38 }
 0x5d9   : > { %v7191_v18 = vpop.permute.xlu2 %7190  ;;  %v7187_v9 = vpop.permute.xlu0 %7186  ;;  %v6931_v42 = vadd.f32 %v6851_v16, %v14962_v41  ;;  %v6681_v36 = vld [vmem:[#allocation2 + $0x108] sm:$0xf]  ;;  %v17883_v41 = vld [vmem:[#allocation132_spill] sm:$0xff]  ;;  %11341 = vtanh.f32 %v7402_v3  ;;  %v7336_v28 = vadd.f32 %v14973_v22, %v7266_v25  ;;  %v15186_v1 = vmul.f32 %v14749_v6, %v17881_v62 }
 0x5da   : > { %v15162_v60 = vunpack.c.l.bf16 %v6681_v36  ;;  %v7265_v63 = vadd.f32 %v14865_v55, %v17883_v41  ;;  %v15182_v55 = vunpack.c.l.bf16 %v6573_v57  ;;  %v7491_v36 = vadd.f32 0.5, %v7459_v37  ;;  %v17886_v3 = vld [vmem:[#allocation76_spill] sm:$0xff]  ;;  %v17887_v41 = vld [vmem:[#allocation141_spill] sm:$0xff] }
 0x5db   : > { %v7001_v23 = vadd.f32 %v14984_v27, %v6931_v42  ;;  %v7337_v42 = vadd.f32 %v14965_v19, %v7267_v11  ;;  %v7122_v27 = vmul.f32 %v17820_v5, %v15151_v15  ;;  %v17884_v19 = vld [vmem:[#allocation99_spill] sm:$0xff]  ;;  %v15193_v22 = vmul.f32 %v14749_v6, %v17886_v3 }
 0x5dc   : > { %v7123_v44 = vmul.f32 %v17820_v5, %v15162_v60  ;;  %v7553_v5 = vmul.f32 %v7521_v31, %v17884_v19  ;;  %v7493_v39 = vadd.f32 0.5, %v7461_v56  ;;  %v7495_v16 = vadd.f32 0.5, %v7463_v30 }
 0x5dd   : > { %v7071_v43 = vadd.f32 %v15081_v0, %v7001_v23  ;;  %v7554_v0 = vmul.f32 %v7522_v2, %v17885_v4  ;;  %11343 = vtanh.f32 %v7401_v17  ;;  %v7335_v38 = vadd.f32 %v14922_v14, %v7265_v63  ;;  %v17888_v14 = vld [vmem:[#allocation140_spill] sm:$0xff] }
 0x5de   : > { %7216 = vrot.lane.b32.xlu0 %v7123_v44, %s11433_s28  ;;  %6880 = vrot.lane.b32.xlu1 %v6786_v45, %s11433_s28  ;;  %v7494_v25 = vadd.f32 0.5, %v7462_v49  ;;  %v7373_v23 = vadd.f32 %v14856_v29, %v7337_v42  ;;  %v7524_v31 = vadd.f32 %v15143_v52, %v7491_v36  ;;  %v7372_v2 = vadd.f32 %v14856_v29, %v7336_v28  ;;  %v11340_v17 = vpop.eup %11339 }
 0x5df   : > { %7214 = vrot.lane.b32.xlu2 %v7122_v27, %s11433_s28  ;;  %v7270_v45 = vadd.f32 %v7191_v18, %v15073_v46  ;;  %v7585_v49 = vpack.c.bf16 %v7553_v5, %v7553_v5  ;;  %v7586_v27 = vpack.c.bf16 %v7554_v0, %v7554_v0  ;;  %v7525_v42 = vadd.f32 %v15143_v52, %v15141_v53  ;;  %v11342_v19 = vpop.eup %11341 }
 0x5e0   : > { %v6459_v11 = vpop.permute.xlu1 %6458  ;;  %v7371_v4 = vadd.f32 %v14856_v29, %v7335_v38  ;;  %v7268_v36 = vadd.f32 %v7187_v9, %v15026_v35  ;;  %v7405_v46 = vmul.f32 0.5, %v7373_v23  ;;  %v7404_v53 = vmul.f32 0.5, %v7372_v2  ;;  %v17890_v38 = vld [vmem:[#allocation103_spill] sm:$0xff] }
 0x5e1   : > { %v6859_v37 = vpop.permute.xlu2 %6858  ;;  %v6855_v57 = vpop.permute.xlu0 %6854  ;;  %v6536_v44 = vadd.f32 %v6459_v11, %v17887_v41  ;;  %v7340_v11 = vadd.f32 %v15098_v34, %v7270_v45  ;;  %v7527_v41 = vadd.f32 %v15143_v52, %v7494_v25 }
 0x5e2   : > { %v6935_v56 = vadd.f32 %v6859_v37, %v15129_v58  ;;  %v6933_v30 = vadd.f32 %v6855_v57, %v15075_v54  ;;  %v6787_v54 = vmul.f32 %v17816_v47, %v15162_v60  ;;  %v7523_v58 = vadd.f32 %v15143_v52, %v15139_v8  ;;  %v17889_v47 = vld [vmem:[#allocation102_spill] sm:$0xff]  ;;  %v17891_v37 = vld [vmem:[#allocation139_spill] sm:$0xff] }
 0x5e3   : > { %v6666_v63 = vadd.f32 %v17888_v14, %v6536_v44  ;;  %v11344_v0 = vpop.eup %11343  ;;  %v7556_v8 = vmul.f32 %v7524_v31, %v17889_v47  ;;  %v7403_v23 = vmul.f32 0.5, %v7371_v4  ;;  %v7338_v57 = vadd.f32 %v17891_v37, %v7268_v36  ;;  %v17893_v14 = vld [vmem:[#allocation142_spill] sm:$0xff] }
 0x5e4   : > { %v7005_v28 = vadd.f32 %v15052_v24, %v6935_v56  ;;  %v7003_v18 = vadd.f32 %v15035_v26, %v6933_v30  ;;  %v7464_v26 = vmul.f32 0.5, %v11340_v17  ;;  %v7466_v24 = vmul.f32 0.5, %v11342_v19  ;;  %v17892_v56 = vld [vmem:[#allocation101_spill] sm:$0xff]  ;;  %v17896_v37 = vld [vmem:[#allocation106_spill] sm:$0xff] }
 0x5e5   : > { %v6736_v5 = vadd.f32 %v15012_v13, %v6666_v63  ;;  %v7557_v13 = vmul.f32 %v7525_v42, %v17890_v38  ;;  %v7526_v44 = vadd.f32 %v15143_v52, %v7493_v39  ;;  %v7465_v2 = vmul.f32 0.5, %v11344_v0  ;;  %v6574_v42 = vld [vmem:[#allocation2 + $0xc4] sm:$0xf] }
 0x5e6   : > { %7649 = vrot.lane.b32.xlu0 %v7585_v49, %s11433_s28  ;;  %7651 = vrot.lane.b32.xlu1 %v7586_v27, %s11433_s28  ;;  %v7075_v9 = vadd.f32 %v15133_v48, %v7005_v28  ;;  %v7073_v35 = vadd.f32 %v15121_v21, %v7003_v18  ;;  %11345 = vtanh.f32 %v7405_v46  ;;  %v7555_v30 = vmul.f32 %v7523_v58, %v17892_v56  ;;  %v17894_v18 = vld [vmem:[#allocation105_spill] sm:$0xff] }
 0x5e7   : > { %6882 = vrot.lane.b32.xlu2 %v6787_v54, %s11433_s28  ;;  %11347 = vtanh.f32 %v7404_v53  ;;  %v7376_v31 = vadd.f32 %v14856_v29, %v7340_v11  ;;  %v7588_v27 = vpack.c.bf16 %v7556_v8, %v7556_v8  ;;  %v7589_v25 = vpack.c.bf16 %v7557_v13, %v7557_v13  ;;  %v17895_v53 = vld [vmem:[#allocation104_spill] sm:$0xff] }
 0x5e8   : > { %v7189_v34 = vpop.permute.xlu1 %7188  ;;  %v7528_v39 = vadd.f32 %v15143_v52, %v7495_v16  ;;  %11349 = vtanh.f32 %v7403_v23  ;;  %v7374_v19 = vadd.f32 %v14856_v29, %v7338_v57  ;;  %v7497_v36 = vadd.f32 0.5, %v7465_v2 }
 0x5e9   : > { %v6467_v48 = vpop.permute.xlu2 %6466  ;;  %v6463_v21 = vpop.permute.xlu0 %6462  ;;  %v7269_v45 = vadd.f32 %v7189_v34, %v7071_v43  ;;  %v7559_v46 = vmul.f32 %v7527_v41, %v17894_v18  ;;  %v7408_v54 = vmul.f32 0.5, %v7376_v31  ;;  %v7498_v58 = vadd.f32 0.5, %v7466_v24 }
 0x5ea   : > { %v6540_v17 = vadd.f32 %v6467_v48, %v15155_v33  ;;  %v6538_v63 = vadd.f32 %v6463_v21, %v17893_v14  ;;  %v7587_v33 = vpack.c.bf16 %v7555_v30, %v7555_v30  ;;  %v7558_v11 = vmul.f32 %v7526_v44, %v17895_v53 }
 0x5eb   : > { %v7339_v49 = vadd.f32 %v15045_v7, %v7269_v45  ;;  %v15239_v7 = vunpack.c.l.bf16 %v6574_v42  ;;  %v7042_v47 = vmul.f32 %v14781_v59, %v17881_v62  ;;  %v7496_v38 = vadd.f32 0.5, %v7464_v26 }
 0x5ec   : > { %v6670_v43 = vadd.f32 %v15148_v40, %v6540_v17  ;;  %v6668_v4 = vadd.f32 %v15101_v10, %v6538_v63  ;;  %v11346_v10 = vpop.eup %11345  ;;  %v7406_v13 = vmul.f32 0.5, %v7374_v19  ;;  %v7591_v41 = vpack.c.bf16 %v7559_v46, %v7559_v46 }
 0x5ed   : > { %v7375_v28 = vadd.f32 %v14856_v29, %v7339_v49  ;;  %v11348_v8 = vpop.eup %11347  ;;  %v7530_v2 = vadd.f32 %v15143_v52, %v7497_v36  ;;  %v7531_v44 = vadd.f32 %v15143_v52, %v7498_v58  ;;  %v7469_v21 = vmul.f32 0.5, %v11346_v10  ;;  %v17897_v49 = vld [vmem:[#allocation109_spill] sm:$0xff]  ;;  %v17899_v10 = vld [vmem:[#allocation134_spill] sm:$0xff] }
 0x5ee   : > { %7655 = vrot.lane.b32.xlu0 %v7588_v27, %s11433_s28  ;;  %7657 = vrot.lane.b32.xlu1 %v7589_v25, %s11433_s28  ;;  %v15242_v16 = vadd.f32 %v15193_v22, %v6670_v43  ;;  %v15245_v40 = vadd.f32 %v15186_v1, %v6668_v4  ;;  %v7311_v22 = vmul.f32 %v14836_v20, %v15182_v55  ;;  %v11350_v48 = vpop.eup %11349  ;;  %11351 = vtanh.f32 %v7408_v54  ;;  %v6575_v25 = vld [vmem:[#allocation2 + $0xcc] sm:$0xf] }
 0x5ef   : > { %v7407_v0 = vmul.f32 0.5, %v7375_v28  ;;  %7653 = vrot.lane.b32.xlu2 %v7587_v33, %s11433_s28  ;;  %v7560_v1 = vmul.f32 %v7528_v39, %v17896_v37  ;;  %v7468_v45 = vmul.f32 0.5, %v11348_v8  ;;  %v7590_v30 = vpack.c.bf16 %v7558_v11, %v7558_v11 }
 0x5f0   : > { %v6857_v23 = vpop.permute.xlu1 %6856  ;;  %v7467_v14 = vmul.f32 0.5, %v11350_v48  ;;  %v7529_v63 = vadd.f32 %v15143_v52, %v7496_v38  ;;  %v7563_v27 = vmul.f32 %v7531_v44, %v17897_v49  ;;  %v7501_v42 = vadd.f32 0.5, %v7469_v21  ;;  %v17900_v38 = vld [vmem:[#allocation107_spill] sm:$0xff]  ;;  %v17905_v49 = vld [vmem:[#allocation114_spill] sm:$0xff] }
 0x5f1   : > { %v7197_v57 = vpop.permute.xlu2 %7196  ;;  %v7193_v34 = vpop.permute.xlu0 %7192  ;;  %v6934_v24 = vadd.f32 %v6857_v23, %v6736_v5  ;;  %11353 = vtanh.f32 %v7407_v0  ;;  %v7592_v5 = vpack.c.bf16 %v7560_v1, %v7560_v1  ;;  %v6976_v43 = vmul.f32 %v14771_v61, %v15239_v7 }
 0x5f2   : > { %v7273_v62 = vadd.f32 %v7197_v57, %v7075_v9  ;;  %v7271_v26 = vadd.f32 %v7193_v34, %v7073_v35  ;;  %11355 = vtanh.f32 %v7406_v13  ;;  %v6974_v4 = vmul.f32 %v14771_v61, %v15108_v32 }
 0x5f3   : > { %v7004_v56 = vadd.f32 %v15106_v51, %v6934_v24  ;;  %v17898_v51 = vld [vmem:[#allocation108_spill] sm:$0xff]  ;;  %v7044_v36 = vmul.f32 %v14781_v59, %v17886_v3  ;;  %v15272_v54 = vunpack.c.l.bf16 %v6575_v25  ;;  %v7046_v58 = vmul.f32 %v14781_v59, %v17899_v10  ;;  %v17901_v59 = vld [vmem:[#allocation77_spill] sm:$0xff] }
 0x5f4   : > { %v7343_v31 = vadd.f32 %v7311_v22, %v7273_v62  ;;  %v7341_v17 = vadd.f32 %v15085_v12, %v7271_v26  ;;  %v7562_v19 = vmul.f32 %v7530_v2, %v17898_v51  ;;  %v7500_v12 = vadd.f32 0.5, %v7468_v45  ;;  %v11352_v28 = vpop.eup %11351 }
 0x5f5   : > { %v7074_v39 = vadd.f32 %v7042_v47, %v7004_v56  ;;  %v7499_v53 = vadd.f32 0.5, %v7467_v14  ;;  %v7561_v13 = vmul.f32 %v7529_v63, %v17900_v38  ;;  %v7595_v22 = vpack.c.bf16 %v7563_v27, %v7563_v27  ;;  %v17904_v14 = vld [vmem:[#allocation111_spill] sm:$0xff] }
 0x5f6   : > { %v7379_v9 = vadd.f32 %v14856_v29, %v7343_v31  ;;  %v7377_v35 = vadd.f32 %v14856_v29, %v7341_v17  ;;  %7661 = vrot.lane.b32.xlu0 %v7591_v41, %s11433_s28  ;;  %7663 = vrot.lane.b32.xlu1 %v7592_v5, %s11433_s28  ;;  %v7594_v57 = vpack.c.bf16 %v7562_v19, %v7562_v19  ;;  %v7472_v24 = vmul.f32 0.5, %v11352_v28  ;;  %v15291_v31 = vld [vmem:[%s17359_s7] ss:$0 sm:$0xff] }
 0x5f7   : > { %7659 = vrot.lane.b32.xlu2 %v7590_v30, %s11433_s28  ;;  %v11354_v0 = vpop.eup %11353  ;;  %v7534_v34 = vadd.f32 %v15143_v52, %v7501_v42  ;;  %v7533_v2 = vadd.f32 %v15143_v52, %v7500_v12  ;;  %v7593_v62 = vpack.c.bf16 %v7561_v13, %v7561_v13  ;;  %v7532_v26 = vadd.f32 %v15143_v52, %v7499_v53  ;;  %v17903_v17 = vld [vmem:[#allocation78_spill] sm:$0xff]  ;;  %v17906_v42 = vld [vmem:[#allocation131_spill] sm:$0xff] }
 0x5f8   : > { %v7411_v33 = vmul.f32 0.5, %v7379_v9  ;;  %v7409_v18 = vmul.f32 0.5, %v7377_v35  ;;  %v6465_v46 = vpop.permute.xlu1 %6464  ;;  %v11356_v23 = vpop.eup %11355  ;;  %v7471_v44 = vmul.f32 0.5, %v11354_v0  ;;  %v7504_v30 = vadd.f32 0.5, %v7472_v24  ;;  %v17907_v35 = vld [vmem:[#allocation90_spill] sm:$0xff] }
 0x5f9   : > { %v6865_v11 = vpop.permute.xlu2 %6864  ;;  %v6861_v47 = vpop.permute.xlu0 %6860  ;;  %v6539_v8 = vadd.f32 %v6465_v46, %v15125_v50  ;;  %v7470_v21 = vmul.f32 0.5, %v11356_v23  ;;  %v6343_v5 = vmul.f32 %v15291_v31, %v17903_v17  ;;  %v7565_v63 = vmul.f32 %v7533_v2, %v17904_v14  ;;  %v17908_v46 = vld [vmem:[#allocation110_spill] sm:$0xff]  ;;  %v6576_v23 = vld [vmem:[#allocation2 + $0xd4] sm:$0xf]  ;;  %v17911_v17 = vld [vmem:[#allocation119_spill] sm:$0xff] }
 0x5fa   : > { %v6938_v37 = vadd.f32 %v6865_v11, %v15242_v16  ;;  %v6936_v1 = vadd.f32 %v6861_v47, %v15245_v40  ;;  %11357 = vtanh.f32 %v7411_v33  ;;  %v17902_v16 = vld [vmem:[#allocation133_spill] sm:$0xff]  ;;  %v7566_v27 = vmul.f32 %v7534_v34, %v17905_v49  ;;  %v17909_v47 = vld [vmem:[#allocation136_spill] sm:$0xff] }
 0x5fb   : > { %v6669_v41 = vadd.f32 %v17901_v59, %v6539_v8  ;;  %11359 = vtanh.f32 %v7409_v18  ;;  %v7503_v25 = vadd.f32 0.5, %v7471_v44  ;;  %v6345_v9 = vmul.f32 %v15291_v31, %v17906_v42 }
 0x5fc   : > { %v7008_v50 = vadd.f32 %v6976_v43, %v6938_v37  ;;  %v7006_v48 = vadd.f32 %v6974_v4, %v6936_v1  ;;  %v6639_v51 = vmul.f32 %v17907_v35, %v15182_v55  ;;  %v7310_v19 = vmul.f32 %v14836_v20, %v15108_v32 }
 0x5fd   : > { %v6739_v45 = vadd.f32 %v17902_v16, %v6669_v41  ;;  %v7502_v4 = vadd.f32 0.5, %v7470_v21  ;;  %v6711_v8 = vmul.f32 %v14749_v6, %v17909_v47  ;;  %v6709_v32 = vmul.f32 %v14749_v6, %v17906_v42  ;;  %v17910_v21 = vld [vmem:[#allocation120_spill] sm:$0xff] }
 0x5fe   : > { %7667 = vrot.lane.b32.xlu0 %v7594_v57, %s11433_s28  ;;  %7669 = vrot.lane.b32.xlu1 %v7595_v22, %s11433_s28  ;;  %v7078_v40 = vadd.f32 %v7046_v58, %v7008_v50  ;;  %v7076_v56 = vadd.f32 %v7044_v36, %v7006_v48  ;;  %v6641_v36 = vmul.f32 %v17907_v35, %v15272_v54  ;;  %v15316_v6 = vunpack.c.l.bf16 %v6576_v23  ;;  %v17913_v23 = vld [vmem:[#allocation82_spill] sm:$0xff] }
 0x5ff   : > { %7665 = vrot.lane.b32.xlu2 %v7593_v62, %s11433_s28  ;;  %v7564_v58 = vmul.f32 %v7532_v26, %v17908_v46  ;;  %v7597_v13 = vpack.c.bf16 %v7565_v63, %v7565_v63  ;;  %v7598_v22 = vpack.c.bf16 %v7566_v27, %v7566_v27  ;;  %v7537_v37 = vadd.f32 %v15143_v52, %v7504_v30 }
 0x600   : > { %v7195_v12 = vpop.permute.xlu1 %7194  ;;  %v11358_v43 = vpop.eup %11357  ;;  %v7536_v34 = vadd.f32 %v15143_v52, %v7503_v25  ;;  %v7535_v2 = vadd.f32 %v15143_v52, %v7502_v4  ;;  %v6975_v16 = vmul.f32 %v14771_v61, %v15182_v55  ;;  %v17912_v25 = vld [vmem:[#allocation117_spill] sm:$0xff]  ;;  %v15331_v4 = vld [vmem:[%s17359_s7 + $0x6] ss:$0 sm:$0xff] }
 0x601   : > { %v6473_v28 = vpop.permute.xlu2 %6472  ;;  %v6469_v33 = vpop.permute.xlu0 %6468  ;;  %v7272_v18 = vadd.f32 %v7195_v12, %v7074_v39  ;;  %v7475_v1 = vmul.f32 0.5, %v11358_v43  ;;  %v7596_v41 = vpack.c.bf16 %v7564_v58, %v7564_v58  ;;  %v7569_v62 = vmul.f32 %v7537_v37, %v17910_v21  ;;  %v6577_v43 = vld [vmem:[#allocation2 + $0xdc] sm:$0xf] }
 0x602   : > { %v11360_v0 = vpop.eup %11359  ;;  %v6543_v53 = vadd.f32 %v6473_v28, %v6345_v9  ;;  %v6541_v11 = vadd.f32 %v6469_v33, %v6343_v5  ;;  %v7568_v5 = vmul.f32 %v7536_v34, %v17911_v17  ;;  %v7567_v9 = vmul.f32 %v7535_v2, %v17912_v25 }
 0x603   : > { %v7342_v38 = vadd.f32 %v7310_v19, %v7272_v18  ;;  %v7473_v24 = vmul.f32 0.5, %v11360_v0  ;;  %v7507_v26 = vadd.f32 0.5, %v7475_v1  ;;  %v7312_v19 = vmul.f32 %v14836_v20, %v15239_v7  ;;  %v15364_v1 = vld [vmem:[%s17359_s7 + $0x5] ss:$0 sm:$0xff] }
 0x604   : > { %v6673_v57 = vadd.f32 %v6641_v36, %v6543_v53  ;;  %v6671_v39 = vadd.f32 %v6639_v51, %v6541_v11  ;;  %v7314_v51 = vmul.f32 %v14836_v20, %v15316_v6  ;;  %v7601_v55 = vpack.c.bf16 %v7569_v62, %v7569_v62  ;;  %v15349_v11 = vld [vmem:[%s17359_s7 + $0x2] ss:$0 sm:$0xff] }
 0x605   : > { %v7378_v59 = vadd.f32 %v14856_v29, %v7342_v38  ;;  %v7505_v14 = vadd.f32 0.5, %v7473_v24  ;;  %v7600_v28 = vpack.c.bf16 %v7568_v5, %v7568_v5  ;;  %v7540_v33 = vadd.f32 %v15143_v52, %v7507_v26  ;;  %v6578_v26 = vld [vmem:[#allocation2 + $0xe4] sm:$0xf] }
 0x606   : > { %7673 = vrot.lane.b32.xlu0 %v7597_v13, %s11433_s28  ;;  %7675 = vrot.lane.b32.xlu1 %v7598_v22, %s11433_s28  ;;  %v6743_v44 = vadd.f32 %v6711_v8, %v6673_v57  ;;  %v6741_v50 = vadd.f32 %v6709_v32, %v6671_v39  ;;  %v7599_v18 = vpack.c.bf16 %v7567_v9, %v7567_v9  ;;  %v15336_v46 = vunpack.c.l.bf16 %v6577_v43 }
 0x607   : > { %v7410_v48 = vmul.f32 0.5, %v7378_v59  ;;  %7671 = vrot.lane.b32.xlu2 %v7596_v41, %s11433_s28  ;;  %v7538_v20 = vadd.f32 %v15143_v52, %v7505_v14  ;;  %v6344_v53 = vmul.f32 %v15291_v31, %v17886_v3  ;;  %v6640_v8 = vmul.f32 %v15349_v11, %v15239_v7  ;;  %v17914_v59 = vld [vmem:[#allocation121_spill] sm:$0xff] }
 0x608   : > { %v6863_v30 = vpop.permute.xlu1 %6862  ;;  %v7572_v37 = vmul.f32 %v7540_v33, %v17913_v23  ;;  %v6979_v7 = vmul.f32 %v15364_v1, %v15336_v46  ;;  %v6977_v39 = vmul.f32 %v15364_v1, %v15272_v54  ;;  %v7047_v17 = vmul.f32 %v15331_v4, %v17909_v47 }
 0x609   : > { %11361 = vtanh.f32 %v7410_v48  ;;  %v7203_v63 = vpop.permute.xlu2 %7202  ;;  %v7199_v49 = vpop.permute.xlu0 %7198  ;;  %v6937_v27 = vadd.f32 %v6863_v30, %v6739_v45  ;;  %v7045_v45 = vmul.f32 %v15331_v4, %v17906_v42  ;;  %v7570_v41 = vmul.f32 %v7538_v20, %v17914_v59  ;;  %v15390_v20 = vld [vmem:[%s17359_s7 + $0x8] ss:$0 sm:$0xff] }
 0x60a   : > { %v7276_v35 = vadd.f32 %v7203_v63, %v7078_v40  ;;  %v7274_v12 = vadd.f32 %v7199_v49, %v7076_v56  ;;  %v7604_v63 = vpack.c.bf16 %v7572_v37, %v7572_v37 }
 0x60b   : > { %v7007_v61 = vadd.f32 %v6975_v16, %v6937_v27  ;;  %v17915_v16 = vld [vmem:[#allocation138_spill] sm:$0xff]  ;;  %v7602_v27 = vpack.c.bf16 %v7570_v41, %v7570_v41 }
 0x60c   : > { %v7346_v36 = vadd.f32 %v7314_v51, %v7276_v35  ;;  %v7344_v40 = vadd.f32 %v7312_v19, %v7274_v12  ;;  %v7049_v30 = vmul.f32 %v15331_v4, %v17915_v16  ;;  %v17917_v12 = vld [vmem:[#allocation137_spill] sm:$0xff] }
 0x60d   : > { %v7077_v56 = vadd.f32 %v7045_v45, %v7007_v61  ;;  %v6348_v43 = vmul.f32 %v15291_v31, %v17917_v12  ;;  %v6346_v61 = vmul.f32 %v15291_v31, %v17899_v10 }
 0x60e   : > { %v7382_v58 = vadd.f32 %v14856_v29, %v7346_v36  ;;  %v7380_v0 = vadd.f32 %v14856_v29, %v7344_v40  ;;  %7679 = vrot.lane.b32.xlu0 %v7600_v28, %s11433_s28  ;;  %7681 = vrot.lane.b32.xlu1 %v7601_v55, %s11433_s28  ;;  %v15356_v29 = vld [vmem:[%s17359_s7 + $0x3] ss:$0 sm:$0xff] }
 0x60f   : > { %v11362_v42 = vpop.eup %11361  ;;  %7677 = vrot.lane.b32.xlu2 %v7599_v18, %s11433_s28  ;;  %v6710_v32 = vmul.f32 %v15356_v29, %v17899_v10  ;;  %v6642_v18 = vmul.f32 %v15349_v11, %v15316_v6 }
 0x610   : > { %v7474_v38 = vmul.f32 0.5, %v11362_v42  ;;  %v7414_v13 = vmul.f32 0.5, %v7382_v58  ;;  %v7412_v22 = vmul.f32 0.5, %v7380_v0  ;;  %v6471_v3 = vpop.permute.xlu1 %6470  ;;  %v7313_v58 = vmul.f32 %v15390_v20, %v15272_v54 }
 0x611   : > { %v6871_v57 = vpop.permute.xlu2 %6870  ;;  %v6867_v34 = vpop.permute.xlu0 %6866  ;;  %v6542_v24 = vadd.f32 %v6471_v3, %v6344_v53 }
 0x612   : > { %v7506_v2 = vadd.f32 0.5, %v7474_v38  ;;  %11363 = vtanh.f32 %v7414_v13  ;;  %v6941_v48 = vadd.f32 %v6871_v57, %v6743_v44  ;;  %v6939_v21 = vadd.f32 %v6867_v34, %v6741_v50  ;;  %v17916_v50 = vld [vmem:[#allocation81_spill] sm:$0xff]  ;;  %v6579_v13 = vld [vmem:[#allocation2 + $0xec] sm:$0xf] }
 0x613   : > { %11365 = vtanh.f32 %v7412_v22  ;;  %v6672_v62 = vadd.f32 %v6640_v8, %v6542_v24  ;;  %v15377_v44 = vunpack.c.l.bf16 %v6578_v26  ;;  %v6712_v22 = vmul.f32 %v15356_v29, %v17917_v12 }
 0x614   : > { %v7011_v5 = vadd.f32 %v6979_v7, %v6941_v48  ;;  %v7009_v14 = vadd.f32 %v6977_v39, %v6939_v21  ;;  %v7539_v49 = vadd.f32 %v15143_v52, %v7506_v2  ;;  %v17918_v7 = vld [vmem:[#allocation143_spill] sm:$0xff]  ;;  %v15408_v34 = vunpack.c.l.bf16 %v6579_v13  ;;  %v17919_v48 = vld [vmem:[#allocation85_spill] sm:$0xff] }
 0x615   : > { %v6742_v25 = vadd.f32 %v6710_v32, %v6672_v62  ;;  %v6644_v10 = vmul.f32 %v15349_v11, %v15377_v44  ;;  %v6714_v54 = vmul.f32 %v15356_v29, %v17918_v7  ;;  %v7315_v62 = vmul.f32 %v15390_v20, %v15336_v46 }
 0x616   : > { %7687 = vrot.lane.b32.xlu1 %v7604_v63, %s11433_s28  ;;  %v7571_v9 = vmul.f32 %v7539_v49, %v17916_v50  ;;  %v7081_v35 = vadd.f32 %v7049_v30, %v7011_v5  ;;  %v7079_v51 = vadd.f32 %v7047_v17, %v7009_v14  ;;  %v17920_v30 = vld [vmem:[#allocation83_spill] sm:$0xff]  ;;  %v6978_v63 = vmul.f32 %v15364_v1, %v15316_v6 }
 0x617   : > { %7683 = vrot.lane.b32.xlu2 %v7602_v27, %s11433_s28 }
 0x618   : > { %v11364_v19 = vpop.eup %11363  ;;  %v7201_v55 = vpop.permute.xlu1 %7200  ;;  %v7603_v45 = vpack.c.bf16 %v7571_v9, %v7571_v9  ;;  %v7317_v9 = vmul.f32 %v15390_v20, %v15408_v34 }
 0x619   : > { %v11366_v36 = vpop.eup %11365  ;;  %v7478_v40 = vmul.f32 0.5, %v11364_v19  ;;  %v6479_v28 = vpop.permute.xlu2 %6478  ;;  %v7275_v0 = vadd.f32 %v7201_v55, %v7077_v56  ;;  %v15404_v56 = vld [vmem:[%s17360_s8] ss:$0 sm:$0xff] }
 0x61a   : > { %v6475_v33 = vpop.permute.xlu0 %6474  ;;  %v7476_v42 = vmul.f32 0.5, %v11366_v36  ;;  %v6546_v53 = vadd.f32 %v6479_v28, %v6348_v43  ;;  %7685 = vrot.lane.b32.xlu0 %v7603_v45, %s11433_s28  ;;  %v7048_v45 = vmul.f32 %v15331_v4, %v17917_v12 }
 0x61b   : > { %v6544_v8 = vadd.f32 %v6475_v33, %v6346_v61  ;;  %v7510_v32 = vadd.f32 0.5, %v7478_v40  ;;  %v7345_v38 = vadd.f32 %v7313_v58, %v7275_v0  ;;  %v6580_v61 = vld [vmem:[#allocation2 + $0xf4] sm:$0xf]  ;;  %v6347_v33 = vmul.f32 %v15291_v31, %v17909_v47 }
 0x61c   : > { %v7508_v3 = vadd.f32 0.5, %v7476_v42  ;;  %v6676_v23 = vadd.f32 %v6644_v10, %v6546_v53  ;;  %v15423_v6 = vunpack.c.l.bf16 %v6580_v61  ;;  %v6980_v53 = vmul.f32 %v15364_v1, %v15377_v44 }
 0x61d   : > { %v6674_v37 = vadd.f32 %v6642_v18, %v6544_v8  ;;  %v7381_v57 = vadd.f32 %v15404_v56, %v7345_v38  ;;  %v7543_v39 = vadd.f32 %v15143_v52, %v7510_v32  ;;  %v6643_v32 = vmul.f32 %v15349_v11, %v15336_v46 }
 0x61e   : > { %v7541_v24 = vadd.f32 %v15143_v52, %v7508_v3  ;;  %v6746_v59 = vadd.f32 %v6714_v54, %v6676_v23  ;;  %v6982_v12 = vmul.f32 %v15364_v1, %v15423_v6  ;;  %v6581_v23 = vld [vmem:[#allocation2 + $0xfc] sm:$0xf]  ;;  %v6713_v54 = vmul.f32 %v15356_v29, %v17915_v16 }
 0x61f   : > { %v6744_v41 = vadd.f32 %v6712_v22, %v6674_v37  ;;  %v7413_v2 = vmul.f32 0.5, %v7381_v57  ;;  %v7575_v21 = vmul.f32 %v7543_v39, %v17919_v48  ;;  %v7050_v37 = vmul.f32 %v15331_v4, %v17918_v7 }
 0x620   : > { %v6869_v26 = vpop.permute.xlu1 %6868  ;;  %v7573_v17 = vmul.f32 %v7541_v24, %v17920_v30  ;;  %v7052_v46 = vmul.f32 %v15331_v4, %v15151_v15  ;;  %v15442_v48 = vunpack.c.l.bf16 %v6581_v23  ;;  %v17922_v30 = vld [vmem:[#allocation144_spill] sm:$0xff] }
 0x621   : > { %11367 = vtanh.f32 %v7413_v2  ;;  %v7209_v5 = vpop.permute.xlu2 %7208  ;;  %v6940_v49 = vadd.f32 %v6869_v26, %v6742_v25  ;;  %v7607_v27 = vpack.c.bf16 %v7575_v21, %v7575_v21 }
 0x622   : > { %v7205_v14 = vpop.permute.xlu0 %7204  ;;  %v7279_v50 = vadd.f32 %v7209_v5, %v7081_v35  ;;  %v7605_v43 = vpack.c.bf16 %v7573_v17, %v7573_v17  ;;  %v6351_v17 = vmul.f32 %v15291_v31, %v17922_v30  ;;  %v6349_v5 = vmul.f32 %v15291_v31, %v17915_v16 }
 0x623   : > { %v7277_v19 = vadd.f32 %v7205_v14, %v7079_v51  ;;  %v7010_v55 = vadd.f32 %v6978_v63, %v6940_v49  ;;  %7693 = vrot.lane.b32.xlu1 %v7607_v27, %s11433_s28 }
 0x624   : > { %v7349_v36 = vadd.f32 %v7317_v9, %v7279_v50  ;;  %7689 = vrot.lane.b32.xlu2 %v7605_v43, %s11433_s28  ;;  %v7316_v43 = vmul.f32 %v15390_v20, %v15377_v44  ;;  %v6717_v44 = vmul.f32 %v15356_v29, %v15162_v60 }
 0x625   : > { %v7347_v40 = vadd.f32 %v7315_v62, %v7277_v19  ;;  %v7080_v25 = vadd.f32 %v7048_v45, %v7010_v55  ;;  %v6645_v19 = vmul.f32 %v15349_v11, %v15408_v34  ;;  %v6647_v45 = vmul.f32 %v15349_v11, %v15442_v48 }
 0x626   : > { %v7385_v35 = vadd.f32 %v15404_v56, %v7349_v36 }
 0x627   : > { %v7383_v28 = vadd.f32 %v15404_v56, %v7347_v40  ;;  %v11368_v51 = vpop.eup %11367 }
 0x628   : > { %v7477_v18 = vmul.f32 0.5, %v11368_v51  ;;  %v7417_v58 = vmul.f32 0.5, %v7385_v35  ;;  %v6477_v42 = vpop.permute.xlu1 %6476  ;;  %v6715_v51 = vmul.f32 %v15356_v29, %v17922_v30 }
 0x629   : > { %v7415_v0 = vmul.f32 0.5, %v7383_v28  ;;  %v6877_v10 = vpop.permute.xlu2 %6876  ;;  %v6545_v38 = vadd.f32 %v6477_v42, %v6347_v33  ;;  %v15456_v28 = vld [vmem:[#allocation2 + $0x104] sm:$0xf] }
 0x62a   : > { %v6873_v8 = vpop.permute.xlu0 %6872  ;;  %v7509_v13 = vadd.f32 0.5, %v7477_v18  ;;  %11369 = vtanh.f32 %v7417_v58  ;;  %v6944_v22 = vadd.f32 %v6877_v10, %v6746_v59  ;;  %v17921_v59 = vld [vmem:[#allocation84_spill] sm:$0xff]  ;;  %v6951_v42 = vunpack.c.l.bf16 %v15456_v28 }
 0x62b   : > { %v6942_v47 = vadd.f32 %v6873_v8, %v6744_v41  ;;  %11371 = vtanh.f32 %v7415_v0  ;;  %v6675_v3 = vadd.f32 %v6643_v32, %v6545_v38  ;;  %v17923_v32 = vld [vmem:[#allocation88_spill] sm:$0xff] }
 0x62c   : > { %v7014_v57 = vadd.f32 %v6982_v12, %v6944_v22  ;;  %v7542_v24 = vadd.f32 %v15143_v52, %v7509_v13  ;;  %v7318_v13 = vmul.f32 %v15390_v20, %v15423_v6 }
 0x62d   : > { %v7012_v39 = vadd.f32 %v6980_v53, %v6942_v47  ;;  %v6745_v2 = vadd.f32 %v6713_v54, %v6675_v3  ;;  %v17924_v47 = vld [vmem:[#allocation86_spill] sm:$0xff]  ;;  %v6981_v54 = vmul.f32 %v15364_v1, %v15408_v34 }
 0x62e   : > { %v7574_v41 = vmul.f32 %v7542_v24, %v17921_v59  ;;  %v7084_v21 = vadd.f32 %v7052_v46, %v7014_v57  ;;  %v7320_v46 = vmul.f32 %v15390_v20, %v6951_v42 }
 0x62f   : > { %v7082_v62 = vadd.f32 %v7050_v37, %v7012_v39 }
 0x630   : > { %v11370_v26 = vpop.eup %11369  ;;  %v7207_v14 = vpop.permute.xlu1 %7206  ;;  %v7606_v63 = vpack.c.bf16 %v7574_v41, %v7574_v41 }
 0x631   : > { %v11372_v49 = vpop.eup %11371  ;;  %v7481_v27 = vmul.f32 0.5, %v11370_v26  ;;  %v6485_v50 = vpop.permute.xlu2 %6484  ;;  %v7278_v61 = vadd.f32 %v7207_v14, %v7080_v25  ;;  %v15475_v26 = vld [vmem:[#allocation2 + $0x10c] sm:$0xf] }
 0x632   : > { %v6481_v9 = vpop.permute.xlu0 %6480  ;;  %v7479_v55 = vmul.f32 0.5, %v11372_v49  ;;  %v6549_v36 = vadd.f32 %v6485_v50, %v6351_v17  ;;  %7691 = vrot.lane.b32.xlu0 %v7606_v63, %s11433_s28  ;;  %v6952_v34 = vunpack.c.l.bf16 %v15475_v26  ;;  %v7287_v49 = vld [vmem:[#allocation2 + $0x11c] sm:$0xf]  ;;  %v6350_v50 = vmul.f32 %v15291_v31, %v17918_v7 }
 0x633   : > { %v6547_v40 = vadd.f32 %v6481_v9, %v6349_v5  ;;  %v7513_v16 = vadd.f32 0.5, %v7481_v27  ;;  %v7348_v35 = vadd.f32 %v7316_v43, %v7278_v61  ;;  %v7051_v5 = vmul.f32 %v15331_v4, %v17922_v30 }
 0x634   : > { %v7511_v33 = vadd.f32 0.5, %v7479_v55  ;;  %v6679_v18 = vadd.f32 %v6647_v45, %v6549_v36  ;;  %v6646_v9 = vmul.f32 %v15349_v11, %v15423_v6  ;;  %v6983_v61 = vmul.f32 %v15364_v1, %v15442_v48  ;;  %v17925_v36 = vld [vmem:[#allocation79_spill] sm:$0xff] }
 0x635   : > { %v6677_v58 = vadd.f32 %v6645_v19, %v6547_v40  ;;  %v7384_v25 = vadd.f32 %v15404_v56, %v7348_v35  ;;  %v7546_v0 = vadd.f32 %v15143_v52, %v7513_v16  ;;  %v6985_v45 = vmul.f32 %v15364_v1, %v6952_v34 }
 0x636   : > { %v7544_v12 = vadd.f32 %v15143_v52, %v7511_v33  ;;  %v6749_v10 = vadd.f32 %v6717_v44, %v6679_v18  ;;  %v17926_v40 = vunpack.c.l.bf16 %v17925_v36  ;;  %v7290_v35 = vunpack.c.l.bf16 %v7287_v49  ;;  %v17929_v49 = vld [vmem:[#allocation96_spill] sm:$0xff] }
 0x637   : > { %v6747_v53 = vadd.f32 %v6715_v51, %v6677_v58  ;;  %v7416_v8 = vmul.f32 0.5, %v7384_v25  ;;  %v7578_v38 = vmul.f32 %v7546_v0, %v17923_v32  ;;  %v6716_v58 = vmul.f32 %v15356_v29, %v15151_v15 }
 0x638   : > { %v6875_v22 = vpop.permute.xlu1 %6874  ;;  %v7576_v3 = vmul.f32 %v7544_v12, %v17924_v47  ;;  %v7055_v16 = vmul.f32 %v15331_v4, %v17926_v40  ;;  %v7053_v12 = vmul.f32 %v15331_v4, %v15162_v60  ;;  %v7323_v32 = vmul.f32 %v15390_v20, %v7290_v35  ;;  %v17928_v47 = vld [vmem:[#allocation92_spill] sm:$0xff] }
 0x639   : > { %11373 = vtanh.f32 %v7416_v8  ;;  %v7215_v23 = vpop.permute.xlu2 %7214  ;;  %v6943_v57 = vadd.f32 %v6875_v22, %v6745_v2  ;;  %v7610_v39 = vpack.c.bf16 %v7578_v38, %v7578_v38 }
 0x63a   : > { %v7211_v37 = vpop.permute.xlu0 %7210  ;;  %v7282_v24 = vadd.f32 %v7215_v23, %v7084_v21  ;;  %v7608_v41 = vpack.c.bf16 %v7576_v3, %v7576_v3 }
 0x63b   : > { %v7280_v59 = vadd.f32 %v7211_v37, %v7082_v62  ;;  %v7013_v17 = vadd.f32 %v6981_v54, %v6943_v57  ;;  %7699 = vrot.lane.b32.xlu1 %v7610_v39, %s11433_s28  ;;  %v7319_v57 = vmul.f32 %v15390_v20, %v15442_v48 }
 0x63c   : > { %v7352_v14 = vadd.f32 %v7320_v46, %v7282_v24  ;;  %7695 = vrot.lane.b32.xlu2 %v7608_v41, %s11433_s28 }
 0x63d   : > { %v7350_v63 = vadd.f32 %v7318_v13, %v7280_v59  ;;  %v7083_v2 = vadd.f32 %v7051_v5, %v7013_v17  ;;  %v17927_v13 = vld [vmem:[#allocation122_spill] sm:$0xff]  ;;  %v7286_v5 = vld [vmem:[#allocation2 + $0x114] sm:$0xf] }
 0x63e   : > { %v7388_v21 = vadd.f32 %v15404_v56, %v7352_v14 }
 0x63f   : > { %v7386_v62 = vadd.f32 %v15404_v56, %v7350_v63  ;;  %v11374_v27 = vpop.eup %11373 }
 0x640   : > { %v7480_v30 = vmul.f32 0.5, %v11374_v27  ;;  %v7420_v19 = vmul.f32 0.5, %v7388_v21  ;;  %v6483_v55 = vpop.permute.xlu1 %6482  ;;  %v7321_v21 = vmul.f32 %v15390_v20, %v6952_v34 }
 0x641   : > { %v7418_v43 = vmul.f32 0.5, %v7386_v62  ;;  %v6883_v51 = vpop.permute.xlu2 %6882  ;;  %v6548_v31 = vadd.f32 %v6483_v55, %v6350_v50  ;;  %v6984_v62 = vmul.f32 %v15364_v1, %v6951_v42  ;;  %v17932_v55 = vld [vmem:[#allocation91_spill] sm:$0xff] }
 0x642   : > { %v6879_v33 = vpop.permute.xlu0 %6878  ;;  %v7512_v7 = vadd.f32 0.5, %v7480_v30  ;;  %11375 = vtanh.f32 %v7420_v19  ;;  %v6947_v11 = vadd.f32 %v6883_v51, %v6749_v10 }
 0x643   : > { %v6945_v6 = vadd.f32 %v6879_v33, %v6747_v53  ;;  %11377 = vtanh.f32 %v7418_v43  ;;  %v6678_v18 = vadd.f32 %v6646_v9, %v6548_v31  ;;  %v17930_v9 = vld [vmem:[#allocation80_spill] sm:$0xff]  ;;  %v7289_v43 = vunpack.c.l.bf16 %v7286_v5  ;;  %v17937_v5 = vld [vmem:[#allocation6_spill] sm:$0xff] }
 0x644   : > { %v7017_v44 = vadd.f32 %v6985_v45, %v6947_v11  ;;  %v7545_v0 = vadd.f32 %v15143_v52, %v7512_v7  ;;  %v17931_v30 = vunpack.c.l.bf16 %v17930_v9  ;;  %v17939_v9 = vld [vmem:[#allocation19_spill] sm:$0xff] }
 0x645   : > { %v7015_v25 = vadd.f32 %v6983_v61, %v6945_v6  ;;  %v6748_v8 = vadd.f32 %v6716_v58, %v6678_v18  ;;  %v7322_v35 = vmul.f32 %v15390_v20, %v7289_v43  ;;  %v17933_v6 = vld [vmem:[#allocation115_spill] sm:$0xff] }
 0x646   : > { %v7087_v38 = vadd.f32 %v7055_v16, %v7017_v44  ;;  %v7577_v22 = vmul.f32 %v7545_v0, %v17927_v13  ;;  %v7054_v19 = vmul.f32 %v15331_v4, %v17931_v30 }
 0x647   : > { %v7085_v10 = vadd.f32 %v7053_v12, %v7015_v25 }
 0x648   : > { %v11376_v53 = vpop.eup %11375  ;;  %v7285_v3 = vadd.f32 %v17928_v47, %v7087_v38  ;;  %v7213_v23 = vpop.permute.xlu1 %7212  ;;  %v7609_v37 = vpack.c.bf16 %v7577_v22, %v7577_v22  ;;  %v7777_v38 = vld [vmem:[#allocation2 + $0x8] sm:$0x8] }
 0x649   : > { %v11378_v15 = vpop.eup %11377  ;;  %v7484_v29 = vmul.f32 0.5, %v11376_v53  ;;  %v7654_v54 = vpop.permute.xlu2 %7653  ;;  %v7281_v39 = vadd.f32 %v7213_v23, %v7083_v2  ;;  %v7811_v47 = vunpack.c.l.bf16 %v7777_v38 }
 0x64a   : > { %v7482_v60 = vmul.f32 0.5, %v11378_v15  ;;  %v7355_v24 = vadd.f32 %v7323_v32, %v7285_v3  ;;  %7747 = vst.msk [vmem:[#allocation2 + $0x20] sm:$0xf] %vm1779_vm9, %v7654_v54  ;;  %7697 = vrot.lane.b32.xlu0 %v7609_v37, %s11433_s28  ;;  %v17934_v37 = vld [vmem:[#allocation129_spill] sm:$0xff] }
 0x64b   : > { %v7516_v46 = vadd.f32 0.5, %v7484_v29  ;;  %v7351_v59 = vadd.f32 %v7319_v57, %v7281_v39  ;;  %v17935_v29 = vld [vmem:[#allocation13_spill] sm:$0xff]  ;;  %v17936_v57 = vld [vmem:[#allocation124_spill] sm:$0xff] }
 0x64c   : > { %v7514_v41 = vadd.f32 0.5, %v7482_v60  ;;  %v7391_v26 = vadd.f32 %v15404_v56, %v7355_v24 }
 0x64d   : > { %v7387_v17 = vadd.f32 %v15404_v56, %v7351_v59  ;;  %v7549_v14 = vadd.f32 %v15143_v52, %v7516_v46 }
 0x64e   : > { %v7423_v63 = vmul.f32 0.5, %v7391_v26  ;;  %v7547_v48 = vadd.f32 %v15143_v52, %v7514_v41 }
 0x64f   : > { %v7419_v2 = vmul.f32 0.5, %v7387_v17  ;;  %v7581_v27 = vmul.f32 %v7549_v14, %v17929_v49  ;;  %v7844_v14 = vmul.f32 %v7811_v47, %v17937_v5 }
 0x650   : > { %11379 = vtanh.f32 %v7423_v63  ;;  %v7217_v50 = vpop.permute.xlu0 %7216  ;;  %v6881_v61 = vpop.permute.xlu1 %6880  ;;  %v7579_v45 = vmul.f32 %v7547_v48, %v17932_v55  ;;  %v17940_v55 = vld [vmem:[#allocation10_spill] sm:$0xff] }
 0x651   : > { %11381 = vtanh.f32 %v7419_v2  ;;  %v7283_v36 = vadd.f32 %v7217_v50, %v7085_v10  ;;  %v7660_v40 = vpop.permute.xlu2 %7659  ;;  %v6946_v34 = vadd.f32 %v6881_v61, %v6748_v8  ;;  %v7613_v16 = vpack.c.bf16 %v7581_v27, %v7581_v27  ;;  %v15524_v31 = vld [vmem:[#allocation2 + $0x20] sm:$0xf]  ;;  %v17938_v27 = vld [vmem:[#allocation8_spill] sm:$0xff] }
 0x652   : > { %7750 = vst.msk [vmem:[#allocation2 + $0x38] sm:$0xf] %vm1779_vm9, %v7660_v40  ;;  %v7611_v1 = vpack.c.bf16 %v7579_v45, %v7579_v45  ;;  %v7814_v20 = vunpack.c.l.bf16 %v15524_v31  ;;  %v7877_v43 = vpack.c.bf16 %v7844_v14, %v7844_v14 }
 0x653   : > { %v7353_v28 = vadd.f32 %v7321_v21, %v7283_v36  ;;  %v7016_v42 = vadd.f32 %v6984_v62, %v6946_v34  ;;  %7705 = vrot.lane.b32.xlu1 %v7613_v16, %s11433_s28  ;;  %v17941_v16 = vld [vmem:[#allocation125_spill] sm:$0xff] }
 0x654   : > { %7701 = vrot.lane.b32.xlu2 %v7611_v1, %s11433_s28  ;;  %v7847_v54 = vmul.f32 %v7814_v20, %v17935_v29  ;;  %v17943_v29 = vld [vmem:[#allocation16_spill] sm:$0xff] }
 0x655   : > { %v7389_v4 = vadd.f32 %v15404_v56, %v7353_v28  ;;  %v7086_v51 = vadd.f32 %v7054_v19, %v7016_v42 }
 0x656   : > { %v11380_v33 = vpop.eup %11379  ;;  %v7880_v48 = vpack.c.bf16 %v7847_v54, %v7847_v54 }
 0x657   : > { %v11382_v7 = vpop.eup %11381  ;;  %v7421_v11 = vmul.f32 0.5, %v7389_v4  ;;  %v7284_v18 = vadd.f32 %v17933_v6, %v7086_v51  ;;  %v7487_v58 = vmul.f32 0.5, %v11380_v33  ;;  %v7911_v6 = vshrl.u32 %v7877_v43, 16 }
 0x658   : > { %v7483_v44 = vmul.f32 0.5, %v11382_v7  ;;  %v7650_v25 = vpop.permute.xlu0 %7649  ;;  %v7652_v0 = vpop.permute.xlu1 %7651  ;;  %v7934_v36 = vshrl.u32 %v7880_v48, 16 }
 0x659   : > { %11383 = vtanh.f32 %v7421_v11  ;;  %v7354_v12 = vadd.f32 %v7322_v35, %v7284_v18  ;;  %7745 = vst.msk [vmem:[#allocation2 + $0x10] sm:$0xf] %vm1779_vm9, %v7650_v25  ;;  %v7666_v8 = vpop.permute.xlu2 %7665  ;;  %v7519_v32 = vadd.f32 0.5, %v7487_v58  ;;  %v15534_v3 = vld [vmem:[#allocation2 + $0x38] sm:$0xf] }
 0x65a   : > { %v7515_v13 = vadd.f32 0.5, %v7483_v44  ;;  %7753 = vst.msk [vmem:[#allocation2 + $0x50] sm:$0xf] %vm1779_vm9, %v7666_v8  ;;  %v7817_v24 = vunpack.c.l.bf16 %v15534_v3  ;;  %v17969_v3 = vld [vmem:[#allocation39_spill] sm:$0xff] }
 0x65b   : > { %v7390_v22 = vadd.f32 %v15404_v56, %v7354_v12  ;;  %7746 = vst.msk [vmem:[#allocation2 + $0x18] sm:$0xf] %vm1779_vm9, %v7652_v0  ;;  %v7552_v10 = vadd.f32 %v15143_v52, %v7519_v32  ;;  %v15573_v0 = vrot.slane %v7934_v36, 7  ;;  %v7937_v32 = vshll.u32 %v7880_v48, 16 }
 0x65c   : > { %v7548_v53 = vadd.f32 %v15143_v52, %v7515_v13  ;;  %v7850_v30 = vmul.f32 %v7817_v24, %v17939_v9 }
 0x65d   : > { %v7422_v23 = vmul.f32 0.5, %v7390_v22  ;;  %v7584_v15 = vmul.f32 %v7552_v10, %v17934_v37 }
 0x65e   : > { %v7580_v39 = vmul.f32 %v7548_v53, %v17936_v57  ;;  %v15567_v35 = vpack.c.bf16 %v7850_v30, %v7850_v30  ;;  %v17944_v57 = vld [vmem:[#allocation25_spill] sm:$0xff] }
 0x65f   : > { %v11384_v60 = vpop.eup %11383  ;;  %11385 = vtanh.f32 %v7422_v23  ;;  %v7616_v56 = vpack.c.bf16 %v7584_v15, %v7584_v15  ;;  %v17942_v23 = vld [vmem:[#allocation127_spill] sm:$0xff]  ;;  %v11016_v15 = vrot.slane %v7911_v6, 11 }
 0x660   : > { %v7485_v46 = vmul.f32 0.5, %v11384_v60  ;;  %v7656_v59 = vpop.permute.xlu0 %7655  ;;  %v7658_v41 = vpop.permute.xlu1 %7657  ;;  %v7612_v26 = vpack.c.bf16 %v7580_v39, %v7580_v39  ;;  %v15542_v17 = vld [vmem:[#allocation2 + $0x10] sm:$0xf]  ;;  %v7961_v47 = vshrl.u32 %v15567_v35, 16  ;;  %v7939_v60 = vor.u32 %v7937_v32, %v15573_v0  ;;  %v17948_v32 = vld [vmem:[#allocation33_spill] sm:$0xff] }
 0x661   : > { %7748 = vst.msk [vmem:[#allocation2 + $0x28] sm:$0xf] %vm1779_vm9, %v7656_v59  ;;  %v7672_v63 = vpop.permute.xlu2 %7671  ;;  %7711 = vrot.lane.b32.xlu1 %v7616_v56, %s11433_s28  ;;  %v7812_v2 = vunpack.c.l.bf16 %v15542_v17  ;;  %v15564_v34 = vld [vmem:[#allocation2 + $0x50] sm:$0xf] }
 0x662   : > { %v7517_v21 = vadd.f32 0.5, %v7485_v46  ;;  %7756 = vst.msk [vmem:[#allocation2 + $0x68] sm:$0xf] %vm1779_vm9, %v7672_v63  ;;  %7703 = vrot.lane.b32.xlu0 %v7612_v26, %s11433_s28  ;;  %v15550_v62 = vld [vmem:[#allocation2 + $0x18] sm:$0xf]  ;;  %v7820_v58 = vunpack.c.l.bf16 %v15564_v34  ;;  %v17945_v46 = vld [vmem:[#allocation15_spill] sm:$0xff] }
 0x663   : > { %7749 = vst.msk [vmem:[#allocation2 + $0x30] sm:$0xf] %vm1779_vm9, %v7658_v41  ;;  %v7813_v49 = vunpack.c.l.bf16 %v15550_v62  ;;  %v7845_v50 = vmul.f32 %v7812_v2, %v17938_v27 }
 0x664   : > { %v7550_v19 = vadd.f32 %v15143_v52, %v7517_v21  ;;  %v15602_v21 = vrot.slane %v7961_v47, 7 }
 0x665   : > { %v11386_v61 = vpop.eup %11385  ;;  %v7846_v45 = vmul.f32 %v7813_v49, %v17940_v55  ;;  %v7878_v40 = vpack.c.bf16 %v7845_v50, %v7845_v50 }
 0x666   : > { %v7582_v1 = vmul.f32 %v7550_v19, %v17941_v16  ;;  %v7486_v28 = vmul.f32 0.5, %v11386_v61 }
 0x667   : > { %v7879_v42 = vpack.c.bf16 %v7846_v45, %v7846_v45  ;;  %v7916_v4 = vshrl.u32 %v7878_v40, 16  ;;  %v7919_v10 = vshll.u32 %v7878_v40, 16  ;;  %v7964_v40 = vshll.u32 %v15567_v35, 16 }
 0x668   : > { %v7662_v51 = vpop.permute.xlu0 %7661  ;;  %v7664_v33 = vpop.permute.xlu1 %7663  ;;  %v7614_v7 = vpack.c.bf16 %v7582_v1, %v7582_v1  ;;  %v7518_v11 = vadd.f32 0.5, %v7486_v28  ;;  %v15569_v18 = vld [vmem:[#allocation2 + $0x28] sm:$0xf] }
 0x669   : > { %7751 = vst.msk [vmem:[#allocation2 + $0x40] sm:$0xf] %vm1779_vm9, %v7662_v51  ;;  %v7678_v44 = vpop.permute.xlu2 %7677  ;;  %v7925_v25 = vshrl.u32 %v7879_v42, 16  ;;  %v15575_v12 = vrot.slane %v7916_v4, 7  ;;  %v7815_v8 = vunpack.c.l.bf16 %v15569_v18  ;;  %v15598_v41 = vld [vmem:[#allocation2 + $0x68] sm:$0xf]  ;;  %v7966_v6 = vor.u32 %v7964_v40, %v15602_v21 }
 0x66a   : > { %7759 = vst.msk [vmem:[#allocation2 + $0x80] sm:$0xf] %vm1779_vm9, %v7678_v44  ;;  %7707 = vrot.lane.b32.xlu2 %v7614_v7, %s11433_s28  ;;  %v7551_v38 = vadd.f32 %v15143_v52, %v7518_v11  ;;  %v15581_v13 = vld [vmem:[#allocation2 + $0x30] sm:$0xf]  ;;  %v7853_v52 = vmul.f32 %v7820_v58, %v17944_v57  ;;  %v7928_v9 = vshll.u32 %v7879_v42, 16  ;;  %v7823_v61 = vunpack.c.l.bf16 %v15598_v41 }
 0x66b   : > { %7752 = vst.msk [vmem:[#allocation2 + $0x48] sm:$0xf] %vm1779_vm9, %v7664_v33  ;;  %v7927_v22 = vrot.slane %v7925_v25, 7  ;;  %v7816_v53 = vunpack.c.l.bf16 %v15581_v13  ;;  %v7848_v54 = vmul.f32 %v7815_v8, %v17943_v29  ;;  %v7921_v56 = vor.u32 %v7919_v10, %v15575_v12  ;;  %v17947_v11 = vld [vmem:[#allocation24_spill] sm:$0xff]  ;;  %v17949_v10 = vld [vmem:[#allocation27_spill] sm:$0xff] }
 0x66c   : > { %v7583_v37 = vmul.f32 %v7551_v38, %v17942_v23  ;;  %v7886_v19 = vpack.c.bf16 %v7853_v52, %v7853_v52  ;;  %v7923_v1 = vrot.slane %v15575_v12, 4  ;;  %v7856_v12 = vmul.f32 %v7823_v61, %v17948_v32 }
 0x66d   : > { %v7932_v39 = vrot.slane %v7927_v22, 4  ;;  %v7849_v59 = vmul.f32 %v7816_v53, %v17945_v46  ;;  %v7881_v5 = vpack.c.bf16 %v7848_v54, %v7848_v54  ;;  %v7922_v45 = vsel %vm11768_vm3, %v11016_v15, %v7921_v56 }
 0x66e   : > { %v7615_v26 = vpack.c.bf16 %v7583_v37, %v7583_v37  ;;  %v7930_v28 = vor.u32 %v7928_v9, %v7927_v22  ;;  %v7988_v25 = vshrl.u32 %v7886_v19, 16  ;;  %v7889_v56 = vpack.c.bf16 %v7856_v12, %v7856_v12 }
 0x66f   : > { %v7940_v63 = vsel %vm11768_vm3, %v7932_v39, %v7939_v60  ;;  %v7882_v48 = vpack.c.bf16 %v7849_v59, %v7849_v59  ;;  %v7943_v30 = vshrl.u32 %v7881_v5, 16  ;;  %v7946_v60 = vshll.u32 %v7881_v5, 16 }
 0x670   : > { %8206 = vrot.lane.b32.xlu1 %v7940_v63, %s11433_s28  ;;  %v7668_v27 = vpop.permute.xlu0 %7667  ;;  %7709 = vrot.lane.b32.xlu0 %v7615_v26, %s11433_s28  ;;  %v7670_v50 = vpop.permute.xlu1 %7669  ;;  %v15606_v43 = vld [vmem:[#allocation2 + $0x40] sm:$0xf]  ;;  %v7931_v15 = vsel %vm11768_vm3, %v7923_v1, %v7930_v28  ;;  %v15639_v39 = vrot.slane %v7988_v25, 7  ;;  %v8015_v40 = vshrl.u32 %v7889_v56, 16  ;;  %v17950_v1 = vld [vmem:[#allocation29_spill] sm:$0xff]  ;;  %v7968_v32 = vrot.slane %v15602_v21, 4 }
 0x671   : > { %7754 = vst.msk [vmem:[#allocation2 + $0x58] sm:$0xf] %vm1779_vm9, %v7668_v27  ;;  %v7684_v55 = vpop.permute.xlu2 %7683  ;;  %v7952_v36 = vshrl.u32 %v7882_v48, 16  ;;  %v7818_v16 = vunpack.c.l.bf16 %v15606_v43  ;;  %v7945_v42 = vrot.slane %v7943_v30, 7  ;;  %v7955_v33 = vshll.u32 %v7882_v48, 16 }
 0x672   : > { %7762 = vst.msk [vmem:[#allocation2 + $0x98] sm:$0xf] %vm1779_vm9, %v7684_v55  ;;  %8202 = vrot.lane.b32.xlu2 %v7922_v45, %s11433_s28  ;;  %v15617_v4 = vld [vmem:[#allocation2 + $0x48] sm:$0xf]  ;;  %v7991_v27 = vshll.u32 %v7886_v19, 16 }
 0x673   : > { %7755 = vst.msk [vmem:[#allocation2 + $0x60] sm:$0xf] %vm1779_vm9, %v7670_v50  ;;  %v7954_v51 = vrot.slane %v7952_v36, 7  ;;  %v7819_v7 = vunpack.c.l.bf16 %v15617_v4  ;;  %v7851_v35 = vmul.f32 %v7818_v16, %v17947_v11  ;;  %v7950_v44 = vrot.slane %v7945_v42, 4  ;;  %v15655_v45 = vld [vmem:[#allocation2 + $0x80] sm:$0xf] }
 0x674   : > { %v7948_v9 = vor.u32 %v7946_v60, %v7945_v42  ;;  %v7941_v36 = vrot.slane %v15573_v0, 4  ;;  %v17951_v11 = vld [vmem:[#allocation31_spill] sm:$0xff] }
 0x675   : > { %v7959_v38 = vrot.slane %v7954_v51, 4  ;;  %v7957_v22 = vor.u32 %v7955_v33, %v7954_v51  ;;  %v7852_v47 = vmul.f32 %v7819_v7, %v17949_v10  ;;  %v7884_v23 = vpack.c.bf16 %v7851_v35, %v7851_v35 }
 0x676   : > { %v7993_v33 = vor.u32 %v7991_v27, %v15639_v39  ;;  %v7949_v25 = vsel %vm11768_vm3, %v7941_v36, %v7948_v9  ;;  %v15675_v10 = vrot.slane %v8015_v40, 7  ;;  %v17954_v40 = vld [vmem:[#allocation34_spill] sm:$0xff] }
 0x677   : > { %v7967_v37 = vsel %vm11768_vm3, %v7959_v38, %v7966_v6  ;;  %v15635_v29 = vpack.c.bf16 %v7852_v47, %v7852_v47  ;;  %v7970_v54 = vshrl.u32 %v7884_v23, 16  ;;  %v7958_v59 = vsel %vm11768_vm3, %v7950_v44, %v7957_v22 }
 0x678   : > { %8212 = vrot.lane.b32.xlu1 %v7967_v37, %s11433_s28  ;;  %v7674_v57 = vpop.permute.xlu0 %7673  ;;  %8204 = vrot.lane.b32.xlu0 %v7931_v15, %s11433_s28  ;;  %v7676_v52 = vpop.permute.xlu1 %7675  ;;  %v15641_v46 = vld [vmem:[#allocation2 + $0x58] sm:$0xf]  ;;  %v7973_v30 = vshll.u32 %v7884_v23, 16  ;;  %v7826_v44 = vunpack.c.l.bf16 %v15655_v45  ;;  %v8018_v47 = vshll.u32 %v7889_v56, 16 }
 0x679   : > { %7757 = vst.msk [vmem:[#allocation2 + $0x70] sm:$0xf] %vm1779_vm9, %v7674_v57  ;;  %v7979_v26 = vshrl.u32 %v15635_v29, 16  ;;  %v15647_v63 = vrot.slane %v7970_v54, 7  ;;  %v7821_v48 = vunpack.c.l.bf16 %v15641_v46  ;;  %v17952_v15 = vld [vmem:[#allocation17_spill] sm:$0xff] }
 0x67a   : > { %7758 = vst.msk [vmem:[#allocation2 + $0x78] sm:$0xf] %vm1779_vm9, %v7676_v52  ;;  %8210 = vrot.lane.b32.xlu2 %v7958_v59, %s11433_s28  ;;  %v15652_v5 = vld [vmem:[#allocation2 + $0x60] sm:$0xf]  ;;  %v8334_v54 = vmul.f32 %v7815_v8, %v17952_v15  ;;  %v7982_v52 = vshll.u32 %v15635_v29, 16  ;;  %v11183_v29 = vld [vmem:[%s17364_s12 + $0x18] sm:$0xff] }
 0x67b   : > { %v7981_v50 = vrot.slane %v7979_v26, 7  ;;  %v7822_v55 = vunpack.c.l.bf16 %v15652_v5  ;;  %v7854_v28 = vmul.f32 %v7821_v48, %v17950_v1  ;;  %v7975_v19 = vor.u32 %v7973_v30, %v15647_v63  ;;  %v17953_v8 = vld [vmem:[#allocation38_spill] sm:$0xff]  ;;  %10051 = vmatpush.bf16.msra.mxu0 %v11183_v29 }
 0x67c   : > { %v7977_v56 = vrot.slane %v15647_v63, 4  ;;  %v7859_v26 = vmul.f32 %v7826_v44, %v17953_v8  ;;  %v17958_v29 = vld [vmem:[#allocation18_spill] sm:$0xff] }
 0x67d   : > { %v7986_v51 = vrot.slane %v7981_v50, 4  ;;  %v7855_v42 = vmul.f32 %v7822_v55, %v17951_v11  ;;  %v7887_v6 = vpack.c.bf16 %v7854_v28, %v7854_v28  ;;  %v7976_v21 = vsel %vm11768_vm3, %v7968_v32, %v7975_v19  ;;  %v17955_v28 = vld [vmem:[#allocation37_spill] sm:$0xff] }
 0x67e   : > { %v7690_v35 = vpop.permute.xlu2 %7689  ;;  %v7984_v30 = vor.u32 %v7982_v52, %v7981_v50  ;;  %v8020_v19 = vor.u32 %v8018_v47, %v15675_v10  ;;  %v8335_v62 = vmul.f32 %v7816_v53, %v17958_v29 }
 0x67f   : > { %7765 = vst.msk [vmem:[#allocation2 + $0xb0] sm:$0xf] %vm1779_vm9, %v7690_v35  ;;  %v7994_v0 = vsel %vm11768_vm3, %v7986_v51, %v7993_v33  ;;  %v7888_v12 = vpack.c.bf16 %v7855_v42, %v7855_v42  ;;  %v7997_v23 = vshrl.u32 %v7887_v6, 16  ;;  %v8000_v36 = vshll.u32 %v7887_v6, 16 }
 0x680   : > { %8218 = vrot.lane.b32.xlu1 %v7994_v0, %s11433_s28  ;;  %v7680_v38 = vpop.permute.xlu0 %7679  ;;  %8208 = vrot.lane.b32.xlu0 %v7949_v25, %s11433_s28  ;;  %v7682_v22 = vpop.permute.xlu1 %7681  ;;  %v15677_v37 = vld [vmem:[#allocation2 + $0x70] sm:$0xf]  ;;  %v8367_v51 = vpack.c.bf16 %v8334_v54, %v8334_v54  ;;  %v7995_v35 = vrot.slane %v15639_v39, 4  ;;  %v15707_v0 = vpack.c.bf16 %v7859_v26, %v7859_v26  ;;  %v7985_v6 = vsel %vm11768_vm3, %v7977_v56, %v7984_v30  ;;  %v17956_v39 = vld [vmem:[#allocation23_spill] sm:$0xff] }
 0x681   : > { %7760 = vst.msk [vmem:[#allocation2 + $0x88] sm:$0xf] %vm1779_vm9, %v7680_v38  ;;  %v8006_v57 = vshrl.u32 %v7888_v12, 16  ;;  %v7824_v60 = vunpack.c.l.bf16 %v15677_v37  ;;  %v15687_v59 = vld [vmem:[#allocation2 + $0x78] sm:$0xf]  ;;  %v7999_v18 = vrot.slane %v7997_v23, 7  ;;  %v8337_v15 = vmul.f32 %v7818_v16, %v17956_v39 }
 0x682   : > { %7761 = vst.msk [vmem:[#allocation2 + $0x90] sm:$0xf] %vm1779_vm9, %v7682_v22  ;;  %8214 = vrot.lane.b32.xlu2 %v7976_v21, %s11433_s28  ;;  %v7825_v27 = vunpack.c.l.bf16 %v15687_v59  ;;  %v8427_v47 = vshll.u32 %v8367_v51, 16  ;;  %v8431_v23 = vshrl.u32 %v8367_v51, 16  ;;  %v17957_v54 = vld [vmem:[#allocation12_spill] sm:$0xff]  ;;  %v8009_v52 = vshll.u32 %v7888_v12, 16 }
 0x683   : > { %v8008_v9 = vrot.slane %v8006_v57, 7  ;;  %v7857_v1 = vmul.f32 %v7824_v60, %v17954_v40  ;;  %v8002_v11 = vor.u32 %v8000_v36, %v7999_v18  ;;  %v8332_v21 = vmul.f32 %v7813_v49, %v17957_v54  ;;  %v17959_v12 = vld [vmem:[#allocation41_spill] sm:$0xff] }
 0x684   : > { %v7858_v63 = vmul.f32 %v7825_v27, %v17955_v28  ;;  %v8004_v43 = vrot.slane %v7999_v18, 4  ;;  %v8042_v16 = vshrl.u32 %v15707_v0, 16  ;;  %v8433_v51 = vrot.slane %v8431_v23, 4  ;;  %v17960_v18 = vld [vmem:[#allocation42_spill] sm:$0xff] }
 0x685   : > { %v8013_v33 = vrot.slane %v8008_v9, 4  ;;  %v7890_v42 = vpack.c.bf16 %v7857_v1, %v7857_v1  ;;  %v8003_v57 = vsel %vm11768_vm3, %v7995_v35, %v8002_v11  ;;  %v8011_v30 = vor.u32 %v8009_v52, %v8008_v9  ;;  %v17961_v9 = vld [vmem:[#allocation14_spill] sm:$0xff] }
 0x686   : > { %v7891_v32 = vpack.c.bf16 %v7858_v63, %v7858_v63  ;;  %v15740_v63 = vrot.slane %v8427_v47, 5  ;;  %v8333_v11 = vmul.f32 %v7814_v20, %v17961_v9  ;;  %v8022_v23 = vrot.slane %v15675_v10, 4 }
 0x687   : > { %v8021_v50 = vsel %vm11768_vm3, %v8013_v33, %v8020_v19  ;;  %v8024_v25 = vshrl.u32 %v7890_v42, 16  ;;  %v8027_v36 = vshll.u32 %v7890_v42, 16  ;;  %v8370_v19 = vpack.c.bf16 %v8337_v15, %v8337_v15  ;;  %v17962_v42 = vld [vmem:[#allocation9_spill] sm:$0xff] }
 0x688   : > { %8224 = vrot.lane.b32.xlu1 %v8021_v50, %s11433_s28  ;;  %8216 = vrot.lane.b32.xlu0 %v7985_v6, %s11433_s28  ;;  %v7688_v38 = vpop.permute.xlu1 %7687  ;;  %v15715_v22 = vld [vmem:[#allocation2 + $0x88] sm:$0xf]  ;;  %v8033_v1 = vshrl.u32 %v7891_v32, 16  ;;  %v8331_v35 = vmul.f32 %v7812_v2, %v17962_v42  ;;  %v15753_v50 = vrot.slane %v8042_v16, 7  ;;  %v15755_v6 = vpack.c.bf16 %v8335_v62, %v8335_v62  ;;  %v17963_v16 = vld [vmem:[#allocation26_spill] sm:$0xff] }
 0x689   : > { %7764 = vst.msk [vmem:[#allocation2 + $0xa8] sm:$0xf] %vm1779_vm9, %v7688_v38  ;;  %v15726_v56 = vrot.slane %v8024_v25, 7  ;;  %v7827_v8 = vunpack.c.l.bf16 %v15715_v22  ;;  %v15729_v26 = vld [vmem:[#allocation2 + $0x90] sm:$0xf]  ;;  %v8365_v38 = vpack.c.bf16 %v8332_v21, %v8332_v21  ;;  %v8012_v47 = vsel %vm11768_vm3, %v8004_v43, %v8011_v30 }
 0x68a   : > { %8220 = vrot.lane.b32.xlu2 %v8003_v57, %s11433_s28  ;;  %v7828_v49 = vunpack.c.l.bf16 %v15729_v26  ;;  %v15760_v15 = vrot.slane %v8033_v1, 7  ;;  %v8036_v31 = vshll.u32 %v7891_v32, 16  ;;  %v8434_v20 = vor.u32 %v8433_v51, %v15740_v63 }
 0x68b   : > { %v7860_v40 = vmul.f32 %v7827_v8, %v17959_v12  ;;  %v8029_v13 = vor.u32 %v8027_v36, %v15726_v56  ;;  %v8457_v17 = vshll.u32 %v8370_v19, 16  ;;  %v8461_v2 = vshrl.u32 %v8370_v19, 16  ;;  %v17964_v12 = vld [vmem:[#allocation28_spill] sm:$0xff] }
 0x68c   : > { %v7686_v28 = vpop.permute.xlu0 %7685  ;;  %v7861_v33 = vmul.f32 %v7828_v49, %v17960_v18  ;;  %v8049_v10 = vrot.slane %v15753_v50, 4  ;;  %v8437_v43 = vshll.u32 %v15755_v6, 16  ;;  %v8338_v32 = vmul.f32 %v7819_v7, %v17963_v16 }
 0x68d   : > { %7763 = vst.msk [vmem:[#allocation2 + $0xa0] sm:$0xf] %vm1779_vm9, %v7686_v28  ;;  %v7893_v53 = vpack.c.bf16 %v7860_v40, %v7860_v40  ;;  %v8030_v54 = vsel %vm11768_vm3, %v8022_v23, %v8029_v13  ;;  %v8364_v29 = vpack.c.bf16 %v8331_v35, %v8331_v35  ;;  %v8031_v30 = vrot.slane %v15726_v56, 4 }
 0x68e   : > { %v7894_v25 = vpack.c.bf16 %v7861_v33, %v7861_v33  ;;  %v8038_v36 = vor.u32 %v8036_v31, %v15760_v15  ;;  %v8339_v40 = vmul.f32 %v7820_v58, %v17964_v12  ;;  %v8435_v1 = vrot.slane %v8434_v20, 4  ;;  %v17966_v20 = vld [vmem:[#allocation20_spill] sm:$0xff] }
 0x68f   : > { %v8051_v39 = vshrl.u32 %v7893_v53, 16  ;;  %v8054_v21 = vshll.u32 %v7893_v53, 16  ;;  %v8407_v28 = vshll.u32 %v8365_v38, 16  ;;  %v8411_v51 = vshrl.u32 %v8365_v38, 16 }
 0x690   : > { %8222 = vrot.lane.b32.xlu0 %v8012_v47, %s11433_s28  ;;  %v8060_v52 = vshrl.u32 %v7894_v25, 16  ;;  %v15781_v4 = vrot.slane %v8457_v17, 5  ;;  %v8463_v7 = vrot.slane %v8461_v2, 4  ;;  %v15785_v13 = vrot.slane %v8437_v43, 5 }
 0x691   : > { %v8053_v57 = vrot.slane %v8051_v39, 7  ;;  %v15787_v34 = vpack.c.bf16 %v8338_v32, %v8338_v32  ;;  %v8366_v58 = vpack.c.bf16 %v8333_v11, %v8333_v11  ;;  %v8398_v53 = vshrl.u32 %v8364_v29, 16 }
 0x692   : > { %8226 = vrot.lane.b32.xlu2 %v8030_v54, %s11433_s28  ;;  %v15779_v19 = vrot.slane %v8060_v52, 7  ;;  %v8039_v9 = vsel %vm11768_vm3, %v8031_v30, %v8038_v36  ;;  %v8063_v42 = vshll.u32 %v7894_v25, 16  ;;  %v8401_v35 = vshll.u32 %v8364_v29, 16  ;;  %v17967_v25 = vld [vmem:[#allocation36_spill] sm:$0xff] }
 0x693   : > { %v8056_v62 = vor.u32 %v8054_v21, %v8053_v57  ;;  %v8372_v38 = vpack.c.bf16 %v8339_v40, %v8339_v40  ;;  %v8440_v23 = vsel %vm11883_vm12, %v8435_v1, %v15785_v13  ;;  %v8409_v39 = vrot.slane %v8407_v28, 5 }
 0x694   : > { %v8413_v31 = vrot.slane %v8411_v51, 4  ;;  %v8340_v11 = vmul.f32 %v7821_v48, %v17966_v20  ;;  %v8058_v17 = vrot.slane %v8053_v57, 4  ;;  %v8065_v2 = vor.u32 %v8063_v42, %v15779_v19 }
 0x695   : > { %v7694_v18 = vpop.permute.xlu1 %7693  ;;  %v8057_v33 = vsel %vm11768_vm3, %v8049_v10, %v8056_v62  ;;  %v8464_v54 = vor.u32 %v8463_v7, %v15781_v4  ;;  %v8344_v21 = vmul.f32 %v7825_v27, %v17967_v25  ;;  %v8045_v52 = vshll.u32 %v15707_v0, 16 }
 0x696   : > { %7767 = vst.msk [vmem:[#allocation2 + $0xc0] sm:$0xf] %vm1779_vm9, %v7694_v18  ;;  %v7696_v56 = vpop.permute.xlu2 %7695  ;;  %8232 = vrot.lane.b32.xlu1 %v8057_v33, %s11433_s28  ;;  %v8467_v10 = vshll.u32 %v15787_v34, 16  ;;  %v8400_v43 = vrot.slane %v8398_v53, 4  ;;  %v8040_v16 = vrot.slane %v15760_v15, 4  ;;  %v8403_v46 = vrot.slane %v8401_v35, 5 }
 0x697   : > { %7768 = vst.msk [vmem:[#allocation2 + $0xc8] sm:$0xf] %vm1779_vm9, %v7696_v56  ;;  %v8477_v48 = vshll.u32 %v8372_v38, 16  ;;  %v8481_v57 = vshrl.u32 %v8372_v38, 16  ;;  %v8414_v32 = vor.u32 %v8413_v31, %v8409_v39  ;;  %v8417_v29 = vshll.u32 %v8366_v58, 16  ;;  %v17968_v15 = vld [vmem:[#allocation22_spill] sm:$0xff] }
 0x698   : > { %8228 = vrot.lane.b32.xlu0 %v8039_v9, %s11433_s28  ;;  %v15808_v62 = vpack.c.bf16 %v8340_v11, %v8340_v11  ;;  %v8066_v59 = vsel %vm11768_vm3, %v8058_v17, %v8065_v2  ;;  %v8047_v27 = vor.u32 %v8045_v52, %v15753_v50  ;;  %v8465_v30 = vrot.slane %v8464_v54, 4 }
 0x699   : > { %v8377_v36 = vpack.c.bf16 %v8344_v21, %v8344_v21  ;;  %v15814_v0 = vrot.slane %v8467_v10, 5  ;;  %v8421_v12 = vshrl.u32 %v8366_v58, 16  ;;  %v8336_v40 = vmul.f32 %v7817_v24, %v17968_v15 }
 0x69a   : > { %8727 = vrot.lane.b32.xlu2 %v8440_v23, %s11433_s28  ;;  %v8441_v1 = vshrl.u32 %v15755_v6, 16  ;;  %v8048_v28 = vsel %vm11768_vm3, %v8040_v16, %v8047_v27  ;;  %v8404_v51 = vor.u32 %v8403_v46, %v8400_v43  ;;  %v15822_v18 = vrot.slane %v8477_v48, 5  ;;  %v17970_v16 = vld [vmem:[#allocation32_spill] sm:$0xff] }
 0x69b   : > { %v8483_v50 = vrot.slane %v8481_v57, 4  ;;  %v8415_v33 = vrot.slane %v8414_v32, 4  ;;  %v8487_v7 = vshll.u32 %v15808_v62, 16  ;;  %v8470_v56 = vsel %vm11883_vm12, %v8465_v30, %v15814_v0  ;;  %v17971_v48 = vld [vmem:[#allocation40_spill] sm:$0xff]  ;;  %v7795_v57 = vld [vmem:[#allocation2 + $0x98] sm:$0xf] }
 0x69c   : > { %v8345_v24 = vmul.f32 %v7826_v44, %v17969_v3  ;;  %v8527_v6 = vshll.u32 %v8377_v36, 16  ;;  %v8531_v58 = vshrl.u32 %v8377_v36, 16  ;;  %v8419_v53 = vrot.slane %v8417_v29, 5 }
 0x69d   : > { %v8423_v9 = vrot.slane %v8421_v12, 4  ;;  %v8369_v42 = vpack.c.bf16 %v8336_v40, %v8336_v40  ;;  %v8443_v35 = vrot.slane %v8441_v1, 4  ;;  %v8405_v38 = vrot.slane %v8404_v51, 4  ;;  %v17972_v51 = vld [vmem:[#allocation35_spill] sm:$0xff] }
 0x69e   : > { %8234 = vrot.lane.b32.xlu1 %v8066_v59, %s11433_s28  ;;  %v8484_v23 = vor.u32 %v8483_v50, %v15822_v18  ;;  %v8420_v20 = vsel %vm11883_vm12, %v8415_v33, %v8419_v53  ;;  %v15836_v11 = vrot.slane %v8487_v7, 5  ;;  %v8378_v45 = vpack.c.bf16 %v8345_v24, %v8345_v24 }
 0x69f   : > { %v15839_v44 = vrot.slane %v8527_v6, 5  ;;  %v8533_v17 = vrot.slane %v8531_v58, 4  ;;  %v8471_v2 = vshrl.u32 %v15787_v34, 16  ;;  %v8424_v54 = vor.u32 %v8423_v9, %v8419_v53  ;;  %v17974_v58 = vld [vmem:[#allocation45_spill] sm:$0xff] }
 0x6a0   : > { %8230 = vrot.lane.b32.xlu0 %v8048_v28, %s11433_s28  ;;  %v8444_v25 = vor.u32 %v8443_v35, %v15785_v13  ;;  %v8447_v21 = vshll.u32 %v8369_v42, 16  ;;  %v8451_v52 = vshrl.u32 %v8369_v42, 16  ;;  %v8410_v10 = vsel %vm11883_vm12, %v8405_v38, %v8409_v39 }
 0x6a1   : > { %v8485_v43 = vrot.slane %v8484_v23, 4  ;;  %v8342_v46 = vmul.f32 %v7823_v61, %v17970_v16  ;;  %v8346_v34 = vmul.f32 %v7827_v8, %v17971_v48  ;;  %v8534_v32 = vor.u32 %v8533_v17, %v15839_v44 }
 0x6a2   : > { %8733 = vrot.lane.b32.xlu2 %v8470_v56, %s11433_s28  ;;  %v8537_v29 = vshll.u32 %v8378_v45, 16  ;;  %v8473_v39 = vrot.slane %v8471_v2, 4  ;;  %v8425_v59 = vrot.slane %v8424_v54, 4  ;;  %v8445_v41 = vrot.slane %v8444_v25, 4  ;;  %v17973_v56 = vld [vmem:[#allocation30_spill] sm:$0xff] }
 0x6a3   : > { %v8490_v13 = vsel %vm11883_vm12, %v8485_v43, %v15836_v11  ;;  %v8449_v61 = vrot.slane %v8447_v21, 5  ;;  %v8453_v27 = vrot.slane %v8451_v52, 4  ;;  %v8541_v30 = vshrl.u32 %v8378_v45, 16  ;;  %v17975_v43 = vld [vmem:[#allocation46_spill] sm:$0xff] }
 0x6a4   : > { %v7692_v31 = vpop.permute.xlu0 %7691  ;;  %v8375_v36 = vpack.c.bf16 %v8342_v46, %v8342_v46  ;;  %v7829_v12 = vunpack.c.l.bf16 %v7795_v57  ;;  %v8430_v22 = vsel %vm11883_vm12, %v8425_v59, %v15740_v63  ;;  %v15861_v8 = vpack.c.bf16 %v8346_v34, %v8346_v34  ;;  %v17976_v57 = vld [vmem:[#allocation44_spill] sm:$0xff] }
 0x6a5   : > { %7766 = vst.msk [vmem:[#allocation2 + $0xb8] sm:$0xf] %vm1779_vm9, %v7692_v31  ;;  %v8535_v40 = vrot.slane %v8534_v32, 4  ;;  %v8539_v1 = vrot.slane %v8537_v29, 5  ;;  %v8474_v28 = vor.u32 %v8473_v39, %v15814_v0  ;;  %v8343_v50 = vmul.f32 %v7824_v60, %v17972_v51  ;;  %v7796_v0 = vld [vmem:[#allocation2 + $0xa0] sm:$0xf] }
 0x6a6   : > { %8723 = vrot.lane.b32.xlu1 %v8420_v20, %s11433_s28  ;;  %v8450_v7 = vsel %vm11883_vm12, %v8445_v41, %v8449_v61  ;;  %v8454_v63 = vor.u32 %v8453_v27, %v8449_v61  ;;  %v8341_v3 = vmul.f32 %v7822_v55, %v17973_v56  ;;  %v8491_v24 = vshrl.u32 %v15808_v62, 16  ;;  %v15881_v55 = vld [vmem:[#allocation2 + $0xa8] sm:$0xf]  ;;  %v17977_v59 = vld [vmem:[#allocation48_spill] sm:$0xff] }
 0x6a7   : > { %v8543_v37 = vrot.slane %v8541_v30, 4  ;;  %v8507_v60 = vshll.u32 %v8375_v36, 16  ;;  %v8511_v6 = vshrl.u32 %v8375_v36, 16  ;;  %v7862_v53 = vmul.f32 %v7829_v12, %v17974_v58  ;;  %v15911_v51 = vld [vmem:[#allocation2 + $0xb0] sm:$0xf] }
 0x6a8   : > { %8721 = vrot.lane.b32.xlu0 %v8410_v10, %s11433_s28  ;;  %v8547_v9 = vshll.u32 %v15861_v8, 16  ;;  %v8540_v42 = vsel %vm11883_vm12, %v8535_v40, %v8539_v1  ;;  %v8376_v35 = vpack.c.bf16 %v8343_v50, %v8343_v50  ;;  %v7830_v5 = vunpack.c.l.bf16 %v7796_v0 }
 0x6a9   : > { %v8455_v62 = vrot.slane %v8454_v63, 4  ;;  %v8475_v38 = vrot.slane %v8474_v28, 4  ;;  %v8374_v23 = vpack.c.bf16 %v8341_v3, %v8341_v3  ;;  %v8493_v31 = vrot.slane %v8491_v24, 4 }
 0x6aa   : > { %8737 = vrot.lane.b32.xlu2 %v8490_v13, %s11433_s28  ;;  %v8544_v20 = vor.u32 %v8543_v37, %v8539_v1  ;;  %v15884_v45 = vrot.slane %v8507_v60, 5  ;;  %v8513_v17 = vrot.slane %v8511_v6, 4  ;;  %v7895_v2 = vpack.c.bf16 %v7862_v53, %v7862_v53  ;;  %v17978_v1 = vld [vmem:[#allocation47_spill] sm:$0xff] }
 0x6ab   : > { %v15886_v54 = vrot.slane %v8547_v9, 5  ;;  %v7831_v25 = vunpack.c.l.bf16 %v15881_v55  ;;  %v8460_v21 = vsel %vm11883_vm12, %v8455_v62, %v15781_v4  ;;  %v8517_v52 = vshll.u32 %v8376_v35, 16 }
 0x6ac   : > { %v8521_v10 = vshrl.u32 %v8376_v35, 16  ;;  %v7863_v16 = vmul.f32 %v7830_v5, %v17975_v43  ;;  %v8494_v46 = vor.u32 %v8493_v31, %v15836_v11  ;;  %v8497_v48 = vshll.u32 %v8374_v23, 16  ;;  %v7799_v31 = vld [vmem:[#allocation2 + $0xb8] sm:$0xf] }
 0x6ad   : > { %v7700_v15 = vpop.permute.xlu1 %7699  ;;  %v8501_v34 = vshrl.u32 %v8374_v23, 16  ;;  %v8348_v13 = vmul.f32 %v7829_v12, %v17976_v57  ;;  %v8480_v32 = vsel %vm11883_vm12, %v8475_v38, %v15822_v18  ;;  %v8545_v29 = vrot.slane %v8544_v20, 4 }
 0x6ae   : > { %7770 = vst.msk [vmem:[#allocation2 + $0xd8] sm:$0xf] %vm1779_vm9, %v7700_v15  ;;  %v7702_v33 = vpop.permute.xlu2 %7701  ;;  %8725 = vrot.lane.b32.xlu1 %v8430_v22, %s11433_s28  ;;  %v8514_v39 = vor.u32 %v8513_v17, %v15884_v45  ;;  %v8069_v4 = vshrl.u32 %v7895_v2, 16  ;;  %v8350_v41 = vmul.f32 %v7831_v25, %v17977_v59  ;;  %v8519_v61 = vrot.slane %v8517_v52, 5 }
 0x6af   : > { %7771 = vst.msk [vmem:[#allocation2 + $0xe0] sm:$0xf] %vm1779_vm9, %v7702_v33  ;;  %v8550_v11 = vsel %vm11883_vm12, %v8545_v29, %v15886_v54  ;;  %v8523_v27 = vrot.slane %v8521_v10, 4  ;;  %v7896_v30 = vpack.c.bf16 %v7863_v16, %v7863_v16  ;;  %v8495_v18 = vrot.slane %v8494_v46, 4  ;;  %v11182_v16 = vld [vmem:[%s17364_s12 + $0x10] sm:$0xff] }
 0x6b0   : > { %8729 = vrot.lane.b32.xlu0 %v8450_v7, %s11433_s28  ;;  %v8499_v36 = vrot.slane %v8497_v48, 5  ;;  %v8503_v12 = vrot.slane %v8501_v34, 4  ;;  %v8381_v22 = vpack.c.bf16 %v8348_v13, %v8348_v13  ;;  %v8515_v15 = vrot.slane %v8514_v39, 4  ;;  %v17979_v7 = vld [vmem:[#allocation43_spill] sm:$0xff]  ;;  %10052 = vmatpush.bf16.msra.mxu0 %v11182_v16 }
 0x6b1   : > { %v15908_v40 = vrot.slane %v8069_v4, 7  ;;  %v8349_v28 = vmul.f32 %v7830_v5, %v17978_v1  ;;  %v8067_v33 = vrot.slane %v15779_v19, 4  ;;  %v8347_v63 = vmul.f32 %v7828_v49, %v17979_v7 }
 0x6b2   : > { %8747 = vrot.lane.b32.xlu2 %v8540_v42, %s11433_s28  ;;  %v8383_v56 = vpack.c.bf16 %v8350_v41, %v8350_v41  ;;  %v8520_v3 = vsel %vm11883_vm12, %v8515_v15, %v8519_v61  ;;  %v8072_v24 = vshll.u32 %v7895_v2, 16  ;;  %v8524_v0 = vor.u32 %v8523_v27, %v8519_v61  ;;  %v17980_v2 = vld [vmem:[#allocation51_spill] sm:$0xff]  ;;  %v17981_v15 = vld [vmem:[#allocation52_spill] sm:$0xff] }
 0x6b3   : > { %v8078_v37 = vshrl.u32 %v7896_v30, 16  ;;  %v8500_v60 = vsel %vm11883_vm12, %v8495_v18, %v8499_v36  ;;  %v8504_v6 = vor.u32 %v8503_v12, %v8499_v36  ;;  %v8567_v19 = vshll.u32 %v8381_v22, 16  ;;  %v15950_v61 = vld [vmem:[#allocation2 + $0xc8] sm:$0xf] }
 0x6b4   : > { %v7832_v58 = vunpack.c.l.bf16 %v15911_v51  ;;  %v8074_v26 = vor.u32 %v8072_v24, %v15908_v40  ;;  %v8382_v49 = vpack.c.bf16 %v8349_v28, %v8349_v28  ;;  %v8571_v53 = vshrl.u32 %v8381_v22, 16  ;;  %v17982_v28 = vld [vmem:[#allocation53_spill] sm:$0xff]  ;;  %v17983_v24 = vld [vmem:[#allocation50_spill] sm:$0xff] }
 0x6b5   : > { %v8551_v9 = vshrl.u32 %v15861_v8, 16  ;;  %v8587_v42 = vshll.u32 %v8383_v56, 16  ;;  %v8591_v35 = vshrl.u32 %v8383_v56, 16  ;;  %v8525_v62 = vrot.slane %v8524_v0, 4 }
 0x6b6   : > { %8731 = vrot.lane.b32.xlu1 %v8460_v21, %s11433_s28  ;;  %v8075_v5 = vsel %vm11768_vm3, %v8067_v33, %v8074_v26  ;;  %v15929_v38 = vrot.slane %v8078_v37, 7  ;;  %v8380_v23 = vpack.c.bf16 %v8347_v63, %v8347_v63  ;;  %v8505_v20 = vrot.slane %v8504_v6, 4  ;;  %v17984_v26 = vld [vmem:[#allocation49_spill] sm:$0xff] }
 0x6b7   : > { %v15932_v17 = vrot.slane %v8567_v19, 5  ;;  %v8351_v21 = vmul.f32 %v7832_v58, %v17980_v2  ;;  %v8081_v8 = vshll.u32 %v7896_v30, 16  ;;  %v8573_v52 = vrot.slane %v8571_v53, 4 }
 0x6b8   : > { %8735 = vrot.lane.b32.xlu0 %v8480_v32, %s11433_s28  ;;  %v8577_v10 = vshll.u32 %v8382_v49, 16  ;;  %v8553_v43 = vrot.slane %v8551_v9, 4  ;;  %v15938_v48 = vrot.slane %v8587_v42, 5  ;;  %v8593_v34 = vrot.slane %v8591_v35, 4  ;;  %v17985_v42 = vld [vmem:[#allocation54_spill] sm:$0xff] }
 0x6b9   : > { %v8581_v57 = vshrl.u32 %v8382_v49, 16  ;;  %v7833_v13 = vunpack.c.l.bf16 %v7799_v31  ;;  %v8530_v29 = vsel %vm11883_vm12, %v8525_v62, %v15839_v44  ;;  %v8076_v39 = vrot.slane %v15908_v40, 4 }
 0x6ba   : > { %8749 = vrot.lane.b32.xlu2 %v8550_v11, %s11433_s28  ;;  %v8083_v4 = vor.u32 %v8081_v8, %v15929_v38  ;;  %v8557_v59 = vshll.u32 %v8380_v23, 16  ;;  %v8384_v41 = vpack.c.bf16 %v8351_v21, %v8351_v21  ;;  %v15948_v11 = vld [vmem:[#allocation2 + $0xc0] sm:$0xf]  ;;  %v8510_v27 = vsel %vm11883_vm12, %v8505_v20, %v15884_v45 }
 0x6bb   : > { %v8574_v44 = vor.u32 %v8573_v52, %v15932_v17  ;;  %v8554_v30 = vor.u32 %v8553_v43, %v15886_v54  ;;  %v8561_v18 = vshrl.u32 %v8380_v23, 16  ;;  %v8579_v36 = vrot.slane %v8577_v10, 5 }
 0x6bc   : > { %v7698_v50 = vpop.permute.xlu0 %7697  ;;  %v8594_v12 = vor.u32 %v8593_v34, %v15938_v48  ;;  %v8583_v22 = vrot.slane %v8581_v57, 4  ;;  %v8352_v40 = vmul.f32 %v7833_v13, %v17981_v15  ;;  %v8084_v1 = vsel %vm11768_vm3, %v8076_v39, %v8083_v4  ;;  %v15990_v34 = vld [vmem:[#allocation2 + $0xd8] sm:$0xf] }
 0x6bd   : > { %7769 = vst.msk [vmem:[#allocation2 + $0xd0] sm:$0xf] %vm1779_vm9, %v7698_v50  ;;  %v7866_v51 = vmul.f32 %v7833_v13, %v17982_v28  ;;  %v7834_v45 = vunpack.c.l.bf16 %v15948_v11  ;;  %v7835_v50 = vunpack.c.l.bf16 %v15950_v61  ;;  %v8559_v54 = vrot.slane %v8557_v59, 5 }
 0x6be   : > { %8743 = vrot.lane.b32.xlu1 %v8520_v3, %s11433_s28  ;;  %v8597_v33 = vshll.u32 %v8384_v41, 16  ;;  %v8601_v7 = vshrl.u32 %v8384_v41, 16  ;;  %v8575_v63 = vrot.slane %v8574_v44, 4  ;;  %v8555_v56 = vrot.slane %v8554_v30, 4 }
 0x6bf   : > { %v8563_v3 = vrot.slane %v8561_v18, 4  ;;  %v7865_v0 = vmul.f32 %v7832_v58, %v17983_v24  ;;  %v8584_v6 = vor.u32 %v8583_v22, %v8579_v36  ;;  %v15967_v19 = vpack.c.bf16 %v8352_v40, %v8352_v40  ;;  %v17986_v58 = vld [vmem:[#allocation57_spill] sm:$0xff] }
 0x6c0   : > { %8739 = vrot.lane.b32.xlu0 %v8500_v60, %s11433_s28  ;;  %v8595_v60 = vrot.slane %v8594_v12, 4  ;;  %v7864_v49 = vmul.f32 %v7831_v25, %v17984_v26  ;;  %v8580_v53 = vsel %vm11883_vm12, %v8575_v63, %v8579_v36  ;;  %v7899_v9 = vpack.c.bf16 %v7866_v51, %v7866_v51  ;;  %v17987_v36 = vld [vmem:[#allocation58_spill] sm:$0xff] }
 0x6c1   : > { %v7867_v35 = vmul.f32 %v7834_v45, %v17985_v42  ;;  %v8599_v62 = vrot.slane %v8597_v33, 5  ;;  %v8603_v23 = vrot.slane %v8601_v7, 4  ;;  %v8560_v55 = vsel %vm11883_vm12, %v8555_v56, %v8559_v54  ;;  %v17989_v33 = vld [vmem:[#allocation61_spill] sm:$0xff]  ;;  %v17991_v42 = vld [vmem:[#allocation55_spill] sm:$0xff] }
 0x6c2   : > { %8236 = vrot.lane.b32.xlu2 %v8075_v5, %s11433_s28  ;;  %v7868_v5 = vmul.f32 %v7835_v50, %v17986_v58  ;;  %v8564_v25 = vor.u32 %v8563_v3, %v8559_v54  ;;  %v15982_v20 = vpack.c.bf16 %v7865_v0, %v7865_v0  ;;  %v8585_v21 = vrot.slane %v8584_v6, 4  ;;  %v17990_v6 = vld [vmem:[#allocation59_spill] sm:$0xff] }
 0x6c3   : > { %v8600_v2 = vsel %vm11883_vm12, %v8595_v60, %v8599_v62  ;;  %v8607_v8 = vshll.u32 %v15967_v19, 16  ;;  %v7897_v52 = vpack.c.bf16 %v7864_v49, %v7864_v49  ;;  %v8105_v10 = vshrl.u32 %v7899_v9, 16  ;;  %v16027_v49 = vld [vmem:[#allocation2 + $0xe0] sm:$0xf] }
 0x6c4   : > { %v7708_v46 = vpop.permute.xlu2 %7707  ;;  %v7802_v31 = vld [vmem:[#allocation2 + $0xd0] sm:$0xf]  ;;  %v15988_v43 = vpack.c.bf16 %v7867_v35, %v7867_v35  ;;  %v7901_v16 = vpack.c.bf16 %v7868_v5, %v7868_v5  ;;  %v8604_v57 = vor.u32 %v8603_v23, %v8599_v62  ;;  %v8590_v59 = vsel %vm11883_vm12, %v8585_v21, %v15938_v48 }
 0x6c5   : > { %7774 = vst.msk [vmem:[#allocation2 + $0xf8] sm:$0xf] %vm1779_vm9, %v7708_v46  ;;  %v7706_v32 = vpop.permute.xlu1 %7705  ;;  %v7836_v46 = vunpack.c.l.bf16 %v7802_v31  ;;  %v15998_v41 = vrot.slane %v8607_v8, 5  ;;  %v8087_v61 = vshrl.u32 %v7897_v52, 16  ;;  %v16002_v44 = vrot.slane %v8105_v10, 7  ;;  %v17988_v48 = vld [vmem:[#allocation56_spill] sm:$0xff] }
 0x6c6   : > { %7773 = vst.msk [vmem:[#allocation2 + $0xf0] sm:$0xf] %vm1779_vm9, %v7706_v32  ;;  %8745 = vrot.lane.b32.xlu1 %v8530_v29, %s11433_s28  ;;  %v8565_v32 = vrot.slane %v8564_v25, 4  ;;  %v8096_v29 = vshrl.u32 %v15982_v20, 16  ;;  %v8114_v30 = vshrl.u32 %v15988_v43, 16  ;;  %v8123_v18 = vshrl.u32 %v7901_v16, 16 }
 0x6c7   : > { %v7869_v12 = vmul.f32 %v7836_v46, %v17987_v36  ;;  %v8605_v22 = vrot.slane %v8604_v57, 4  ;;  %v8354_v15 = vmul.f32 %v7835_v50, %v17988_v48  ;;  %v8108_v28 = vshll.u32 %v7899_v9, 16 }
 0x6c8   : > { %8741 = vrot.lane.b32.xlu0 %v8510_v27, %s11433_s28  ;;  %v7837_v27 = vunpack.c.l.bf16 %v15990_v34  ;;  %v8570_v40 = vsel %vm11883_vm12, %v8565_v32, %v15932_v17  ;;  %v16016_v54 = vrot.slane %v8087_v61, 7  ;;  %v8116_v63 = vrot.slane %v8114_v30, 7 }
 0x6c9   : > { %v8610_v51 = vsel %vm11883_vm12, %v8605_v22, %v15998_v41  ;;  %v8110_v50 = vor.u32 %v8108_v28, %v16002_v44  ;;  %v16022_v56 = vrot.slane %v8123_v18, 7  ;;  %v7902_v17 = vpack.c.bf16 %v7869_v12, %v7869_v12 }
 0x6ca   : > { %8238 = vrot.lane.b32.xlu2 %v8084_v1, %s11433_s28  ;;  %v8098_v1 = vrot.slane %v8096_v29, 7  ;;  %v8356_v7 = vmul.f32 %v7837_v27, %v17989_v33  ;;  %v8090_v3 = vshll.u32 %v7897_v52, 16  ;;  %v8387_v24 = vpack.c.bf16 %v8354_v15, %v8354_v15 }
 0x6cb   : > { %v8126_v60 = vshll.u32 %v7901_v16, 16  ;;  %v8355_v26 = vmul.f32 %v7836_v46, %v17990_v6  ;;  %v8353_v35 = vmul.f32 %v7834_v45, %v17991_v42  ;;  %v8121_v62 = vrot.slane %v8116_v63, 4 }
 0x6cc   : > { %v8203_v37 = vpop.permute.xlu2 %8202  ;;  %v8103_v0 = vrot.slane %v8098_v1, 4  ;;  %v8092_v9 = vor.u32 %v8090_v3, %v16016_v54  ;;  %v8389_v58 = vpack.c.bf16 %v8356_v7, %v8356_v7  ;;  %v8132_v23 = vshrl.u32 %v7902_v17, 16  ;;  %v7807_v30 = vld [vmem:[#allocation2 + $0xf8] sm:$0xf] }
 0x6cd   : > { %8298 = vst.msk [vmem:[#allocation2 + $0x10] sm:$0xf] %vm2497_vm1, %v8203_v37  ;;  %v8085_v37 = vrot.slane %v15929_v38, 4  ;;  %v8128_v38 = vor.u32 %v8126_v60, %v16022_v56  ;;  %v8627_v31 = vshll.u32 %v8387_v24, 16  ;;  %v7838_v25 = vunpack.c.l.bf16 %v16027_v49  ;;  %v16069_v3 = vld [vmem:[#allocation2 + $0xf0] sm:$0xf] }
 0x6ce   : > { %8755 = vrot.lane.b32.xlu1 %v8580_v53, %s11433_s28  ;;  %v8111_v5 = vsel %vm11768_vm3, %v8103_v0, %v8110_v50  ;;  %v8099_v45 = vshll.u32 %v15982_v20, 16  ;;  %v8611_v21 = vshrl.u32 %v15967_v19, 16  ;;  %v8117_v8 = vshll.u32 %v15988_v43, 16 }
 0x6cf   : > { %v8093_v11 = vsel %vm11768_vm3, %v8085_v37, %v8092_v9  ;;  %v8094_v52 = vrot.slane %v16016_v54, 4  ;;  %v8647_v10 = vshll.u32 %v8389_v58, 16  ;;  %v8651_v16 = vshrl.u32 %v8389_v58, 16  ;;  %v17994_v9 = vld [vmem:[#allocation65_spill] sm:$0xff] }
 0x6d0   : > { %8751 = vrot.lane.b32.xlu0 %v8560_v55, %s11433_s28  ;;  %v8631_v55 = vshrl.u32 %v8387_v24, 16  ;;  %v8129_v46 = vsel %vm11768_vm3, %v8121_v62, %v8128_v38  ;;  %v8112_v57 = vrot.slane %v16002_v44, 4  ;;  %v8386_v32 = vpack.c.bf16 %v8353_v35, %v8353_v35 }
 0x6d1   : > { %v8135_v44 = vshll.u32 %v7902_v17, 16  ;;  %v8613_v36 = vrot.slane %v8611_v21, 4  ;;  %v8101_v48 = vor.u32 %v8099_v45, %v8098_v1  ;;  %v16059_v15 = vrot.slane %v8647_v10, 5 }
 0x6d2   : > { %8759 = vrot.lane.b32.xlu2 %v8600_v2, %s11433_s28  ;;  %v8388_v2 = vpack.c.bf16 %v8355_v26, %v8355_v26  ;;  %v8633_v43 = vrot.slane %v8631_v55, 4  ;;  %v8617_v33 = vshll.u32 %v8386_v32, 16  ;;  %v7841_v7 = vunpack.c.l.bf16 %v7807_v30  ;;  %v17993_v26 = vld [vmem:[#allocation64_spill] sm:$0xff] }
 0x6d3   : > { %v7712_v13 = vpop.permute.xlu1 %7711  ;;  %v8102_v50 = vsel %vm11768_vm3, %v8094_v52, %v8101_v48  ;;  %v8130_v1 = vrot.slane %v16022_v56, 4  ;;  %v8621_v17 = vshrl.u32 %v8386_v32, 16  ;;  %v8614_v37 = vor.u32 %v8613_v36, %v15998_v41  ;;  %v17997_v52 = vld [vmem:[#allocation60_spill] sm:$0xff] }
 0x6d4   : > { %7776 = vst.msk [vmem:[#allocation2 + $0x108] sm:$0xf] %vm1779_vm9, %v7712_v13  ;;  %v8211_v39 = vpop.permute.xlu2 %8210  ;;  %v7704_v4 = vpop.permute.xlu0 %7703  ;;  %v16049_v13 = vrot.slane %v8132_v23, 7  ;;  %v8637_v18 = vshll.u32 %v8388_v2, 16  ;;  %v8641_v12 = vshrl.u32 %v8388_v2, 16  ;;  %v8619_v35 = vrot.slane %v8617_v33, 5 }
 0x6d5   : > { %8302 = vst.msk [vmem:[#allocation2 + $0x30] sm:$0xf] %vm2497_vm1, %v8211_v39  ;;  %v8119_v39 = vor.u32 %v8117_v8, %v8116_v63  ;;  %v7840_v58 = vunpack.c.l.bf16 %v16069_v3  ;;  %v8615_v21 = vrot.slane %v8614_v37, 4  ;;  %v7870_v10 = vmul.f32 %v7837_v27, %v17997_v52 }
 0x6d6   : > { %7772 = vst.msk [vmem:[#allocation2 + $0xe8] sm:$0xf] %vm1779_vm9, %v7704_v4  ;;  %8757 = vrot.lane.b32.xlu1 %v8590_v59, %s11433_s28  ;;  %v16052_v4 = vrot.slane %v8627_v31, 5  ;;  %v17992_v59 = vld [vmem:[#allocation62_spill] sm:$0xff]  ;;  %v8137_v54 = vor.u32 %v8135_v44, %v16049_v13  ;;  %v8639_v0 = vrot.slane %v8637_v18, 5  ;;  %v8643_v60 = vrot.slane %v8641_v12, 4 }
 0x6d7   : > { %v8357_v61 = vmul.f32 %v7838_v25, %v17992_v59  ;;  %v8623_v31 = vrot.slane %v8621_v17, 4  ;;  %v8620_v30 = vsel %vm11883_vm12, %v8615_v21, %v8619_v35  ;;  %v7903_v18 = vpack.c.bf16 %v7870_v10, %v7870_v10 }
 0x6d8   : > { %8753 = vrot.lane.b32.xlu0 %v8570_v40, %s11433_s28  ;;  %v8653_v40 = vrot.slane %v8651_v16, 4  ;;  %v8634_v24 = vor.u32 %v8633_v43, %v16052_v4  ;;  %v8138_v56 = vsel %vm11768_vm3, %v8130_v1, %v8137_v54  ;;  %v8644_v8 = vor.u32 %v8643_v60, %v8639_v0 }
 0x6d9   : > { %v8390_v63 = vpack.c.bf16 %v8357_v61, %v8357_v61  ;;  %v8624_v44 = vor.u32 %v8623_v31, %v8619_v35 }
 0x6da   : > { %8761 = vrot.lane.b32.xlu2 %v8610_v51, %s11433_s28  ;;  %v8120_v51 = vsel %vm11768_vm3, %v8112_v57, %v8119_v39  ;;  %v8654_v6 = vor.u32 %v8653_v40, %v16059_v15  ;;  %v8635_v2 = vrot.slane %v8634_v24, 4 }
 0x6db   : > { %v8657_v23 = vshll.u32 %v8390_v63, 16  ;;  %v8661_v55 = vshrl.u32 %v8390_v63, 16  ;;  %v8625_v17 = vrot.slane %v8624_v44, 4 }
 0x6dc   : > { %v8215_v53 = vpop.permute.xlu2 %8214  ;;  %v8640_v49 = vsel %vm11883_vm12, %v8635_v2, %v8639_v0 }
 0x6dd   : > { %8304 = vst.msk [vmem:[#allocation2 + $0x40] sm:$0xf] %vm2497_vm1, %v8215_v53  ;;  %v7805_v20 = vld [vmem:[#allocation2 + $0xe8] sm:$0xf]  ;;  %v8659_v27 = vrot.slane %v8657_v23, 5  ;;  %v8663_v39 = vrot.slane %v8661_v55, 4 }
 0x6de   : > { %8244 = vrot.lane.b32.xlu1 %v8111_v5, %s11433_s28  ;;  %v7839_v28 = vunpack.c.l.bf16 %v7805_v20  ;;  %v17995_v5 = vld [vmem:[#allocation68_spill] sm:$0xff] }
 0x6df   : > { %v8360_v62 = vmul.f32 %v7841_v7, %v17995_v5  ;;  %v8664_v1 = vor.u32 %v8663_v39, %v8659_v27  ;;  %v18002_v39 = vld [vmem:[#allocation7_spill] sm:$0xff] }
 0x6e0   : > { %8240 = vrot.lane.b32.xlu0 %v8093_v11, %s11433_s28  ;;  %v8358_v53 = vmul.f32 %v7839_v28, %v17993_v26  ;;  %v7872_v42 = vmul.f32 %v7839_v28, %v17994_v9  ;;  %v17996_v11 = vld [vmem:[#allocation63_spill] sm:$0xff]  ;;  %v8141_v26 = vshrl.u32 %v7903_v18, 16 }
 0x6e1   : > { %v7871_v45 = vmul.f32 %v7838_v25, %v17996_v11  ;;  %v8393_v20 = vpack.c.bf16 %v8360_v62, %v8360_v62  ;;  %v17998_v25 = vld [vmem:[#allocation67_spill] sm:$0xff] }
 0x6e2   : > { %v8207_v29 = vpop.permute.xlu1 %8206  ;;  %8248 = vrot.lane.b32.xlu2 %v8129_v46, %s11433_s28  ;;  %v7710_v19 = vpop.permute.xlu0 %7709  ;;  %v8655_v46 = vrot.slane %v8654_v6, 4  ;;  %v16090_v57 = vpack.c.bf16 %v8358_v53, %v8358_v53  ;;  %v7905_v32 = vpack.c.bf16 %v7872_v42, %v7872_v42  ;;  %v18000_v42 = vld [vmem:[#allocation71_spill] sm:$0xff]  ;;  %v8143_v55 = vrot.slane %v8141_v26, 7 }
 0x6e3   : > { %8300 = vst.msk [vmem:[#allocation2 + $0x20] sm:$0xf] %vm2497_vm1, %v8207_v29  ;;  %v7873_v29 = vmul.f32 %v7840_v58, %v17998_v25  ;;  %v16100_v43 = vpack.c.bf16 %v7871_v45, %v7871_v45  ;;  %v8687_v61 = vshll.u32 %v8393_v20, 16  ;;  %v8691_v36 = vshrl.u32 %v8393_v20, 16  ;;  %v18001_v25 = vld [vmem:[#allocation66_spill] sm:$0xff] }
 0x6e4   : > { %7775 = vst.msk [vmem:[#allocation2 + $0x100] sm:$0xf] %vm1779_vm9, %v7710_v19  ;;  %v8221_v22 = vpop.permute.xlu2 %8220  ;;  %v17999_v19 = vld [vmem:[#allocation69_spill] sm:$0xff]  ;;  %v8660_v12 = vsel %vm11883_vm12, %v8655_v46, %v8659_v27  ;;  %v8667_v48 = vshll.u32 %v16090_v57, 16  ;;  %v8159_v40 = vshrl.u32 %v7905_v32, 16  ;;  %v8162_v62 = vshll.u32 %v7905_v32, 16 }
 0x6e5   : > { %8307 = vst.msk [vmem:[#allocation2 + $0x58] sm:$0xf] %vm2497_vm1, %v8221_v22  ;;  %v7874_v34 = vmul.f32 %v7841_v7, %v17999_v19  ;;  %v8645_v22 = vrot.slane %v8644_v8, 4  ;;  %v16110_v28 = vpack.c.bf16 %v7873_v29, %v7873_v29  ;;  %v16113_v33 = vrot.slane %v8687_v61, 5 }
 0x6e6   : > { %8246 = vrot.lane.b32.xlu1 %v8120_v51, %s11433_s28  ;;  %v8150_v63 = vshrl.u32 %v16100_v43, 16  ;;  %v16118_v24 = vrot.slane %v8691_v36, 4  ;;  %v16124_v60 = vrot.slane %v8667_v48, 5  ;;  %v16126_v6 = vrot.slane %v8159_v40, 7  ;;  %v11181_v48 = vld [vmem:[%s17364_s12 + $0x8] sm:$0xff] }
 0x6e7   : > { %v7907_v51 = vpack.c.bf16 %v7874_v34, %v7874_v34  ;;  %v8650_v37 = vsel %vm11883_vm12, %v8645_v22, %v16059_v15  ;;  %v8168_v53 = vshrl.u32 %v16110_v28, 16  ;;  %v8665_v15 = vrot.slane %v8664_v1, 4  ;;  %10053 = vmatpush.bf16.msra.mxu0 %v11181_v48 }
 0x6e8   : > { %8242 = vrot.lane.b32.xlu0 %v8102_v50, %s11433_s28  ;;  %v8694_v35 = vor.u32 %v16118_v24, %v16113_v33  ;;  %v8152_v5 = vrot.slane %v8150_v63, 7  ;;  %v8164_v31 = vor.u32 %v8162_v62, %v16126_v6  ;;  %v8359_v29 = vmul.f32 %v7840_v58, %v18001_v25 }
 0x6e9   : > { %v8177_v9 = vshrl.u32 %v7907_v51, 16  ;;  %v8670_v23 = vsel %vm11883_vm12, %v8665_v15, %v16124_v60  ;;  %v8170_v11 = vrot.slane %v8168_v53, 7  ;;  %v8180_v46 = vshll.u32 %v7907_v51, 16 }
 0x6ea   : > { %v8213_v38 = vpop.permute.xlu1 %8212  ;;  %8250 = vrot.lane.b32.xlu2 %v8138_v56, %s11433_s28  ;;  %v8205_v41 = vpop.permute.xlu0 %8204  ;;  %v8157_v10 = vrot.slane %v8152_v5, 4  ;;  %v8153_v44 = vshll.u32 %v16100_v43, 16  ;;  %v8392_v3 = vpack.c.bf16 %v8359_v29, %v8359_v29 }
 0x6eb   : > { %8303 = vst.msk [vmem:[#allocation2 + $0x38] sm:$0xf] %vm2497_vm1, %v8213_v38  ;;  %v16102_v59 = vld [vmem:[#allocation2 + $0x100] sm:$0xf]  ;;  %v7809_v38 = vld [vmem:[#allocation2 + $0x108] sm:$0xf] }
 0x6ec   : > { %8299 = vst.msk [vmem:[#allocation2 + $0x18] sm:$0xf] %vm2497_vm1, %v8205_v41  ;;  %v8227_v16 = vpop.permute.xlu2 %8226  ;;  %v7842_v54 = vunpack.c.l.bf16 %v16102_v59  ;;  %v8630_v41 = vsel %vm11883_vm12, %v8625_v17, %v16052_v4  ;;  %v8179_v45 = vrot.slane %v8177_v9, 7  ;;  %v7843_v21 = vunpack.c.l.bf16 %v7809_v38 }
 0x6ed   : > { %8310 = vst.msk [vmem:[#allocation2 + $0x70] sm:$0xf] %vm2497_vm1, %v8227_v16  ;;  %v8144_v16 = vshll.u32 %v7903_v18, 16  ;;  %v8139_v4 = vrot.slane %v16049_v13, 4  ;;  %v8165_v20 = vsel %vm11768_vm3, %v8157_v10, %v8164_v31  ;;  %v8175_v19 = vrot.slane %v8170_v11, 4 }
 0x6ee   : > { %8767 = vrot.lane.b32.xlu1 %v8640_v49, %s11433_s28  ;;  %v7875_v56 = vmul.f32 %v7842_v54, %v18000_v42  ;;  %v8182_v34 = vor.u32 %v8180_v46, %v8179_v45  ;;  %v7876_v61 = vmul.f32 %v7843_v21, %v18002_v39  ;;  %v8166_v18 = vrot.slane %v16126_v6, 4  ;;  %v18003_v6 = vld [vmem:[#allocation73_spill] sm:$0xff] }
 0x6ef   : > { %v8146_v49 = vor.u32 %v8144_v16, %v8143_v55  ;;  %v8155_v43 = vor.u32 %v8153_v44, %v8152_v5  ;;  %v8362_v26 = vmul.f32 %v7843_v21, %v18003_v6  ;;  %v8184_v9 = vrot.slane %v8179_v45, 4  ;;  %v18004_v5 = vld [vmem:[#allocation70_spill] sm:$0xff] }
 0x6f0   : > { %8763 = vrot.lane.b32.xlu0 %v8620_v30, %s11433_s28  ;;  %v7908_v2 = vpack.c.bf16 %v7875_v56, %v7875_v56  ;;  %v8171_v30 = vshll.u32 %v16110_v28, 16  ;;  %v8183_v58 = vsel %vm11768_vm3, %v8175_v19, %v8182_v34  ;;  %v8148_v28 = vrot.slane %v8143_v55, 4  ;;  %v8851_v19 = vld [vmem:[#allocation2 + $0x10] sm:$0xf] }
 0x6f1   : > { %v8147_v13 = vsel %vm11768_vm3, %v8139_v4, %v8146_v49  ;;  %v8361_v62 = vmul.f32 %v7842_v54, %v18004_v5  ;;  %v16188_v45 = vpack.c.bf16 %v8362_v26, %v8362_v26  ;;  %v18005_v54 = vld [vmem:[#allocation118_spill] sm:$0xff] }
 0x6f2   : > { %v8219_v7 = vpop.permute.xlu1 %8218  ;;  %8771 = vrot.lane.b32.xlu2 %v8660_v12, %s11433_s28  ;;  %v8209_v50 = vpop.permute.xlu0 %8208  ;;  %v8186_v27 = vshrl.u32 %v7908_v2, 16  ;;  %v7909_v12 = vpack.c.bf16 %v7876_v61, %v7876_v61  ;;  %v8173_v40 = vor.u32 %v8171_v30, %v8170_v11  ;;  %v8189_v51 = vshll.u32 %v7908_v2, 16 }
 0x6f3   : > { %8306 = vst.msk [vmem:[#allocation2 + $0x50] sm:$0xf] %vm2497_vm1, %v8219_v7  ;;  %v8852_v17 = vld [vmem:[#allocation2 + $0x18] sm:$0xf]  ;;  %v8156_v53 = vsel %vm11768_vm3, %v8148_v28, %v8155_v43  ;;  %v8394_v11 = vpack.c.bf16 %v8361_v62, %v8361_v62  ;;  %v8707_v25 = vshll.u32 %v16188_v45, 16 }
 0x6f4   : > { %8301 = vst.msk [vmem:[#allocation2 + $0x28] sm:$0xf] %vm2497_vm1, %v8209_v50  ;;  %v8728_v0 = vpop.permute.xlu2 %8727  ;;  %v8188_v36 = vrot.slane %v8186_v27, 7  ;;  %v8677_v50 = vshll.u32 %v8392_v3, 16  ;;  %v8174_v1 = vsel %vm11768_vm3, %v8166_v18, %v8173_v40  ;;  %v16177_v56 = vunpack.c.l.bf16 %v8852_v17  ;;  %v18006_v27 = vld [vmem:[#allocation112_spill] sm:$0xff]  ;;  %v18007_v40 = vld [vmem:[#allocation94_spill] sm:$0xff] }
 0x6f5   : > { %8820 = vst.msk [vmem:[#allocation2 + $0x2c] sm:$0xf] %vm2497_vm1, %v8728_v0  ;;  %v8195_v0 = vshrl.u32 %v7909_v12, 16  ;;  %v8198_v21 = vshll.u32 %v7909_v12, 16  ;;  %v8697_v10 = vshll.u32 %v8394_v11, 16  ;;  %v8701_v16 = vshrl.u32 %v8394_v11, 16 }
 0x6f6   : > { %8769 = vrot.lane.b32.xlu1 %v8650_v37, %s11433_s28  ;;  %v8191_v63 = vor.u32 %v8189_v51, %v8188_v36  ;;  %v8681_v37 = vshrl.u32 %v8392_v3, 16  ;;  %v16179_v15 = vrot.slane %v8677_v50, 5  ;;  %v8193_v2 = vrot.slane %v8188_v36, 4 }
 0x6f7   : > { %v8703_v49 = vrot.slane %v8701_v16, 4  ;;  %v16222_v44 = vrot.slane %v8707_v25, 5  ;;  %v8956_v28 = vmul.f32 %v18007_v40, %v16177_v56 }
 0x6f8   : > { %8765 = vrot.lane.b32.xlu0 %v8630_v41, %s11433_s28  ;;  %v8192_v38 = vsel %vm11768_vm3, %v8184_v9, %v8191_v63  ;;  %v8197_v41 = vrot.slane %v8195_v0, 7  ;;  %v8683_v31 = vrot.slane %v8681_v37, 4 }
 0x6fa   : > { %v8225_v8 = vpop.permute.xlu1 %8224  ;;  %8773 = vrot.lane.b32.xlu2 %v8670_v23, %s11433_s28  ;;  %v8217_v52 = vpop.permute.xlu0 %8216  ;;  %v8853_v23 = vld [vmem:[#allocation2 + $0x20] sm:$0xf]  ;;  %v8200_v4 = vor.u32 %v8198_v21, %v8197_v41  ;;  %v8684_v46 = vor.u32 %v8683_v31, %v16179_v15 }
 0x6fb   : > { %8309 = vst.msk [vmem:[#allocation2 + $0x68] sm:$0xf] %vm2497_vm1, %v8225_v8  ;;  %v9352_v8 = vmul.f32 %v18005_v54, %v16177_v56 }
 0x6fc   : > { %8305 = vst.msk [vmem:[#allocation2 + $0x48] sm:$0xf] %vm2497_vm1, %v8217_v52  ;;  %v8734_v32 = vpop.permute.xlu2 %8733  ;;  %v16193_v52 = vunpack.c.l.bf16 %v8853_v23  ;;  %v8201_v29 = vsel %vm11768_vm3, %v8193_v2, %v8200_v4  ;;  %v8685_v61 = vrot.slane %v8684_v46, 4  ;;  %v16236_v12 = vld [vmem:[#allocation2 + $0x28] sm:$0xff]  }
 0x6fd   : > { %8823 = vst.msk [vmem:[#allocation2 + $0x44] sm:$0xf] %vm2497_vm1, %v8734_v32  ;;  %v16201_v32 = vrot.slane %v8694_v35, 4  ;;  %v16245_v43 = vunpack.c.l.bf16 %v16236_v12 }
 0x6fe   : > { %8256 = vrot.lane.b32.xlu1 %v8165_v20, %s11433_s28  ;;  %v16203_v20 = vrot.slane %v8697_v10, 5  ;;  %v9689_v39 = vmul.f32 %v18006_v27, %v16193_v52  ;;  %v8690_v18 = vsel %vm11883_vm12, %v8685_v61, %v16113_v33  ;;  %v9353_v17 = vmul.f32 %v18005_v54, %v16193_v52 }
 0x6ff   : > { %v9690_v50 = vmul.f32 %v18006_v27, %v16245_v43  ;;  %v8958_v2 = vmul.f32 %v18007_v40, %v16245_v43  ;;  %v8957_v21 = vmul.f32 %v18007_v40, %v16193_v52 }
 0x700   : > { %8252 = vrot.lane.b32.xlu0 %v8147_v13, %s11433_s28  ;;  %v8700_v24 = vsel %vm11883_vm12, %v16201_v32, %v16203_v20  ;;  %v8704_v35 = vor.u32 %v8703_v49, %v16203_v20  ;;  %v16218_v13 = vunpack.c.l.bf16 %v8851_v19  ;;  %v8857_v49 = vld [vmem:[#allocation2 + $0x40] sm:$0xf]  ;;  %v8860_v19 = vld [vmem:[#allocation2 + $0x58] sm:$0xf] }
 0x701   : > { %v16314_v61 = vunpack.c.l.bf16 %v8860_v19 }
 0x702   : > { %8260 = vrot.lane.b32.xlu2 %v8183_v58, %s11433_s28  ;;  %v8223_v22 = vpop.permute.xlu0 %8222  ;;  %v16220_v30 = vrot.slane %v8704_v35, 4  ;;  %v9351_v36 = vmul.f32 %v18005_v54, %v16218_v13 }
 0x703   : > { %8308 = vst.msk [vmem:[#allocation2 + $0x60] sm:$0xf] %vm2497_vm1, %v8223_v22  ;;  %v8671_v22 = vshrl.u32 %v16090_v57, 16  ;;  %v8955_v57 = vmul.f32 %v18007_v40, %v16218_v13  ;;  %v8858_v16 = vld [vmem:[#allocation2 + $0x48] sm:$0xf] }
 0x704   : > { %v8738_v7 = vpop.permute.xlu2 %8737  ;;  %v8710_v58 = vsel %vm11883_vm12, %v16220_v30, %v16222_v44 }
 0x705   : > { %8825 = vst.msk [vmem:[#allocation2 + $0x54] sm:$0xf] %vm2497_vm1, %v8738_v7  ;;  %v8673_v51 = vrot.slane %v8671_v22, 4 }
 0x706   : > { %8258 = vrot.lane.b32.xlu1 %v8174_v1, %s11433_s28 }
 0x707   : > { %v8674_v1 = vor.u32 %v8673_v51, %v16124_v60 }
 0x708   : > { %v8233_v42 = vpop.permute.xlu1 %8232  ;;  %8254 = vrot.lane.b32.xlu0 %v8156_v53, %s11433_s28 }
 0x709   : > { %8313 = vst.msk [vmem:[#allocation2 + $0x88] sm:$0xf] %vm2497_vm1, %v8233_v42  ;;  %v8675_v37 = vrot.slane %v8674_v1, 4 }
 0x70a   : > { %8262 = vrot.lane.b32.xlu2 %v8192_v38, %s11433_s28  ;;  %v8229_v55 = vpop.permute.xlu0 %8228 }
 0x70b   : > { %8311 = vst.msk [vmem:[#allocation2 + $0x78] sm:$0xf] %vm2497_vm1, %v8229_v55  ;;  %v8680_v60 = vsel %vm11883_vm12, %v8675_v37, %v16179_v15  ;;  %v9354_v15 = vmul.f32 %v18005_v54, %v16245_v43 }
 0x70c   : > { %v8748_v59 = vpop.permute.xlu2 %8747 }
 0x70d   : > { %8830 = vst.msk [vmem:[#allocation2 + $0x7c] sm:$0xf] %vm2497_vm1, %v8748_v59 }
 0x70e   : > { %9417 = vrot.lane.b32.xlu1 %v9352_v8, %s11433_s28 }
 0x710   : > { %v8235_v34 = vpop.permute.xlu1 %8234  ;;  %8264 = vrot.lane.b32.xlu0 %v8201_v29, %s11433_s28  ;;  %v16308_v29 = vunpack.c.l.bf16 %v8858_v16 }
 0x711   : > { %8314 = vst.msk [vmem:[#allocation2 + $0x90] sm:$0xf] %vm2497_vm1, %v8235_v34 }
 0x712   : > { %9753 = vrot.lane.b32.xlu2 %v9689_v39, %s11433_s28  ;;  %v8231_v14 = vpop.permute.xlu0 %8230  ;;  %v16311_v39 = vunpack.c.l.bf16 %v8857_v49  ;;  %v8864_v19 = vld [vmem:[#allocation2 + $0x78] sm:$0xf] }
 0x713   : > { %8312 = vst.msk [vmem:[#allocation2 + $0x80] sm:$0xf] %vm2497_vm1, %v8231_v14  ;;  %v9694_v14 = vmul.f32 %v18006_v27, %v16308_v29 }
 0x714   : > { %v8750_v3 = vpop.permute.xlu2 %8749 }
 0x715   : > { %8831 = vst.msk [vmem:[#allocation2 + $0x84] sm:$0xf] %vm2497_vm1, %v8750_v3 }
 0x716   : > { %8777 = vrot.lane.b32.xlu1 %v8690_v18, %s11433_s28  ;;  %v9693_v18 = vmul.f32 %v18006_v27, %v16311_v39 }
 0x718   : > { %v8724_v48 = vpop.permute.xlu1 %8723  ;;  %9415 = vrot.lane.b32.xlu0 %v9351_v36, %s11433_s28  ;;  %v9696_v36 = vmul.f32 %v18006_v27, %v16314_v61 }
 0x719   : > { %8818 = vst.msk [vmem:[#allocation2 + $0x1c] sm:$0xf] %vm2497_vm1, %v8724_v48 }
 0x71a   : > { %9023 = vrot.lane.b32.xlu2 %v8956_v28, %s11433_s28  ;;  %v8722_v33 = vpop.permute.xlu0 %8721  ;;  %v9358_v28 = vmul.f32 %v18005_v54, %v16308_v29 }
 0x71b   : > { %8817 = vst.msk [vmem:[#allocation2 + $0x14] sm:$0xf] %vm2497_vm1, %v8722_v33 }
 0x71c   : > { %v8237_v7 = vpop.permute.xlu2 %8236  ;;  %v9161_v20 = vld [vmem:[#allocation2 + $0x84] sm:$0xf] }
 0x71d   : > { %8315 = vst.msk [vmem:[#allocation2 + $0x98] sm:$0xf] %vm2497_vm1, %v8237_v7 }
 0x71e   : > { %9021 = vrot.lane.b32.xlu1 %v8955_v57, %s11433_s28  ;;  %v11180_v57 = vld [vmem:[%s17364_s12] sm:$0xff] }
 0x71f   : > { %10054 = vmatpush.bf16.msra.mxu0 %v11180_v57 }
 0x720   : > { %v8726_v63 = vpop.permute.xlu1 %8725  ;;  %9755 = vrot.lane.b32.xlu0 %v9690_v50, %s11433_s28  ;;  %v9360_v50 = vmul.f32 %v18005_v54, %v16314_v61 }
 0x721   : > { %8819 = vst.msk [vmem:[#allocation2 + $0x24] sm:$0xf] %vm2497_vm1, %v8726_v63  ;;  %v8861_v63 = vld [vmem:[#allocation2 + $0x60] sm:$0xf] }
 0x722   : > { %9419 = vrot.lane.b32.xlu2 %v9353_v17, %s11433_s28  ;;  %v8730_v0 = vpop.permute.xlu0 %8729  ;;  %v16348_v37 = vunpack.c.l.bf16 %v8861_v63  ;;  %v18008_v63 = vld [vmem:[#allocation95_spill] sm:$0xff] }
 0x723   : > { %8821 = vst.msk [vmem:[#allocation2 + $0x34] sm:$0xf] %vm2497_vm1, %v8730_v0 }
 0x724   : > { %v8239_v6 = vpop.permute.xlu2 %8238 }
 0x725   : > { %8316 = vst.msk [vmem:[#allocation2 + $0xa0] sm:$0xf] %vm2497_vm1, %v8239_v6 }
 0x728   : > { %v8732_v26 = vpop.permute.xlu1 %8731  ;;  %8775 = vrot.lane.b32.xlu0 %v8680_v60, %s11433_s28 }
 0x729   : > { %8822 = vst.msk [vmem:[#allocation2 + $0x3c] sm:$0xf] %vm2497_vm1, %v8732_v26  ;;  %v9357_v26 = vmul.f32 %v18005_v54, %v16311_v39 }
 0x72a   : > { %v16267_v53 = vld [vmem:[#allocation2 + $0x30] sm:$0xff]   ;;  %v8736_v9 = vpop.permute.xlu0 %8735 }
 0x72b   : > { %v16270_v42 = vunpack.c.l.bf16 %v16267_v53  ;;  %8824 = vst.msk [vmem:[#allocation2 + $0x4c] sm:$0xf] %vm2497_vm1, %v8736_v9  ;;  %v9697_v9 = vmul.f32 %v18006_v27, %v16348_v37 }
 0x72c   : > { %v8760_v5 = vpop.permute.xlu2 %8759 }
 0x72d   : > { %v9691_v62 = vmul.f32 %v18006_v27, %v16270_v42  ;;  %8836 = vst.msk [vmem:[#allocation2 + $0xac] sm:$0xf] %vm2497_vm1, %v8760_v5  ;;  %v9355_v46 = vmul.f32 %v18005_v54, %v16270_v42  ;;  %v8959_v25 = vmul.f32 %v18007_v40, %v16270_v42 }
 0x72f   : > { %9757 = vrot.lane.b32.xlu1 %v9691_v62, %s11433_s28 }
 0x730   : > { %v16279_v38 = vld [vmem:[#allocation2 + $0x38] sm:$0xff]   ;;  %v8744_v41 = vpop.permute.xlu1 %8743  ;;  %9421 = vrot.lane.b32.xlu0 %v9354_v15, %s11433_s28  ;;  %v8962_v15 = vmul.f32 %v18007_v40, %v16308_v29 }
 0x731   : > { %v16283_v23 = vunpack.c.l.bf16 %v16279_v38  ;;  %8828 = vst.msk [vmem:[#allocation2 + $0x6c] sm:$0xf] %vm2497_vm1, %v8744_v41 }
 0x732   : > { %v8740_v31 = vpop.permute.xlu0 %8739  ;;  %v16331_v33 = vld [vmem:[#allocation2 + $0x4c] sm:$0xff]  }
 0x733   : > { %v9692_v55 = vmul.f32 %v18006_v27, %v16283_v23  ;;  %8826 = vst.msk [vmem:[#allocation2 + $0x5c] sm:$0xf] %vm2497_vm1, %v8740_v31  ;;  %v9356_v10 = vmul.f32 %v18005_v54, %v16283_v23  ;;  %v8960_v7 = vmul.f32 %v18007_v40, %v16283_v23  ;;  %v16344_v1 = vunpack.c.h.bf16 %v16331_v33 }
 0x734   : > { %v8762_v11 = vpop.permute.xlu2 %8761  ;;  %v8961_v31 = vmul.f32 %v18007_v40, %v16311_v39 }
 0x735   : > { %9759 = vrot.lane.b32.xlu2 %v9692_v55, %s11433_s28  ;;  %8837 = vst.msk [vmem:[#allocation2 + $0xb4] sm:$0xf] %vm2497_vm1, %v8762_v11  ;;  %v9695_v6 = vmul.f32 %v18006_v27, %v16344_v1  ;;  %v8862_v55 = vld [vmem:[#allocation2 + $0x68] sm:$0xf]  ;;  %v8964_v11 = vmul.f32 %v18007_v40, %v16314_v61 }
 0x737   : > { %9027 = vrot.lane.b32.xlu1 %v8958_v2, %s11433_s28 }
 0x738   : > { %v8746_v59 = vpop.permute.xlu1 %8745  ;;  %9025 = vrot.lane.b32.xlu0 %v8957_v21, %s11433_s28  ;;  %v16373_v21 = vunpack.c.l.bf16 %v8862_v55  ;;  %v9148_v55 = vld [vmem:[#allocation2 + $0x1c] sm:$0xf] }
 0x739   : > { %8829 = vst.msk [vmem:[#allocation2 + $0x74] sm:$0xf] %vm2497_vm1, %v8746_v59 }
 0x73a   : > { %v8742_v8 = vpop.permute.xlu0 %8741  ;;  %v9698_v16 = vmul.f32 %v18006_v27, %v16373_v21 }
 0x73b   : > { %8827 = vst.msk [vmem:[#allocation2 + $0x64] sm:$0xf] %vm2497_vm1, %v8742_v8  ;;  %v9359_v8 = vmul.f32 %v18005_v54, %v16344_v1 }
 0x73c   : > { %v8249_v4 = vpop.permute.xlu2 %8248 }
 0x73d   : > { %9425 = vrot.lane.b32.xlu2 %v9356_v10, %s11433_s28  ;;  %8321 = vst.msk [vmem:[#allocation2 + $0xc8] sm:$0xf] %vm2497_vm1, %v8249_v4  ;;  %v9361_v4 = vmul.f32 %v18005_v54, %v16348_v37 }
 0x73f   : > { %9423 = vrot.lane.b32.xlu1 %v9355_v46, %s11433_s28 }
 0x740   : > { %v8756_v34 = vpop.permute.xlu1 %8755  ;;  %9029 = vrot.lane.b32.xlu0 %v8959_v25, %s11433_s28  ;;  %v8963_v25 = vmul.f32 %v18007_v40, %v16344_v1 }
 0x741   : > { %8834 = vst.msk [vmem:[#allocation2 + $0x9c] sm:$0xf] %vm2497_vm1, %v8756_v34  ;;  %v9362_v34 = vmul.f32 %v18005_v54, %v16373_v21 }
 0x742   : > { %v8752_v35 = vpop.permute.xlu0 %8751 }
 0x743   : > { %8832 = vst.msk [vmem:[#allocation2 + $0x8c] sm:$0xf] %vm2497_vm1, %v8752_v35  ;;  %v8863_v35 = vld [vmem:[#allocation2 + $0x70] sm:$0xf] }
 0x744   : > { %v8251_v3 = vpop.permute.xlu2 %8250 }
 0x745   : > { %9763 = vrot.lane.b32.xlu2 %v9694_v14, %s11433_s28  ;;  %8322 = vst.msk [vmem:[#allocation2 + $0xd0] sm:$0xf] %vm2497_vm1, %v8251_v3  ;;  %v8965_v14 = vmul.f32 %v18007_v40, %v16348_v37  ;;  %v16397_v3 = vunpack.c.l.bf16 %v8864_v19 }
 0x747   : > { %9761 = vrot.lane.b32.xlu1 %v9693_v18, %s11433_s28  ;;  %v8866_v18 = vld [vmem:[#allocation2 + $0x88] sm:$0xf]  ;;  %v9700_v57 = vmul.f32 %v18006_v27, %v16397_v3 }
 0x748   : > { %v8758_v22 = vpop.permute.xlu1 %8757  ;;  %9767 = vrot.lane.b32.xlu0 %v9696_v36, %s11433_s28 }
 0x749   : > { %8835 = vst.msk [vmem:[#allocation2 + $0xa4] sm:$0xf] %vm2497_vm1, %v8758_v22  ;;  %v16400_v22 = vunpack.c.l.bf16 %v8863_v35 }
 0x74a   : > { %v8754_v48 = vpop.permute.xlu0 %8753 }
 0x74b   : > { %8833 = vst.msk [vmem:[#allocation2 + $0x94] sm:$0xf] %vm2497_vm1, %v8754_v48  ;;  %v9146_v48 = vld [vmem:[#allocation2 + $0xc] sm:$0xf] }
 0x74c   : > { %v8772_v51 = vpop.permute.xlu2 %8771 }
 0x74d   : > { %9429 = vrot.lane.b32.xlu2 %v9358_v28, %s11433_s28  ;;  %8842 = vst.msk [vmem:[#allocation2 + $0xdc] sm:$0xf] %vm2497_vm1, %v8772_v51  ;;  %v16403_v51 = vunpack.c.l.bf16 %v8866_v18 }
 0x74f   : > { %9031 = vrot.lane.b32.xlu1 %v8960_v7, %s11433_s28  ;;  %v16408_v7 = vld [vmem:[%s17363_s11] ss:$0 sm:$0xff]  ;;  %v9366_v19 = vmul.f32 %v18005_v54, %v16403_v51 }
 0x750   : > { %v8245_v17 = vpop.permute.xlu1 %8244  ;;  %9433 = vrot.lane.b32.xlu0 %v9360_v50, %s11433_s28 }
 0x751   : > { %8319 = vst.msk [vmem:[#allocation2 + $0xb8] sm:$0xf] %vm2497_vm1, %v8245_v17  ;;  %v18009_v17 = vunpack.c.l.bf16 %v18008_v63 }
 0x752   : > { %v8241_v0 = vpop.permute.xlu0 %8240 }
 0x753   : > { %8317 = vst.msk [vmem:[#allocation2 + $0xa8] sm:$0xf] %vm2497_vm1, %v8241_v0  ;;  %v8916_v0 = vmul.f32 %v16408_v7, %v18009_v17  ;;  %v16464_v17 = vld [vmem:[%s17363_s11 + $0x6] ss:$0 sm:$0xff] }
 0x754   : > { %v8774_v60 = vpop.permute.xlu2 %8773 }
 0x755   : > { %9765 = vrot.lane.b32.xlu2 %v9695_v6, %s11433_s28  ;;  %8843 = vst.msk [vmem:[#allocation2 + $0xe4] sm:$0xf] %vm2497_vm1, %v8774_v60  ;;  %v9179_v6 = vunpack.c.l.bf16 %v9146_v48  ;;  %v9699_v60 = vmul.f32 %v18006_v27, %v16400_v22  ;;  %v16457_v48 = vld [vmem:[%s17363_s11 + $0x5] ss:$0 sm:$0xff] }
 0x757   : > { %9427 = vrot.lane.b32.xlu1 %v9357_v26, %s11433_s28  ;;  %v9702_v26 = vmul.f32 %v18006_v27, %v16403_v51 }
 0x758   : > { %v8247_v5 = vpop.permute.xlu1 %8246  ;;  %9769 = vrot.lane.b32.xlu0 %v9697_v9, %s11433_s28  ;;  %v16426_v9 = vld [vmem:[%s17363_s11 + $0x2] ss:$0 sm:$0xff] }
 0x759   : > { %8320 = vst.msk [vmem:[#allocation2 + $0xc0] sm:$0xf] %vm2497_vm1, %v8247_v5 }
 0x75a   : > { %v8243_v62 = vpop.permute.xlu0 %8242 }
 0x75b   : > { %8318 = vst.msk [vmem:[#allocation2 + $0xb0] sm:$0xf] %vm2497_vm1, %v8243_v62  ;;  %v9212_v62 = vmul.f32 %v16426_v9, %v9179_v6 }
 0x75c   : > { %v8261_v41 = vpop.permute.xlu2 %8260 }
 0x75d   : > { %9035 = vrot.lane.b32.xlu2 %v8962_v15, %s11433_s28  ;;  %8327 = vst.msk [vmem:[#allocation2 + $0xf8] sm:$0xf] %vm2497_vm1, %v8261_v41  ;;  %v18010_v15 = vld [vmem:[#allocation116_spill] sm:$0xff] }
 0x75e   : > { %v9114_v41 = vadd.f32 %v18010_v15, %v8916_v0  ;;  %v9620_v15 = vmul.f32 %v16464_v17, %v16245_v43 }
 0x75f   : > { %9033 = vrot.lane.b32.xlu1 %v8961_v31, %s11433_s28  ;;  %v16436_v31 = vld [vmem:[%s17363_s11 + $0x3] ss:$0 sm:$0xff] }
 0x760   : > { %v8768_v2 = vpop.permute.xlu1 %8767  ;;  %9039 = vrot.lane.b32.xlu0 %v8964_v11, %s11433_s28 }
 0x761   : > { %8840 = vst.msk [vmem:[#allocation2 + $0xcc] sm:$0xf] %vm2497_vm1, %v8768_v2  ;;  %v9364_v2 = vmul.f32 %v18005_v54, %v16397_v3 }
 0x762   : > { %v8764_v59 = vpop.permute.xlu0 %8763 }
 0x763   : > { %8838 = vst.msk [vmem:[#allocation2 + $0xbc] sm:$0xf] %vm2497_vm1, %v8764_v59  ;;  %v9282_v59 = vmul.f32 %v16436_v31, %v16177_v56 }
 0x764   : > { %v8263_v10 = vpop.permute.xlu2 %8262 }
 0x765   : > { %9431 = vrot.lane.b32.xlu2 %v9359_v8, %s11433_s28  ;;  %8328 = vst.msk [vmem:[#allocation2 + $0x100] sm:$0xf] %vm2497_vm1, %v8263_v10  ;;  %v8865_v8 = vld [vmem:[#allocation2 + $0x80] sm:$0xf]  ;;  %v9244_v10 = vadd.f32 %v9212_v62, %v9114_v41  ;;  %v9147_v41 = vld [vmem:[#allocation2 + $0x14] sm:$0xf] }
 0x766   : > { %v16452_v18 = vunpack.c.l.bf16 %v8865_v8 }
 0x767   : > { %9771 = vrot.lane.b32.xlu1 %v9698_v16, %s11433_s28 }
 0x768   : > { %v8770_v46 = vpop.permute.xlu1 %8769  ;;  %9435 = vrot.lane.b32.xlu0 %v9361_v4, %s11433_s28  ;;  %v9181_v4 = vunpack.c.l.bf16 %v9148_v55  ;;  %v9363_v55 = vmul.f32 %v18005_v54, %v16400_v22 }
 0x769   : > { %8841 = vst.msk [vmem:[#allocation2 + $0xd4] sm:$0xf] %vm2497_vm1, %v8770_v46  ;;  %v8966_v46 = vmul.f32 %v18007_v40, %v16373_v21 }
 0x76a   : > { %v8766_v49 = vpop.permute.xlu0 %8765 }
 0x76b   : > { %8839 = vst.msk [vmem:[#allocation2 + $0xc4] sm:$0xf] %vm2497_vm1, %v8766_v49  ;;  %v11402_v49 = vld [vmem:[#allocation2] sm:$0xff]  }
 0x76c   : > { %v16412_v50 = vpop.permute.xlu2 %9753 }
 0x76d   : > { %9037 = vrot.lane.b32.xlu2 %v8963_v25, %s11433_s28  ;;  %v9178_v25 = vunpack.c.h.bf16 %v11402_v49  ;;  %v8867_v49 = vld [vmem:[#allocation2 + $0x90] sm:$0xf] }
 0x76f   : > { %9437 = vrot.lane.b32.xlu1 %v9362_v34, %s11433_s28  ;;  %v18011_v34 = vld [vmem:[#allocation97_spill] sm:$0xff]  ;;  %v9211_v0 = vmul.f32 %v16426_v9, %v9178_v25  ;;  %v8918_v25 = vmul.f32 %v16408_v7, %v16177_v56  ;;  %v8967_v56 = vmul.f32 %v18007_v40, %v16400_v22 }
 0x770   : > { %v8257_v36 = vpop.permute.xlu1 %8256  ;;  %9041 = vrot.lane.b32.xlu0 %v8965_v14, %s11433_s28  ;;  %v18012_v35 = vunpack.c.l.bf16 %v18011_v34 }
 0x771   : > { %8325 = vst.msk [vmem:[#allocation2 + $0xe8] sm:$0xf] %vm2497_vm1, %v8257_v36  ;;  %v9314_v36 = vadd.f32 %v9282_v59, %v9244_v10  ;;  %v8970_v59 = vmul.f32 %v18007_v40, %v16403_v51 }
 0x772   : > { %v8253_v28 = vpop.permute.xlu0 %8252  ;;  %v8915_v14 = vmul.f32 %v16408_v7, %v18012_v35 }
 0x773   : > { %8323 = vst.msk [vmem:[#allocation2 + $0xd8] sm:$0xf] %vm2497_vm1, %v8253_v28 }
 0x774   : > { %v9024_v16 = vpop.permute.xlu2 %9023 }
 0x775   : > { %9775 = vrot.lane.b32.xlu2 %v9700_v57, %s11433_s28  ;;  %v9550_v57 = vmul.f32 %v16457_v48, %v9181_v4  ;;  %v9116_v35 = vadd.f32 %v9024_v16, %v8918_v25  ;;  %v9619_v16 = vmul.f32 %v16464_v17, %v16193_v52 }
 0x777   : > { %9773 = vrot.lane.b32.xlu1 %v9699_v60, %s11433_s28  ;;  %v18013_v60 = vld [vmem:[#allocation113_spill] sm:$0xff] }
 0x778   : > { %v8259_v5 = vpop.permute.xlu1 %8258  ;;  %9779 = vrot.lane.b32.xlu0 %v9702_v26, %s11433_s28  ;;  %v9113_v26 = vadd.f32 %v18013_v60, %v8915_v14 }
 0x779   : > { %8326 = vst.msk [vmem:[#allocation2 + $0xf0] sm:$0xf] %vm2497_vm1, %v8259_v5  ;;  %v9701_v5 = vmul.f32 %v18006_v27, %v16452_v18 }
 0x77a   : > { %v8255_v11 = vpop.permute.xlu0 %8254  ;;  %v9243_v8 = vadd.f32 %v9211_v0, %v9113_v26  ;;  %v9214_v0 = vmul.f32 %v16426_v9, %v9181_v4  ;;  %v16504_v4 = vld [vmem:[%s17363_s11 + $0x8] ss:$0 sm:$0xff] }
 0x77b   : > { %8324 = vst.msk [vmem:[#allocation2 + $0xe0] sm:$0xf] %vm2497_vm1, %v8255_v11  ;;  %v9281_v11 = vmul.f32 %v16436_v31, %v16218_v13 }
 0x77c   : > { %v9420_v10 = vpop.permute.xlu2 %9419  ;;  %v9246_v26 = vadd.f32 %v9214_v0, %v9116_v35  ;;  %v9283_v35 = vmul.f32 %v16436_v31, %v16193_v52 }
 0x77d   : > { %9441 = vrot.lane.b32.xlu2 %v9364_v2, %s11433_s28  ;;  %v9313_v34 = vadd.f32 %v9281_v11, %v9243_v8  ;;  %v8917_v11 = vmul.f32 %v16408_v7, %v16218_v13 }
 0x77f   : > { %9043 = vrot.lane.b32.xlu1 %v8966_v46, %s11433_s28  ;;  %v9180_v46 = vunpack.c.l.bf16 %v9147_v41 }
 0x780   : > { %v9418_v28 = vpop.permute.xlu1 %9417  ;;  %9445 = vrot.lane.b32.xlu0 %v9366_v19, %s11433_s28 }
 0x781   : > { %v9512_v63 = vadd.f32 %v9418_v28, %v9314_v36  ;;  %v16485_v36 = vunpack.c.l.bf16 %v8867_v49  ;;  %v8968_v28 = vmul.f32 %v18007_v40, %v16397_v3 }
 0x782   : > { %v8265_v6 = vpop.permute.xlu0 %8264 }
 0x783   : > { %v9582_v62 = vadd.f32 %v9550_v57, %v9512_v63  ;;  %8329 = vst.msk [vmem:[#allocation2 + $0x108] sm:$0xf] %vm2497_vm1, %v8265_v6  ;;  %v9549_v57 = vmul.f32 %v16457_v48, %v9180_v46  ;;  %v9149_v6 = vld [vmem:[#allocation2 + $0x24] sm:$0xf] }
 0x785   : > { %9777 = vrot.lane.b32.xlu2 %v9701_v5, %s11433_s28  ;;  %v9652_v2 = vadd.f32 %v9620_v15, %v9582_v62  ;;  %v8868_v5 = vld [vmem:[#allocation2 + $0x98] sm:$0xf]  ;;  %v9703_v62 = vmul.f32 %v18006_v27, %v16485_v36  ;;  %v16499_v15 = vunpack.c.h.bf16 %v16236_v12  ;;  %v9284_v12 = vmul.f32 %v16436_v31, %v16245_v43 }
 0x786   : > { %v16517_v25 = vunpack.c.l.bf16 %v8868_v5 }
 0x787   : > { %9439 = vrot.lane.b32.xlu1 %v9363_v55, %s11433_s28  ;;  %v9888_v13 = vmul.f32 %v16504_v4, %v16499_v15 }
 0x788   : > { %v8778_v19 = vpop.permute.xlu1 %8777  ;;  %9051 = vrot.lane.b32.xlu0 %v8970_v59, %s11433_s28  ;;  %v16511_v59 = vunpack.c.l.bf16 %v9149_v6 }
 0x789   : > { %8845 = vst.msk [vmem:[#allocation2 + $0xf4] sm:$0xf] %vm2497_vm1, %v8778_v19  ;;  %v9213_v19 = vmul.f32 %v16426_v9, %v9180_v46  ;;  %v9704_v46 = vmul.f32 %v18006_v27, %v16517_v25 }
 0x78a   : > { %v9416_v14 = vpop.permute.xlu0 %9415 }
 0x78b   : > { %v9511_v63 = vadd.f32 %v9416_v14, %v9313_v34 }
 0x78d   : > { %9047 = vrot.lane.b32.xlu2 %v8968_v28, %s11433_s28  ;;  %v9581_v60 = vadd.f32 %v9549_v57, %v9511_v63  ;;  %v9316_v28 = vadd.f32 %v9284_v12, %v9246_v26  ;;  %v9365_v57 = vmul.f32 %v18005_v54, %v16452_v18  ;;  %v8969_v12 = vmul.f32 %v18007_v40, %v16452_v18 }
 0x78f   : > { %v16506_v41 = vpop.permute.xlu2 %9759  ;;  %9045 = vrot.lane.b32.xlu1 %v8967_v56, %s11433_s28  ;;  %v9651_v55 = vadd.f32 %v9619_v16, %v9581_v60  ;;  %v9367_v16 = vmul.f32 %v18005_v54, %v16485_v36 }
 0x790   : > { %v9022_v8 = vpop.permute.xlu1 %9021  ;;  %9781 = vrot.lane.b32.xlu0 %v9703_v62, %s11433_s28  ;;  %v9551_v62 = vmul.f32 %v16457_v48, %v16511_v59 }
 0x791   : > { %v9849_v49 = vadd.f32 %v16412_v50, %v9651_v55  ;;  %v9115_v34 = vadd.f32 %v9022_v8, %v8917_v11  ;;  %v9887_v50 = vmul.f32 %v16504_v4, %v16511_v59  ;;  %v9621_v11 = vmul.f32 %v16464_v17, %v16270_v42 }
 0x792   : > { %v9756_v14 = vpop.permute.xlu0 %9755 }
 0x793   : > { %v9245_v63 = vadd.f32 %v9213_v19, %v9115_v34  ;;  %v9850_v0 = vadd.f32 %v9756_v14, %v9652_v2  ;;  %v9919_v56 = vadd.f32 %v9887_v50, %v9849_v49  ;;  %v8870_v19 = vld [vmem:[#allocation2 + $0xa8] sm:$0xf]  ;;  %v16549_v34 = vunpack.c.h.bf16 %v16267_v53 }
 0x794   : > { %v16556_v14 = vunpack.c.l.bf16 %v8870_v19 }
 0x795   : > { %9443 = vrot.lane.b32.xlu2 %v9365_v57, %s11433_s28  ;;  %v9315_v6 = vadd.f32 %v9283_v35, %v9245_v63  ;;  %v9920_v60 = vadd.f32 %v9888_v13, %v9850_v0  ;;  %v8971_v35 = vmul.f32 %v18007_v40, %v16485_v36  ;;  %v8872_v57 = vld [vmem:[#allocation2 + $0xb8] sm:$0xf]  ;;  %v9889_v0 = vmul.f32 %v16504_v4, %v16549_v34 }
 0x796   : > { %v16561_v53 = vunpack.c.l.bf16 %v8872_v57  ;;  %v8919_v57 = vmul.f32 %v16408_v7, %v16193_v52 }
 0x797   : > { %v16533_v26 = vpop.permute.xlu2 %9425  ;;  %9783 = vrot.lane.b32.xlu1 %v9704_v46, %s11433_s28  ;;  %v9951_v5 = vpack.c.bf16 %v9920_v60, %v9919_v56  ;;  %v9513_v2 = vadd.f32 %v9420_v10, %v9315_v6  ;;  %v9368_v10 = vmul.f32 %v18005_v54, %v16517_v25  ;;  %v9706_v6 = vmul.f32 %v18006_v27, %v16556_v14 }
 0x798   : > { %9447 = vrot.lane.b32.xlu0 %v9367_v16, %s11433_s28  ;;  %v9552_v56 = vmul.f32 %v16457_v48, %v16499_v15 }
 0x799   : > { %v9583_v55 = vadd.f32 %v9551_v62, %v9513_v2  ;;  %11033 = vmatmul.msk.bf16.vlgmr.msra.gmra.mxu0 %vm1319_vm0, %v9951_v5  ;;  %v8972_v5 = vmul.f32 %v18007_v40, %v16517_v25  ;;  %v16571_v2 = vunpack.c.h.bf16 %v16279_v38 }
 0x79a   : > { %v8776_v8 = vpop.permute.xlu0 %8775 }
 0x79b   : > { %v9653_v49 = vadd.f32 %v9621_v11, %v9583_v55  ;;  %8844 = vst.msk [vmem:[#allocation2 + $0xec] sm:$0xf] %vm2497_vm1, %v8776_v8  ;;  %v9622_v55 = vmul.f32 %v16464_v17, %v16283_v23  ;;  %v8869_v11 = vld [vmem:[#allocation2 + $0xa0] sm:$0xf]  ;;  %v9708_v8 = vmul.f32 %v18006_v27, %v16561_v53 }
 0x79d   : > { %9049 = vrot.lane.b32.xlu2 %v8969_v12, %s11433_s28 }
 0x79f   : > { %v16553_v13 = vpop.permute.xlu2 %9763  ;;  %9449 = vrot.lane.b32.xlu1 %v9368_v10, %s11433_s28  ;;  %v9890_v10 = vmul.f32 %v16504_v4, %v16571_v2 }
 0x7a0   : > { %9053 = vrot.lane.b32.xlu0 %v8971_v35, %s11433_s28  ;;  %v16586_v35 = vunpack.c.l.bf16 %v8869_v11  ;;  %v9372_v11 = vmul.f32 %v18005_v54, %v16561_v53 }
 0x7a1   : > { %v9758_v63 = vpop.permute.xlu1 %9757 }
 0x7a2   : > { %v9851_v50 = vadd.f32 %v9758_v63, %v9653_v49  ;;  %v9422_v46 = vpop.permute.xlu0 %9421  ;;  %v8920_v49 = vmul.f32 %v16408_v7, %v16245_v43  ;;  %v9216_v63 = vmul.f32 %v16426_v9, %v16499_v15  ;;  %v9370_v43 = vmul.f32 %v18005_v54, %v16556_v14 }
 0x7a3   : > { %v9514_v60 = vadd.f32 %v9422_v46, %v9316_v28  ;;  %v9705_v52 = vmul.f32 %v18006_v27, %v16586_v35  ;;  %v9285_v15 = vmul.f32 %v16436_v31, %v16270_v42 }
 0x7a4   : > { %v9921_v16 = vadd.f32 %v9889_v0, %v9851_v50 }
 0x7a5   : > { %9787 = vrot.lane.b32.xlu2 %v9706_v6, %s11433_s28  ;;  %v9584_v62 = vadd.f32 %v9552_v56, %v9514_v60  ;;  %v9286_v56 = vmul.f32 %v16436_v31, %v16283_v23 }
 0x7a7   : > { %v16577_v12 = vpop.permute.xlu2 %9429  ;;  %9055 = vrot.lane.b32.xlu1 %v8972_v5, %s11433_s28  ;;  %v9654_v28 = vadd.f32 %v9622_v55, %v9584_v62 }
 0x7a8   : > { %9791 = vrot.lane.b32.xlu0 %v9708_v8, %s11433_s28 }
 0x7a9   : > { %v9028_v38 = vpop.permute.xlu1 %9027  ;;  %v9852_v19 = vadd.f32 %v16506_v41, %v9654_v28  ;;  %v9215_v41 = vmul.f32 %v16426_v9, %v16511_v59  ;;  %v9554_v28 = vmul.f32 %v16457_v48, %v16571_v2 }
 0x7aa   : > { %v9118_v0 = vadd.f32 %v9028_v38, %v8920_v49  ;;  %v9026_v50 = vpop.permute.xlu0 %9025 }
 0x7ab   : > { %v9922_v46 = vadd.f32 %v9890_v10, %v9852_v19  ;;  %v9117_v6 = vadd.f32 %v9026_v50, %v8919_v57  ;;  %v8921_v19 = vmul.f32 %v16408_v7, %v16270_v42  ;;  %v16618_v57 = vunpack.c.l.bf16 %v16331_v33  ;;  %v8871_v33 = vld [vmem:[#allocation2 + $0xb0] sm:$0xf] }
 0x7ac   : > { %v9248_v60 = vadd.f32 %v9216_v63, %v9118_v0  ;;  %v9153_v63 = vld [vmem:[#allocation2 + $0x44] sm:$0xf]  ;;  %v9553_v50 = vmul.f32 %v16457_v48, %v16549_v34  ;;  %v9623_v42 = vmul.f32 %v16464_v17, %v16311_v39 }
 0x7ad   : > { %9453 = vrot.lane.b32.xlu2 %v9370_v43, %s11433_s28  ;;  %v9247_v5 = vadd.f32 %v9215_v41, %v9117_v6  ;;  %v9952_v62 = vpack.c.bf16 %v9922_v46, %v9921_v16  ;;  %v9624_v16 = vmul.f32 %v16464_v17, %v16308_v29  ;;  %v9217_v46 = vmul.f32 %v16426_v9, %v16549_v34 }
 0x7ae   : > { %v9318_v55 = vadd.f32 %v9286_v56, %v9248_v60  ;;  %v9287_v60 = vmul.f32 %v16436_v31, %v16311_v39 }
 0x7af   : > { %v16605_v8 = vpop.permute.xlu2 %9765  ;;  %9785 = vrot.lane.b32.xlu1 %v9705_v52, %s11433_s28  ;;  %v9317_v59 = vadd.f32 %v9285_v15, %v9247_v5  ;;  %11034 = vmatmul.msk.bf16.gmra.mxu0 %vm1319_vm0, %v9952_v62  ;;  %v8924_v52 = vmul.f32 %v16408_v7, %v16308_v29  ;;  %v9369_v15 = vmul.f32 %v18005_v54, %v16586_v35  ;;  %v16635_v5 = vunpack.c.l.bf16 %v9153_v63 }
 0x7b0   : > { %v9516_v49 = vadd.f32 %v16533_v26, %v9318_v55  ;;  %9457 = vrot.lane.b32.xlu0 %v9372_v11, %s11433_s28  ;;  %v8974_v26 = vmul.f32 %v18007_v40, %v16556_v14  ;;  %v9892_v11 = vmul.f32 %v16504_v4, %v16618_v57 }
 0x7b1   : > { %v9424_v38 = vpop.permute.xlu1 %9423 }
 0x7b2   : > { %v9586_v10 = vadd.f32 %v9554_v28, %v9516_v49  ;;  %v9515_v0 = vadd.f32 %v9424_v38, %v9317_v59  ;;  %v9030_v43 = vpop.permute.xlu0 %9029  ;;  %v8976_v59 = vmul.f32 %v18007_v40, %v16561_v53  ;;  %v16643_v49 = vunpack.c.l.bf16 %v8871_v33 }
 0x7b3   : > { %v9119_v6 = vadd.f32 %v9030_v43, %v8921_v19  ;;  %v9220_v19 = vmul.f32 %v16426_v9, %v16618_v57  ;;  %v9891_v43 = vmul.f32 %v16504_v4, %v16635_v5 }
 0x7b4   : > { %v9585_v41 = vadd.f32 %v9553_v50, %v9515_v0  ;;  %v9656_v56 = vadd.f32 %v9624_v16, %v9586_v10  ;;  %v8873_v16 = vld [vmem:[#allocation2 + $0xc0] sm:$0xf]  ;;  %v9290_v0 = vmul.f32 %v16436_v31, %v16314_v61 }
 0x7b5   : > { %9059 = vrot.lane.b32.xlu2 %v8974_v26, %s11433_s28  ;;  %v9249_v34 = vadd.f32 %v9217_v46, %v9119_v6  ;;  %v16652_v6 = vunpack.c.l.bf16 %v8873_v16 }
 0x7b6   : > { %v9655_v62 = vadd.f32 %v9623_v42, %v9585_v41  ;;  %v9854_v55 = vadd.f32 %v16553_v13, %v9656_v56  ;;  %v9707_v41 = vmul.f32 %v18006_v27, %v16643_v49  ;;  %v9156_v56 = vld [vmem:[#allocation2 + $0x5c] sm:$0xf] }
 0x7b7   : > { %v9036_v28 = vpop.permute.xlu2 %9035  ;;  %9451 = vrot.lane.b32.xlu1 %v9369_v15, %s11433_s28  ;;  %v9319_v38 = vadd.f32 %v9287_v60, %v9249_v34  ;;  %v8973_v60 = vmul.f32 %v18007_v40, %v16586_v35  ;;  %v8874_v15 = vld [vmem:[#allocation2 + $0xc8] sm:$0xf]  ;;  %v9709_v34 = vmul.f32 %v18006_v27, %v16652_v6 }
 0x7b8   : > { %v9122_v10 = vadd.f32 %v9036_v28, %v8924_v52  ;;  %v9924_v63 = vadd.f32 %v9892_v11, %v9854_v55  ;;  %9063 = vrot.lane.b32.xlu0 %v8976_v59, %s11433_s28  ;;  %v16664_v55 = vunpack.c.l.bf16 %v9156_v56  ;;  %v8922_v11 = vmul.f32 %v16408_v7, %v16283_v23  ;;  %v9155_v28 = vld [vmem:[#allocation2 + $0x54] sm:$0xf] }
 0x7b9   : > { %v9762_v13 = vpop.permute.xlu1 %9761  ;;  %v16670_v16 = vunpack.c.l.bf16 %v8874_v15  ;;  %v9556_v15 = vmul.f32 %v16457_v48, %v16618_v57  ;;  %v8975_v57 = vmul.f32 %v18007_v40, %v16643_v49 }
 0x7ba   : > { %v9252_v50 = vadd.f32 %v9220_v19, %v9122_v10  ;;  %v9853_v26 = vadd.f32 %v9762_v13, %v9655_v62  ;;  %v9768_v46 = vpop.permute.xlu0 %9767  ;;  %v9218_v19 = vmul.f32 %v16426_v9, %v16571_v2  ;;  %v9371_v13 = vmul.f32 %v18005_v54, %v16643_v49 }
 0x7bb   : > { %v9710_v2 = vmul.f32 %v18006_v27, %v16670_v16 }
 0x7bc   : > { %v9923_v42 = vadd.f32 %v9891_v43, %v9853_v26  ;;  %v9322_v33 = vadd.f32 %v9290_v0, %v9252_v50  ;;  %v9558_v0 = vmul.f32 %v16457_v48, %v16664_v55  ;;  %v9288_v50 = vmul.f32 %v16436_v31, %v16308_v29 }
 0x7bd   : > { %9789 = vrot.lane.b32.xlu2 %v9707_v41, %s11433_s28  ;;  %v16680_v26 = vunpack.c.l.bf16 %v9155_v28  ;;  %v9626_v28 = vmul.f32 %v16464_v17, %v16314_v61 }
 0x7be   : > { %v9953_v52 = vpack.c.bf16 %v9924_v63, %v9923_v42  ;;  %v9628_v42 = vmul.f32 %v16464_v17, %v16373_v21 }
 0x7bf   : > { %v16661_v62 = vpop.permute.xlu2 %9431  ;;  %9057 = vrot.lane.b32.xlu1 %v8973_v60, %s11433_s28  ;;  %v8925_v60 = vmul.f32 %v16408_v7, %v16344_v1 }
 0x7c0   : > { %11035 = vmatmul.msk.bf16.gmra.mxu0 %vm1319_vm0, %v9953_v52  ;;  %9793 = vrot.lane.b32.xlu0 %v9709_v34, %s11433_s28 }
 0x7c1   : > { %v9032_v59 = vpop.permute.xlu1 %9031 }
 0x7c2   : > { %v9120_v10 = vadd.f32 %v9032_v59, %v8922_v11  ;;  %v9434_v63 = vpop.permute.xlu0 %9433  ;;  %v9221_v11 = vmul.f32 %v16426_v9, %v16680_v26 }
 0x7c3   : > { %v9520_v23 = vadd.f32 %v9434_v63, %v9322_v33  ;;  %v9373_v33 = vmul.f32 %v18005_v54, %v16652_v6 }
 0x7c4   : > { %v9250_v43 = vadd.f32 %v9218_v19, %v9120_v10  ;;  %v9555_v19 = vmul.f32 %v16457_v48, %v16635_v5 }
 0x7c5   : > { %9455 = vrot.lane.b32.xlu2 %v9371_v13, %s11433_s28  ;;  %v9590_v41 = vadd.f32 %v9558_v0, %v9520_v23 }
 0x7c6   : > { %v9320_v56 = vadd.f32 %v9288_v50, %v9250_v43  ;;  %v9625_v43 = vmul.f32 %v16464_v17, %v16344_v1 }
 0x7c7   : > { %v9038_v29 = vpop.permute.xlu2 %9037  ;;  %9795 = vrot.lane.b32.xlu1 %v9710_v2, %s11433_s28  ;;  %v16692_v52 = vadd.f32 %v9628_v42, %v9590_v41  ;;  %v8875_v41 = vld [vmem:[#allocation2 + $0xd0] sm:$0xf] }
 0x7c8   : > { %v9518_v34 = vadd.f32 %v16577_v12, %v9320_v56  ;;  %v9123_v59 = vadd.f32 %v9038_v29, %v8925_v60  ;;  %9459 = vrot.lane.b32.xlu0 %v9373_v33, %s11433_s28  ;;  %v9291_v12 = vmul.f32 %v16436_v31, %v16348_v37  ;;  %v8977_v33 = vmul.f32 %v18007_v40, %v16652_v6 }
 0x7c9   : > { %v9428_v10 = vpop.permute.xlu1 %9427 }
 0x7ca   : > { %v9588_v63 = vadd.f32 %v9556_v15, %v9518_v34  ;;  %v9253_v13 = vadd.f32 %v9221_v11, %v9123_v59  ;;  %v9517_v0 = vadd.f32 %v9428_v10, %v9319_v38  ;;  %v16704_v23 = vpop.permute.xlu0 %9769  ;;  %v9374_v38 = vmul.f32 %v18005_v54, %v16670_v16  ;;  %v8876_v34 = vld [vmem:[#allocation2 + $0xd8] sm:$0xf] }
 0x7cb   : > { %v16720_v15 = vunpack.c.l.bf16 %v8875_v41  ;;  %v9894_v11 = vmul.f32 %v16504_v4, %v16664_v55  ;;  %v9893_v59 = vmul.f32 %v16504_v4, %v16680_v26  ;;  %v9157_v41 = vld [vmem:[#allocation2 + $0x64] sm:$0xf] }
 0x7cc   : > { %v9658_v50 = vadd.f32 %v9626_v28, %v9588_v63  ;;  %v9587_v2 = vadd.f32 %v9555_v19, %v9517_v0  ;;  %v9323_v42 = vadd.f32 %v9291_v12, %v9253_v13  ;;  %v9219_v19 = vmul.f32 %v16426_v9, %v16635_v5 }
 0x7cd   : > { %9061 = vrot.lane.b32.xlu2 %v8975_v57, %s11433_s28  ;;  %v8926_v63 = vmul.f32 %v16408_v7, %v16314_v61  ;;  %v16734_v57 = vunpack.c.l.bf16 %v8876_v34  ;;  %v9289_v5 = vmul.f32 %v16436_v31, %v16344_v1  ;;  %v8978_v61 = vmul.f32 %v18007_v40, %v16670_v16 }
 0x7ce   : > { %v9856_v56 = vadd.f32 %v9768_v46, %v9658_v50  ;;  %v9657_v60 = vadd.f32 %v9625_v43, %v9587_v2  ;;  %v8923_v46 = vmul.f32 %v16408_v7, %v16311_v39  ;;  %v9222_v39 = vmul.f32 %v16426_v9, %v16664_v55 }
 0x7cf   : > { %v16717_v29 = vpop.permute.xlu2 %9775  ;;  %9461 = vrot.lane.b32.xlu1 %v9374_v38, %s11433_s28  ;;  %v8980_v55 = vmul.f32 %v18007_v40, %v16734_v57  ;;  %v9190_v34 = vunpack.c.l.bf16 %v9157_v41  ;;  %v9629_v41 = vmul.f32 %v16464_v17, %v16400_v22 }
 0x7d0   : > { %v9855_v28 = vadd.f32 %v16605_v8, %v9657_v60  ;;  %9065 = vrot.lane.b32.xlu0 %v8977_v33, %s11433_s28  ;;  %v9926_v13 = vadd.f32 %v9894_v11, %v9856_v56  ;;  %v8979_v8 = vmul.f32 %v18007_v40, %v16720_v15  ;;  %v9292_v60 = vmul.f32 %v16436_v31, %v16373_v21  ;;  %v9158_v11 = vld [vmem:[#allocation2 + $0x6c] sm:$0xf] }
 0x7d1   : > { %v9034_v10 = vpop.permute.xlu1 %9033 }
 0x7d2   : > { %v9925_v0 = vadd.f32 %v9893_v59, %v9855_v28  ;;  %v9121_v12 = vadd.f32 %v9034_v10, %v8923_v46  ;;  %v9040_v50 = vpop.permute.xlu0 %9039  ;;  %v8877_v28 = vld [vmem:[#allocation2 + $0xe0] sm:$0xf]  ;;  %v9557_v46 = vmul.f32 %v16457_v48, %v16680_v26 }
 0x7d3   : > { %v9124_v43 = vadd.f32 %v9040_v50, %v8926_v63  ;;  %v9627_v63 = vmul.f32 %v16464_v17, %v16348_v37  ;;  %v16761_v50 = vunpack.c.l.bf16 %v8877_v28  ;;  %v9160_v28 = vld [vmem:[#allocation2 + $0x7c] sm:$0xf] }
 0x7d4   : > { %v9251_v2 = vadd.f32 %v9219_v19, %v9121_v12  ;;  %v9954_v38 = vpack.c.bf16 %v9926_v13, %v9925_v0  ;;  %v16759_v0 = vunpack.c.l.bf16 %v9158_v11 }
 0x7d5   : > { %9069 = vrot.lane.b32.xlu2 %v8979_v8, %s11433_s28  ;;  %v9254_v56 = vadd.f32 %v9222_v39, %v9124_v43  ;;  %v9712_v8 = vmul.f32 %v18006_v27, %v16734_v57  ;;  %v9559_v39 = vmul.f32 %v16457_v48, %v9190_v34 }
 0x7d6   : > { %v9321_v33 = vadd.f32 %v9289_v5, %v9251_v2  ;;  %11036 = vmatmul.msk.bf16.gmra.mxu0 %vm1319_vm0, %v9954_v38  ;;  %v9711_v5 = vmul.f32 %v18006_v27, %v16720_v15  ;;  %v9895_v38 = vmul.f32 %v16504_v4, %v9190_v34 }
 0x7d7   : > { %v16750_v1 = vpop.permute.xlu2 %9441  ;;  %9067 = vrot.lane.b32.xlu1 %v8978_v61, %s11433_s28  ;;  %v9324_v59 = vadd.f32 %v9292_v60, %v9254_v56  ;;  %v9896_v56 = vmul.f32 %v16504_v4, %v16759_v0 }
 0x7d8   : > { %v9519_v19 = vadd.f32 %v16661_v62, %v9321_v33  ;;  %9071 = vrot.lane.b32.xlu0 %v8980_v55, %s11433_s28 }
 0x7d9   : > { %v9772_v10 = vpop.permute.xlu1 %9771 }
 0x7da   : > { %v9589_v13 = vadd.f32 %v9557_v46, %v9519_v19  ;;  %v9436_v12 = vpop.permute.xlu0 %9435  ;;  %v9858_v62 = vadd.f32 %v9772_v10, %v16692_v52  ;;  %v9560_v19 = vmul.f32 %v16457_v48, %v16759_v0 }
 0x7db   : > { %v9521_v26 = vadd.f32 %v9436_v12, %v9323_v42  ;;  %v9713_v42 = vmul.f32 %v18006_v27, %v16761_v50  ;;  %v9159_v12 = vld [vmem:[#allocation2 + $0x74] sm:$0xf] }
 0x7dc   : > { %v9659_v43 = vadd.f32 %v9627_v63, %v9589_v13  ;;  %v9928_v55 = vadd.f32 %v9896_v56, %v9858_v62  ;;  %v9376_v13 = vmul.f32 %v18005_v54, %v16734_v57  ;;  %v16791_v62 = vunpack.c.l.bf16 %v9160_v28 }
 0x7dd   : > { %9799 = vrot.lane.b32.xlu2 %v9712_v8, %s11433_s28  ;;  %v9591_v2 = vadd.f32 %v9559_v39, %v9521_v26  ;;  %v9223_v8 = vmul.f32 %v16426_v9, %v9190_v34  ;;  %v9630_v26 = vmul.f32 %v16464_v17, %v16397_v3  ;;  %v8930_v34 = vmul.f32 %v16408_v7, %v16397_v3 }
 0x7de   : > { %v9857_v61 = vadd.f32 %v16704_v23, %v9659_v43  ;;  %v8927_v23 = vmul.f32 %v16408_v7, %v16348_v37  ;;  %v9375_v37 = vmul.f32 %v18005_v54, %v16720_v15 }
 0x7df   : > { %v16778_v52 = vpop.permute.xlu2 %9777  ;;  %9797 = vrot.lane.b32.xlu1 %v9711_v5, %s11433_s28  ;;  %v9661_v60 = vadd.f32 %v9629_v41, %v9591_v2  ;;  %v9293_v5 = vmul.f32 %v16436_v31, %v16400_v22  ;;  %v16801_v41 = vunpack.c.l.bf16 %v9159_v12 }
 0x7e0   : > { %v9927_v33 = vadd.f32 %v9895_v38, %v9857_v61  ;;  %9801 = vrot.lane.b32.xlu0 %v9713_v42, %s11433_s28  ;;  %v8878_v38 = vld [vmem:[#allocation2 + $0xe8] sm:$0xf]  ;;  %v9377_v61 = vmul.f32 %v18005_v54, %v16761_v50 }
 0x7e1   : > { %v9438_v11 = vpop.permute.xlu1 %9437 }
 0x7e2   : > { %v9955_v46 = vpack.c.bf16 %v9928_v55, %v9927_v33  ;;  %v9522_v10 = vadd.f32 %v9438_v11, %v9324_v59  ;;  %v9042_v63 = vpop.permute.xlu0 %9041  ;;  %v8880_v33 = vld [vmem:[#allocation2 + $0xf8] sm:$0xf]  ;;  %v9226_v11 = vmul.f32 %v16426_v9, %v16791_v62 }
 0x7e3   : > { %v9125_v39 = vadd.f32 %v9042_v63, %v8927_v23  ;;  %v9898_v23 = vmul.f32 %v16504_v4, %v16791_v62 }
 0x7e4   : > { %v9592_v43 = vadd.f32 %v9560_v19, %v9522_v10  ;;  %v16814_v19 = vunpack.c.l.bf16 %v8878_v38  ;;  %v9296_v10 = vmul.f32 %v16436_v31, %v16403_v51 }
 0x7e5   : > { %9465 = vrot.lane.b32.xlu2 %v9376_v13, %s11433_s28  ;;  %v9255_v59 = vadd.f32 %v9223_v8, %v9125_v39  ;;  %v9897_v13 = vmul.f32 %v16504_v4, %v16801_v41  ;;  %v16822_v8 = vunpack.c.l.bf16 %v8880_v33 }
 0x7e6   : > { %v9662_v2 = vadd.f32 %v9630_v26, %v9592_v43  ;;  %11037 = vmatmul.msk.bf16.gmra.mxu0 %vm1319_vm0, %v9955_v46  ;;  %v9162_v43 = vld [vmem:[#allocation2 + $0x8c] sm:$0xf] }
 0x7e7   : > { %v9048_v56 = vpop.permute.xlu2 %9047  ;;  %9463 = vrot.lane.b32.xlu1 %v9375_v37, %s11433_s28  ;;  %v16806_v42 = vadd.f32 %v9293_v5, %v9255_v59  ;;  %v9714_v59 = vmul.f32 %v18006_v27, %v16814_v19  ;;  %v16837_v38 = vunpack.c.l.bf16 %v9162_v43  ;;  %v9634_v43 = vmul.f32 %v16464_v17, %v16517_v25 }
 0x7e8   : > { %v9860_v55 = vadd.f32 %v16717_v29, %v9662_v2  ;;  %v9128_v28 = vadd.f32 %v9048_v56, %v8930_v34  ;;  %9467 = vrot.lane.b32.xlu0 %v9377_v61, %s11433_s28  ;;  %v7810_v2 = vld [vmem:[#allocation2 + $0x110] sm:$0x1]  ;;  %v8928_v61 = vmul.f32 %v16408_v7, %v16373_v21  ;;  %v9224_v56 = vmul.f32 %v16426_v9, %v16759_v0 }
 0x7e9   : > { %v9774_v46 = vpop.permute.xlu1 %9773  ;;  %v9294_v21 = vmul.f32 %v16436_v31, %v16397_v3  ;;  %v9378_v0 = vmul.f32 %v18005_v54, %v16814_v19 }
 0x7ea   : > { %v9258_v63 = vadd.f32 %v9226_v11, %v9128_v28  ;;  %v9859_v29 = vadd.f32 %v9774_v46, %v9661_v60  ;;  %v16820_v12 = vpop.permute.xlu0 %9779  ;;  %v9930_v39 = vadd.f32 %v9898_v23, %v9860_v55  ;;  %v9716_v60 = vmul.f32 %v18006_v27, %v16822_v8 }
 0x7eb   : > { %v8982_v11 = vmul.f32 %v18007_v40, %v16814_v19  ;;  %v9564_v28 = vmul.f32 %v16457_v48, %v16837_v38  ;;  %v8711_v46 = vshrl.u32 %v16188_v45, 16  ;;  %v8931_v45 = vmul.f32 %v16408_v7, %v16452_v18 }
 0x7ec   : > { %v9929_v26 = vadd.f32 %v9897_v13, %v9859_v29  ;;  %v9328_v37 = vadd.f32 %v9296_v10, %v9258_v63  ;;  %v16851_v63 = vunpack.c.l.bf16 %v9161_v20  ;;  %v8879_v13 = vld [vmem:[#allocation2 + $0xf0] sm:$0xf] }
 0x7ed   : > { %8779 = vrot.lane.b32.xlu2 %v8700_v24, %s11433_s28  ;;  %v8330_v24 = vunpack.c.l.bf16 %v7810_v2 }
 0x7ee   : > { %v9956_v5 = vpack.c.bf16 %v9930_v39, %v9929_v26  ;;  %v18014_v39 = vld [vmem:[#allocation72_spill] sm:$0xff]  ;;  %v9227_v20 = vmul.f32 %v16426_v9, %v16851_v63 }
 0x7ef   : > { %v16834_v34 = vpop.permute.xlu2 %9443  ;;  %9803 = vrot.lane.b32.xlu1 %v9714_v59, %s11433_s28  ;;  %v8363_v26 = vmul.f32 %v8330_v24, %v18014_v39  ;;  %v16863_v59 = vunpack.c.l.bf16 %v8879_v13  ;;  %v9631_v13 = vmul.f32 %v16464_v17, %v16452_v18 }
 0x7f0   : > { %9807 = vrot.lane.b32.xlu0 %v9716_v60, %s11433_s28  ;;  %v8713_v60 = vrot.slane %v8711_v46, 4  ;;  %v9228_v46 = vmul.f32 %v16426_v9, %v16837_v38 }
 0x7f1   : > { %v9044_v32 = vpop.permute.xlu1 %9043 }
 0x7f2   : > { %v9126_v33 = vadd.f32 %v9044_v32, %v8928_v61  ;;  %v9446_v55 = vpop.permute.xlu0 %9445  ;;  %v9562_v61 = vmul.f32 %v16457_v48, %v16791_v62  ;;  %v8932_v62 = vmul.f32 %v16408_v7, %v16403_v51 }
 0x7f3   : > { %v9526_v23 = vadd.f32 %v9446_v55, %v9328_v37 }
 0x7f4   : > { %v9256_v10 = vadd.f32 %v9224_v56, %v9126_v33  ;;  %v8396_v33 = vpack.c.bf16 %v8363_v26, %v8363_v26 }
 0x7f5   : > { %9075 = vrot.lane.b32.xlu2 %v8982_v11, %s11433_s28  ;;  %v9596_v29 = vadd.f32 %v9564_v28, %v9526_v23  ;;  %v9561_v28 = vmul.f32 %v16457_v48, %v16801_v41 }
 0x7f6   : > { %v9326_v37 = vadd.f32 %v9294_v21, %v9256_v10  ;;  %11038 = vmatmul.msk.bf16.gmra.mxu0 %vm1319_vm0, %v9956_v5  ;;  %v9632_v5 = vmul.f32 %v16464_v17, %v16403_v51  ;;  %v8714_v51 = vor.u32 %v8713_v60, %v16222_v44  ;;  %v8717_v26 = vshll.u32 %v8396_v33, 16 }
 0x7f7   : > { %v9050_v3 = vpop.permute.xlu2 %9049  ;;  %9469 = vrot.lane.b32.xlu1 %v9378_v0, %s11433_s28  ;;  %v16865_v2 = vadd.f32 %v9634_v43, %v9596_v29  ;;  %v9298_v43 = vmul.f32 %v16436_v31, %v16517_v25  ;;  %v9380_v44 = vmul.f32 %v18005_v54, %v16822_v8 }
 0x7f8   : > { %v9524_v32 = vadd.f32 %v16750_v1, %v9326_v37  ;;  %v9129_v24 = vadd.f32 %v9050_v3, %v8931_v45  ;;  %8781 = vrot.lane.b32.xlu0 %v8710_v58, %s11433_s28  ;;  %v9297_v1 = vmul.f32 %v16436_v31, %v16485_v36  ;;  %v9715_v58 = vmul.f32 %v18006_v27, %v16863_v59 }
 0x7f9   : > { %v9440_v56 = vpop.permute.xlu1 %9439 }
 0x7fa   : > { %v9594_v55 = vadd.f32 %v9562_v61, %v9524_v32  ;;  %v9259_v11 = vadd.f32 %v9227_v20, %v9129_v24  ;;  %v9523_v23 = vadd.f32 %v9440_v56, %v16806_v42  ;;  %v9052_v30 = vpop.permute.xlu0 %9051  ;;  %v8981_v42 = vmul.f32 %v18007_v40, %v16761_v50 }
 0x7fb   : > { %v9130_v21 = vadd.f32 %v9052_v30, %v8932_v62  ;;  %v9900_v61 = vmul.f32 %v16504_v4, %v16837_v38  ;;  %v9899_v32 = vmul.f32 %v16504_v4, %v16851_v63  ;;  %v8719_v56 = vrot.slane %v8717_v26, 5 }
 0x7fc   : > { %v9664_v10 = vadd.f32 %v9632_v5, %v9594_v55  ;;  %v9593_v0 = vadd.f32 %v9561_v28, %v9523_v23  ;;  %v9329_v29 = vadd.f32 %v9297_v1, %v9259_v11  ;;  %v8715_v5 = vrot.slane %v8714_v51, 4  ;;  %v9163_v23 = vld [vmem:[#allocation2 + $0x94] sm:$0xf] }
 0x7fd   : > { %9805 = vrot.lane.b32.xlu2 %v9715_v58, %s11433_s28  ;;  %v9260_v39 = vadd.f32 %v9228_v46, %v9130_v21  ;;  %v9225_v1 = vmul.f32 %v16426_v9, %v16801_v41  ;;  %v9379_v11 = vmul.f32 %v18005_v54, %v16863_v59  ;;  %v9164_v9 = vld [vmem:[#allocation2 + $0x9c] sm:$0xf]  ;;  %v9275_v41 = vld [vmem:[#allocation2 + $0x100] sm:$0xf]  ;;  %v8983_v46 = vmul.f32 %v18007_v40, %v16863_v59 }
 0x7fe   : > { %v9862_v37 = vadd.f32 %v16820_v12, %v9664_v10  ;;  %v9663_v45 = vadd.f32 %v9631_v13, %v9593_v0  ;;  %v8929_v12 = vmul.f32 %v16408_v7, %v16400_v22  ;;  %v9276_v7 = vld [vmem:[#allocation2 + $0x108] sm:$0xf]  ;;  %v8720_v58 = vsel %vm11883_vm12, %v8715_v5, %v8719_v56  ;;  %v9166_v0 = vld [vmem:[#allocation2 + $0xac] sm:$0xf] }
 0x7ff   : > { %v16902_v3 = vpop.permute.xlu2 %9787  ;;  %9073 = vrot.lane.b32.xlu1 %v8981_v42, %s11433_s28  ;;  %v16905_v60 = vadd.f32 %v9298_v43, %v9260_v39  ;;  %v9563_v51 = vmul.f32 %v16457_v48, %v16851_v63  ;;  %v16936_v10 = vunpack.c.l.bf16 %v9164_v9  ;;  %v16938_v42 = vunpack.c.l.bf16 %v9275_v41 }
 0x800   : > { %v9861_v20 = vadd.f32 %v16778_v52, %v9663_v45  ;;  %9473 = vrot.lane.b32.xlu0 %v9380_v44, %s11433_s28  ;;  %v9932_v62 = vadd.f32 %v9900_v61, %v9862_v37  ;;  %v9295_v52 = vmul.f32 %v16436_v31, %v16452_v18  ;;  %v16930_v31 = vunpack.c.l.bf16 %v9276_v7 }
 0x801   : > { %v9046_v24 = vpop.permute.xlu1 %9045  ;;  %v9196_v18 = vunpack.c.l.bf16 %v9163_v23  ;;  %v9633_v26 = vmul.f32 %v16464_v17, %v16485_v36  ;;  %v16946_v61 = vunpack.c.l.bf16 %v9166_v0 }
 0x802   : > { %v9931_v33 = vadd.f32 %v9899_v32, %v9861_v20  ;;  %v9127_v55 = vadd.f32 %v9046_v24, %v8929_v12  ;;  %v9782_v38 = vpop.permute.xlu0 %9781  ;;  %v9718_v37 = vmul.f32 %v18006_v27, %v16930_v31  ;;  %v9902_v32 = vmul.f32 %v16504_v4, %v16936_v10 }
 0x803   : > { %v9565_v63 = vmul.f32 %v16457_v48, %v9196_v18  ;;  %v9717_v20 = vmul.f32 %v18006_v27, %v16938_v42  ;;  %v9635_v24 = vmul.f32 %v16464_v17, %v16586_v35  ;;  %v9901_v5 = vmul.f32 %v16504_v4, %v9196_v18 }
 0x804   : > { %v9257_v28 = vadd.f32 %v9225_v1, %v9127_v55  ;;  %v9957_v22 = vpack.c.bf16 %v9932_v62, %v9931_v33  ;;  %v9382_v62 = vmul.f32 %v18005_v54, %v16930_v31 }
 0x805   : > { %9471 = vrot.lane.b32.xlu2 %v9379_v11, %s11433_s28 }
 0x806   : > { %v9327_v30 = vadd.f32 %v9295_v52, %v9257_v28  ;;  %11039 = vmatmul.msk.bf16.gmra.mxu0 %vm1319_vm0, %v9957_v22  ;;  %v9566_v22 = vmul.f32 %v16457_v48, %v16936_v10  ;;  %v9381_v48 = vmul.f32 %v18005_v54, %v16938_v42  ;;  %v17001_v54 = vld [vmem:[%s17365_s13] ss:$0 sm:$0xff] }
 0x807   : > { %v16927_v21 = vpop.permute.xlu2 %9453  ;;  %8783 = vrot.lane.b32.xlu1 %v8720_v58, %s11433_s28 }
 0x808   : > { %v9525_v47 = vadd.f32 %v16834_v34, %v9327_v30  ;;  %9077 = vrot.lane.b32.xlu0 %v8983_v46, %s11433_s28  ;;  %v16984_v46 = vld [vmem:[%s17363_s11 + $0x3] ss:$0 sm:$0xff] }
 0x809   : > { %v9784_v13 = vpop.permute.xlu1 %9783 }
 0x80a   : > { %v9595_v39 = vadd.f32 %v9563_v51, %v9525_v47  ;;  %v9448_v43 = vpop.permute.xlu0 %9447  ;;  %v9864_v34 = vadd.f32 %v9784_v13, %v16865_v2  ;;  %v16959_v2 = vld [vmem:[%s17363_s11] ss:$0 sm:$0xff]  ;;  %v9302_v51 = vmul.f32 %v16984_v46, %v16561_v53 }
 0x80b   : > { %v9527_v45 = vadd.f32 %v9448_v43, %v9329_v29  ;;  %v8936_v56 = vmul.f32 %v16959_v2, %v16556_v14  ;;  %v8933_v23 = vmul.f32 %v16959_v2, %v16485_v36  ;;  %v9636_v36 = vmul.f32 %v16464_v17, %v16556_v14 }
 0x80c   : > { %v9665_v44 = vadd.f32 %v9633_v26, %v9595_v39  ;;  %v9934_v55 = vadd.f32 %v9902_v32, %v9864_v34  ;;  %v8984_v26 = vmul.f32 %v18007_v40, %v16822_v8  ;;  %v18015_v34 = vld [vmem:[#allocation87_spill] sm:$0xff] }
 0x80d   : > { %9811 = vrot.lane.b32.xlu2 %v9718_v37, %s11433_s28  ;;  %v9597_v12 = vadd.f32 %v9565_v63, %v9527_v45  ;;  %v17006_v37 = vld [vmem:[#allocation2 + $0x110] sm:$0xf] }
 0x80e   : > { %v9863_v29 = vadd.f32 %v9782_v38, %v9665_v44  ;;  %v16971_v38 = vld [vmem:[%s17363_s11 + $0x2] ss:$0 sm:$0xff] }
 0x80f   : > { %v9060_v33 = vpop.permute.xlu2 %9059  ;;  %9809 = vrot.lane.b32.xlu1 %v9717_v20, %s11433_s28  ;;  %v16966_v1 = vadd.f32 %v9635_v24, %v9597_v12  ;;  %v9232_v52 = vmul.f32 %v16971_v38, %v16946_v61  ;;  %v9229_v47 = vmul.f32 %v16971_v38, %v9196_v18  ;;  %v9299_v18 = vmul.f32 %v16984_v46, %v16586_v35 }
 0x810   : > { %v9933_v11 = vadd.f32 %v9901_v5, %v9863_v29  ;;  %v9134_v28 = vadd.f32 %v9060_v33, %v8936_v56  ;;  %9477 = vrot.lane.b32.xlu0 %v9382_v62, %s11433_s28  ;;  %v8934_v20 = vmul.f32 %v16959_v2, %v16517_v25  ;;  %v9616_v24 = vunpack.c.l.bf16 %v17006_v37 }
 0x811   : > { %v9450_v7 = vpop.permute.xlu1 %9449  ;;  %v9230_v29 = vmul.f32 %v16971_v38, %v16936_v10  ;;  %v9300_v25 = vmul.f32 %v16984_v46, %v16556_v14  ;;  %v9168_v10 = vld [vmem:[#allocation2 + $0xbc] sm:$0xf] }
 0x812   : > { %v9958_v30 = vpack.c.bf16 %v9934_v55, %v9933_v11  ;;  %v9264_v58 = vadd.f32 %v9232_v52, %v9134_v28  ;;  %v9528_v9 = vadd.f32 %v9450_v7, %v16905_v60  ;;  %v9054_v41 = vpop.permute.xlu0 %9053  ;;  %v16993_v60 = vld [vmem:[#allocation2 + $0x118] sm:$0xf]  ;;  %v9165_v11 = vld [vmem:[#allocation2 + $0xa4] sm:$0xf]  ;;  %v9719_v28 = vmul.f32 %v18006_v27, %v9616_v24 }
 0x813   : > { %v9131_v13 = vadd.f32 %v9054_v41, %v8933_v23  ;;  %v9617_v40 = vunpack.c.l.bf16 %v16993_v60  ;;  %v17038_v23 = vunpack.c.l.bf16 %v9165_v11 }
 0x814   : > { %v9598_v0 = vadd.f32 %v9566_v22, %v9528_v9  ;;  %v9334_v39 = vadd.f32 %v9302_v51, %v9264_v58  ;;  %v9201_v58 = vunpack.c.l.bf16 %v9168_v10  ;;  %v18016_v9 = vld [vmem:[#allocation123_spill] sm:$0xff] }
 0x815   : > { %9475 = vrot.lane.b32.xlu2 %v9381_v48, %s11433_s28  ;;  %v9261_v43 = vadd.f32 %v9229_v47, %v9131_v13  ;;  %v9720_v33 = vmul.f32 %v18006_v27, %v9617_v40  ;;  %v17050_v27 = vld [vmem:[%s17363_s11 + $0x5] ss:$0 sm:$0xff]  ;;  %v9904_v13 = vmul.f32 %v16504_v4, %v16946_v61 }
 0x816   : > { %v9668_v17 = vadd.f32 %v9636_v36, %v9598_v0  ;;  %11040 = vmatmul.msk.bf16.gmra.mxu0 %vm1319_vm0, %v9958_v30  ;;  %v10056_v63 = vpop.f32.mrf.mxu0  ;;  %v9568_v48 = vmul.f32 %v17050_v27, %v16946_v61  ;;  %v9167_v0 = vld [vmem:[#allocation2 + $0xb4] sm:$0xf] }
 0x817   : > { %v17008_v45 = vpop.permute.xlu2 %9789  ;;  %9079 = vrot.lane.b32.xlu1 %v8984_v26, %s11433_s28  ;;  %v10057_v44 = vadd.f32 %v10056_v63, %v18015_v34  ;;  %v17013_v32 = vadd.f32 %v9299_v18, %v9261_v43  ;;  %v9570_v34 = vmul.f32 %v17050_v27, %v9201_v58 }
 0x818   : > { %v9866_v51 = vadd.f32 %v16902_v3, %v9668_v17  ;;  %v9903_v3 = vmul.f32 %v16504_v4, %v17038_v23  ;;  %v17064_v17 = vld [vmem:[%s17363_s11 + $0x6] ss:$0 sm:$0xff] }
 0x819   : > { %v9056_v12 = vpop.permute.xlu1 %9055  ;;  %v10140_v5 = vadd.f32 %v17001_v54, %v10057_v44 }
 0x81a   : > { %v9132_v56 = vadd.f32 %v9056_v12, %v8934_v20  ;;  %v17022_v62 = vpop.permute.xlu0 %9791  ;;  %v9936_v20 = vadd.f32 %v9904_v13, %v9866_v51  ;;  %v9234_v51 = vmul.f32 %v16971_v38, %v9201_v58 }
 0x81b   : > { %v10172_v55 = vmax.f32 %v10140_v5, 0.0  ;;  %v9200_v5 = vunpack.c.l.bf16 %v9167_v0 }
 0x81c   : > { %v9262_v52 = vadd.f32 %v9230_v29, %v9132_v56  ;;  %v9640_v56 = vmul.f32 %v17064_v17, %v16670_v16 }
 0x81d   : > { %9815 = vrot.lane.b32.xlu2 %v9720_v33, %s11433_s28  ;;  %v10204_v22 = vmin.f32 %v10172_v55, 6.0  ;;  %v8937_v55 = vmul.f32 %v16959_v2, %v16643_v49 }
 0x81e   : > { %v9332_v7 = vadd.f32 %v9300_v25, %v9262_v52  ;;  %v10058_v30 = vpop.f32.mrf.mxu0 }
 0x81f   : > { %v17040_v14 = vpop.permute.xlu2 %9455  ;;  %9813 = vrot.lane.b32.xlu1 %v9719_v28, %s11433_s28  ;;  %10236 = vst.msk [vmem:[%s17032_s29] sm:$0xff] %vm1319_vm0, %v10204_v22  ;;  %v10059_v41 = vadd.f32 %v10058_v30, %v18016_v9  ;;  %v8938_v28 = vmul.f32 %v16959_v2, %v16561_v53 }
 0x820   : > { %v9530_v47 = vadd.f32 %v16927_v21, %v9332_v7  ;;  %v9638_v21 = vmul.f32 %v17064_v17, %v16561_v53  ;;  %v9567_v7 = vmul.f32 %v17050_v27, %v17038_v23 }
 0x821   : > { %v9786_v36 = vpop.permute.xlu1 %9785  ;;  %v10141_v26 = vadd.f32 %v17001_v54, %v10059_v41  ;;  %v9303_v41 = vmul.f32 %v16984_v46, %v16652_v6 }
 0x822   : > { %v9865_v43 = vadd.f32 %v9786_v36, %v16966_v1  ;;  %v9600_v18 = vadd.f32 %v9568_v48, %v9530_v47  ;;  %v9458_v61 = vpop.permute.xlu0 %9457  ;;  %v9637_v47 = vmul.f32 %v17064_v17, %v16643_v49 }
 0x823   : > { %v10173_v63 = vmax.f32 %v10141_v26, 0.0  ;;  %v9532_v44 = vadd.f32 %v9458_v61, %v9334_v39  ;;  %v9233_v39 = vmul.f32 %v16971_v38, %v9200_v5  ;;  %v18017_v26 = vld [vmem:[#allocation89_spill] sm:$0xff] }
 0x824   : > { %v9935_v12 = vadd.f32 %v9903_v3, %v9865_v43  ;;  %v9670_v4 = vadd.f32 %v9638_v21, %v9600_v18  ;;  %v9304_v43 = vmul.f32 %v16984_v46, %v16670_v16 }
 0x825   : > { %v10205_v1 = vmin.f32 %v10173_v63, 6.0  ;;  %v9602_v29 = vadd.f32 %v9570_v34, %v9532_v44  ;;  %v17099_v34 = vld [vmem:[%s17363_s11 + $0x8] ss:$0 sm:$0xff] }
 0x826   : > { %v9959_v33 = vpack.c.bf16 %v9936_v20, %v9935_v12  ;;  %v9906_v44 = vmul.f32 %v17099_v34, %v9201_v58  ;;  %v9905_v20 = vmul.f32 %v17099_v34, %v9200_v5  ;;  %v9301_v58 = vmul.f32 %v16984_v46, %v16643_v49 }
 0x827   : > { %v9062_v11 = vpop.permute.xlu2 %9061  ;;  %10237 = vst.msk [vmem:[%s17032_s29 + $0x8] sm:$0xff] %vm1319_vm0, %v10205_v1  ;;  %v17075_v25 = vadd.f32 %v9640_v56, %v9602_v29 }
 0x828   : > { %v9135_v52 = vadd.f32 %v9062_v11, %v8937_v55  ;;  %11041 = vmatmul.msk.bf16.gmra.mxu0 %vm1319_vm0, %v9959_v33  ;;  %v9231_v33 = vmul.f32 %v16971_v38, %v17038_v23 }
 0x829   : > { %v9452_v10 = vpop.permute.xlu1 %9451 }
 0x82a   : > { %v9265_v22 = vadd.f32 %v9233_v39, %v9135_v52  ;;  %v9529_v30 = vadd.f32 %v9452_v10, %v17013_v32  ;;  %v9064_v9 = vpop.permute.xlu0 %9063  ;;  %v9868_v32 = vadd.f32 %v17022_v62, %v9670_v4  ;;  %v8935_v62 = vmul.f32 %v16959_v2, %v16586_v35  ;;  %v18018_v35 = vld [vmem:[#allocation93_spill] sm:$0xff] }
 0x82b   : > { %v9136_v48 = vadd.f32 %v9064_v9, %v8938_v28  ;;  %v9169_v28 = vld [vmem:[#allocation2 + $0xc4] sm:$0xf] }
 0x82c   : > { %v9599_v13 = vadd.f32 %v9567_v7, %v9529_v30  ;;  %v10061_v36 = vpop.f32.mrf.mxu0  ;;  %v9335_v0 = vadd.f32 %v9303_v41, %v9265_v22  ;;  %v9938_v29 = vadd.f32 %v9906_v44, %v9868_v32  ;;  %v9170_v30 = vld [vmem:[#allocation2 + $0xcc] sm:$0xf]  ;;  %v9202_v41 = vunpack.c.l.bf16 %v9169_v28 }
 0x82d   : > { %v9266_v53 = vadd.f32 %v9234_v51, %v9136_v48  ;;  %v10062_v3 = vadd.f32 %v10061_v36, %v18017_v26  ;;  %v9569_v51 = vmul.f32 %v17050_v27, %v9200_v5  ;;  %v9171_v48 = vld [vmem:[#allocation2 + $0xd4] sm:$0xf]  ;;  %v9639_v26 = vmul.f32 %v17064_v17, %v16652_v6 }
 0x82e   : > { %v9669_v18 = vadd.f32 %v9637_v47, %v9599_v13  ;;  %v9203_v47 = vunpack.c.l.bf16 %v9170_v30  ;;  %v8941_v5 = vmul.f32 %v16959_v2, %v16720_v15 }
 0x82f   : > { %v9070_v21 = vpop.permute.xlu2 %9069  ;;  %v10142_v61 = vadd.f32 %v17001_v54, %v10062_v3  ;;  %v17094_v63 = vadd.f32 %v9304_v43, %v9266_v53  ;;  %v17121_v43 = vpop.f32.mrf.mxu3 }
 0x830   : > { %v9867_v12 = vadd.f32 %v17008_v45, %v9669_v18  ;;  %v9571_v18 = vmul.f32 %v17050_v27, %v9202_v41 }
 0x831   : > { %v9058_v4 = vpop.permute.xlu1 %9057  ;;  %v10174_v1 = vmax.f32 %v10142_v61, 0.0 }
 0x832   : > { %v9937_v56 = vadd.f32 %v9905_v20, %v9867_v12  ;;  %v9133_v55 = vadd.f32 %v9058_v4, %v8935_v62  ;;  %v9794_v11 = vpop.permute.xlu0 %9793  ;;  %v9908_v12 = vmul.f32 %v17099_v34, %v9203_v47 }
 0x833   : > { %v10206_v39 = vmin.f32 %v10174_v1, 6.0  ;;  %v9641_v1 = vmul.f32 %v17064_v17, %v16720_v15 }
 0x834   : > { %v9263_v52 = vadd.f32 %v9231_v33, %v9133_v55  ;;  %v9960_v10 = vpack.c.bf16 %v9938_v29, %v9937_v56  ;;  %v10063_v45 = vpop.f32.mrf.mxu0  ;;  %v9139_v29 = vadd.f32 %v9070_v21, %v8941_v5  ;;  %v18019_v33 = vld [vmem:[#allocation98_spill] sm:$0xff]  ;;  %v8939_v21 = vmul.f32 %v16959_v2, %v16652_v6 }
 0x835   : > { %10238 = vst.msk [vmem:[%s17032_s29 + $0x10] sm:$0xff] %vm1319_vm0, %v10206_v39  ;;  %v10064_v22 = vadd.f32 %v10063_v45, %v18018_v35  ;;  %v9572_v45 = vmul.f32 %v17050_v27, %v9203_v47 }
 0x836   : > { %v9333_v7 = vadd.f32 %v9301_v58, %v9263_v52 }
 0x837   : > { %v17113_v9 = vpop.permute.xlu2 %9799  ;;  %v10143_v23 = vadd.f32 %v17001_v54, %v10064_v22  ;;  %v17148_v6 = vpop.f32.mrf.mxu3 }
 0x838   : > { %11042 = vmatmul.msk.bf16.gmra.mxu0 %vm1319_vm0, %v9960_v10  ;;  %v9531_v49 = vadd.f32 %v17040_v14, %v9333_v7  ;;  %v17126_v14 = vunpack.c.l.bf16 %v9171_v48  ;;  %v9642_v48 = vmul.f32 %v17064_v17, %v16734_v57 }
 0x839   : > { %v9796_v13 = vpop.permute.xlu1 %9795  ;;  %v10175_v36 = vmax.f32 %v10143_v23, 0.0 }
 0x83a   : > { %v9601_v53 = vadd.f32 %v9569_v51, %v9531_v49  ;;  %v9460_v3 = vpop.permute.xlu0 %9459  ;;  %v9870_v44 = vadd.f32 %v9796_v13, %v17075_v25  ;;  %v9237_v25 = vmul.f32 %v16971_v38, %v17126_v14  ;;  %v9235_v51 = vmul.f32 %v16971_v38, %v9202_v41 }
 0x83b   : > { %v10207_v32 = vmin.f32 %v10175_v36, 6.0  ;;  %v9533_v61 = vadd.f32 %v9460_v3, %v9335_v0  ;;  %v9907_v0 = vmul.f32 %v17099_v34, %v9202_v41  ;;  %v18020_v41 = vld [vmem:[#allocation126_spill] sm:$0xff] }
 0x83c   : > { %v9671_v20 = vadd.f32 %v9639_v26, %v9601_v53  ;;  %v9940_v52 = vadd.f32 %v9908_v12, %v9870_v44  ;;  %v9269_v22 = vadd.f32 %v9237_v25, %v9139_v29  ;;  %v9172_v53 = vld [vmem:[#allocation2 + $0xdc] sm:$0xf]  ;;  %v9307_v26 = vmul.f32 %v16984_v46, %v16761_v50 }
 0x83d   : > { %10239 = vst.msk [vmem:[%s17032_s29 + $0x18] sm:$0xff] %vm1319_vm0, %v10207_v32  ;;  %v9603_v62 = vadd.f32 %v9571_v18, %v9533_v61  ;;  %v10066_v4 = vpop.f32.mrf.mxu0  ;;  %v9236_v29 = vmul.f32 %v16971_v38, %v9203_v47 }
 0x83e   : > { %v9869_v56 = vadd.f32 %v9794_v11, %v9671_v20  ;;  %v10067_v55 = vadd.f32 %v10066_v4, %v18019_v33  ;;  %v9339_v5 = vadd.f32 %v9307_v26, %v9269_v22  ;;  %v9205_v20 = vunpack.c.l.bf16 %v9172_v53  ;;  %v9174_v22 = vld [vmem:[#allocation2 + $0xec] sm:$0xf] }
 0x83f   : > { %v9466_v39 = vpop.permute.xlu2 %9465  ;;  %v9673_v58 = vadd.f32 %v9641_v1, %v9603_v62  ;;  %v8940_v62 = vmul.f32 %v16959_v2, %v16670_v16  ;;  %v8942_v1 = vmul.f32 %v16959_v2, %v16734_v57  ;;  %v9644_v26 = vmul.f32 %v17064_v17, %v16814_v19 }
 0x840   : > { %v9939_v10 = vadd.f32 %v9907_v0, %v9869_v56  ;;  %v10144_v28 = vadd.f32 %v17001_v54, %v10067_v55  ;;  %v9238_v55 = vmul.f32 %v16971_v38, %v9205_v20 }
 0x841   : > { %v9462_v35 = vpop.permute.xlu1 %9461 }
 0x842   : > { %v9961_v7 = vpack.c.bf16 %v9940_v52, %v9939_v10  ;;  %v9534_v11 = vadd.f32 %v9462_v35, %v17094_v63  ;;  %v10176_v30 = vmax.f32 %v10144_v28, 0.0  ;;  %v9066_v23 = vpop.permute.xlu0 %9065  ;;  %v9305_v63 = vmul.f32 %v16984_v46, %v16720_v15 }
 0x843   : > { %v9137_v49 = vadd.f32 %v9066_v23, %v8939_v21  ;;  %v9306_v52 = vmul.f32 %v16984_v46, %v16734_v57  ;;  %v17170_v21 = vpop.f32.mrf.mxu3  ;;  %v8944_v23 = vmul.f32 %v16959_v2, %v16814_v19 }
 0x844   : > { %v9604_v13 = vadd.f32 %v9572_v45, %v9534_v11  ;;  %v10208_v36 = vmin.f32 %v10176_v30, 6.0  ;;  %v9308_v45 = vmul.f32 %v16984_v46, %v16814_v19  ;;  %v9574_v30 = vmul.f32 %v17050_v27, %v9205_v20 }
 0x845   : > { %v9267_v3 = vadd.f32 %v9235_v51, %v9137_v49  ;;  %v10068_v32 = vpop.f32.mrf.mxu0  ;;  %v9909_v51 = vmul.f32 %v17099_v34, %v17126_v14  ;;  %v9910_v49 = vmul.f32 %v17099_v34, %v9205_v20 }
 0x846   : > { %v9674_v18 = vadd.f32 %v9642_v48, %v9604_v13  ;;  %10240 = vst.msk [vmem:[%s17032_s29 + $0x20] sm:$0xff] %vm1319_vm0, %v10208_v36  ;;  %v10069_v61 = vadd.f32 %v10068_v32, %v18020_v41  ;;  %v9207_v13 = vunpack.c.l.bf16 %v9174_v22 }
 0x847   : > { %v8780_v44 = vpop.permute.xlu2 %8779  ;;  %v9337_v12 = vadd.f32 %v9305_v63, %v9267_v3 }
 0x848   : > { %8846 = vst.msk [vmem:[#allocation2 + $0xfc] sm:$0xf] %vm2497_vm1, %v8780_v44  ;;  %11043 = vmatmul.msk.bf16.gmra.mxu0 %vm1319_vm0, %v9961_v7  ;;  %v10145_v4 = vadd.f32 %v17001_v54, %v10069_v61  ;;  %v9872_v47 = vadd.f32 %v17113_v9, %v9674_v18  ;;  %v18021_v18 = vld [vmem:[#allocation128_spill] sm:$0xff]  ;;  %v9173_v61 = vld [vmem:[#allocation2 + $0xe4] sm:$0xf] }
 0x849   : > { %v9068_v15 = vpop.permute.xlu1 %9067 }
 0x84a   : > { %v9138_v0 = vadd.f32 %v9068_v15, %v8940_v62  ;;  %v10177_v56 = vmax.f32 %v10145_v4, 0.0  ;;  %v9072_v33 = vpop.permute.xlu0 %9071  ;;  %v9240_v62 = vmul.f32 %v16971_v38, %v9207_v13 }
 0x84b   : > { %v9140_v25 = vadd.f32 %v9072_v33, %v8942_v1  ;;  %v17189_v19 = vpop.f32.mrf.mxu3 }
 0x84c   : > { %v9268_v10 = vadd.f32 %v9236_v29, %v9138_v0  ;;  %v10209_v16 = vmin.f32 %v10177_v56, 6.0  ;;  %v9573_v56 = vmul.f32 %v17050_v27, %v17126_v14 }
 0x84d   : > { %v9270_v28 = vadd.f32 %v9238_v55, %v9140_v25  ;;  %v9310_v25 = vmul.f32 %v16984_v46, %v16822_v8 }
 0x84e   : > { %v9338_v35 = vadd.f32 %v9306_v52, %v9268_v10  ;;  %10241 = vst.msk [vmem:[%s17032_s29 + $0x28] sm:$0xff] %vm1319_vm0, %v10209_v16 }
 0x84f   : > { %v17173_v7 = vadd.f32 %v9308_v45, %v9270_v28  ;;  %v9076_v57 = vpop.permute.xlu2 %9075  ;;  %v9643_v45 = vmul.f32 %v17064_v17, %v16761_v50 }
 0x850   : > { %v9536_v11 = vadd.f32 %v9466_v39, %v9338_v35  ;;  %v9942_v39 = vadd.f32 %v9910_v49, %v9872_v47  ;;  %v9142_v32 = vadd.f32 %v9076_v57, %v8944_v23  ;;  %v18022_v35 = vld [vmem:[#allocation130_spill] sm:$0xff] }
 0x851   : > { %v9798_v48 = vpop.permute.xlu1 %9797 }
 0x852   : > { %v9871_v36 = vadd.f32 %v9798_v48, %v9673_v58  ;;  %v9802_v53 = vpop.permute.xlu0 %9801  ;;  %v9606_v9 = vadd.f32 %v9574_v30, %v9536_v11  ;;  %v17186_v58 = vunpack.c.l.bf16 %v9173_v61  ;;  %v9272_v15 = vadd.f32 %v9240_v62, %v9142_v32 }
 0x853   : > { %v10071_v3 = vpop.f32.mrf.mxu0 }
 0x854   : > { %v9941_v63 = vadd.f32 %v9909_v51, %v9871_v36  ;;  %v10072_v41 = vadd.f32 %v10071_v3, %v18021_v18  ;;  %v9676_v44 = vadd.f32 %v9644_v26, %v9606_v9  ;;  %v9575_v10 = vmul.f32 %v17050_v27, %v17186_v58 }
 0x855   : > { %v9342_v22 = vadd.f32 %v9310_v25, %v9272_v15  ;;  %v9911_v49 = vmul.f32 %v17099_v34, %v17186_v58  ;;  %v9912_v36 = vmul.f32 %v17099_v34, %v9207_v13  ;;  %v9576_v15 = vmul.f32 %v17050_v27, %v9207_v13 }
 0x856   : > { %v9962_v4 = vpack.c.bf16 %v9942_v39, %v9941_v63  ;;  %v10146_v20 = vadd.f32 %v17001_v54, %v10072_v41  ;;  %v17208_v39 = vpop.f32.mrf.mxu3 }
 0x858   : > { %v10178_v1 = vmax.f32 %v10146_v20, 0.0  ;;  %11044 = vmatmul.msk.bf16.gmra.mxu0 %vm1319_vm0, %v9962_v4  ;;  %v9176_v4 = vld [vmem:[#allocation2 + $0xfc] sm:$0xf] }
 0x859   : > { %v9464_v29 = vpop.permute.xlu1 %9463 }
 0x85a   : > { %v10210_v0 = vmin.f32 %v10178_v1, 6.0  ;;  %v9535_v33 = vadd.f32 %v9464_v29, %v9337_v12  ;;  %v9468_v55 = vpop.permute.xlu0 %9467  ;;  %v9645_v12 = vmul.f32 %v17064_v17, %v16863_v59 }
 0x85b   : > { %v10073_v52 = vpop.f32.mrf.mxu0  ;;  %v9537_v16 = vadd.f32 %v9468_v55, %v9339_v5  ;;  %v17222_v55 = vunpack.c.l.bf16 %v9176_v4 }
 0x85c   : > { %10242 = vst.msk [vmem:[%s17032_s29 + $0x30] sm:$0xff] %vm1319_vm0, %v10210_v0  ;;  %v9605_v28 = vadd.f32 %v9573_v56, %v9535_v33  ;;  %v10074_v47 = vadd.f32 %v10073_v52, %v18022_v35  ;;  %v9806_v0 = vpop.permute.xlu2 %9805 }
 0x85d   : > { %v9607_v14 = vadd.f32 %v9575_v10, %v9537_v16 }
 0x85e   : > { %v9675_v11 = vadd.f32 %v9643_v45, %v9605_v28  ;;  %v10147_v30 = vadd.f32 %v17001_v54, %v10074_v47  ;;  %v17225_v10 = vpop.f32.mrf.mxu3  ;;  %v8943_v28 = vmul.f32 %v16959_v2, %v16761_v50  ;;  %v9914_v45 = vmul.f32 %v17099_v34, %v17222_v55 }
 0x85f   : > { %v9677_v57 = vadd.f32 %v9645_v12, %v9607_v14  ;;  %v9578_v50 = vmul.f32 %v17050_v27, %v17222_v55 }
 0x860   : > { %v9873_v23 = vadd.f32 %v9802_v53, %v9675_v11  ;;  %v10179_v5 = vmax.f32 %v10147_v30, 0.0 }
 0x861   : > { %v9804_v51 = vpop.permute.xlu1 %9803  ;;  %v9875_v13 = vadd.f32 %v9806_v0, %v9677_v57 }
 0x862   : > { %v10211_v48 = vmin.f32 %v10179_v5, 6.0  ;;  %v9874_v9 = vadd.f32 %v9804_v51, %v9676_v44  ;;  %v9808_v26 = vpop.permute.xlu0 %9807  ;;  %v9943_v32 = vadd.f32 %v9911_v49, %v9873_v23  ;;  %v9175_v44 = vld [vmem:[#allocation2 + $0xf4] sm:$0xf] }
 0x863   : > { %v10076_v3 = vpop.f32.mrf.mxu0  ;;  %v9208_v25 = vunpack.c.l.bf16 %v9175_v44 }
 0x864   : > { %10243 = vst.msk [vmem:[%s17032_s29 + $0x38] sm:$0xff] %vm1319_vm0, %v10211_v48  ;;  %v9944_v63 = vadd.f32 %v9912_v36, %v9874_v9  ;;  %v10077_v18 = vadd.f32 %v10076_v3, %v17121_v43  ;;  %v9646_v43 = vmul.f32 %v17064_v17, %v16822_v8  ;;  %v9309_v36 = vmul.f32 %v16984_v46, %v16863_v59 }
 0x865   : > { %v9913_v47 = vmul.f32 %v17099_v34, %v9208_v25  ;;  %v9648_v3 = vmul.f32 %v17064_v17, %v16930_v31 }
 0x866   : > { %v9963_v53 = vpack.c.bf16 %v9944_v63, %v9943_v32  ;;  %v10148_v41 = vadd.f32 %v17001_v54, %v10077_v18 }
 0x867   : > { %v9945_v11 = vadd.f32 %v9913_v47, %v9875_v13 }
 0x868   : > { %v10180_v61 = vmax.f32 %v10148_v41, 0.0  ;;  %11045 = vmatmul.msk.bf16.gmra.mxu0 %vm1319_vm0, %v9963_v53  ;;  %v17245_v53 = vpop.f32.mrf.mxu3 }
 0x869   : > { %v9470_v62 = vpop.permute.xlu1 %9469 }
 0x86a   : > { %v10212_v20 = vmin.f32 %v10180_v61, 6.0  ;;  %v9538_v1 = vadd.f32 %v9470_v62, %v17173_v7  ;;  %v8782_v29 = vpop.permute.xlu0 %8781  ;;  %v9577_v62 = vmul.f32 %v17050_v27, %v9208_v25 }
 0x86b   : > { %v10078_v56 = vpop.f32.mrf.mxu0  ;;  %8847 = vst.msk [vmem:[#allocation2 + $0x104] sm:$0xf] %vm2497_vm1, %v8782_v29 }
 0x86c   : > { %10244 = vst.msk [vmem:[%s17032_s29 + $0x40] sm:$0xff] %vm1319_vm0, %v10212_v20  ;;  %v9608_v33 = vadd.f32 %v9576_v15, %v9538_v1  ;;  %v10079_v52 = vadd.f32 %v10078_v56, %v17148_v6  ;;  %v9239_v6 = vmul.f32 %v16971_v38, %v17186_v58  ;;  %v9647_v15 = vmul.f32 %v17064_v17, %v16938_v42 }
 0x86e   : > { %v9678_v7 = vadd.f32 %v9646_v43, %v9608_v33  ;;  %v10149_v16 = vadd.f32 %v17001_v54, %v10079_v52  ;;  %v9241_v43 = vmul.f32 %v16971_v38, %v9208_v25 }
 0x870   : > { %v9876_v35 = vadd.f32 %v9808_v26, %v9678_v7  ;;  %v10181_v14 = vmax.f32 %v10149_v16, 0.0  ;;  %v9472_v26 = vpop.permute.xlu2 %9471  ;;  %v17261_v47 = vpop.f32.mrf.mxu3 }
 0x871   : > { %v9074_v12 = vpop.permute.xlu1 %9073 }
 0x872   : > { %v9946_v30 = vadd.f32 %v9914_v45, %v9876_v35  ;;  %v10213_v57 = vmin.f32 %v10181_v14, 6.0  ;;  %v9141_v23 = vadd.f32 %v9074_v12, %v8943_v28  ;;  %v9474_v5 = vpop.permute.xlu0 %9473  ;;  %v9543_v52 = vld [vmem:[#allocation2 + $0x104] sm:$0xf] }
 0x873   : > { %v10081_v51 = vpop.f32.mrf.mxu0  ;;  %v9540_v49 = vadd.f32 %v9474_v5, %v9342_v22  ;;  %v9546_v35 = vunpack.c.l.bf16 %v9543_v52 }
 0x874   : > { %v9964_v48 = vpack.c.bf16 %v9946_v30, %v9945_v11  ;;  %10245 = vst.msk [vmem:[%s17032_s29 + $0x48] sm:$0xff] %vm1319_vm0, %v10213_v57  ;;  %v9271_v9 = vadd.f32 %v9239_v6, %v9141_v23  ;;  %v10082_v58 = vadd.f32 %v10081_v51, %v17170_v21  ;;  %v8945_v21 = vmul.f32 %v16959_v2, %v16863_v59 }
 0x875   : > { %v9610_v32 = vadd.f32 %v9578_v50, %v9540_v49  ;;  %v9311_v59 = vmul.f32 %v16984_v46, %v16938_v42  ;;  %v9915_v42 = vmul.f32 %v17099_v34, %v9546_v35 }
 0x876   : > { %v9341_v63 = vadd.f32 %v9309_v36, %v9271_v9  ;;  %v10150_v18 = vadd.f32 %v17001_v54, %v10082_v58  ;;  %v8946_v36 = vmul.f32 %v16959_v2, %v16822_v8  ;;  %v9579_v2 = vmul.f32 %v17050_v27, %v9546_v35 }
 0x877   : > { %v9680_v22 = vadd.f32 %v9648_v3, %v9610_v32  ;;  %v9242_v3 = vmul.f32 %v16971_v38, %v17222_v55 }
 0x878   : > { %v10182_v41 = vmax.f32 %v10150_v18, 0.0  ;;  %11046 = vmatmul.msk.bf16.gmra.mxu0 %vm1319_vm0, %v9964_v48  ;;  %v9539_v61 = vadd.f32 %v9472_v26, %v9341_v63  ;;  %v9812_v16 = vpop.permute.xlu2 %9811  ;;  %v4872_v63 = vpop.f32.mrf.mxu3 }
 0x879   : > { %v8784_v4 = vpop.permute.xlu1 %8783  ;;  %v9878_v30 = vadd.f32 %v9812_v16, %v9680_v22 }
 0x87a   : > { %v10214_v44 = vmin.f32 %v10182_v41, 6.0  ;;  %8848 = vst.msk [vmem:[#allocation2 + $0x10c] sm:$0xf] %vm2497_vm1, %v8784_v4  ;;  %v9609_v20 = vadd.f32 %v9577_v62, %v9539_v61  ;;  %v9078_v1 = vpop.permute.xlu0 %9077  ;;  %v9312_v41 = vmul.f32 %v16984_v46, %v16930_v31  ;;  %v9881_v61 = vld [vmem:[#allocation2 + $0x114] sm:$0xf] }
 0x87b   : > { %v10083_v29 = vpop.f32.mrf.mxu0  ;;  %v9143_v0 = vadd.f32 %v9078_v1, %v8945_v21  ;;  %v9882_v62 = vld [vmem:[#allocation2 + $0x11c] sm:$0xf]  ;;  %v9649_v21 = vmul.f32 %v17064_v17, %v9616_v24  ;;  %v9884_v46 = vunpack.c.l.bf16 %v9881_v61 }
 0x87c   : > { %10246 = vst.msk [vmem:[%s17032_s29 + $0x50] sm:$0xff] %vm1319_vm0, %v10214_v44  ;;  %v10084_v56 = vadd.f32 %v10083_v29, %v17189_v19  ;;  %v9679_v33 = vadd.f32 %v9647_v15, %v9609_v20  ;;  %v9650_v44 = vmul.f32 %v17064_v17, %v9617_v40  ;;  %v9885_v1 = vunpack.c.l.bf16 %v9882_v62 }
 0x87d   : > { %v9273_v13 = vadd.f32 %v9241_v43, %v9143_v0  ;;  %v9917_v37 = vmul.f32 %v17099_v34, %v9884_v46 }
 0x87e   : > { %v10151_v7 = vadd.f32 %v17001_v54, %v10084_v56  ;;  %v9918_v60 = vmul.f32 %v17099_v34, %v9885_v1 }
 0x87f   : > { %v9343_v28 = vadd.f32 %v9311_v59, %v9273_v13 }
 0x880   : > { %v10183_v45 = vmax.f32 %v10151_v7, 0.0  ;;  %v9476_v9 = vpop.permute.xlu2 %9475  ;;  %v4874_v52 = vpop.f32.mrf.mxu3 }
 0x881   : > { %v9544_v25 = vld [vmem:[#allocation2 + $0x10c] sm:$0xf]  ;;  %v9810_v14 = vpop.permute.xlu1 %9809 }
 0x882   : > { %v10215_v6 = vmin.f32 %v10183_v45, 6.0  ;;  %v9547_v12 = vunpack.c.l.bf16 %v9544_v25  ;;  %v9877_v19 = vadd.f32 %v9810_v14, %v9679_v33  ;;  %v9478_v31 = vpop.permute.xlu0 %9477 }
 0x883   : > { %v10086_v11 = vpop.f32.mrf.mxu0 }
 0x884   : > { %10247 = vst.msk [vmem:[%s17032_s29 + $0x58] sm:$0xff] %vm1319_vm0, %v10215_v6  ;;  %v9916_v57 = vmul.f32 %v17099_v34, %v9547_v12  ;;  %v10087_v23 = vadd.f32 %v10086_v11, %v17208_v39  ;;  %v9947_v51 = vadd.f32 %v9915_v42, %v9877_v19  ;;  %v9541_v39 = vadd.f32 %v9476_v9, %v9343_v28 }
 0x885   : > { %v9580_v20 = vmul.f32 %v17050_v27, %v9547_v12 }
 0x886   : > { %v9948_v5 = vadd.f32 %v9916_v57, %v9878_v30  ;;  %v10152_v50 = vadd.f32 %v17001_v54, %v10087_v23  ;;  %v9611_v55 = vadd.f32 %v9579_v2, %v9541_v39 }
 0x888   : > { %v9965_v49 = vpack.c.bf16 %v9948_v5, %v9947_v51  ;;  %v10184_v48 = vmax.f32 %v10152_v50, 0.0  ;;  %v9681_v56 = vadd.f32 %v9649_v21, %v9611_v55  ;;  %v9816_v27 = vpop.permute.xlu2 %9815  ;;  %v4877_v14 = vpop.f32.mrf.mxu3 }
 0x889   : > { %v9080_v58 = vpop.permute.xlu1 %9079 }
 0x88a   : > { %v10216_v26 = vmin.f32 %v10184_v48, 6.0  ;;  %v9144_v32 = vadd.f32 %v9080_v58, %v8946_v36  ;;  %11047 = vmatmul.msk.bf16.gmra.mxu0 %vm1319_vm0, %v9965_v49 }
 0x88b   : > { %v10088_v18 = vpop.f32.mrf.mxu0 }
 0x88c   : > { %10248 = vst.msk [vmem:[%s17032_s29 + $0x60] sm:$0xff] %vm1319_vm0, %v10216_v26  ;;  %v9274_v22 = vadd.f32 %v9242_v3, %v9144_v32  ;;  %v10089_v8 = vadd.f32 %v10088_v18, %v17225_v10 }
 0x88e   : > { %v9344_v4 = vadd.f32 %v9312_v41, %v9274_v22  ;;  %v10153_v38 = vadd.f32 %v17001_v54, %v10089_v8 }
 0x890   : > { %v9542_v10 = vadd.f32 %v9478_v31, %v9344_v4  ;;  %v10185_v15 = vmax.f32 %v10153_v38, 0.0  ;;  %v4879_v42 = vpop.f32.mrf.mxu3 }
 0x891   : > { %v9814_v29 = vpop.permute.xlu1 %9813 }
 0x892   : > { %v9612_v0 = vadd.f32 %v9580_v20, %v9542_v10  ;;  %v10217_v43 = vmin.f32 %v10185_v15, 6.0  ;;  %v9879_v40 = vadd.f32 %v9814_v29, %v9681_v56 }
 0x893   : > { %v10091_v33 = vpop.f32.mrf.mxu0 }
 0x894   : > { %v9682_v24 = vadd.f32 %v9650_v44, %v9612_v0  ;;  %10249 = vst.msk [vmem:[%s17032_s29 + $0x68] sm:$0xff] %vm1319_vm0, %v10217_v43  ;;  %v10092_v17 = vadd.f32 %v10091_v33, %v17245_v53  ;;  %v9949_v16 = vadd.f32 %v9917_v37, %v9879_v40 }
 0x896   : > { %v9880_v59 = vadd.f32 %v9816_v27, %v9682_v24  ;;  %v10154_v13 = vadd.f32 %v17001_v54, %v10092_v17 }
 0x898   : > { %v9950_v7 = vadd.f32 %v9918_v60, %v9880_v59  ;;  %v10186_v28 = vmax.f32 %v10154_v13, 0.0  ;;  %v4882_v49 = vpop.f32.mrf.mxu3 }
 0x89a   : > { %v9966_v45 = vpack.c.bf16 %v9950_v7, %v9949_v16  ;;  %v10218_v35 = vmin.f32 %v10186_v28, 6.0 }
 0x89b   : > { %v10093_v25 = vpop.f32.mrf.mxu0 }
 0x89c   : > { %10250 = vst.msk [vmem:[%s17032_s29 + $0x70] sm:$0xff] %vm1319_vm0, %v10218_v35  ;;  %11048 = vmatmul.msk.bf16.gmra.mxu0 %vm1319_vm0, %v9966_v45  ;;  %v10094_v34 = vadd.f32 %v10093_v25, %v17261_v47 }
 0x89e   : > { %v10155_v53 = vadd.f32 %v17001_v54, %v10094_v34 }
 0x8a0   : > { %v10187_v6 = vmax.f32 %v10155_v53, 0.0  ;;  %v4884_v32 = vpop.f32.mrf.mxu3 }
 0x8a2   : > { %v10219_v12 = vmin.f32 %v10187_v6, 6.0 }
 0x8a4   : > { %10251 = vst.msk [vmem:[%s17032_s29 + $0x78] sm:$0xff] %vm1319_vm0, %v10219_v12 }
 0x8a5   : > { %v10096_v19 = vpop.f32.mrf.mxu0 }
 0x8a6   : > { %v10097_v11 = vadd.f32 %v10096_v19, %v4872_v63 }
 0x8a8   : > { %v10156_v30 = vadd.f32 %v17001_v54, %v10097_v11  ;;  %v4887_v61 = vpop.f32.mrf.mxu3 }
 0x8aa   : > { %v10188_v57 = vmax.f32 %v10156_v30, 0.0 }
 0x8ac   : > { %v10220_v23 = vmin.f32 %v10188_v57, 6.0 }
 0x8ad   : > { %v10098_v5 = vpop.f32.mrf.mxu0 }
 0x8ae   : > { %10252 = vst.msk [vmem:[%s17032_s29 + $0x80] sm:$0xff] %vm1319_vm0, %v10220_v23  ;;  %v10099_v47 = vadd.f32 %v10098_v5, %v4874_v52 }
 0x8b0   : > { %v10157_v51 = vadd.f32 %v17001_v54, %v10099_v47  ;;  %v4889_v31 = vpop.f32.mrf.mxu3 }
 0x8b2   : > { %v10189_v50 = vmax.f32 %v10157_v51, 0.0 }
 0x8b4   : > { %v10221_v48 = vmin.f32 %v10189_v50, 6.0 }
 0x8b5   : > { %v10101_v36 = vpop.f32.mrf.mxu0 }
 0x8b6   : > { %10253 = vst.msk [vmem:[%s17032_s29 + $0x88] sm:$0xff] %vm1319_vm0, %v10221_v48  ;;  %v10102_v9 = vadd.f32 %v10101_v36, %v4877_v14 }
 0x8b8   : > { %v10158_v58 = vadd.f32 %v17001_v54, %v10102_v9  ;;  %v4892_v0 = vpop.f32.mrf.mxu3 }
 0x8ba   : > { %v10190_v26 = vmax.f32 %v10158_v58, 0.0 }
 0x8bc   : > { %v10222_v3 = vmin.f32 %v10190_v26, 6.0 }
 0x8bd   : > { %v10103_v39 = vpop.f32.mrf.mxu0 }
 0x8be   : > { %10254 = vst.msk [vmem:[%s17032_s29 + $0x90] sm:$0xff] %vm1319_vm0, %v10222_v3  ;;  %v10104_v63 = vadd.f32 %v10103_v39, %v4879_v42 }
 0x8c0   : > { %v10159_v18 = vadd.f32 %v17001_v54, %v10104_v63  ;;  %v4894_v40 = vpop.f32.mrf.mxu3 }
 0x8c2   : > { %v10191_v22 = vmax.f32 %v10159_v18, 0.0 }
 0x8c4   : > { %v10223_v41 = vmin.f32 %v10191_v22, 6.0 }
 0x8c5   : > { %v10106_v8 = vpop.f32.mrf.mxu0 }
 0x8c6   : > { %10255 = vst.msk [vmem:[%s17032_s29 + $0x98] sm:$0xff] %vm1319_vm0, %v10223_v41  ;;  %v10107_v2 = vadd.f32 %v10106_v8, %v4882_v49 }
 0x8c8   : > { %v10160_v62 = vadd.f32 %v17001_v54, %v10107_v2  ;;  %v4897_v28 = vpop.f32.mrf.mxu3 }
 0x8ca   : > { %v10192_v4 = vmax.f32 %v10160_v62, 0.0 }
 0x8cc   : > { %v10224_v38 = vmin.f32 %v10192_v4, 6.0 }
 0x8cd   : > { %v10108_v55 = vpop.f32.mrf.mxu0 }
 0x8ce   : > { %10256 = vst.msk [vmem:[%s17032_s29 + $0xa0] sm:$0xff] %vm1319_vm0, %v10224_v38  ;;  %v10109_v21 = vadd.f32 %v10108_v55, %v4884_v32 }
 0x8d0   : > { %v10161_v44 = vadd.f32 %v17001_v54, %v10109_v21  ;;  %v4899_v6 = vpop.f32.mrf.mxu3 }
 0x8d2   : > { %v10193_v46 = vmax.f32 %v10161_v44, 0.0 }
 0x8d4   : > { %v10225_v10 = vmin.f32 %v10193_v46, 6.0 }
 0x8d5   : > { %v10111_v20 = vpop.f32.mrf.mxu0 }
 0x8d6   : > { %10257 = vst.msk [vmem:[%s17032_s29 + $0xa8] sm:$0xff] %vm1319_vm0, %v10225_v10  ;;  %v10112_v15 = vadd.f32 %v10111_v20, %v4887_v61 }
 0x8d8   : > { %v10162_v1 = vadd.f32 %v17001_v54, %v10112_v15  ;;  %v4902_v23 = vpop.f32.mrf.mxu3 }
 0x8da   : > { %v10194_v29 = vmax.f32 %v10162_v1, 0.0 }
 0x8dc   : > { %v10226_v43 = vmin.f32 %v10194_v29, 6.0 }
 0x8dd   : > { %v10113_v56 = vpop.f32.mrf.mxu0 }
 0x8de   : > { %10258 = vst.msk [vmem:[%s17032_s29 + $0xb0] sm:$0xff] %vm1319_vm0, %v10226_v43  ;;  %v10114_v37 = vadd.f32 %v10113_v56, %v4889_v31 }
 0x8e0   : > { %v10163_v33 = vadd.f32 %v17001_v54, %v10114_v37  ;;  %v4904_v48 = vpop.f32.mrf.mxu3 }
 0x8e2   : > { %v10195_v24 = vmax.f32 %v10163_v33, 0.0 }
 0x8e4   : > { %v10227_v60 = vmin.f32 %v10195_v24, 6.0 }
 0x8e5   : > { %v10116_v17 = vpop.f32.mrf.mxu0 }
 0x8e6   : > { %10259 = vst.msk [vmem:[%s17032_s29 + $0xb8] sm:$0xff] %vm1319_vm0, %v10227_v60  ;;  %v10117_v52 = vadd.f32 %v10116_v17, %v4892_v0 }
 0x8e8   : > { %v10164_v27 = vadd.f32 %v17001_v54, %v10117_v52  ;;  %v4907_v39 = vpop.f32.mrf.mxu3 }
 0x8ea   : > { %v10196_v59 = vmax.f32 %v10164_v27, 0.0 }
 0x8ec   : > { %v10228_v13 = vmin.f32 %v10196_v59, 6.0 }
 0x8ed   : > { %v10118_v7 = vpop.f32.mrf.mxu0 }
 0x8ee   : > { %10260 = vst.msk [vmem:[%s17032_s29 + $0xc0] sm:$0xff] %vm1319_vm0, %v10228_v13  ;;  %v10119_v16 = vadd.f32 %v10118_v7, %v4894_v40 }
 0x8f0   : > { %v10165_v45 = vadd.f32 %v17001_v54, %v10119_v16  ;;  %v4909_v2 = vpop.f32.mrf.mxu3 }
 0x8f2   : > { %v10197_v35 = vmax.f32 %v10165_v45, 0.0 }
 0x8f4   : > { %v10229_v25 = vmin.f32 %v10197_v35, 6.0 }
 0x8f5   : > { %v10121_v34 = vpop.f32.mrf.mxu0 }
 0x8f6   : > { %10261 = vst.msk [vmem:[%s17032_s29 + $0xc8] sm:$0xff] %vm1319_vm0, %v10229_v25  ;;  %v10122_v53 = vadd.f32 %v10121_v34, %v4897_v28 }
 0x8f8   : > { %v10166_v14 = vadd.f32 %v17001_v54, %v10122_v53 }
 0x8fa   : > { %v10198_v12 = vmax.f32 %v10166_v14, 0.0 }
 0x8fc   : > { %v10230_v19 = vmin.f32 %v10198_v12, 6.0 }
 0x8fd   : > { %v10123_v11 = vpop.f32.mrf.mxu0 }
 0x8fe   : > { %10262 = vst.msk [vmem:[%s17032_s29 + $0xd0] sm:$0xff] %vm1319_vm0, %v10230_v19  ;;  %v10124_v30 = vadd.f32 %v10123_v11, %v4899_v6 }
 0x900   : > { %v10167_v42 = vadd.f32 %v17001_v54, %v10124_v30 }
 0x902   : > { %v10199_v57 = vmax.f32 %v10167_v42, 0.0 }
 0x904   : > { %v10231_v5 = vmin.f32 %v10199_v57, 6.0 }
 0x906   : > { %10263 = vst.msk [vmem:[%s17032_s29 + $0xd8] sm:$0xff] %vm1319_vm0, %v10231_v5 }
 0x907   : > { %v10126_v47 = vpop.f32.mrf.mxu0 }
 0x908   : > { %v10127_v51 = vadd.f32 %v10126_v47, %v4902_v23 }
 0x90a   : > { %v10168_v50 = vadd.f32 %v17001_v54, %v10127_v51 }
 0x90c   : > { %v10200_v49 = vmax.f32 %v10168_v50, 0.0 }
 0x90e   : > { %v10232_v36 = vmin.f32 %v10200_v49, 6.0 }
 0x90f   : > { %v10128_v9 = vpop.f32.mrf.mxu0 }
 0x910   : > { %10264 = vst.msk [vmem:[%s17032_s29 + $0xe0] sm:$0xff] %vm1319_vm0, %v10232_v36  ;;  %v10129_v58 = vadd.f32 %v10128_v9, %v4904_v48 }
 0x912   : > { %v10169_v26 = vadd.f32 %v17001_v54, %v10129_v58 }
 0x914   : > { %v10201_v3 = vmax.f32 %v10169_v26, 0.0 }
 0x916   : > { %v10233_v32 = vmin.f32 %v10201_v3, 6.0 }
 0x918   : > { %10265 = vst.msk [vmem:[%s17032_s29 + $0xe8] sm:$0xff] %vm1319_vm0, %v10233_v32 }
 0x919   : > { %v10131_v63 = vpop.f32.mrf.mxu0 }
 0x91a   : > { %v10132_v18 = vadd.f32 %v10131_v63, %v4907_v39 }
 0x91c   : > { %v10170_v22 = vadd.f32 %v17001_v54, %v10132_v18 }
 0x91e   : > { %v10202_v41 = vmax.f32 %v10170_v22, 0.0 }
 0x920   : > { %v10234_v8 = vmin.f32 %v10202_v41, 6.0 }
 0x921   : > { %v10133_v61 = vpop.f32.mrf.mxu0 }
 0x922   : > { %10266 = vst.msk [vmem:[%s17032_s29 + $0xf0] sm:$0xff] %vm1319_vm0, %v10234_v8  ;;  %v10134_v62 = vadd.f32 %v10133_v61, %v4909_v2 }
 0x924   : > { %v10171_v4 = vadd.f32 %v17001_v54, %v10134_v62 }
 0x926   : > { %v10203_v38 = vmax.f32 %v10171_v4, 0.0 }
 0x928   : > { %v10235_v55 = vmin.f32 %v10203_v38, 6.0 }
 0x92a   : > { %10267 = vst.msk [vmem:[%s17032_s29 + $0xf8] sm:$0xff] %vm1319_vm0, %v10235_v55 }
 0x92b PF: > { %s32_s17 = sadd.s32 1, %s11429_s17  }
 0x92c   : > { %p29_p4 = scmp.ge.s32.totalorder %s32_s17, 4  }
 0x92e   :  { %31 = sbr.rel (!%p29_p4) target bundleno = 7 (0x7), region = 107 }

</bundles_post_ra>
